<compile_context>
chip_gen: v5e
topology: v5e:2x2
jax: 0.10.0
libtpu: 0.0.40
codegen_flags: <defaults>
</compile_context>

<pallas_src>
import functools

import numpy as np
import jax
import jax.numpy as jnp
from jax import lax
from jax.experimental import pallas as pl
from jax.experimental.pallas import tpu as pltpu


# ---------------------------------------------------------------------------
# Model configuration (small shapes consistent with the module)
# ---------------------------------------------------------------------------
C_IN, C_OUT = 32, 3
C1, C2 = C_IN // 2, C_IN // 8          # 16, 4
LANES = 64                             # widest phase-packed channel width
NUM_STAGES = 7                         # convd1, rb1.c1, rb1.c2, convd2, rb2.c1, rb2.c2, out
HALO_PAD = 16                          # scratch margin rows (> row_stride + 1)


# ---------------------------------------------------------------------------
# The single fused Pallas kernel
# ---------------------------------------------------------------------------
def _fused_kernel(x_ref, w_ref, b_ref, m_ref, o_ref, buf, *, n_rows, row_stride):
    # x_ref : (n_rows, L)   f32   zero-halo-padded, lane-padded input (base grid)
    # w_ref : (7, 9, L, L)  bf16  per-stage, per-shift block-packed weights
    # b_ref : (7, L)        f32   per-stage phase-tiled biases
    # m_ref : (n_rows, 1)   f32   interior mask (1 on the 8x8 grid, 0 on halo)
    # o_ref : (n_rows, L)   f32   final activation, phase-wide layout
    # buf   : VMEM scratch (n_rows + 2*HALO_PAD, L) f32
    lanes = x_ref.shape[-1]
    buf[...] = jnp.zeros_like(buf)                       # zero halo margins once
    mask = m_ref[...]                                    # (n_rows, 1)
    shifts = tuple(dr * row_stride + dc for dr in (-1, 0, 1) for dc in (-1, 0, 1))

    def conv_stage(stage, act):
        # act: (n_rows, lanes) f32 with zero halo rows.
        buf[HALO_PAD:HALO_PAD + n_rows, :] = act
        acc = jnp.zeros((n_rows, lanes), jnp.float32)
        for t, sh in enumerate(shifts):
            lo = HALO_PAD + sh
            xs = buf[lo:lo + n_rows, :]                  # shifted neighbourhood
            acc = acc + jnp.dot(xs.astype(jnp.bfloat16), w_ref[stage, t],
                                preferred_element_type=jnp.float32)
        return (acc + b_ref[stage:stage + 1, :]) * mask  # bias + keep halo at 0

    x = x_ref[...]
    y1 = conv_stage(0, x)                                # convd1 (ConvT 4x4 s2 p1)
    t1 = jnp.maximum(conv_stage(1, y1), 0.0)             # dense1.conv1 + relu
    x2 = 2.0 * y1 + 0.1 * conv_stage(2, t1)              # dense1(y1) + convd1(x)
    y2 = conv_stage(3, x2)                               # convd2
    t2 = jnp.maximum(conv_stage(4, y2), 0.0)             # dense2.conv1 + relu
    x3 = 2.0 * y2 + 0.1 * conv_stage(5, t2)              # dense2(y2) + convd2(x2)
    o_ref[...] = jnp.tanh(conv_stage(6, x3))             # conv_output + tanh


# ---------------------------------------------------------------------------
# Wrapper: layout in / pallas_call / layout out
# ---------------------------------------------------------------------------
def output_layer_forward(x, w_packed, b_packed, mask):
    """x: (N, H, W, C_IN) NHWC  ->  (N, 4H, 4W, C_OUT)."""
    n, hb, wb, cin = x.shape
    row_stride = wb + 2
    n_rows = (hb + 2) * row_stride
    assert HALO_PAD > row_stride + 1

    # phase-wide base-grid input: zero spatial halo + zero lane padding
    xw = jnp.pad(x, ((0, 0), (1, 1), (1, 1), (0, LANES - cin)))
    xw = xw.reshape(n, n_rows, LANES)

    kern = functools.partial(_fused_kernel, n_rows=n_rows, row_stride=row_stride)
    ow = pl.pallas_call(
        kern,
        out_shape=jax.ShapeDtypeStruct((n, n_rows, LANES), jnp.float32),
        grid=(n,),
        in_specs=[
            pl.BlockSpec((None, n_rows, LANES), lambda i: (i, 0, 0)),
            pl.BlockSpec((NUM_STAGES, 9, LANES, LANES), lambda i: (0, 0, 0, 0)),
            pl.BlockSpec((NUM_STAGES, LANES), lambda i: (0, 0)),
            pl.BlockSpec((n_rows, 1), lambda i: (0, 0)),
        ],
        out_specs=pl.BlockSpec((None, n_rows, LANES), lambda i: (i, 0, 0)),
        scratch_shapes=[pltpu.VMEM((n_rows + 2 * HALO_PAD, LANES), jnp.float32)],
        compiler_params=pltpu.CompilerParams(dimension_semantics=("parallel",)),
    )(xw, w_packed, b_packed, mask)

    # unpack phase-wide layout -> NHWC raster at 4x resolution
    u = 4
    o = ow[:, :, :u * u * C_OUT].reshape(n, hb + 2, wb + 2, u, u, C_OUT)
    o = o[:, 1:hb + 1, 1:wb + 1]
    return jnp.transpose(o, (0, 1, 3, 2, 4, 5)).reshape(n, u * hb, u * wb, C_OUT)


# ---------------------------------------------------------------------------
# Host-side weight packing (plain numpy, done once)
# ---------------------------------------------------------------------------
def _pad_lanes(m):
    out = np.zeros((9, LANES, LANES), np.float32)
    out[:, :m.shape[1], :m.shape[2]] = m
    return out


def _pack_conv3x3(w_pt, u):
    # PyTorch Conv2d weight (Cout, Cin, 3, 3) at upsample factor u.
    cout, cin = w_pt.shape[0], w_pt.shape[1]
    k = np.transpose(np.asarray(w_pt), (2, 3, 1, 0))              # (3,3,Cin,Cout)
    m = np.zeros((3, 3, u * u * cin, u * u * cout), np.float32)
    for r in range(u):
        for s in range(u):
            ob = r * u + s
            for a in range(3):
                v = r + (a - 1); dr = v // u; rp = v % u
                for b in range(3):
                    q = s + (b - 1); dc = q // u; sp = q % u
                    ib = rp * u + sp
                    m[dr + 1, dc + 1,
                      ib * cin:(ib + 1) * cin, ob * cout:(ob + 1) * cout] = k[a, b]
    return _pad_lanes(m.reshape(9, u * u * cin, u * u * cout))


def _pack_convT4x4s2(w_pt, u):
    # PyTorch ConvTranspose2d weight (Cin, Cout, 4, 4), factor u -> 2u (sub-pixel).
    cin, cout = w_pt.shape[0], w_pt.shape[1]
    f = np.transpose(np.asarray(w_pt)[:, :, ::-1, ::-1], (2, 3, 0, 1))  # flipped
    uu = 2 * u
    tab = {0: ((-1, 0), (0, 2)), 1: ((0, 1), (1, 3))}             # parity -> ((shift, tap),...)
    m = np.zeros((3, 3, u * u * cin, uu * uu * cout), np.float32)
    for R in range(uu):
        r, rho = R // 2, R % 2
        for S in range(uu):
            s, sig = S // 2, S % 2
            ob = R * uu + S
            for (da, i) in tab[rho]:
                v = r + da; dr = v // u; rp = v % u
                for (db, j) in tab[sig]:
                    q = s + db; dc = q // u; sp = q % u
                    ib = rp * u + sp
                    m[dr + 1, dc + 1,
                      ib * cin:(ib + 1) * cin, ob * cout:(ob + 1) * cout] = f[i, j]
    return _pad_lanes(m.reshape(9, u * u * cin, uu * uu * cout))


def _pack_bias(b, u_out):
    wide = np.tile(np.asarray(b), u_out * u_out)
    out = np.zeros((LANES,), np.float32)
    out[:wide.shape[0]] = wide
    return out


def pack_params(p):
    assert max(C_IN, 4 * C1, 16 * C2, 16 * C_OUT) <= LANES
    w = np.stack([
        _pack_convT4x4s2(p["convd1_w"], 1),
        _pack_conv3x3(p["d1_c1_w"], 2),
        _pack_conv3x3(p["d1_c2_w"], 2),
        _pack_convT4x4s2(p["convd2_w"], 2),
        _pack_conv3x3(p["d2_c1_w"], 4),
        _pack_conv3x3(p["d2_c2_w"], 4),
        _pack_conv3x3(p["out_w"], 4),
    ])
    b = np.stack([
        _pack_bias(p["convd1_b"], 2), _pack_bias(p["d1_c1_b"], 2),
        _pack_bias(p["d1_c2_b"], 2), _pack_bias(p["convd2_b"], 4),
        _pack_bias(p["d2_c1_b"], 4), _pack_bias(p["d2_c2_b"], 4),
        _pack_bias(p["out_b"], 4),
    ])
    return jnp.asarray(w, jnp.bfloat16), jnp.asarray(b, jnp.float32)


def make_mask(hb, wb):
    m = np.zeros((hb + 2, wb + 2), np.float32)
    m[1:-1, 1:-1] = 1.0
    return jnp.asarray(m.reshape((hb + 2) * (wb + 2), 1))


# ---------------------------------------------------------------------------
# Deterministic parameters (PyTorch layouts) and a plain-JAX reference
# ---------------------------------------------------------------------------
def make_params(key):
    ks = iter(jax.random.split(key, 16))

    def norm(shape):
        return jax.random.normal(next(ks), shape, jnp.float32) * 0.05

    return {
        "convd1_w": norm((C_IN, C1, 4, 4)), "convd1_b": norm((C1,)),
        "d1_c1_w": norm((C1, C1, 3, 3)),    "d1_c1_b": norm((C1,)),
        "d1_c2_w": norm((C1, C1, 3, 3)),    "d1_c2_b": norm((C1,)),
        "convd2_w": norm((C1, C2, 4, 4)),   "convd2_b": norm((C2,)),
        "d2_c1_w": norm((C2, C2, 3, 3)),    "d2_c1_b": norm((C2,)),
        "d2_c2_w": norm((C2, C2, 3, 3)),    "d2_c2_b": norm((C2,)),
        "out_w": norm((C_OUT, C2, 3, 3)),   "out_b": norm((C_OUT,)),
    }


def reference_forward(x, p):
    dn = ("NHWC", "HWIO", "NHWC")

    def conv(z, w_pt, b):
        w = jnp.transpose(w_pt, (2, 3, 1, 0))
        return lax.conv_general_dilated(z, w, (1, 1), [(1, 1), (1, 1)],
                                        dimension_numbers=dn) + b

    def convt(z, w_pt, b):
        w = jnp.transpose(w_pt[:, :, ::-1, ::-1], (2, 3, 0, 1))
        return lax.conv_general_dilated(z, w, (1, 1), [(2, 2), (2, 2)],
                                        lhs_dilation=(2, 2), dimension_numbers=dn) + b

    y1 = convt(x, p["convd1_w"], p["convd1_b"])
    t = jax.nn.relu(conv(y1, p["d1_c1_w"], p["d1_c1_b"]))
    x2 = 2.0 * y1 + 0.1 * conv(t, p["d1_c2_w"], p["d1_c2_b"])
    y2 = convt(x2, p["convd2_w"], p["convd2_b"])
    t = jax.nn.relu(conv(y2, p["d2_c1_w"], p["d2_c1_b"]))
    x3 = 2.0 * y2 + 0.1 * conv(t, p["d2_c2_w"], p["d2_c2_b"])
    return jnp.tanh(conv(x3, p["out_w"], p["out_b"]))


if __name__ == "__main__":
    key = jax.random.PRNGKey(0)
    kp, kx = jax.random.split(key)

    N, H, W = 2, 8, 8
    params = make_params(kp)
    x = jax.random.normal(kx, (N, H, W, C_IN), jnp.float32)          # NHWC

    w_packed, b_packed = pack_params(params)
    mask = make_mask(H, W)

    fwd = jax.jit(output_layer_forward)
    out = jax.block_until_ready(fwd(x, w_packed, b_packed, mask))

    assert out.shape == (N, 4 * H, 4 * W, C_OUT), out.shape
    assert bool(jnp.all(jnp.isfinite(out)))
    assert bool(jnp.all(jnp.abs(out) <= 1.0))                        # tanh range

    ref = reference_forward(x, params)                               # f32 reference
    assert float(jnp.max(jnp.abs(out - ref))) < 8e-2                 # bf16-dot tolerance
    print("KERNEL_OK")
</pallas_src>

<mosaic_0001>
module attributes {stable_mosaic.version = 11 : i64} {
  func.func @_fused_kernel(%arg0: i32, %arg1: memref<1x100x64xf32, #tpu.memory_space<vmem>>, %arg2: memref<7x9x64x64xbf16, #tpu.memory_space<vmem>>, %arg3: memref<7x64xf32, #tpu.memory_space<vmem>>, %arg4: memref<100x1xf32, #tpu.memory_space<vmem>>, %arg5: memref<1x100x64xf32, #tpu.memory_space<vmem>>, %arg6: memref<132x64xf32, #tpu.memory_space<vmem>>) attributes {dimension_semantics = [#tpu.dimension_semantics<parallel>], iteration_bounds = array<i64: 2>, scalar_prefetch = 0 : i64, scratch_operands = 1 : i64, tpu.core_type = #tpu.core_type<tc>, window_params = [{transform_indices = @transform_0, window_bounds = array<i64: 1, 100, 64>}, {pipeline_mode = #tpu.pipeline_mode<synchronous>, transform_indices = @transform_1, window_bounds = array<i64: 7, 9, 64, 64>}, {pipeline_mode = #tpu.pipeline_mode<synchronous>, transform_indices = @transform_2, window_bounds = array<i64: 7, 64>}, {pipeline_mode = #tpu.pipeline_mode<synchronous>, transform_indices = @transform_3, window_bounds = array<i64: 100, 1>}, {transform_indices = @transform_4, window_bounds = array<i64: 1, 100, 64>}]} {
    %cst = arith.constant 0.000000e+00 : f32
    %0 = vector.broadcast %cst : f32 to vector<132x64xf32>
    %c0 = arith.constant 0 : index
    %c0_0 = arith.constant 0 : index
    %1 = vector.load %arg6[%c0, %c0_0] : memref<132x64xf32, #tpu.memory_space<vmem>>, vector<132x64xf32>
    tpu.vector_store %arg6[%c0, %c0_0], %0 {strides = array<i32>} : memref<132x64xf32, #tpu.memory_space<vmem>>, vector<132x64xf32>,
    %c0_1 = arith.constant 0 : index
    %c0_2 = arith.constant 0 : index
    %2 = vector.load %arg4[%c0_1, %c0_2] : memref<100x1xf32, #tpu.memory_space<vmem>>, vector<100x1xf32>
    %c0_3 = arith.constant 0 : index
    %c0_4 = arith.constant 0 : index
    %c0_5 = arith.constant 0 : index
    %3 = vector.load %arg1[%c0_3, %c0_4, %c0_5] : memref<1x100x64xf32, #tpu.memory_space<vmem>>, vector<1x100x64xf32>
    %4 = vector.shape_cast %3 : vector<1x100x64xf32> to vector<100x64xf32>
    %c16 = arith.constant 16 : index
    %c0_6 = arith.constant 0 : index
    %5 = vector.load %arg6[%c16, %c0_6] : memref<132x64xf32, #tpu.memory_space<vmem>>, vector<100x64xf32>
    tpu.vector_store %arg6[%c16, %c0_6], %4 {strides = array<i32>} : memref<132x64xf32, #tpu.memory_space<vmem>>, vector<100x64xf32>,
    %cst_7 = arith.constant 0.000000e+00 : f32
    %6 = vector.broadcast %cst_7 : f32 to vector<100x64xf32>
    %c5 = arith.constant 5 : index
    %c0_8 = arith.constant 0 : index
    %7 = vector.load %arg6[%c5, %c0_8] : memref<132x64xf32, #tpu.memory_space<vmem>>, vector<100x64xf32>
    %8 = arith.truncf %7 : vector<100x64xf32> to vector<100x64xbf16>
    %c0_9 = arith.constant 0 : index
    %c0_10 = arith.constant 0 : index
    %c0_11 = arith.constant 0 : index
    %c0_12 = arith.constant 0 : index
    %9 = vector.load %arg2[%c0_9, %c0_10, %c0_11, %c0_12] : memref<7x9x64x64xbf16, #tpu.memory_space<vmem>>, vector<1x1x64x64xbf16>
    %10 = vector.shape_cast %9 : vector<1x1x64x64xbf16> to vector<64x64xbf16>
    %cst_13 = arith.constant dense<0.000000e+00> : vector<100x64xf32>
    %11 = tpu.matmul %8, %10, %cst_13 {dimension_numbers = #tpu.dot_dimension_numbers<[1], [0], [0], [1], [0, 0, 1, 1], [], []>} : vector<100x64xbf16>, vector<64x64xbf16>, vector<100x64xf32> -> vector<100x64xf32>
    %12 = arith.addf %6, %11 : vector<100x64xf32>
    %c6 = arith.constant 6 : index
    %c0_14 = arith.constant 0 : index
    %13 = vector.load %arg6[%c6, %c0_14] : memref<132x64xf32, #tpu.memory_space<vmem>>, vector<100x64xf32>
    %14 = arith.truncf %13 : vector<100x64xf32> to vector<100x64xbf16>
    %c0_15 = arith.constant 0 : index
    %c1 = arith.constant 1 : index
    %c0_16 = arith.constant 0 : index
    %c0_17 = arith.constant 0 : index
    %15 = vector.load %arg2[%c0_15, %c1, %c0_16, %c0_17] : memref<7x9x64x64xbf16, #tpu.memory_space<vmem>>, vector<1x1x64x64xbf16>
    %16 = vector.shape_cast %15 : vector<1x1x64x64xbf16> to vector<64x64xbf16>
    %cst_18 = arith.constant dense<0.000000e+00> : vector<100x64xf32>
    %17 = tpu.matmul %14, %16, %cst_18 {dimension_numbers = #tpu.dot_dimension_numbers<[1], [0], [0], [1], [0, 0, 1, 1], [], []>} : vector<100x64xbf16>, vector<64x64xbf16>, vector<100x64xf32> -> vector<100x64xf32>
    %18 = arith.addf %12, %17 : vector<100x64xf32>
    %c7 = arith.constant 7 : index
    %c0_19 = arith.constant 0 : index
    %19 = vector.load %arg6[%c7, %c0_19] : memref<132x64xf32, #tpu.memory_space<vmem>>, vector<100x64xf32>
    %20 = arith.truncf %19 : vector<100x64xf32> to vector<100x64xbf16>
    %c0_20 = arith.constant 0 : index
    %c2 = arith.constant 2 : index
    %c0_21 = arith.constant 0 : index
    %c0_22 = arith.constant 0 : index
    %21 = vector.load %arg2[%c0_20, %c2, %c0_21, %c0_22] : memref<7x9x64x64xbf16, #tpu.memory_space<vmem>>, vector<1x1x64x64xbf16>
    %22 = vector.shape_cast %21 : vector<1x1x64x64xbf16> to vector<64x64xbf16>
    %cst_23 = arith.constant dense<0.000000e+00> : vector<100x64xf32>
    %23 = tpu.matmul %20, %22, %cst_23 {dimension_numbers = #tpu.dot_dimension_numbers<[1], [0], [0], [1], [0, 0, 1, 1], [], []>} : vector<100x64xbf16>, vector<64x64xbf16>, vector<100x64xf32> -> vector<100x64xf32>
    %24 = arith.addf %18, %23 : vector<100x64xf32>
    %c15 = arith.constant 15 : index
    %c0_24 = arith.constant 0 : index
    %25 = vector.load %arg6[%c15, %c0_24] : memref<132x64xf32, #tpu.memory_space<vmem>>, vector<100x64xf32>
    %26 = arith.truncf %25 : vector<100x64xf32> to vector<100x64xbf16>
    %c0_25 = arith.constant 0 : index
    %c3 = arith.constant 3 : index
    %c0_26 = arith.constant 0 : index
    %c0_27 = arith.constant 0 : index
    %27 = vector.load %arg2[%c0_25, %c3, %c0_26, %c0_27] : memref<7x9x64x64xbf16, #tpu.memory_space<vmem>>, vector<1x1x64x64xbf16>
    %28 = vector.shape_cast %27 : vector<1x1x64x64xbf16> to vector<64x64xbf16>
    %cst_28 = arith.constant dense<0.000000e+00> : vector<100x64xf32>
    %29 = tpu.matmul %26, %28, %cst_28 {dimension_numbers = #tpu.dot_dimension_numbers<[1], [0], [0], [1], [0, 0, 1, 1], [], []>} : vector<100x64xbf16>, vector<64x64xbf16>, vector<100x64xf32> -> vector<100x64xf32>
    %30 = arith.addf %24, %29 : vector<100x64xf32>
    %c16_29 = arith.constant 16 : index
    %c0_30 = arith.constant 0 : index
    %31 = vector.load %arg6[%c16_29, %c0_30] : memref<132x64xf32, #tpu.memory_space<vmem>>, vector<100x64xf32>
    %32 = arith.truncf %31 : vector<100x64xf32> to vector<100x64xbf16>
    %c0_31 = arith.constant 0 : index
    %c4 = arith.constant 4 : index
    %c0_32 = arith.constant 0 : index
    %c0_33 = arith.constant 0 : index
    %33 = vector.load %arg2[%c0_31, %c4, %c0_32, %c0_33] : memref<7x9x64x64xbf16, #tpu.memory_space<vmem>>, vector<1x1x64x64xbf16>
    %34 = vector.shape_cast %33 : vector<1x1x64x64xbf16> to vector<64x64xbf16>
    %cst_34 = arith.constant dense<0.000000e+00> : vector<100x64xf32>
    %35 = tpu.matmul %32, %34, %cst_34 {dimension_numbers = #tpu.dot_dimension_numbers<[1], [0], [0], [1], [0, 0, 1, 1], [], []>} : vector<100x64xbf16>, vector<64x64xbf16>, vector<100x64xf32> -> vector<100x64xf32>
    %36 = arith.addf %30, %35 : vector<100x64xf32>
    %c17 = arith.constant 17 : index
    %c0_35 = arith.constant 0 : index
    %37 = vector.load %arg6[%c17, %c0_35] : memref<132x64xf32, #tpu.memory_space<vmem>>, vector<100x64xf32>
    %38 = arith.truncf %37 : vector<100x64xf32> to vector<100x64xbf16>
    %c0_36 = arith.constant 0 : index
    %c5_37 = arith.constant 5 : index
    %c0_38 = arith.constant 0 : index
    %c0_39 = arith.constant 0 : index
    %39 = vector.load %arg2[%c0_36, %c5_37, %c0_38, %c0_39] : memref<7x9x64x64xbf16, #tpu.memory_space<vmem>>, vector<1x1x64x64xbf16>
    %40 = vector.shape_cast %39 : vector<1x1x64x64xbf16> to vector<64x64xbf16>
    %cst_40 = arith.constant dense<0.000000e+00> : vector<100x64xf32>
    %41 = tpu.matmul %38, %40, %cst_40 {dimension_numbers = #tpu.dot_dimension_numbers<[1], [0], [0], [1], [0, 0, 1, 1], [], []>} : vector<100x64xbf16>, vector<64x64xbf16>, vector<100x64xf32> -> vector<100x64xf32>
    %42 = arith.addf %36, %41 : vector<100x64xf32>
    %c25 = arith.constant 25 : index
    %c0_41 = arith.constant 0 : index
    %43 = vector.load %arg6[%c25, %c0_41] : memref<132x64xf32, #tpu.memory_space<vmem>>, vector<100x64xf32>
    %44 = arith.truncf %43 : vector<100x64xf32> to vector<100x64xbf16>
    %c0_42 = arith.constant 0 : index
    %c6_43 = arith.constant 6 : index
    %c0_44 = arith.constant 0 : index
    %c0_45 = arith.constant 0 : index
    %45 = vector.load %arg2[%c0_42, %c6_43, %c0_44, %c0_45] : memref<7x9x64x64xbf16, #tpu.memory_space<vmem>>, vector<1x1x64x64xbf16>
    %46 = vector.shape_cast %45 : vector<1x1x64x64xbf16> to vector<64x64xbf16>
    %cst_46 = arith.constant dense<0.000000e+00> : vector<100x64xf32>
    %47 = tpu.matmul %44, %46, %cst_46 {dimension_numbers = #tpu.dot_dimension_numbers<[1], [0], [0], [1], [0, 0, 1, 1], [], []>} : vector<100x64xbf16>, vector<64x64xbf16>, vector<100x64xf32> -> vector<100x64xf32>
    %48 = arith.addf %42, %47 : vector<100x64xf32>
    %c26 = arith.constant 26 : index
    %c0_47 = arith.constant 0 : index
    %49 = vector.load %arg6[%c26, %c0_47] : memref<132x64xf32, #tpu.memory_space<vmem>>, vector<100x64xf32>
    %50 = arith.truncf %49 : vector<100x64xf32> to vector<100x64xbf16>
    %c0_48 = arith.constant 0 : index
    %c7_49 = arith.constant 7 : index
    %c0_50 = arith.constant 0 : index
    %c0_51 = arith.constant 0 : index
    %51 = vector.load %arg2[%c0_48, %c7_49, %c0_50, %c0_51] : memref<7x9x64x64xbf16, #tpu.memory_space<vmem>>, vector<1x1x64x64xbf16>
    %52 = vector.shape_cast %51 : vector<1x1x64x64xbf16> to vector<64x64xbf16>
    %cst_52 = arith.constant dense<0.000000e+00> : vector<100x64xf32>
    %53 = tpu.matmul %50, %52, %cst_52 {dimension_numbers = #tpu.dot_dimension_numbers<[1], [0], [0], [1], [0, 0, 1, 1], [], []>} : vector<100x64xbf16>, vector<64x64xbf16>, vector<100x64xf32> -> vector<100x64xf32>
    %54 = arith.addf %48, %53 : vector<100x64xf32>
    %c27 = arith.constant 27 : index
    %c0_53 = arith.constant 0 : index
    %55 = vector.load %arg6[%c27, %c0_53] : memref<132x64xf32, #tpu.memory_space<vmem>>, vector<100x64xf32>
    %56 = arith.truncf %55 : vector<100x64xf32> to vector<100x64xbf16>
    %c0_54 = arith.constant 0 : index
    %c8 = arith.constant 8 : index
    %c0_55 = arith.constant 0 : index
    %c0_56 = arith.constant 0 : index
    %57 = vector.load %arg2[%c0_54, %c8, %c0_55, %c0_56] : memref<7x9x64x64xbf16, #tpu.memory_space<vmem>>, vector<1x1x64x64xbf16>
    %58 = vector.shape_cast %57 : vector<1x1x64x64xbf16> to vector<64x64xbf16>
    %cst_57 = arith.constant dense<0.000000e+00> : vector<100x64xf32>
    %59 = tpu.matmul %56, %58, %cst_57 {dimension_numbers = #tpu.dot_dimension_numbers<[1], [0], [0], [1], [0, 0, 1, 1], [], []>} : vector<100x64xbf16>, vector<64x64xbf16>, vector<100x64xf32> -> vector<100x64xf32>
    %60 = arith.addf %54, %59 : vector<100x64xf32>
    %c0_58 = arith.constant 0 : index
    %c0_59 = arith.constant 0 : index
    %61 = vector.load %arg3[%c0_58, %c0_59] : memref<7x64xf32, #tpu.memory_space<vmem>>, vector<1x64xf32>
    %62 = vector.broadcast %61 : vector<1x64xf32> to vector<100x64xf32>
    %63 = arith.addf %60, %62 : vector<100x64xf32>
    %64 = vector.broadcast %2 : vector<100x1xf32> to vector<100x64xf32>
    %65 = arith.mulf %63, %64 : vector<100x64xf32>
    %c16_60 = arith.constant 16 : index
    %c0_61 = arith.constant 0 : index
    %66 = vector.load %arg6[%c16_60, %c0_61] : memref<132x64xf32, #tpu.memory_space<vmem>>, vector<100x64xf32>
    tpu.vector_store %arg6[%c16_60, %c0_61], %65 {strides = array<i32>} : memref<132x64xf32, #tpu.memory_space<vmem>>, vector<100x64xf32>,
    %cst_62 = arith.constant 0.000000e+00 : f32
    %67 = vector.broadcast %cst_62 : f32 to vector<100x64xf32>
    %c5_63 = arith.constant 5 : index
    %c0_64 = arith.constant 0 : index
    %68 = vector.load %arg6[%c5_63, %c0_64] : memref<132x64xf32, #tpu.memory_space<vmem>>, vector<100x64xf32>
    %69 = arith.truncf %68 : vector<100x64xf32> to vector<100x64xbf16>
    %c1_65 = arith.constant 1 : index
    %c0_66 = arith.constant 0 : index
    %c0_67 = arith.constant 0 : index
    %c0_68 = arith.constant 0 : index
    %70 = vector.load %arg2[%c1_65, %c0_66, %c0_67, %c0_68] : memref<7x9x64x64xbf16, #tpu.memory_space<vmem>>, vector<1x1x64x64xbf16>
    %71 = vector.shape_cast %70 : vector<1x1x64x64xbf16> to vector<64x64xbf16>
    %cst_69 = arith.constant dense<0.000000e+00> : vector<100x64xf32>
    %72 = tpu.matmul %69, %71, %cst_69 {dimension_numbers = #tpu.dot_dimension_numbers<[1], [0], [0], [1], [0, 0, 1, 1], [], []>} : vector<100x64xbf16>, vector<64x64xbf16>, vector<100x64xf32> -> vector<100x64xf32>
    %73 = arith.addf %67, %72 : vector<100x64xf32>
    %c6_70 = arith.constant 6 : index
    %c0_71 = arith.constant 0 : index
    %74 = vector.load %arg6[%c6_70, %c0_71] : memref<132x64xf32, #tpu.memory_space<vmem>>, vector<100x64xf32>
    %75 = arith.truncf %74 : vector<100x64xf32> to vector<100x64xbf16>
    %c1_72 = arith.constant 1 : index
    %c1_73 = arith.constant 1 : index
    %c0_74 = arith.constant 0 : index
    %c0_75 = arith.constant 0 : index
    %76 = vector.load %arg2[%c1_72, %c1_73, %c0_74, %c0_75] : memref<7x9x64x64xbf16, #tpu.memory_space<vmem>>, vector<1x1x64x64xbf16>
    %77 = vector.shape_cast %76 : vector<1x1x64x64xbf16> to vector<64x64xbf16>
    %cst_76 = arith.constant dense<0.000000e+00> : vector<100x64xf32>
    %78 = tpu.matmul %75, %77, %cst_76 {dimension_numbers = #tpu.dot_dimension_numbers<[1], [0], [0], [1], [0, 0, 1, 1], [], []>} : vector<100x64xbf16>, vector<64x64xbf16>, vector<100x64xf32> -> vector<100x64xf32>
    %79 = arith.addf %73, %78 : vector<100x64xf32>
    %c7_77 = arith.constant 7 : index
    %c0_78 = arith.constant 0 : index
    %80 = vector.load %arg6[%c7_77, %c0_78] : memref<132x64xf32, #tpu.memory_space<vmem>>, vector<100x64xf32>
    %81 = arith.truncf %80 : vector<100x64xf32> to vector<100x64xbf16>
    %c1_79 = arith.constant 1 : index
    %c2_80 = arith.constant 2 : index
    %c0_81 = arith.constant 0 : index
    %c0_82 = arith.constant 0 : index
    %82 = vector.load %arg2[%c1_79, %c2_80, %c0_81, %c0_82] : memref<7x9x64x64xbf16, #tpu.memory_space<vmem>>, vector<1x1x64x64xbf16>
    %83 = vector.shape_cast %82 : vector<1x1x64x64xbf16> to vector<64x64xbf16>
    %cst_83 = arith.constant dense<0.000000e+00> : vector<100x64xf32>
    %84 = tpu.matmul %81, %83, %cst_83 {dimension_numbers = #tpu.dot_dimension_numbers<[1], [0], [0], [1], [0, 0, 1, 1], [], []>} : vector<100x64xbf16>, vector<64x64xbf16>, vector<100x64xf32> -> vector<100x64xf32>
    %85 = arith.addf %79, %84 : vector<100x64xf32>
    %c15_84 = arith.constant 15 : index
    %c0_85 = arith.constant 0 : index
    %86 = vector.load %arg6[%c15_84, %c0_85] : memref<132x64xf32, #tpu.memory_space<vmem>>, vector<100x64xf32>
    %87 = arith.truncf %86 : vector<100x64xf32> to vector<100x64xbf16>
    %c1_86 = arith.constant 1 : index
    %c3_87 = arith.constant 3 : index
    %c0_88 = arith.constant 0 : index
    %c0_89 = arith.constant 0 : index
    %88 = vector.load %arg2[%c1_86, %c3_87, %c0_88, %c0_89] : memref<7x9x64x64xbf16, #tpu.memory_space<vmem>>, vector<1x1x64x64xbf16>
    %89 = vector.shape_cast %88 : vector<1x1x64x64xbf16> to vector<64x64xbf16>
    %cst_90 = arith.constant dense<0.000000e+00> : vector<100x64xf32>
    %90 = tpu.matmul %87, %89, %cst_90 {dimension_numbers = #tpu.dot_dimension_numbers<[1], [0], [0], [1], [0, 0, 1, 1], [], []>} : vector<100x64xbf16>, vector<64x64xbf16>, vector<100x64xf32> -> vector<100x64xf32>
    %91 = arith.addf %85, %90 : vector<100x64xf32>
    %c16_91 = arith.constant 16 : index
    %c0_92 = arith.constant 0 : index
    %92 = vector.load %arg6[%c16_91, %c0_92] : memref<132x64xf32, #tpu.memory_space<vmem>>, vector<100x64xf32>
    %93 = arith.truncf %92 : vector<100x64xf32> to vector<100x64xbf16>
    %c1_93 = arith.constant 1 : index
    %c4_94 = arith.constant 4 : index
    %c0_95 = arith.constant 0 : index
    %c0_96 = arith.constant 0 : index
    %94 = vector.load %arg2[%c1_93, %c4_94, %c0_95, %c0_96] : memref<7x9x64x64xbf16, #tpu.memory_space<vmem>>, vector<1x1x64x64xbf16>
    %95 = vector.shape_cast %94 : vector<1x1x64x64xbf16> to vector<64x64xbf16>
    %cst_97 = arith.constant dense<0.000000e+00> : vector<100x64xf32>
    %96 = tpu.matmul %93, %95, %cst_97 {dimension_numbers = #tpu.dot_dimension_numbers<[1], [0], [0], [1], [0, 0, 1, 1], [], []>} : vector<100x64xbf16>, vector<64x64xbf16>, vector<100x64xf32> -> vector<100x64xf32>
    %97 = arith.addf %91, %96 : vector<100x64xf32>
    %c17_98 = arith.constant 17 : index
    %c0_99 = arith.constant 0 : index
    %98 = vector.load %arg6[%c17_98, %c0_99] : memref<132x64xf32, #tpu.memory_space<vmem>>, vector<100x64xf32>
    %99 = arith.truncf %98 : vector<100x64xf32> to vector<100x64xbf16>
    %c1_100 = arith.constant 1 : index
    %c5_101 = arith.constant 5 : index
    %c0_102 = arith.constant 0 : index
    %c0_103 = arith.constant 0 : index
    %100 = vector.load %arg2[%c1_100, %c5_101, %c0_102, %c0_103] : memref<7x9x64x64xbf16, #tpu.memory_space<vmem>>, vector<1x1x64x64xbf16>
    %101 = vector.shape_cast %100 : vector<1x1x64x64xbf16> to vector<64x64xbf16>
    %cst_104 = arith.constant dense<0.000000e+00> : vector<100x64xf32>
    %102 = tpu.matmul %99, %101, %cst_104 {dimension_numbers = #tpu.dot_dimension_numbers<[1], [0], [0], [1], [0, 0, 1, 1], [], []>} : vector<100x64xbf16>, vector<64x64xbf16>, vector<100x64xf32> -> vector<100x64xf32>
    %103 = arith.addf %97, %102 : vector<100x64xf32>
    %c25_105 = arith.constant 25 : index
    %c0_106 = arith.constant 0 : index
    %104 = vector.load %arg6[%c25_105, %c0_106] : memref<132x64xf32, #tpu.memory_space<vmem>>, vector<100x64xf32>
    %105 = arith.truncf %104 : vector<100x64xf32> to vector<100x64xbf16>
    %c1_107 = arith.constant 1 : index
    %c6_108 = arith.constant 6 : index
    %c0_109 = arith.constant 0 : index
    %c0_110 = arith.constant 0 : index
    %106 = vector.load %arg2[%c1_107, %c6_108, %c0_109, %c0_110] : memref<7x9x64x64xbf16, #tpu.memory_space<vmem>>, vector<1x1x64x64xbf16>
    %107 = vector.shape_cast %106 : vector<1x1x64x64xbf16> to vector<64x64xbf16>
    %cst_111 = arith.constant dense<0.000000e+00> : vector<100x64xf32>
    %108 = tpu.matmul %105, %107, %cst_111 {dimension_numbers = #tpu.dot_dimension_numbers<[1], [0], [0], [1], [0, 0, 1, 1], [], []>} : vector<100x64xbf16>, vector<64x64xbf16>, vector<100x64xf32> -> vector<100x64xf32>
    %109 = arith.addf %103, %108 : vector<100x64xf32>
    %c26_112 = arith.constant 26 : index
    %c0_113 = arith.constant 0 : index
    %110 = vector.load %arg6[%c26_112, %c0_113] : memref<132x64xf32, #tpu.memory_space<vmem>>, vector<100x64xf32>
    %111 = arith.truncf %110 : vector<100x64xf32> to vector<100x64xbf16>
    %c1_114 = arith.constant 1 : index
    %c7_115 = arith.constant 7 : index
    %c0_116 = arith.constant 0 : index
    %c0_117 = arith.constant 0 : index
    %112 = vector.load %arg2[%c1_114, %c7_115, %c0_116, %c0_117] : memref<7x9x64x64xbf16, #tpu.memory_space<vmem>>, vector<1x1x64x64xbf16>
    %113 = vector.shape_cast %112 : vector<1x1x64x64xbf16> to vector<64x64xbf16>
    %cst_118 = arith.constant dense<0.000000e+00> : vector<100x64xf32>
    %114 = tpu.matmul %111, %113, %cst_118 {dimension_numbers = #tpu.dot_dimension_numbers<[1], [0], [0], [1], [0, 0, 1, 1], [], []>} : vector<100x64xbf16>, vector<64x64xbf16>, vector<100x64xf32> -> vector<100x64xf32>
    %115 = arith.addf %109, %114 : vector<100x64xf32>
    %c27_119 = arith.constant 27 : index
    %c0_120 = arith.constant 0 : index
    %116 = vector.load %arg6[%c27_119, %c0_120] : memref<132x64xf32, #tpu.memory_space<vmem>>, vector<100x64xf32>
    %117 = arith.truncf %116 : vector<100x64xf32> to vector<100x64xbf16>
    %c1_121 = arith.constant 1 : index
    %c8_122 = arith.constant 8 : index
    %c0_123 = arith.constant 0 : index
    %c0_124 = arith.constant 0 : index
    %118 = vector.load %arg2[%c1_121, %c8_122, %c0_123, %c0_124] : memref<7x9x64x64xbf16, #tpu.memory_space<vmem>>, vector<1x1x64x64xbf16>
    %119 = vector.shape_cast %118 : vector<1x1x64x64xbf16> to vector<64x64xbf16>
    %cst_125 = arith.constant dense<0.000000e+00> : vector<100x64xf32>
    %120 = tpu.matmul %117, %119, %cst_125 {dimension_numbers = #tpu.dot_dimension_numbers<[1], [0], [0], [1], [0, 0, 1, 1], [], []>} : vector<100x64xbf16>, vector<64x64xbf16>, vector<100x64xf32> -> vector<100x64xf32>
    %121 = arith.addf %115, %120 : vector<100x64xf32>
    %c1_126 = arith.constant 1 : index
    %c0_127 = arith.constant 0 : index
    %122 = vector.load %arg3[%c1_126, %c0_127] : memref<7x64xf32, #tpu.memory_space<vmem>>, vector<1x64xf32>
    %123 = vector.broadcast %122 : vector<1x64xf32> to vector<100x64xf32>
    %124 = arith.addf %121, %123 : vector<100x64xf32>
    %125 = vector.broadcast %2 : vector<100x1xf32> to vector<100x64xf32>
    %126 = arith.mulf %124, %125 : vector<100x64xf32>
    %cst_128 = arith.constant 0.000000e+00 : f32
    %127 = vector.broadcast %cst_128 : f32 to vector<100x64xf32>
    %128 = arith.maximumf %126, %127 : vector<100x64xf32>
    %cst_129 = arith.constant 2.000000e+00 : f32
    %129 = vector.broadcast %cst_129 : f32 to vector<100x64xf32>
    %130 = arith.mulf %129, %65 : vector<100x64xf32>
    %c16_130 = arith.constant 16 : index
    %c0_131 = arith.constant 0 : index
    %131 = vector.load %arg6[%c16_130, %c0_131] : memref<132x64xf32, #tpu.memory_space<vmem>>, vector<100x64xf32>
    tpu.vector_store %arg6[%c16_130, %c0_131], %128 {strides = array<i32>} : memref<132x64xf32, #tpu.memory_space<vmem>>, vector<100x64xf32>,
    %cst_132 = arith.constant 0.000000e+00 : f32
    %132 = vector.broadcast %cst_132 : f32 to vector<100x64xf32>
    %c5_133 = arith.constant 5 : index
    %c0_134 = arith.constant 0 : index
    %133 = vector.load %arg6[%c5_133, %c0_134] : memref<132x64xf32, #tpu.memory_space<vmem>>, vector<100x64xf32>
    %134 = arith.truncf %133 : vector<100x64xf32> to vector<100x64xbf16>
    %c2_135 = arith.constant 2 : index
    %c0_136 = arith.constant 0 : index
    %c0_137 = arith.constant 0 : index
    %c0_138 = arith.constant 0 : index
    %135 = vector.load %arg2[%c2_135, %c0_136, %c0_137, %c0_138] : memref<7x9x64x64xbf16, #tpu.memory_space<vmem>>, vector<1x1x64x64xbf16>
    %136 = vector.shape_cast %135 : vector<1x1x64x64xbf16> to vector<64x64xbf16>
    %cst_139 = arith.constant dense<0.000000e+00> : vector<100x64xf32>
    %137 = tpu.matmul %134, %136, %cst_139 {dimension_numbers = #tpu.dot_dimension_numbers<[1], [0], [0], [1], [0, 0, 1, 1], [], []>} : vector<100x64xbf16>, vector<64x64xbf16>, vector<100x64xf32> -> vector<100x64xf32>
    %138 = arith.addf %132, %137 : vector<100x64xf32>
    %c6_140 = arith.constant 6 : index
    %c0_141 = arith.constant 0 : index
    %139 = vector.load %arg6[%c6_140, %c0_141] : memref<132x64xf32, #tpu.memory_space<vmem>>, vector<100x64xf32>
    %140 = arith.truncf %139 : vector<100x64xf32> to vector<100x64xbf16>
    %c2_142 = arith.constant 2 : index
    %c1_143 = arith.constant 1 : index
    %c0_144 = arith.constant 0 : index
    %c0_145 = arith.constant 0 : index
    %141 = vector.load %arg2[%c2_142, %c1_143, %c0_144, %c0_145] : memref<7x9x64x64xbf16, #tpu.memory_space<vmem>>, vector<1x1x64x64xbf16>
    %142 = vector.shape_cast %141 : vector<1x1x64x64xbf16> to vector<64x64xbf16>
    %cst_146 = arith.constant dense<0.000000e+00> : vector<100x64xf32>
    %143 = tpu.matmul %140, %142, %cst_146 {dimension_numbers = #tpu.dot_dimension_numbers<[1], [0], [0], [1], [0, 0, 1, 1], [], []>} : vector<100x64xbf16>, vector<64x64xbf16>, vector<100x64xf32> -> vector<100x64xf32>
    %144 = arith.addf %138, %143 : vector<100x64xf32>
    %c7_147 = arith.constant 7 : index
    %c0_148 = arith.constant 0 : index
    %145 = vector.load %arg6[%c7_147, %c0_148] : memref<132x64xf32, #tpu.memory_space<vmem>>, vector<100x64xf32>
    %146 = arith.truncf %145 : vector<100x64xf32> to vector<100x64xbf16>
    %c2_149 = arith.constant 2 : index
    %c2_150 = arith.constant 2 : index
    %c0_151 = arith.constant 0 : index
    %c0_152 = arith.constant 0 : index
    %147 = vector.load %arg2[%c2_149, %c2_150, %c0_151, %c0_152] : memref<7x9x64x64xbf16, #tpu.memory_space<vmem>>, vector<1x1x64x64xbf16>
    %148 = vector.shape_cast %147 : vector<1x1x64x64xbf16> to vector<64x64xbf16>
    %cst_153 = arith.constant dense<0.000000e+00> : vector<100x64xf32>
    %149 = tpu.matmul %146, %148, %cst_153 {dimension_numbers = #tpu.dot_dimension_numbers<[1], [0], [0], [1], [0, 0, 1, 1], [], []>} : vector<100x64xbf16>, vector<64x64xbf16>, vector<100x64xf32> -> vector<100x64xf32>
    %150 = arith.addf %144, %149 : vector<100x64xf32>
    %c15_154 = arith.constant 15 : index
    %c0_155 = arith.constant 0 : index
    %151 = vector.load %arg6[%c15_154, %c0_155] : memref<132x64xf32, #tpu.memory_space<vmem>>, vector<100x64xf32>
    %152 = arith.truncf %151 : vector<100x64xf32> to vector<100x64xbf16>
    %c2_156 = arith.constant 2 : index
    %c3_157 = arith.constant 3 : index
    %c0_158 = arith.constant 0 : index
    %c0_159 = arith.constant 0 : index
    %153 = vector.load %arg2[%c2_156, %c3_157, %c0_158, %c0_159] : memref<7x9x64x64xbf16, #tpu.memory_space<vmem>>, vector<1x1x64x64xbf16>
    %154 = vector.shape_cast %153 : vector<1x1x64x64xbf16> to vector<64x64xbf16>
    %cst_160 = arith.constant dense<0.000000e+00> : vector<100x64xf32>
    %155 = tpu.matmul %152, %154, %cst_160 {dimension_numbers = #tpu.dot_dimension_numbers<[1], [0], [0], [1], [0, 0, 1, 1], [], []>} : vector<100x64xbf16>, vector<64x64xbf16>, vector<100x64xf32> -> vector<100x64xf32>
    %156 = arith.addf %150, %155 : vector<100x64xf32>
    %c16_161 = arith.constant 16 : index
    %c0_162 = arith.constant 0 : index
    %157 = vector.load %arg6[%c16_161, %c0_162] : memref<132x64xf32, #tpu.memory_space<vmem>>, vector<100x64xf32>
    %158 = arith.truncf %157 : vector<100x64xf32> to vector<100x64xbf16>
    %c2_163 = arith.constant 2 : index
    %c4_164 = arith.constant 4 : index
    %c0_165 = arith.constant 0 : index
    %c0_166 = arith.constant 0 : index
    %159 = vector.load %arg2[%c2_163, %c4_164, %c0_165, %c0_166] : memref<7x9x64x64xbf16, #tpu.memory_space<vmem>>, vector<1x1x64x64xbf16>
    %160 = vector.shape_cast %159 : vector<1x1x64x64xbf16> to vector<64x64xbf16>
    %cst_167 = arith.constant dense<0.000000e+00> : vector<100x64xf32>
    %161 = tpu.matmul %158, %160, %cst_167 {dimension_numbers = #tpu.dot_dimension_numbers<[1], [0], [0], [1], [0, 0, 1, 1], [], []>} : vector<100x64xbf16>, vector<64x64xbf16>, vector<100x64xf32> -> vector<100x64xf32>
    %162 = arith.addf %156, %161 : vector<100x64xf32>
    %c17_168 = arith.constant 17 : index
    %c0_169 = arith.constant 0 : index
    %163 = vector.load %arg6[%c17_168, %c0_169] : memref<132x64xf32, #tpu.memory_space<vmem>>, vector<100x64xf32>
    %164 = arith.truncf %163 : vector<100x64xf32> to vector<100x64xbf16>
    %c2_170 = arith.constant 2 : index
    %c5_171 = arith.constant 5 : index
    %c0_172 = arith.constant 0 : index
    %c0_173 = arith.constant 0 : index
    %165 = vector.load %arg2[%c2_170, %c5_171, %c0_172, %c0_173] : memref<7x9x64x64xbf16, #tpu.memory_space<vmem>>, vector<1x1x64x64xbf16>
    %166 = vector.shape_cast %165 : vector<1x1x64x64xbf16> to vector<64x64xbf16>
    %cst_174 = arith.constant dense<0.000000e+00> : vector<100x64xf32>
    %167 = tpu.matmul %164, %166, %cst_174 {dimension_numbers = #tpu.dot_dimension_numbers<[1], [0], [0], [1], [0, 0, 1, 1], [], []>} : vector<100x64xbf16>, vector<64x64xbf16>, vector<100x64xf32> -> vector<100x64xf32>
    %168 = arith.addf %162, %167 : vector<100x64xf32>
    %c25_175 = arith.constant 25 : index
    %c0_176 = arith.constant 0 : index
    %169 = vector.load %arg6[%c25_175, %c0_176] : memref<132x64xf32, #tpu.memory_space<vmem>>, vector<100x64xf32>
    %170 = arith.truncf %169 : vector<100x64xf32> to vector<100x64xbf16>
    %c2_177 = arith.constant 2 : index
    %c6_178 = arith.constant 6 : index
    %c0_179 = arith.constant 0 : index
    %c0_180 = arith.constant 0 : index
    %171 = vector.load %arg2[%c2_177, %c6_178, %c0_179, %c0_180] : memref<7x9x64x64xbf16, #tpu.memory_space<vmem>>, vector<1x1x64x64xbf16>
    %172 = vector.shape_cast %171 : vector<1x1x64x64xbf16> to vector<64x64xbf16>
    %cst_181 = arith.constant dense<0.000000e+00> : vector<100x64xf32>
    %173 = tpu.matmul %170, %172, %cst_181 {dimension_numbers = #tpu.dot_dimension_numbers<[1], [0], [0], [1], [0, 0, 1, 1], [], []>} : vector<100x64xbf16>, vector<64x64xbf16>, vector<100x64xf32> -> vector<100x64xf32>
    %174 = arith.addf %168, %173 : vector<100x64xf32>
    %c26_182 = arith.constant 26 : index
    %c0_183 = arith.constant 0 : index
    %175 = vector.load %arg6[%c26_182, %c0_183] : memref<132x64xf32, #tpu.memory_space<vmem>>, vector<100x64xf32>
    %176 = arith.truncf %175 : vector<100x64xf32> to vector<100x64xbf16>
    %c2_184 = arith.constant 2 : index
    %c7_185 = arith.constant 7 : index
    %c0_186 = arith.constant 0 : index
    %c0_187 = arith.constant 0 : index
    %177 = vector.load %arg2[%c2_184, %c7_185, %c0_186, %c0_187] : memref<7x9x64x64xbf16, #tpu.memory_space<vmem>>, vector<1x1x64x64xbf16>
    %178 = vector.shape_cast %177 : vector<1x1x64x64xbf16> to vector<64x64xbf16>
    %cst_188 = arith.constant dense<0.000000e+00> : vector<100x64xf32>
    %179 = tpu.matmul %176, %178, %cst_188 {dimension_numbers = #tpu.dot_dimension_numbers<[1], [0], [0], [1], [0, 0, 1, 1], [], []>} : vector<100x64xbf16>, vector<64x64xbf16>, vector<100x64xf32> -> vector<100x64xf32>
    %180 = arith.addf %174, %179 : vector<100x64xf32>
    %c27_189 = arith.constant 27 : index
    %c0_190 = arith.constant 0 : index
    %181 = vector.load %arg6[%c27_189, %c0_190] : memref<132x64xf32, #tpu.memory_space<vmem>>, vector<100x64xf32>
    %182 = arith.truncf %181 : vector<100x64xf32> to vector<100x64xbf16>
    %c2_191 = arith.constant 2 : index
    %c8_192 = arith.constant 8 : index
    %c0_193 = arith.constant 0 : index
    %c0_194 = arith.constant 0 : index
    %183 = vector.load %arg2[%c2_191, %c8_192, %c0_193, %c0_194] : memref<7x9x64x64xbf16, #tpu.memory_space<vmem>>, vector<1x1x64x64xbf16>
    %184 = vector.shape_cast %183 : vector<1x1x64x64xbf16> to vector<64x64xbf16>
    %cst_195 = arith.constant dense<0.000000e+00> : vector<100x64xf32>
    %185 = tpu.matmul %182, %184, %cst_195 {dimension_numbers = #tpu.dot_dimension_numbers<[1], [0], [0], [1], [0, 0, 1, 1], [], []>} : vector<100x64xbf16>, vector<64x64xbf16>, vector<100x64xf32> -> vector<100x64xf32>
    %186 = arith.addf %180, %185 : vector<100x64xf32>
    %c2_196 = arith.constant 2 : index
    %c0_197 = arith.constant 0 : index
    %187 = vector.load %arg3[%c2_196, %c0_197] : memref<7x64xf32, #tpu.memory_space<vmem>>, vector<1x64xf32>
    %188 = vector.broadcast %187 : vector<1x64xf32> to vector<100x64xf32>
    %189 = arith.addf %186, %188 : vector<100x64xf32>
    %190 = vector.broadcast %2 : vector<100x1xf32> to vector<100x64xf32>
    %191 = arith.mulf %189, %190 : vector<100x64xf32>
    %cst_198 = arith.constant 1.000000e-01 : f32
    %192 = vector.broadcast %cst_198 : f32 to vector<100x64xf32>
    %193 = arith.mulf %192, %191 : vector<100x64xf32>
    %194 = arith.addf %130, %193 : vector<100x64xf32>
    %c16_199 = arith.constant 16 : index
    %c0_200 = arith.constant 0 : index
    %195 = vector.load %arg6[%c16_199, %c0_200] : memref<132x64xf32, #tpu.memory_space<vmem>>, vector<100x64xf32>
    tpu.vector_store %arg6[%c16_199, %c0_200], %194 {strides = array<i32>} : memref<132x64xf32, #tpu.memory_space<vmem>>, vector<100x64xf32>,
    %cst_201 = arith.constant 0.000000e+00 : f32
    %196 = vector.broadcast %cst_201 : f32 to vector<100x64xf32>
    %c5_202 = arith.constant 5 : index
    %c0_203 = arith.constant 0 : index
    %197 = vector.load %arg6[%c5_202, %c0_203] : memref<132x64xf32, #tpu.memory_space<vmem>>, vector<100x64xf32>
    %198 = arith.truncf %197 : vector<100x64xf32> to vector<100x64xbf16>
    %c3_204 = arith.constant 3 : index
    %c0_205 = arith.constant 0 : index
    %c0_206 = arith.constant 0 : index
    %c0_207 = arith.constant 0 : index
    %199 = vector.load %arg2[%c3_204, %c0_205, %c0_206, %c0_207] : memref<7x9x64x64xbf16, #tpu.memory_space<vmem>>, vector<1x1x64x64xbf16>
    %200 = vector.shape_cast %199 : vector<1x1x64x64xbf16> to vector<64x64xbf16>
    %cst_208 = arith.constant dense<0.000000e+00> : vector<100x64xf32>
    %201 = tpu.matmul %198, %200, %cst_208 {dimension_numbers = #tpu.dot_dimension_numbers<[1], [0], [0], [1], [0, 0, 1, 1], [], []>} : vector<100x64xbf16>, vector<64x64xbf16>, vector<100x64xf32> -> vector<100x64xf32>
    %202 = arith.addf %196, %201 : vector<100x64xf32>
    %c6_209 = arith.constant 6 : index
    %c0_210 = arith.constant 0 : index
    %203 = vector.load %arg6[%c6_209, %c0_210] : memref<132x64xf32, #tpu.memory_space<vmem>>, vector<100x64xf32>
    %204 = arith.truncf %203 : vector<100x64xf32> to vector<100x64xbf16>
    %c3_211 = arith.constant 3 : index
    %c1_212 = arith.constant 1 : index
    %c0_213 = arith.constant 0 : index
    %c0_214 = arith.constant 0 : index
    %205 = vector.load %arg2[%c3_211, %c1_212, %c0_213, %c0_214] : memref<7x9x64x64xbf16, #tpu.memory_space<vmem>>, vector<1x1x64x64xbf16>
    %206 = vector.shape_cast %205 : vector<1x1x64x64xbf16> to vector<64x64xbf16>
    %cst_215 = arith.constant dense<0.000000e+00> : vector<100x64xf32>
    %207 = tpu.matmul %204, %206, %cst_215 {dimension_numbers = #tpu.dot_dimension_numbers<[1], [0], [0], [1], [0, 0, 1, 1], [], []>} : vector<100x64xbf16>, vector<64x64xbf16>, vector<100x64xf32> -> vector<100x64xf32>
    %208 = arith.addf %202, %207 : vector<100x64xf32>
    %c7_216 = arith.constant 7 : index
    %c0_217 = arith.constant 0 : index
    %209 = vector.load %arg6[%c7_216, %c0_217] : memref<132x64xf32, #tpu.memory_space<vmem>>, vector<100x64xf32>
    %210 = arith.truncf %209 : vector<100x64xf32> to vector<100x64xbf16>
    %c3_218 = arith.constant 3 : index
    %c2_219 = arith.constant 2 : index
    %c0_220 = arith.constant 0 : index
    %c0_221 = arith.constant 0 : index
    %211 = vector.load %arg2[%c3_218, %c2_219, %c0_220, %c0_221] : memref<7x9x64x64xbf16, #tpu.memory_space<vmem>>, vector<1x1x64x64xbf16>
    %212 = vector.shape_cast %211 : vector<1x1x64x64xbf16> to vector<64x64xbf16>
    %cst_222 = arith.constant dense<0.000000e+00> : vector<100x64xf32>
    %213 = tpu.matmul %210, %212, %cst_222 {dimension_numbers = #tpu.dot_dimension_numbers<[1], [0], [0], [1], [0, 0, 1, 1], [], []>} : vector<100x64xbf16>, vector<64x64xbf16>, vector<100x64xf32> -> vector<100x64xf32>
    %214 = arith.addf %208, %213 : vector<100x64xf32>
    %c15_223 = arith.constant 15 : index
    %c0_224 = arith.constant 0 : index
    %215 = vector.load %arg6[%c15_223, %c0_224] : memref<132x64xf32, #tpu.memory_space<vmem>>, vector<100x64xf32>
    %216 = arith.truncf %215 : vector<100x64xf32> to vector<100x64xbf16>
    %c3_225 = arith.constant 3 : index
    %c3_226 = arith.constant 3 : index
    %c0_227 = arith.constant 0 : index
    %c0_228 = arith.constant 0 : index
    %217 = vector.load %arg2[%c3_225, %c3_226, %c0_227, %c0_228] : memref<7x9x64x64xbf16, #tpu.memory_space<vmem>>, vector<1x1x64x64xbf16>
    %218 = vector.shape_cast %217 : vector<1x1x64x64xbf16> to vector<64x64xbf16>
    %cst_229 = arith.constant dense<0.000000e+00> : vector<100x64xf32>
    %219 = tpu.matmul %216, %218, %cst_229 {dimension_numbers = #tpu.dot_dimension_numbers<[1], [0], [0], [1], [0, 0, 1, 1], [], []>} : vector<100x64xbf16>, vector<64x64xbf16>, vector<100x64xf32> -> vector<100x64xf32>
    %220 = arith.addf %214, %219 : vector<100x64xf32>
    %c16_230 = arith.constant 16 : index
    %c0_231 = arith.constant 0 : index
    %221 = vector.load %arg6[%c16_230, %c0_231] : memref<132x64xf32, #tpu.memory_space<vmem>>, vector<100x64xf32>
    %222 = arith.truncf %221 : vector<100x64xf32> to vector<100x64xbf16>
    %c3_232 = arith.constant 3 : index
    %c4_233 = arith.constant 4 : index
    %c0_234 = arith.constant 0 : index
    %c0_235 = arith.constant 0 : index
    %223 = vector.load %arg2[%c3_232, %c4_233, %c0_234, %c0_235] : memref<7x9x64x64xbf16, #tpu.memory_space<vmem>>, vector<1x1x64x64xbf16>
    %224 = vector.shape_cast %223 : vector<1x1x64x64xbf16> to vector<64x64xbf16>
    %cst_236 = arith.constant dense<0.000000e+00> : vector<100x64xf32>
    %225 = tpu.matmul %222, %224, %cst_236 {dimension_numbers = #tpu.dot_dimension_numbers<[1], [0], [0], [1], [0, 0, 1, 1], [], []>} : vector<100x64xbf16>, vector<64x64xbf16>, vector<100x64xf32> -> vector<100x64xf32>
    %226 = arith.addf %220, %225 : vector<100x64xf32>
    %c17_237 = arith.constant 17 : index
    %c0_238 = arith.constant 0 : index
    %227 = vector.load %arg6[%c17_237, %c0_238] : memref<132x64xf32, #tpu.memory_space<vmem>>, vector<100x64xf32>
    %228 = arith.truncf %227 : vector<100x64xf32> to vector<100x64xbf16>
    %c3_239 = arith.constant 3 : index
    %c5_240 = arith.constant 5 : index
    %c0_241 = arith.constant 0 : index
    %c0_242 = arith.constant 0 : index
    %229 = vector.load %arg2[%c3_239, %c5_240, %c0_241, %c0_242] : memref<7x9x64x64xbf16, #tpu.memory_space<vmem>>, vector<1x1x64x64xbf16>
    %230 = vector.shape_cast %229 : vector<1x1x64x64xbf16> to vector<64x64xbf16>
    %cst_243 = arith.constant dense<0.000000e+00> : vector<100x64xf32>
    %231 = tpu.matmul %228, %230, %cst_243 {dimension_numbers = #tpu.dot_dimension_numbers<[1], [0], [0], [1], [0, 0, 1, 1], [], []>} : vector<100x64xbf16>, vector<64x64xbf16>, vector<100x64xf32> -> vector<100x64xf32>
    %232 = arith.addf %226, %231 : vector<100x64xf32>
    %c25_244 = arith.constant 25 : index
    %c0_245 = arith.constant 0 : index
    %233 = vector.load %arg6[%c25_244, %c0_245] : memref<132x64xf32, #tpu.memory_space<vmem>>, vector<100x64xf32>
    %234 = arith.truncf %233 : vector<100x64xf32> to vector<100x64xbf16>
    %c3_246 = arith.constant 3 : index
    %c6_247 = arith.constant 6 : index
    %c0_248 = arith.constant 0 : index
    %c0_249 = arith.constant 0 : index
    %235 = vector.load %arg2[%c3_246, %c6_247, %c0_248, %c0_249] : memref<7x9x64x64xbf16, #tpu.memory_space<vmem>>, vector<1x1x64x64xbf16>
    %236 = vector.shape_cast %235 : vector<1x1x64x64xbf16> to vector<64x64xbf16>
    %cst_250 = arith.constant dense<0.000000e+00> : vector<100x64xf32>
    %237 = tpu.matmul %234, %236, %cst_250 {dimension_numbers = #tpu.dot_dimension_numbers<[1], [0], [0], [1], [0, 0, 1, 1], [], []>} : vector<100x64xbf16>, vector<64x64xbf16>, vector<100x64xf32> -> vector<100x64xf32>
    %238 = arith.addf %232, %237 : vector<100x64xf32>
    %c26_251 = arith.constant 26 : index
    %c0_252 = arith.constant 0 : index
    %239 = vector.load %arg6[%c26_251, %c0_252] : memref<132x64xf32, #tpu.memory_space<vmem>>, vector<100x64xf32>
    %240 = arith.truncf %239 : vector<100x64xf32> to vector<100x64xbf16>
    %c3_253 = arith.constant 3 : index
    %c7_254 = arith.constant 7 : index
    %c0_255 = arith.constant 0 : index
    %c0_256 = arith.constant 0 : index
    %241 = vector.load %arg2[%c3_253, %c7_254, %c0_255, %c0_256] : memref<7x9x64x64xbf16, #tpu.memory_space<vmem>>, vector<1x1x64x64xbf16>
    %242 = vector.shape_cast %241 : vector<1x1x64x64xbf16> to vector<64x64xbf16>
    %cst_257 = arith.constant dense<0.000000e+00> : vector<100x64xf32>
    %243 = tpu.matmul %240, %242, %cst_257 {dimension_numbers = #tpu.dot_dimension_numbers<[1], [0], [0], [1], [0, 0, 1, 1], [], []>} : vector<100x64xbf16>, vector<64x64xbf16>, vector<100x64xf32> -> vector<100x64xf32>
    %244 = arith.addf %238, %243 : vector<100x64xf32>
    %c27_258 = arith.constant 27 : index
    %c0_259 = arith.constant 0 : index
    %245 = vector.load %arg6[%c27_258, %c0_259] : memref<132x64xf32, #tpu.memory_space<vmem>>, vector<100x64xf32>
    %246 = arith.truncf %245 : vector<100x64xf32> to vector<100x64xbf16>
    %c3_260 = arith.constant 3 : index
    %c8_261 = arith.constant 8 : index
    %c0_262 = arith.constant 0 : index
    %c0_263 = arith.constant 0 : index
    %247 = vector.load %arg2[%c3_260, %c8_261, %c0_262, %c0_263] : memref<7x9x64x64xbf16, #tpu.memory_space<vmem>>, vector<1x1x64x64xbf16>
    %248 = vector.shape_cast %247 : vector<1x1x64x64xbf16> to vector<64x64xbf16>
    %cst_264 = arith.constant dense<0.000000e+00> : vector<100x64xf32>
    %249 = tpu.matmul %246, %248, %cst_264 {dimension_numbers = #tpu.dot_dimension_numbers<[1], [0], [0], [1], [0, 0, 1, 1], [], []>} : vector<100x64xbf16>, vector<64x64xbf16>, vector<100x64xf32> -> vector<100x64xf32>
    %250 = arith.addf %244, %249 : vector<100x64xf32>
    %c3_265 = arith.constant 3 : index
    %c0_266 = arith.constant 0 : index
    %251 = vector.load %arg3[%c3_265, %c0_266] : memref<7x64xf32, #tpu.memory_space<vmem>>, vector<1x64xf32>
    %252 = vector.broadcast %251 : vector<1x64xf32> to vector<100x64xf32>
    %253 = arith.addf %250, %252 : vector<100x64xf32>
    %254 = vector.broadcast %2 : vector<100x1xf32> to vector<100x64xf32>
    %255 = arith.mulf %253, %254 : vector<100x64xf32>
    %c16_267 = arith.constant 16 : index
    %c0_268 = arith.constant 0 : index
    %256 = vector.load %arg6[%c16_267, %c0_268] : memref<132x64xf32, #tpu.memory_space<vmem>>, vector<100x64xf32>
    tpu.vector_store %arg6[%c16_267, %c0_268], %255 {strides = array<i32>} : memref<132x64xf32, #tpu.memory_space<vmem>>, vector<100x64xf32>,
    %cst_269 = arith.constant 0.000000e+00 : f32
    %257 = vector.broadcast %cst_269 : f32 to vector<100x64xf32>
    %c5_270 = arith.constant 5 : index
    %c0_271 = arith.constant 0 : index
    %258 = vector.load %arg6[%c5_270, %c0_271] : memref<132x64xf32, #tpu.memory_space<vmem>>, vector<100x64xf32>
    %259 = arith.truncf %258 : vector<100x64xf32> to vector<100x64xbf16>
    %c4_272 = arith.constant 4 : index
    %c0_273 = arith.constant 0 : index
    %c0_274 = arith.constant 0 : index
    %c0_275 = arith.constant 0 : index
    %260 = vector.load %arg2[%c4_272, %c0_273, %c0_274, %c0_275] : memref<7x9x64x64xbf16, #tpu.memory_space<vmem>>, vector<1x1x64x64xbf16>
    %261 = vector.shape_cast %260 : vector<1x1x64x64xbf16> to vector<64x64xbf16>
    %cst_276 = arith.constant dense<0.000000e+00> : vector<100x64xf32>
    %262 = tpu.matmul %259, %261, %cst_276 {dimension_numbers = #tpu.dot_dimension_numbers<[1], [0], [0], [1], [0, 0, 1, 1], [], []>} : vector<100x64xbf16>, vector<64x64xbf16>, vector<100x64xf32> -> vector<100x64xf32>
    %263 = arith.addf %257, %262 : vector<100x64xf32>
    %c6_277 = arith.constant 6 : index
    %c0_278 = arith.constant 0 : index
    %264 = vector.load %arg6[%c6_277, %c0_278] : memref<132x64xf32, #tpu.memory_space<vmem>>, vector<100x64xf32>
    %265 = arith.truncf %264 : vector<100x64xf32> to vector<100x64xbf16>
    %c4_279 = arith.constant 4 : index
    %c1_280 = arith.constant 1 : index
    %c0_281 = arith.constant 0 : index
    %c0_282 = arith.constant 0 : index
    %266 = vector.load %arg2[%c4_279, %c1_280, %c0_281, %c0_282] : memref<7x9x64x64xbf16, #tpu.memory_space<vmem>>, vector<1x1x64x64xbf16>
    %267 = vector.shape_cast %266 : vector<1x1x64x64xbf16> to vector<64x64xbf16>
    %cst_283 = arith.constant dense<0.000000e+00> : vector<100x64xf32>
    %268 = tpu.matmul %265, %267, %cst_283 {dimension_numbers = #tpu.dot_dimension_numbers<[1], [0], [0], [1], [0, 0, 1, 1], [], []>} : vector<100x64xbf16>, vector<64x64xbf16>, vector<100x64xf32> -> vector<100x64xf32>
    %269 = arith.addf %263, %268 : vector<100x64xf32>
    %c7_284 = arith.constant 7 : index
    %c0_285 = arith.constant 0 : index
    %270 = vector.load %arg6[%c7_284, %c0_285] : memref<132x64xf32, #tpu.memory_space<vmem>>, vector<100x64xf32>
    %271 = arith.truncf %270 : vector<100x64xf32> to vector<100x64xbf16>
    %c4_286 = arith.constant 4 : index
    %c2_287 = arith.constant 2 : index
    %c0_288 = arith.constant 0 : index
    %c0_289 = arith.constant 0 : index
    %272 = vector.load %arg2[%c4_286, %c2_287, %c0_288, %c0_289] : memref<7x9x64x64xbf16, #tpu.memory_space<vmem>>, vector<1x1x64x64xbf16>
    %273 = vector.shape_cast %272 : vector<1x1x64x64xbf16> to vector<64x64xbf16>
    %cst_290 = arith.constant dense<0.000000e+00> : vector<100x64xf32>
    %274 = tpu.matmul %271, %273, %cst_290 {dimension_numbers = #tpu.dot_dimension_numbers<[1], [0], [0], [1], [0, 0, 1, 1], [], []>} : vector<100x64xbf16>, vector<64x64xbf16>, vector<100x64xf32> -> vector<100x64xf32>
    %275 = arith.addf %269, %274 : vector<100x64xf32>
    %c15_291 = arith.constant 15 : index
    %c0_292 = arith.constant 0 : index
    %276 = vector.load %arg6[%c15_291, %c0_292] : memref<132x64xf32, #tpu.memory_space<vmem>>, vector<100x64xf32>
    %277 = arith.truncf %276 : vector<100x64xf32> to vector<100x64xbf16>
    %c4_293 = arith.constant 4 : index
    %c3_294 = arith.constant 3 : index
    %c0_295 = arith.constant 0 : index
    %c0_296 = arith.constant 0 : index
    %278 = vector.load %arg2[%c4_293, %c3_294, %c0_295, %c0_296] : memref<7x9x64x64xbf16, #tpu.memory_space<vmem>>, vector<1x1x64x64xbf16>
    %279 = vector.shape_cast %278 : vector<1x1x64x64xbf16> to vector<64x64xbf16>
    %cst_297 = arith.constant dense<0.000000e+00> : vector<100x64xf32>
    %280 = tpu.matmul %277, %279, %cst_297 {dimension_numbers = #tpu.dot_dimension_numbers<[1], [0], [0], [1], [0, 0, 1, 1], [], []>} : vector<100x64xbf16>, vector<64x64xbf16>, vector<100x64xf32> -> vector<100x64xf32>
    %281 = arith.addf %275, %280 : vector<100x64xf32>
    %c16_298 = arith.constant 16 : index
    %c0_299 = arith.constant 0 : index
    %282 = vector.load %arg6[%c16_298, %c0_299] : memref<132x64xf32, #tpu.memory_space<vmem>>, vector<100x64xf32>
    %283 = arith.truncf %282 : vector<100x64xf32> to vector<100x64xbf16>
    %c4_300 = arith.constant 4 : index
    %c4_301 = arith.constant 4 : index
    %c0_302 = arith.constant 0 : index
    %c0_303 = arith.constant 0 : index
    %284 = vector.load %arg2[%c4_300, %c4_301, %c0_302, %c0_303] : memref<7x9x64x64xbf16, #tpu.memory_space<vmem>>, vector<1x1x64x64xbf16>
    %285 = vector.shape_cast %284 : vector<1x1x64x64xbf16> to vector<64x64xbf16>
    %cst_304 = arith.constant dense<0.000000e+00> : vector<100x64xf32>
    %286 = tpu.matmul %283, %285, %cst_304 {dimension_numbers = #tpu.dot_dimension_numbers<[1], [0], [0], [1], [0, 0, 1, 1], [], []>} : vector<100x64xbf16>, vector<64x64xbf16>, vector<100x64xf32> -> vector<100x64xf32>
    %287 = arith.addf %281, %286 : vector<100x64xf32>
    %c17_305 = arith.constant 17 : index
    %c0_306 = arith.constant 0 : index
    %288 = vector.load %arg6[%c17_305, %c0_306] : memref<132x64xf32, #tpu.memory_space<vmem>>, vector<100x64xf32>
    %289 = arith.truncf %288 : vector<100x64xf32> to vector<100x64xbf16>
    %c4_307 = arith.constant 4 : index
    %c5_308 = arith.constant 5 : index
    %c0_309 = arith.constant 0 : index
    %c0_310 = arith.constant 0 : index
    %290 = vector.load %arg2[%c4_307, %c5_308, %c0_309, %c0_310] : memref<7x9x64x64xbf16, #tpu.memory_space<vmem>>, vector<1x1x64x64xbf16>
    %291 = vector.shape_cast %290 : vector<1x1x64x64xbf16> to vector<64x64xbf16>
    %cst_311 = arith.constant dense<0.000000e+00> : vector<100x64xf32>
    %292 = tpu.matmul %289, %291, %cst_311 {dimension_numbers = #tpu.dot_dimension_numbers<[1], [0], [0], [1], [0, 0, 1, 1], [], []>} : vector<100x64xbf16>, vector<64x64xbf16>, vector<100x64xf32> -> vector<100x64xf32>
    %293 = arith.addf %287, %292 : vector<100x64xf32>
    %c25_312 = arith.constant 25 : index
    %c0_313 = arith.constant 0 : index
    %294 = vector.load %arg6[%c25_312, %c0_313] : memref<132x64xf32, #tpu.memory_space<vmem>>, vector<100x64xf32>
    %295 = arith.truncf %294 : vector<100x64xf32> to vector<100x64xbf16>
    %c4_314 = arith.constant 4 : index
    %c6_315 = arith.constant 6 : index
    %c0_316 = arith.constant 0 : index
    %c0_317 = arith.constant 0 : index
    %296 = vector.load %arg2[%c4_314, %c6_315, %c0_316, %c0_317] : memref<7x9x64x64xbf16, #tpu.memory_space<vmem>>, vector<1x1x64x64xbf16>
    %297 = vector.shape_cast %296 : vector<1x1x64x64xbf16> to vector<64x64xbf16>
    %cst_318 = arith.constant dense<0.000000e+00> : vector<100x64xf32>
    %298 = tpu.matmul %295, %297, %cst_318 {dimension_numbers = #tpu.dot_dimension_numbers<[1], [0], [0], [1], [0, 0, 1, 1], [], []>} : vector<100x64xbf16>, vector<64x64xbf16>, vector<100x64xf32> -> vector<100x64xf32>
    %299 = arith.addf %293, %298 : vector<100x64xf32>
    %c26_319 = arith.constant 26 : index
    %c0_320 = arith.constant 0 : index
    %300 = vector.load %arg6[%c26_319, %c0_320] : memref<132x64xf32, #tpu.memory_space<vmem>>, vector<100x64xf32>
    %301 = arith.truncf %300 : vector<100x64xf32> to vector<100x64xbf16>
    %c4_321 = arith.constant 4 : index
    %c7_322 = arith.constant 7 : index
    %c0_323 = arith.constant 0 : index
    %c0_324 = arith.constant 0 : index
    %302 = vector.load %arg2[%c4_321, %c7_322, %c0_323, %c0_324] : memref<7x9x64x64xbf16, #tpu.memory_space<vmem>>, vector<1x1x64x64xbf16>
    %303 = vector.shape_cast %302 : vector<1x1x64x64xbf16> to vector<64x64xbf16>
    %cst_325 = arith.constant dense<0.000000e+00> : vector<100x64xf32>
    %304 = tpu.matmul %301, %303, %cst_325 {dimension_numbers = #tpu.dot_dimension_numbers<[1], [0], [0], [1], [0, 0, 1, 1], [], []>} : vector<100x64xbf16>, vector<64x64xbf16>, vector<100x64xf32> -> vector<100x64xf32>
    %305 = arith.addf %299, %304 : vector<100x64xf32>
    %c27_326 = arith.constant 27 : index
    %c0_327 = arith.constant 0 : index
    %306 = vector.load %arg6[%c27_326, %c0_327] : memref<132x64xf32, #tpu.memory_space<vmem>>, vector<100x64xf32>
    %307 = arith.truncf %306 : vector<100x64xf32> to vector<100x64xbf16>
    %c4_328 = arith.constant 4 : index
    %c8_329 = arith.constant 8 : index
    %c0_330 = arith.constant 0 : index
    %c0_331 = arith.constant 0 : index
    %308 = vector.load %arg2[%c4_328, %c8_329, %c0_330, %c0_331] : memref<7x9x64x64xbf16, #tpu.memory_space<vmem>>, vector<1x1x64x64xbf16>
    %309 = vector.shape_cast %308 : vector<1x1x64x64xbf16> to vector<64x64xbf16>
    %cst_332 = arith.constant dense<0.000000e+00> : vector<100x64xf32>
    %310 = tpu.matmul %307, %309, %cst_332 {dimension_numbers = #tpu.dot_dimension_numbers<[1], [0], [0], [1], [0, 0, 1, 1], [], []>} : vector<100x64xbf16>, vector<64x64xbf16>, vector<100x64xf32> -> vector<100x64xf32>
    %311 = arith.addf %305, %310 : vector<100x64xf32>
    %c4_333 = arith.constant 4 : index
    %c0_334 = arith.constant 0 : index
    %312 = vector.load %arg3[%c4_333, %c0_334] : memref<7x64xf32, #tpu.memory_space<vmem>>, vector<1x64xf32>
    %313 = vector.broadcast %312 : vector<1x64xf32> to vector<100x64xf32>
    %314 = arith.addf %311, %313 : vector<100x64xf32>
    %315 = vector.broadcast %2 : vector<100x1xf32> to vector<100x64xf32>
    %316 = arith.mulf %314, %315 : vector<100x64xf32>
    %cst_335 = arith.constant 0.000000e+00 : f32
    %317 = vector.broadcast %cst_335 : f32 to vector<100x64xf32>
    %318 = arith.maximumf %316, %317 : vector<100x64xf32>
    %cst_336 = arith.constant 2.000000e+00 : f32
    %319 = vector.broadcast %cst_336 : f32 to vector<100x64xf32>
    %320 = arith.mulf %319, %255 : vector<100x64xf32>
    %c16_337 = arith.constant 16 : index
    %c0_338 = arith.constant 0 : index
    %321 = vector.load %arg6[%c16_337, %c0_338] : memref<132x64xf32, #tpu.memory_space<vmem>>, vector<100x64xf32>
    tpu.vector_store %arg6[%c16_337, %c0_338], %318 {strides = array<i32>} : memref<132x64xf32, #tpu.memory_space<vmem>>, vector<100x64xf32>,
    %cst_339 = arith.constant 0.000000e+00 : f32
    %322 = vector.broadcast %cst_339 : f32 to vector<100x64xf32>
    %c5_340 = arith.constant 5 : index
    %c0_341 = arith.constant 0 : index
    %323 = vector.load %arg6[%c5_340, %c0_341] : memref<132x64xf32, #tpu.memory_space<vmem>>, vector<100x64xf32>
    %324 = arith.truncf %323 : vector<100x64xf32> to vector<100x64xbf16>
    %c5_342 = arith.constant 5 : index
    %c0_343 = arith.constant 0 : index
    %c0_344 = arith.constant 0 : index
    %c0_345 = arith.constant 0 : index
    %325 = vector.load %arg2[%c5_342, %c0_343, %c0_344, %c0_345] : memref<7x9x64x64xbf16, #tpu.memory_space<vmem>>, vector<1x1x64x64xbf16>
    %326 = vector.shape_cast %325 : vector<1x1x64x64xbf16> to vector<64x64xbf16>
    %cst_346 = arith.constant dense<0.000000e+00> : vector<100x64xf32>
    %327 = tpu.matmul %324, %326, %cst_346 {dimension_numbers = #tpu.dot_dimension_numbers<[1], [0], [0], [1], [0, 0, 1, 1], [], []>} : vector<100x64xbf16>, vector<64x64xbf16>, vector<100x64xf32> -> vector<100x64xf32>
    %328 = arith.addf %322, %327 : vector<100x64xf32>
    %c6_347 = arith.constant 6 : index
    %c0_348 = arith.constant 0 : index
    %329 = vector.load %arg6[%c6_347, %c0_348] : memref<132x64xf32, #tpu.memory_space<vmem>>, vector<100x64xf32>
    %330 = arith.truncf %329 : vector<100x64xf32> to vector<100x64xbf16>
    %c5_349 = arith.constant 5 : index
    %c1_350 = arith.constant 1 : index
    %c0_351 = arith.constant 0 : index
    %c0_352 = arith.constant 0 : index
    %331 = vector.load %arg2[%c5_349, %c1_350, %c0_351, %c0_352] : memref<7x9x64x64xbf16, #tpu.memory_space<vmem>>, vector<1x1x64x64xbf16>
    %332 = vector.shape_cast %331 : vector<1x1x64x64xbf16> to vector<64x64xbf16>
    %cst_353 = arith.constant dense<0.000000e+00> : vector<100x64xf32>
    %333 = tpu.matmul %330, %332, %cst_353 {dimension_numbers = #tpu.dot_dimension_numbers<[1], [0], [0], [1], [0, 0, 1, 1], [], []>} : vector<100x64xbf16>, vector<64x64xbf16>, vector<100x64xf32> -> vector<100x64xf32>
    %334 = arith.addf %328, %333 : vector<100x64xf32>
    %c7_354 = arith.constant 7 : index
    %c0_355 = arith.constant 0 : index
    %335 = vector.load %arg6[%c7_354, %c0_355] : memref<132x64xf32, #tpu.memory_space<vmem>>, vector<100x64xf32>
    %336 = arith.truncf %335 : vector<100x64xf32> to vector<100x64xbf16>
    %c5_356 = arith.constant 5 : index
    %c2_357 = arith.constant 2 : index
    %c0_358 = arith.constant 0 : index
    %c0_359 = arith.constant 0 : index
    %337 = vector.load %arg2[%c5_356, %c2_357, %c0_358, %c0_359] : memref<7x9x64x64xbf16, #tpu.memory_space<vmem>>, vector<1x1x64x64xbf16>
    %338 = vector.shape_cast %337 : vector<1x1x64x64xbf16> to vector<64x64xbf16>
    %cst_360 = arith.constant dense<0.000000e+00> : vector<100x64xf32>
    %339 = tpu.matmul %336, %338, %cst_360 {dimension_numbers = #tpu.dot_dimension_numbers<[1], [0], [0], [1], [0, 0, 1, 1], [], []>} : vector<100x64xbf16>, vector<64x64xbf16>, vector<100x64xf32> -> vector<100x64xf32>
    %340 = arith.addf %334, %339 : vector<100x64xf32>
    %c15_361 = arith.constant 15 : index
    %c0_362 = arith.constant 0 : index
    %341 = vector.load %arg6[%c15_361, %c0_362] : memref<132x64xf32, #tpu.memory_space<vmem>>, vector<100x64xf32>
    %342 = arith.truncf %341 : vector<100x64xf32> to vector<100x64xbf16>
    %c5_363 = arith.constant 5 : index
    %c3_364 = arith.constant 3 : index
    %c0_365 = arith.constant 0 : index
    %c0_366 = arith.constant 0 : index
    %343 = vector.load %arg2[%c5_363, %c3_364, %c0_365, %c0_366] : memref<7x9x64x64xbf16, #tpu.memory_space<vmem>>, vector<1x1x64x64xbf16>
    %344 = vector.shape_cast %343 : vector<1x1x64x64xbf16> to vector<64x64xbf16>
    %cst_367 = arith.constant dense<0.000000e+00> : vector<100x64xf32>
    %345 = tpu.matmul %342, %344, %cst_367 {dimension_numbers = #tpu.dot_dimension_numbers<[1], [0], [0], [1], [0, 0, 1, 1], [], []>} : vector<100x64xbf16>, vector<64x64xbf16>, vector<100x64xf32> -> vector<100x64xf32>
    %346 = arith.addf %340, %345 : vector<100x64xf32>
    %c16_368 = arith.constant 16 : index
    %c0_369 = arith.constant 0 : index
    %347 = vector.load %arg6[%c16_368, %c0_369] : memref<132x64xf32, #tpu.memory_space<vmem>>, vector<100x64xf32>
    %348 = arith.truncf %347 : vector<100x64xf32> to vector<100x64xbf16>
    %c5_370 = arith.constant 5 : index
    %c4_371 = arith.constant 4 : index
    %c0_372 = arith.constant 0 : index
    %c0_373 = arith.constant 0 : index
    %349 = vector.load %arg2[%c5_370, %c4_371, %c0_372, %c0_373] : memref<7x9x64x64xbf16, #tpu.memory_space<vmem>>, vector<1x1x64x64xbf16>
    %350 = vector.shape_cast %349 : vector<1x1x64x64xbf16> to vector<64x64xbf16>
    %cst_374 = arith.constant dense<0.000000e+00> : vector<100x64xf32>
    %351 = tpu.matmul %348, %350, %cst_374 {dimension_numbers = #tpu.dot_dimension_numbers<[1], [0], [0], [1], [0, 0, 1, 1], [], []>} : vector<100x64xbf16>, vector<64x64xbf16>, vector<100x64xf32> -> vector<100x64xf32>
    %352 = arith.addf %346, %351 : vector<100x64xf32>
    %c17_375 = arith.constant 17 : index
    %c0_376 = arith.constant 0 : index
    %353 = vector.load %arg6[%c17_375, %c0_376] : memref<132x64xf32, #tpu.memory_space<vmem>>, vector<100x64xf32>
    %354 = arith.truncf %353 : vector<100x64xf32> to vector<100x64xbf16>
    %c5_377 = arith.constant 5 : index
    %c5_378 = arith.constant 5 : index
    %c0_379 = arith.constant 0 : index
    %c0_380 = arith.constant 0 : index
    %355 = vector.load %arg2[%c5_377, %c5_378, %c0_379, %c0_380] : memref<7x9x64x64xbf16, #tpu.memory_space<vmem>>, vector<1x1x64x64xbf16>
    %356 = vector.shape_cast %355 : vector<1x1x64x64xbf16> to vector<64x64xbf16>
    %cst_381 = arith.constant dense<0.000000e+00> : vector<100x64xf32>
    %357 = tpu.matmul %354, %356, %cst_381 {dimension_numbers = #tpu.dot_dimension_numbers<[1], [0], [0], [1], [0, 0, 1, 1], [], []>} : vector<100x64xbf16>, vector<64x64xbf16>, vector<100x64xf32> -> vector<100x64xf32>
    %358 = arith.addf %352, %357 : vector<100x64xf32>
    %c25_382 = arith.constant 25 : index
    %c0_383 = arith.constant 0 : index
    %359 = vector.load %arg6[%c25_382, %c0_383] : memref<132x64xf32, #tpu.memory_space<vmem>>, vector<100x64xf32>
    %360 = arith.truncf %359 : vector<100x64xf32> to vector<100x64xbf16>
    %c5_384 = arith.constant 5 : index
    %c6_385 = arith.constant 6 : index
    %c0_386 = arith.constant 0 : index
    %c0_387 = arith.constant 0 : index
    %361 = vector.load %arg2[%c5_384, %c6_385, %c0_386, %c0_387] : memref<7x9x64x64xbf16, #tpu.memory_space<vmem>>, vector<1x1x64x64xbf16>
    %362 = vector.shape_cast %361 : vector<1x1x64x64xbf16> to vector<64x64xbf16>
    %cst_388 = arith.constant dense<0.000000e+00> : vector<100x64xf32>
    %363 = tpu.matmul %360, %362, %cst_388 {dimension_numbers = #tpu.dot_dimension_numbers<[1], [0], [0], [1], [0, 0, 1, 1], [], []>} : vector<100x64xbf16>, vector<64x64xbf16>, vector<100x64xf32> -> vector<100x64xf32>
    %364 = arith.addf %358, %363 : vector<100x64xf32>
    %c26_389 = arith.constant 26 : index
    %c0_390 = arith.constant 0 : index
    %365 = vector.load %arg6[%c26_389, %c0_390] : memref<132x64xf32, #tpu.memory_space<vmem>>, vector<100x64xf32>
    %366 = arith.truncf %365 : vector<100x64xf32> to vector<100x64xbf16>
    %c5_391 = arith.constant 5 : index
    %c7_392 = arith.constant 7 : index
    %c0_393 = arith.constant 0 : index
    %c0_394 = arith.constant 0 : index
    %367 = vector.load %arg2[%c5_391, %c7_392, %c0_393, %c0_394] : memref<7x9x64x64xbf16, #tpu.memory_space<vmem>>, vector<1x1x64x64xbf16>
    %368 = vector.shape_cast %367 : vector<1x1x64x64xbf16> to vector<64x64xbf16>
    %cst_395 = arith.constant dense<0.000000e+00> : vector<100x64xf32>
    %369 = tpu.matmul %366, %368, %cst_395 {dimension_numbers = #tpu.dot_dimension_numbers<[1], [0], [0], [1], [0, 0, 1, 1], [], []>} : vector<100x64xbf16>, vector<64x64xbf16>, vector<100x64xf32> -> vector<100x64xf32>
    %370 = arith.addf %364, %369 : vector<100x64xf32>
    %c27_396 = arith.constant 27 : index
    %c0_397 = arith.constant 0 : index
    %371 = vector.load %arg6[%c27_396, %c0_397] : memref<132x64xf32, #tpu.memory_space<vmem>>, vector<100x64xf32>
    %372 = arith.truncf %371 : vector<100x64xf32> to vector<100x64xbf16>
    %c5_398 = arith.constant 5 : index
    %c8_399 = arith.constant 8 : index
    %c0_400 = arith.constant 0 : index
    %c0_401 = arith.constant 0 : index
    %373 = vector.load %arg2[%c5_398, %c8_399, %c0_400, %c0_401] : memref<7x9x64x64xbf16, #tpu.memory_space<vmem>>, vector<1x1x64x64xbf16>
    %374 = vector.shape_cast %373 : vector<1x1x64x64xbf16> to vector<64x64xbf16>
    %cst_402 = arith.constant dense<0.000000e+00> : vector<100x64xf32>
    %375 = tpu.matmul %372, %374, %cst_402 {dimension_numbers = #tpu.dot_dimension_numbers<[1], [0], [0], [1], [0, 0, 1, 1], [], []>} : vector<100x64xbf16>, vector<64x64xbf16>, vector<100x64xf32> -> vector<100x64xf32>
    %376 = arith.addf %370, %375 : vector<100x64xf32>
    %c5_403 = arith.constant 5 : index
    %c0_404 = arith.constant 0 : index
    %377 = vector.load %arg3[%c5_403, %c0_404] : memref<7x64xf32, #tpu.memory_space<vmem>>, vector<1x64xf32>
    %378 = vector.broadcast %377 : vector<1x64xf32> to vector<100x64xf32>
    %379 = arith.addf %376, %378 : vector<100x64xf32>
    %380 = vector.broadcast %2 : vector<100x1xf32> to vector<100x64xf32>
    %381 = arith.mulf %379, %380 : vector<100x64xf32>
    %cst_405 = arith.constant 1.000000e-01 : f32
    %382 = vector.broadcast %cst_405 : f32 to vector<100x64xf32>
    %383 = arith.mulf %382, %381 : vector<100x64xf32>
    %384 = arith.addf %320, %383 : vector<100x64xf32>
    %c16_406 = arith.constant 16 : index
    %c0_407 = arith.constant 0 : index
    %385 = vector.load %arg6[%c16_406, %c0_407] : memref<132x64xf32, #tpu.memory_space<vmem>>, vector<100x64xf32>
    tpu.vector_store %arg6[%c16_406, %c0_407], %384 {strides = array<i32>} : memref<132x64xf32, #tpu.memory_space<vmem>>, vector<100x64xf32>,
    %cst_408 = arith.constant 0.000000e+00 : f32
    %386 = vector.broadcast %cst_408 : f32 to vector<100x64xf32>
    %c5_409 = arith.constant 5 : index
    %c0_410 = arith.constant 0 : index
    %387 = vector.load %arg6[%c5_409, %c0_410] : memref<132x64xf32, #tpu.memory_space<vmem>>, vector<100x64xf32>
    %388 = arith.truncf %387 : vector<100x64xf32> to vector<100x64xbf16>
    %c6_411 = arith.constant 6 : index
    %c0_412 = arith.constant 0 : index
    %c0_413 = arith.constant 0 : index
    %c0_414 = arith.constant 0 : index
    %389 = vector.load %arg2[%c6_411, %c0_412, %c0_413, %c0_414] : memref<7x9x64x64xbf16, #tpu.memory_space<vmem>>, vector<1x1x64x64xbf16>
    %390 = vector.shape_cast %389 : vector<1x1x64x64xbf16> to vector<64x64xbf16>
    %cst_415 = arith.constant dense<0.000000e+00> : vector<100x64xf32>
    %391 = tpu.matmul %388, %390, %cst_415 {dimension_numbers = #tpu.dot_dimension_numbers<[1], [0], [0], [1], [0, 0, 1, 1], [], []>} : vector<100x64xbf16>, vector<64x64xbf16>, vector<100x64xf32> -> vector<100x64xf32>
    %392 = arith.addf %386, %391 : vector<100x64xf32>
    %c6_416 = arith.constant 6 : index
    %c0_417 = arith.constant 0 : index
    %393 = vector.load %arg6[%c6_416, %c0_417] : memref<132x64xf32, #tpu.memory_space<vmem>>, vector<100x64xf32>
    %394 = arith.truncf %393 : vector<100x64xf32> to vector<100x64xbf16>
    %c6_418 = arith.constant 6 : index
    %c1_419 = arith.constant 1 : index
    %c0_420 = arith.constant 0 : index
    %c0_421 = arith.constant 0 : index
    %395 = vector.load %arg2[%c6_418, %c1_419, %c0_420, %c0_421] : memref<7x9x64x64xbf16, #tpu.memory_space<vmem>>, vector<1x1x64x64xbf16>
    %396 = vector.shape_cast %395 : vector<1x1x64x64xbf16> to vector<64x64xbf16>
    %cst_422 = arith.constant dense<0.000000e+00> : vector<100x64xf32>
    %397 = tpu.matmul %394, %396, %cst_422 {dimension_numbers = #tpu.dot_dimension_numbers<[1], [0], [0], [1], [0, 0, 1, 1], [], []>} : vector<100x64xbf16>, vector<64x64xbf16>, vector<100x64xf32> -> vector<100x64xf32>
    %398 = arith.addf %392, %397 : vector<100x64xf32>
    %c7_423 = arith.constant 7 : index
    %c0_424 = arith.constant 0 : index
    %399 = vector.load %arg6[%c7_423, %c0_424] : memref<132x64xf32, #tpu.memory_space<vmem>>, vector<100x64xf32>
    %400 = arith.truncf %399 : vector<100x64xf32> to vector<100x64xbf16>
    %c6_425 = arith.constant 6 : index
    %c2_426 = arith.constant 2 : index
    %c0_427 = arith.constant 0 : index
    %c0_428 = arith.constant 0 : index
    %401 = vector.load %arg2[%c6_425, %c2_426, %c0_427, %c0_428] : memref<7x9x64x64xbf16, #tpu.memory_space<vmem>>, vector<1x1x64x64xbf16>
    %402 = vector.shape_cast %401 : vector<1x1x64x64xbf16> to vector<64x64xbf16>
    %cst_429 = arith.constant dense<0.000000e+00> : vector<100x64xf32>
    %403 = tpu.matmul %400, %402, %cst_429 {dimension_numbers = #tpu.dot_dimension_numbers<[1], [0], [0], [1], [0, 0, 1, 1], [], []>} : vector<100x64xbf16>, vector<64x64xbf16>, vector<100x64xf32> -> vector<100x64xf32>
    %404 = arith.addf %398, %403 : vector<100x64xf32>
    %c15_430 = arith.constant 15 : index
    %c0_431 = arith.constant 0 : index
    %405 = vector.load %arg6[%c15_430, %c0_431] : memref<132x64xf32, #tpu.memory_space<vmem>>, vector<100x64xf32>
    %406 = arith.truncf %405 : vector<100x64xf32> to vector<100x64xbf16>
    %c6_432 = arith.constant 6 : index
    %c3_433 = arith.constant 3 : index
    %c0_434 = arith.constant 0 : index
    %c0_435 = arith.constant 0 : index
    %407 = vector.load %arg2[%c6_432, %c3_433, %c0_434, %c0_435] : memref<7x9x64x64xbf16, #tpu.memory_space<vmem>>, vector<1x1x64x64xbf16>
    %408 = vector.shape_cast %407 : vector<1x1x64x64xbf16> to vector<64x64xbf16>
    %cst_436 = arith.constant dense<0.000000e+00> : vector<100x64xf32>
    %409 = tpu.matmul %406, %408, %cst_436 {dimension_numbers = #tpu.dot_dimension_numbers<[1], [0], [0], [1], [0, 0, 1, 1], [], []>} : vector<100x64xbf16>, vector<64x64xbf16>, vector<100x64xf32> -> vector<100x64xf32>
    %410 = arith.addf %404, %409 : vector<100x64xf32>
    %c16_437 = arith.constant 16 : index
    %c0_438 = arith.constant 0 : index
    %411 = vector.load %arg6[%c16_437, %c0_438] : memref<132x64xf32, #tpu.memory_space<vmem>>, vector<100x64xf32>
    %412 = arith.truncf %411 : vector<100x64xf32> to vector<100x64xbf16>
    %c6_439 = arith.constant 6 : index
    %c4_440 = arith.constant 4 : index
    %c0_441 = arith.constant 0 : index
    %c0_442 = arith.constant 0 : index
    %413 = vector.load %arg2[%c6_439, %c4_440, %c0_441, %c0_442] : memref<7x9x64x64xbf16, #tpu.memory_space<vmem>>, vector<1x1x64x64xbf16>
    %414 = vector.shape_cast %413 : vector<1x1x64x64xbf16> to vector<64x64xbf16>
    %cst_443 = arith.constant dense<0.000000e+00> : vector<100x64xf32>
    %415 = tpu.matmul %412, %414, %cst_443 {dimension_numbers = #tpu.dot_dimension_numbers<[1], [0], [0], [1], [0, 0, 1, 1], [], []>} : vector<100x64xbf16>, vector<64x64xbf16>, vector<100x64xf32> -> vector<100x64xf32>
    %416 = arith.addf %410, %415 : vector<100x64xf32>
    %c17_444 = arith.constant 17 : index
    %c0_445 = arith.constant 0 : index
    %417 = vector.load %arg6[%c17_444, %c0_445] : memref<132x64xf32, #tpu.memory_space<vmem>>, vector<100x64xf32>
    %418 = arith.truncf %417 : vector<100x64xf32> to vector<100x64xbf16>
    %c6_446 = arith.constant 6 : index
    %c5_447 = arith.constant 5 : index
    %c0_448 = arith.constant 0 : index
    %c0_449 = arith.constant 0 : index
    %419 = vector.load %arg2[%c6_446, %c5_447, %c0_448, %c0_449] : memref<7x9x64x64xbf16, #tpu.memory_space<vmem>>, vector<1x1x64x64xbf16>
    %420 = vector.shape_cast %419 : vector<1x1x64x64xbf16> to vector<64x64xbf16>
    %cst_450 = arith.constant dense<0.000000e+00> : vector<100x64xf32>
    %421 = tpu.matmul %418, %420, %cst_450 {dimension_numbers = #tpu.dot_dimension_numbers<[1], [0], [0], [1], [0, 0, 1, 1], [], []>} : vector<100x64xbf16>, vector<64x64xbf16>, vector<100x64xf32> -> vector<100x64xf32>
    %422 = arith.addf %416, %421 : vector<100x64xf32>
    %c25_451 = arith.constant 25 : index
    %c0_452 = arith.constant 0 : index
    %423 = vector.load %arg6[%c25_451, %c0_452] : memref<132x64xf32, #tpu.memory_space<vmem>>, vector<100x64xf32>
    %424 = arith.truncf %423 : vector<100x64xf32> to vector<100x64xbf16>
    %c6_453 = arith.constant 6 : index
    %c6_454 = arith.constant 6 : index
    %c0_455 = arith.constant 0 : index
    %c0_456 = arith.constant 0 : index
    %425 = vector.load %arg2[%c6_453, %c6_454, %c0_455, %c0_456] : memref<7x9x64x64xbf16, #tpu.memory_space<vmem>>, vector<1x1x64x64xbf16>
    %426 = vector.shape_cast %425 : vector<1x1x64x64xbf16> to vector<64x64xbf16>
    %cst_457 = arith.constant dense<0.000000e+00> : vector<100x64xf32>
    %427 = tpu.matmul %424, %426, %cst_457 {dimension_numbers = #tpu.dot_dimension_numbers<[1], [0], [0], [1], [0, 0, 1, 1], [], []>} : vector<100x64xbf16>, vector<64x64xbf16>, vector<100x64xf32> -> vector<100x64xf32>
    %428 = arith.addf %422, %427 : vector<100x64xf32>
    %c26_458 = arith.constant 26 : index
    %c0_459 = arith.constant 0 : index
    %429 = vector.load %arg6[%c26_458, %c0_459] : memref<132x64xf32, #tpu.memory_space<vmem>>, vector<100x64xf32>
    %430 = arith.truncf %429 : vector<100x64xf32> to vector<100x64xbf16>
    %c6_460 = arith.constant 6 : index
    %c7_461 = arith.constant 7 : index
    %c0_462 = arith.constant 0 : index
    %c0_463 = arith.constant 0 : index
    %431 = vector.load %arg2[%c6_460, %c7_461, %c0_462, %c0_463] : memref<7x9x64x64xbf16, #tpu.memory_space<vmem>>, vector<1x1x64x64xbf16>
    %432 = vector.shape_cast %431 : vector<1x1x64x64xbf16> to vector<64x64xbf16>
    %cst_464 = arith.constant dense<0.000000e+00> : vector<100x64xf32>
    %433 = tpu.matmul %430, %432, %cst_464 {dimension_numbers = #tpu.dot_dimension_numbers<[1], [0], [0], [1], [0, 0, 1, 1], [], []>} : vector<100x64xbf16>, vector<64x64xbf16>, vector<100x64xf32> -> vector<100x64xf32>
    %434 = arith.addf %428, %433 : vector<100x64xf32>
    %c27_465 = arith.constant 27 : index
    %c0_466 = arith.constant 0 : index
    %435 = vector.load %arg6[%c27_465, %c0_466] : memref<132x64xf32, #tpu.memory_space<vmem>>, vector<100x64xf32>
    %436 = arith.truncf %435 : vector<100x64xf32> to vector<100x64xbf16>
    %c6_467 = arith.constant 6 : index
    %c8_468 = arith.constant 8 : index
    %c0_469 = arith.constant 0 : index
    %c0_470 = arith.constant 0 : index
    %437 = vector.load %arg2[%c6_467, %c8_468, %c0_469, %c0_470] : memref<7x9x64x64xbf16, #tpu.memory_space<vmem>>, vector<1x1x64x64xbf16>
    %438 = vector.shape_cast %437 : vector<1x1x64x64xbf16> to vector<64x64xbf16>
    %cst_471 = arith.constant dense<0.000000e+00> : vector<100x64xf32>
    %439 = tpu.matmul %436, %438, %cst_471 {dimension_numbers = #tpu.dot_dimension_numbers<[1], [0], [0], [1], [0, 0, 1, 1], [], []>} : vector<100x64xbf16>, vector<64x64xbf16>, vector<100x64xf32> -> vector<100x64xf32>
    %440 = arith.addf %434, %439 : vector<100x64xf32>
    %c6_472 = arith.constant 6 : index
    %c0_473 = arith.constant 0 : index
    %441 = vector.load %arg3[%c6_472, %c0_473] : memref<7x64xf32, #tpu.memory_space<vmem>>, vector<1x64xf32>
    %442 = vector.broadcast %441 : vector<1x64xf32> to vector<100x64xf32>
    %443 = arith.addf %440, %442 : vector<100x64xf32>
    %444 = vector.broadcast %2 : vector<100x1xf32> to vector<100x64xf32>
    %445 = arith.mulf %443, %444 : vector<100x64xf32>
    %446 = math.tanh %445 : vector<100x64xf32>
    %c0_474 = arith.constant 0 : index
    %c0_475 = arith.constant 0 : index
    %c0_476 = arith.constant 0 : index
    %447 = vector.load %arg5[%c0_474, %c0_475, %c0_476] : memref<1x100x64xf32, #tpu.memory_space<vmem>>, vector<1x100x64xf32>
    %448 = vector.shape_cast %447 : vector<1x100x64xf32> to vector<100x64xf32>
    %449 = vector.shape_cast %446 : vector<100x64xf32> to vector<1x100x64xf32>
    tpu.vector_store %arg5[%c0_474, %c0_475, %c0_476], %449 {strides = array<i32>} : memref<1x100x64xf32, #tpu.memory_space<vmem>>, vector<1x100x64xf32>,
    return
  }
  func.func @transform_0(%arg0: i32) -> (i32, i32, i32) {
    %c0_i32 = arith.constant 0 : i32
    %c0_i32_0 = arith.constant 0 : i32
    %c0_i32_1 = arith.constant 0 : i32
    return %arg0, %c0_i32, %c0_i32_0 : i32, i32, i32
  }
  func.func @transform_1(%arg0: i32) -> (i32, i32, i32, i32) {
    %c0_i32 = arith.constant 0 : i32
    %c0_i32_0 = arith.constant 0 : i32
    %c0_i32_1 = arith.constant 0 : i32
    %c0_i32_2 = arith.constant 0 : i32
    %c0_i32_3 = arith.constant 0 : i32
    return %c0_i32, %c0_i32_0, %c0_i32_1, %c0_i32_2 : i32, i32, i32, i32
  }
  func.func @transform_2(%arg0: i32) -> (i32, i32) {
    %c0_i32 = arith.constant 0 : i32
    %c0_i32_0 = arith.constant 0 : i32
    %c0_i32_1 = arith.constant 0 : i32
    return %c0_i32, %c0_i32_0 : i32, i32
  }
  func.func @transform_3(%arg0: i32) -> (i32, i32) {
    %c0_i32 = arith.constant 0 : i32
    %c0_i32_0 = arith.constant 0 : i32
    %c0_i32_1 = arith.constant 0 : i32
    return %c0_i32, %c0_i32_0 : i32, i32
  }
  func.func @transform_4(%arg0: i32) -> (i32, i32, i32) {
    %c0_i32 = arith.constant 0 : i32
    %c0_i32_0 = arith.constant 0 : i32
    %c0_i32_1 = arith.constant 0 : i32
    return %arg0, %c0_i32, %c0_i32_0 : i32, i32, i32
  }
}

</mosaic_0001>

<bundles_post_ra>
// kernel: output_layer_forward.1
= control target key start
LH: loop header
LB: loop body
LE: loop exit
PB: predicated region body
PF: predicated region fallthrough
CT: control target
= control target key end

     0   :  { %9 = vsyncpa [#allocation4], 0  ;;  %s10673_s15 = smov 0   ;;  %s12855_s0 = inlined_call_operand.vmem [shape: f32[2,100,64], index: 0, kind: input, shape index: {}]   ;;  %s12856_s1 = inlined_call_operand.hbm [shape: bf16[7,9,64,64], index: 1, kind: input, shape index: {}]   ;;  %s12857_s2 = inlined_call_operand.vmem [shape: f32[7,64], index: 2, kind: input, shape index: {}]   ;;  %s12858_s3 = inlined_call_operand.vmem [shape: f32[100,1], index: 3, kind: input, shape index: {}]   ;;  %s12859_s4 = inlined_call_operand.vmem [shape: f32[2,100,64], index: 4, kind: output, shape index: {}]  }
   0x1 LB: > { %s146_s18 = sshll.u32 %s12856_s1, 4  ;;  %s8817_s19 = sadd.s32 4294967295, %s10641_s15   ;;  %s10641_s15 = sphi %s10673_s15, %s15_s15   ;;  %s147_s18 = int_to_ptr.hbm [resolvable:$true] %s146_s18 }
   0x2   : > { %p8819_p0 = scmp.ge.s32.totalorder %s10641_s15, 1  ;;  %p135_p1 = scmp.lt.s32.totalorder %s10641_s15, 3 }
   0x3   : > { %p10550_p2 = scmp.eq.s32.totalorder %s8817_s19, 0  ;;  %s10643_s20 = smov [#allocation3]  }
   0x4   : > { %p136_p3 = pnand %p8819_p0, %p135_p1  ;;  %s148_s21 = sshll.u32 %s10643_s20, 4  ;;  %s149_s21 = int_to_ptr.vmem [resolvable:$true] %s148_s21 }
   0x5   : > { %s10644_s22 = smov 64   ;;  %s10645_s23 = smov 4  }
   0x6   : > { %p10546_p4 = pneg %p136_p3  ;;  %178 = sbr.rel (%p136_p3) target bundleno = 2716 (0xa9c), region = 36 }
   0x8   : > { %p10547_p5 = pnand %p10550_p2, %p10546_p4 }
   0xa   : > { %10549 = dma.hbm_to_vmem [thread:$0]  (!%p10547_p5), %s147_s18, 32256, %s149_s21, [#allocation4], %s10644_s22, %s10644_s22, %s10645_s23  }
   0xb   : > { %10636 = dma.done.wait (%p10550_p2), [#allocation4], 32256  }
   0xc   : > { %10638 = vsyncadd (%p10550_p2), [#allocation4], 4294935040  ;;  %p205_p6 = scmp.lt.s32.totalorder %s8817_s19, 1  ;;  %vm216_vm0 = vcmask 523264   ;;  %v10646_v0 = vmov 0.0   ;;  %v10284_v1 = vld [vmem:[#allocation3 + $0x38] sm:$0xff] }
   0xd   : > { %219 = vst.msk [vmem:[#allocation2 + $0x10] sm:$0xff] %vm216_vm0, %v10646_v0  ;;  %v10693_v2 = vld [vmem:[#allocation3 + $0x58] sm:$0xff]  ;;  %10529 = vmatpush.bf16.msra.mxu3 %v10284_v1  ;;  %v10283_v4 = vld [vmem:[#allocation3 + $0x30] sm:$0xff]  ;;  %380 = vmatpush.bf16.msra.mxu0 %v10284_v1  ;;  %v10282_v10 = vld [vmem:[#allocation3 + $0x28] sm:$0xff]  ;;  %vm233_vm1 = vcmask 519168  }
   0xe   : > { %s13058_s19 = smov (!%p205_p6, %s8817_s19), 1  ;;  %220 = vst.msk [vmem:[#allocation2 + $0x18] sm:$0xff] %vm216_vm0, %v10646_v0  ;;  %v10703_v3 = vld [vmem:[#allocation3 + $0x18] sm:$0xff]  ;;  %10537 = vmatpush.bf16.msra.mxu2 %v10693_v2  ;;  %v10707_v5 = vld [vmem:[#allocation3 + $0x50] sm:$0xff]  ;;  %v10720_v11 = vld [vmem:[#allocation3 + $0x48] sm:$0xff] }
   0xf   : > { %221 = vst.msk [vmem:[#allocation2 + $0x20] sm:$0xff] %vm216_vm0, %v10646_v0  ;;  %s10541_s24 = smul.u32 104, %s13058_s19  ;;  %10533 = vmatpush.bf16.msra.mxu1 %v10703_v3  ;;  %v10711_v6 = vld [vmem:[#allocation3 + $0x10] sm:$0xff]  ;;  %v10278_v12 = vld [vmem:[#allocation3 + $0x8] sm:$0xff]  ;;  %v10281_v13 = vld [vmem:[#allocation3 + $0x20] sm:$0xff] }
  0x10   : > { %217 = vst.msk [vmem:[#allocation2] sm:$0xff] %vm216_vm0, %v10646_v0  ;;  %v10725_v14 = vld [vmem:[#allocation3 + $0x40] sm:$0xff]  ;;  %v10292_v15 = vld [vmem:[#allocation3 + $0x78] sm:$0xff]  ;;  %v10291_v33 = vld [vmem:[#allocation3 + $0x70] sm:$0xff] }
  0x11   : > { %218 = vst.msk [vmem:[#allocation2 + $0x8] sm:$0xff] %vm216_vm0, %v10646_v0  ;;  %s10700_s27 = scalar_lea.vmem %s12855_s0, %s10541_s24  ;;  %10530 = vmatpush.bf16.msra.mxu3 %v10283_v4  ;;  %381 = vmatpush.bf16.msra.mxu0 %v10283_v4  ;;  %v10277_v16 = vld [vmem:[#allocation3] sm:$0xff]  ;;  %v10290_v48 = vld [vmem:[#allocation3 + $0x68] sm:$0xff]  ;;  %s12789_s23 = scalar_lea.vmem %s12859_s4, %s10541_s24 }
  0x12   : > { %222 = vst.msk [vmem:[#allocation2 + $0x28] sm:$0xff] %vm216_vm0, %v10646_v0  ;;  %v248_v7 = vld [vmem:[%s10700_s27] sm:$0xff]  ;;  %v249_v8 = vld [vmem:[%s10700_s27 + $0x8] sm:$0xff]  ;;  %v250_v9 = vld [vmem:[%s10700_s27 + $0x10] sm:$0xff]  ;;  %10538 = vmatpush.bf16.msra.mxu2 %v10707_v5 }
  0x13   : > { %223 = vst.msk [vmem:[#allocation2 + $0x30] sm:$0xff] %vm216_vm0, %v10646_v0  ;;  %10534 = vmatpush.bf16.msra.mxu1 %v10711_v6  ;;  %v251_v17 = vld [vmem:[%s10700_s27 + $0x18] sm:$0xff]  ;;  %v252_v18 = vld [vmem:[%s10700_s27 + $0x20] sm:$0xff]  ;;  %v253_v21 = vld [vmem:[%s10700_s27 + $0x28] sm:$0xff] }
  0x14   : > { %224 = vst.msk [vmem:[#allocation2 + $0x38] sm:$0xff] %vm216_vm0, %v10646_v0  ;;  %v254_v22 = vld [vmem:[%s10700_s27 + $0x30] sm:$0xff]  ;;  %v255_v34 = vld [vmem:[%s10700_s27 + $0x38] sm:$0xff]  ;;  %v256_v35 = vld [vmem:[%s10700_s27 + $0x40] sm:$0xff] }
  0x15   : > { %225 = vst.msk [vmem:[#allocation2 + $0x40] sm:$0xff] %vm216_vm0, %v10646_v0  ;;  %10531 = vmatpush.bf16.msra.mxu3 %v10282_v10  ;;  %382 = vmatpush.bf16.msra.mxu0 %v10282_v10  ;;  %v257_v49 = vld [vmem:[%s10700_s27 + $0x48] sm:$0xff]  ;;  %v258_v50 = vld [vmem:[%s10700_s27 + $0x50] sm:$0xff]  ;;  %v10296_v10 = vld [vmem:[#allocation3 + $0x98] sm:$0xff] }
  0x16   : > { %226 = vst.msk [vmem:[#allocation2 + $0x48] sm:$0xff] %vm216_vm0, %v10646_v0  ;;  %10539 = vmatpush.bf16.msra.mxu2 %v10720_v11  ;;  %v10289_v63 = vld [vmem:[#allocation3 + $0x60] sm:$0xff] }
  0x17   : > { %261 = vst.msk [vmem:[#allocation2 + $0x10] sm:$0xff] %vm216_vm0, %v248_v7  ;;  %10535 = vmatpush.bf16.msra.mxu1 %v10278_v12 }
  0x18   : > { %262 = vst.msk [vmem:[#allocation2 + $0x18] sm:$0xff] %vm216_vm0, %v249_v8  ;;  %v302_v19 = vld [vmem:[#allocation2 + $0x6] sm:$0xff] }
  0x19   : > { %263 = vst.msk [vmem:[#allocation2 + $0x20] sm:$0xff] %vm216_vm0, %v250_v9  ;;  %10532 = vmatpush.bf16.msra.mxu3 %v10281_v13  ;;  %383 = vmatpush.bf16.msra.mxu0 %v10281_v13  ;;  %v274_v42 = vld [vmem:[#allocation2 + $0x5] sm:$0xff] }
  0x1a   : > { %227 = vst.msk [vmem:[#allocation2 + $0x50] sm:$0xff] %vm216_vm0, %v10646_v0  ;;  %10540 = vmatpush.bf16.msra.mxu2 %v10725_v14  ;;  %v507_v57 = vld [vmem:[#allocation2 + $0x7] sm:$0xff] }
  0x1b   : > { %228 = vst.msk [vmem:[#allocation2 + $0x58] sm:$0xff] %vm216_vm0, %v10646_v0  ;;  %10536 = vmatpush.bf16.msra.mxu1 %v10277_v16  ;;  %v10300_v13 = vld [vmem:[#allocation3 + $0xb8] sm:$0xff] }
  0x1c   : > { %229 = vst.msk [vmem:[#allocation2 + $0x60] sm:$0xff] %vm216_vm0, %v10646_v0 }
  0x1d   : > { %230 = vst.msk [vmem:[#allocation2 + $0x68] sm:$0xff] %vm216_vm0, %v10646_v0  ;;  %715 = vmatpush.bf16.msrb.mxu3 %v10292_v15  ;;  %468 = vmatpush.bf16.msrb.mxu0 %v10703_v3  ;;  %v10299_v15 = vld [vmem:[#allocation3 + $0xb0] sm:$0xff] }
  0x1e   : > { %231 = vst.msk [vmem:[#allocation2 + $0x70] sm:$0xff] %vm216_vm0, %v10646_v0  ;;  %v303_v20 = vld [vmem:[#allocation2 + $0xe] sm:$0xff] }
  0x1f   : > { %v304_v23 = vld [vmem:[#allocation2 + $0x16] sm:$0xff]  ;;  %232 = vst.msk [vmem:[#allocation2 + $0x78] sm:$0xff] %vm216_vm0, %v10646_v0  ;;  %v315_v32 = vpack.c.bf16 %v303_v20, %v302_v19  ;;  %v275_v43 = vld [vmem:[#allocation2 + $0xd] sm:$0xff]  ;;  %975 = vmatpush.bf16.msrb.mxu1 %v10300_v13 }
  0x20   : > { %v10737_v24 = vld [vmem:[#allocation2 + $0x17] sm:$0xff]  ;;  %v10739_v27 = vld [vmem:[#allocation2 + $0x1f] sm:$0xff]  ;;  %264 = vst.msk [vmem:[#allocation2 + $0x28] sm:$0xff] %vm216_vm0, %v251_v17  ;;  %v287_v47 = vpack.c.bf16 %v275_v43, %v274_v42  ;;  %v10780_v58 = vld [vmem:[#allocation2 + $0xf] sm:$0xff] }
  0x21   : > { %v276_v25 = vld [vmem:[#allocation2 + $0x15] sm:$0xff]  ;;  %v305_v26 = vld [vmem:[#allocation2 + $0x1e] sm:$0xff]  ;;  %v521_v30 = vpack.c.bf16 %v10739_v27, %v10737_v24  ;;  %265 = vst.msk [vmem:[#allocation2 + $0x30] sm:$0xff] %vm216_vm0, %v252_v18  ;;  %8842 = vmatmul.msk.bf16.vlgmr.msra.gmra.mxu0 %vm216_vm0, %v315_v32  ;;  %716 = vmatpush.bf16.msrb.mxu3 %v10291_v33  ;;  %v520_v62 = vpack.c.bf16 %v10780_v58, %v507_v57 }
  0x22   : > { %v277_v28 = vld [vmem:[#allocation2 + $0x1d] sm:$0xff]  ;;  %v316_v29 = vpack.c.bf16 %v305_v26, %v304_v23  ;;  %266 = vst.msk [vmem:[#allocation2 + $0x38] sm:$0xff] %vm216_vm0, %v253_v21  ;;  %469 = vmatpush.bf16.msrb.mxu0 %v10711_v6  ;;  %v10302_v17 = vld [vmem:[#allocation3 + $0xc8] sm:$0xff] }
  0x23   : > { %v288_v31 = vpack.c.bf16 %v277_v28, %v276_v25  ;;  %267 = vst.msk [vmem:[#allocation2 + $0x40] sm:$0xff] %vm216_vm0, %v254_v22  ;;  %8889 = vmatmul.msk.bf16.vlgmr.msra.gmra.mxu2 %vm216_vm0, %v521_v30  ;;  %v259_v0 = vld [vmem:[%s10700_s27 + $0x58] sm:$0xff]  ;;  %976 = vmatpush.bf16.msrb.mxu1 %v10299_v15  ;;  %v10293_v22 = vld [vmem:[#allocation3 + $0x80] sm:$0xff]  ;;  %v767_v30 = vld [vmem:[#allocation2 + $0x10] sm:$0xff] }
  0x24   : > { %8843 = vmatmul.msk.bf16.vlgmr.msra.gmra.mxu3 %vm216_vm0, %v316_v29  ;;  %268 = vst.msk [vmem:[#allocation2 + $0x48] sm:$0xff] %vm216_vm0, %v255_v34  ;;  %v10308_v33 = vld [vmem:[#allocation3 + $0xf8] sm:$0xff]  ;;  %v10298_v34 = vld [vmem:[#allocation3 + $0xa8] sm:$0xff] }
  0x25   : > { %8866 = vmatmul.msk.bf16.vlgmr.msra.gmra.mxu1 %vm216_vm0, %v288_v31  ;;  %269 = vst.msk [vmem:[#allocation2 + $0x50] sm:$0xff] %vm216_vm0, %v256_v35  ;;  %717 = vmatpush.bf16.msrb.mxu3 %v10290_v48  ;;  %v768_v31 = vld [vmem:[#allocation2 + $0x18] sm:$0xff]  ;;  %v10301_v35 = vld [vmem:[#allocation3 + $0xc0] sm:$0xff] }
  0x26   : > { %470 = vmatpush.bf16.msrb.mxu0 %v10278_v12  ;;  %270 = vst.msk [vmem:[#allocation2 + $0x58] sm:$0xff] %vm216_vm0, %v257_v49  ;;  %v10304_v12 = vld [vmem:[#allocation3 + $0xd8] sm:$0xff]  ;;  %v780_v32 = vpack.c.bf16 %v768_v31, %v767_v30  ;;  %v10307_v49 = vld [vmem:[#allocation3 + $0xf0] sm:$0xff] }
  0x27   : > { %v306_v36 = vld [vmem:[#allocation2 + $0x26] sm:$0xff]  ;;  %271 = vst.msk [vmem:[#allocation2 + $0x60] sm:$0xff] %vm216_vm0, %v258_v50  ;;  %1105 = vmatpush.bf16.msrb.mxu2 %v10304_v12  ;;  %977 = vmatpush.bf16.msrb.mxu1 %v10298_v34  ;;  %v1027_v50 = vld [vmem:[#allocation2 + $0x19] sm:$0xff] }
  0x28   : > { %v307_v37 = vld [vmem:[#allocation2 + $0x2e] sm:$0xff]  ;;  %v278_v40 = vld [vmem:[#allocation2 + $0x25] sm:$0xff]  ;;  %272 = vst.msk [vmem:[#allocation2 + $0x68] sm:$0xff] %vm216_vm0, %v259_v0 }
  0x29   : > { %v10758_v38 = vld [vmem:[#allocation2 + $0x27] sm:$0xff]  ;;  %v10760_v39 = vld [vmem:[#allocation2 + $0x2f] sm:$0xff]  ;;  %v317_v44 = vpack.c.bf16 %v307_v37, %v306_v36  ;;  %v10775_v53 = vld [vmem:[#allocation2 + $0x37] sm:$0xff]  ;;  %718 = vmatpush.bf16.msrb.mxu3 %v10289_v63 }
  0x2a   : > { %v279_v41 = vld [vmem:[#allocation2 + $0x2d] sm:$0xff]  ;;  %v522_v45 = vpack.c.bf16 %v10760_v39, %v10758_v38  ;;  %471 = vmatpush.bf16.msrb.mxu0 %v10277_v16  ;;  %v308_v51 = vld [vmem:[#allocation2 + $0x36] sm:$0xff]  ;;  %v309_v52 = vld [vmem:[#allocation2 + $0x3e] sm:$0xff] }
  0x2b   : > { %v289_v46 = vpack.c.bf16 %v279_v41, %v278_v40  ;;  %v10777_v54 = vld [vmem:[#allocation2 + $0x3f] sm:$0xff]  ;;  %v280_v55 = vld [vmem:[#allocation2 + $0x35] sm:$0xff]  ;;  %v318_v59 = vpack.c.bf16 %v309_v52, %v308_v51  ;;  %v10791_v3 = vld [vmem:[#allocation2 + $0x47] sm:$0xff] }
  0x2c   : > { %v281_v56 = vld [vmem:[#allocation2 + $0x3d] sm:$0xff]  ;;  %v523_v60 = vpack.c.bf16 %v10777_v54, %v10775_v53  ;;  %v310_v1 = vld [vmem:[#allocation2 + $0x46] sm:$0xff]  ;;  %v10793_v4 = vld [vmem:[#allocation2 + $0x4f] sm:$0xff]  ;;  %v653_v31 = vpack.c.bf16 %v10791_v3, %v10777_v54 }
  0x2d   : > { %v290_v61 = vpack.c.bf16 %v281_v56, %v280_v55  ;;  %v283_v6 = vld [vmem:[#allocation2 + $0x4d] sm:$0xff]  ;;  %v524_v8 = vpack.c.bf16 %v10793_v4, %v10791_v3  ;;  %v312_v18 = vld [vmem:[#allocation2 + $0x56] sm:$0xff]  ;;  %1235 = vmatpush.bf16.msra.mxu3 %v10308_v33  ;;  %v10312_v37 = vld [vmem:[#allocation3 + $0x118] sm:$0xff]  ;;  %v650_v55 = vpack.c.bf16 %v10737_v24, %v10780_v58  ;;  %v651_v24 = vpack.c.bf16 %v10758_v38, %v10739_v27 }
  0x2e   : > { %585 = vmatpush.bf16.msra.mxu0 %v10693_v2  ;;  %v311_v2 = vld [vmem:[#allocation2 + $0x4e] sm:$0xff]  ;;  %v313_v19 = vld [vmem:[#allocation2 + $0x5e] sm:$0xff]  ;;  %v652_v27 = vpack.c.bf16 %v10775_v53, %v10760_v39 }
  0x2f   : > { %v319_v7 = vpack.c.bf16 %v311_v2, %v310_v1  ;;  %v10294_v16 = vld [vmem:[#allocation3 + $0x88] sm:$0xff]  ;;  %v10802_v21 = vld [vmem:[#allocation2 + $0x5f] sm:$0xff]  ;;  %v320_v26 = vpack.c.bf16 %v313_v19, %v312_v18  ;;  %v10297_v36 = vld [vmem:[#allocation3 + $0xa0] sm:$0xff] }
  0x30   : > { %v10800_v20 = vld [vmem:[#allocation2 + $0x57] sm:$0xff]  ;;  %978 = vmatpush.bf16.msrb.mxu1 %v10297_v36  ;;  %v314_v40 = vld [vmem:[#allocation2 + $0x66] sm:$0xf] }
  0x31   : > { %8865 = vmatmul.msk.bf16.vlgmr.msrb.gmra.mxu0 %vm216_vm0, %v287_v47  ;;  %v284_v23 = vld [vmem:[#allocation2 + $0x55] sm:$0xff]  ;;  %v285_v25 = vld [vmem:[#allocation2 + $0x5d] sm:$0xff]  ;;  %v525_v28 = vpack.c.bf16 %v10802_v21, %v10800_v20  ;;  %v519_v41 = vld [vmem:[#allocation2 + $0x67] sm:$0xf]  ;;  %v321_v43 = vpack.c.bf16 %v314_v40, %v314_v40  ;;  %1236 = vmatpush.bf16.msra.mxu3 %v10307_v49 }
  0x32   : > { %586 = vmatpush.bf16.msra.mxu0 %v10707_v5  ;;  %v282_v5 = vld [vmem:[#allocation2 + $0x45] sm:$0xff]  ;;  %v292_v29 = vpack.c.bf16 %v285_v25, %v284_v23  ;;  %v897_v52 = vld [vmem:[#allocation2 + $0x11] sm:$0xff] }
  0x33   : > { %8890 = vmatmul.msk.bf16.gmra.mxu2 %vm216_vm0, %v522_v45  ;;  %v291_v9 = vpack.c.bf16 %v283_v6, %v282_v5  ;;  %v286_v42 = vld [vmem:[#allocation2 + $0x65] sm:$0xf]  ;;  %v910_v57 = vpack.c.bf16 %v1027_v50, %v897_v52  ;;  %v1029_v63 = vld [vmem:[#allocation2 + $0x29] sm:$0xff]  ;;  %v1030_v0 = vld [vmem:[#allocation2 + $0x31] sm:$0xff]  ;;  %v654_v52 = vpack.c.bf16 %v10800_v20, %v10793_v4 }
  0x34   : > { %8844 = vmatmul.msk.bf16.gmra.mxu3 %vm216_vm0, %v317_v44  ;;  %v526_v44 = vpack.c.bf16 %v519_v41, %v519_v41  ;;  %v293_v45 = vpack.c.bf16 %v286_v42, %v286_v42  ;;  %v770_v47 = vld [vmem:[#allocation2 + $0x28] sm:$0xff]  ;;  %v1041_v58 = vpack.c.bf16 %v1030_v0, %v1029_v63  ;;  %v773_v2 = vld [vmem:[#allocation2 + $0x40] sm:$0xff]  ;;  %v776_v12 = vld [vmem:[#allocation2 + $0x58] sm:$0xff] }
  0x35   : > { %8867 = vmatmul.msk.bf16.gmra.mxu1 %vm216_vm0, %v289_v46  ;;  %v769_v46 = vld [vmem:[#allocation2 + $0x20] sm:$0xff]  ;;  %v774_v5 = vld [vmem:[#allocation2 + $0x48] sm:$0xff]  ;;  %v1034_v25 = vld [vmem:[#allocation2 + $0x51] sm:$0xff] }
  0x36   : > { %587 = vmatpush.bf16.msra.mxu0 %v10720_v11  ;;  %v10295_v11 = vld [vmem:[#allocation3 + $0x90] sm:$0xff]  ;;  %v781_v48 = vpack.c.bf16 %v770_v47, %v769_v46  ;;  %v1028_v51 = vld [vmem:[#allocation2 + $0x21] sm:$0xff]  ;;  %v783_v6 = vpack.c.bf16 %v774_v5, %v773_v2  ;;  %v1033_v23 = vld [vmem:[#allocation2 + $0x49] sm:$0xff] }
  0x37   : > { %v1040_v56 = vpack.c.bf16 %v1028_v51, %v1027_v50  ;;  %v911_v1 = vpack.c.bf16 %v1029_v63, %v1028_v51  ;;  %v777_v34 = vld [vmem:[#allocation2 + $0x60] sm:$0xff] }
  0x38   : > { %v1036_v49 = vld [vmem:[#allocation2 + $0x61] sm:$0xff] }
  0x39   : > { %v235_v2 = vld [vmem:[%s12858_s3] sm:$0xff] }
  0x3a   : > { %588 = vmatpush.bf16.msra.mxu0 %v10725_v14  ;;  %v10303_v14 = vld [vmem:[#allocation3 + $0xd0] sm:$0xff]  ;;  %v648_v5 = vld [vmem:[#allocation2 + $0x67] sm:$0xff] }
  0x3b   : > { %1106 = vmatpush.bf16.msrb.mxu2 %v10303_v14 }
  0x3e   : > { %845 = vmatpush.bf16.msrb.mxu0 %v10296_v10 }
  0x3f   : > { %1107 = vmatpush.bf16.msrb.mxu2 %v10302_v17 }
  0x41   : > { %8888 = vmatmul.msk.bf16.vlgmr.msra.gmra.mxu0 %vm216_vm0, %v520_v62  ;;  %v10311_v62 = vld [vmem:[#allocation3 + $0x110] sm:$0xff] }
  0x42   : > { %846 = vmatpush.bf16.msrb.mxu0 %v10295_v11  ;;  %v775_v11 = vld [vmem:[#allocation2 + $0x50] sm:$0xff] }
  0x43   : > { %8891 = vmatmul.msk.bf16.gmra.mxu2 %vm216_vm0, %v523_v60  ;;  %v772_v60 = vld [vmem:[#allocation2 + $0x38] sm:$0xff]  ;;  %v784_v14 = vpack.c.bf16 %v776_v12, %v775_v11 }
  0x44   : > { %8845 = vmatmul.msk.bf16.gmra.mxu3 %vm216_vm0, %v318_v59  ;;  %1108 = vmatpush.bf16.msrb.mxu2 %v10301_v35  ;;  %v771_v59 = vld [vmem:[#allocation2 + $0x30] sm:$0xff]  ;;  %v778_v35 = vld [vmem:[#allocation2 + $0x68] sm:$0xff]  ;;  %v1287_v11 = vld [vmem:[#allocation2 + $0x1b] sm:$0xff] }
  0x45   : > { %8868 = vmatmul.msk.bf16.gmra.mxu1 %vm216_vm0, %v290_v61  ;;  %v782_v61 = vpack.c.bf16 %v772_v60, %v771_v59  ;;  %v785_v40 = vpack.c.bf16 %v778_v35, %v777_v34  ;;  %v244_v34 = vld [vmem:[%s12858_s3 + $0x48] sm:$0xff] }
  0x46   : > { %847 = vmatpush.bf16.msrb.mxu0 %v10294_v16  ;;  %v10310_v16 = vld [vmem:[#allocation3 + $0x108] sm:$0xff] }
  0x4a   : > { %848 = vmatpush.bf16.msrb.mxu0 %v10293_v22 }
  0x4e   : > { %1365 = vmatpush.bf16.msra.mxu0 %v10312_v37 }
  0x51   : > { %8934 = vmatmul.msk.bf16.vlgmr.msrb.gmra.mxu0 %vm216_vm0, %v780_v32  ;;  %v1043_v32 = vpack.c.bf16 %v1034_v25, %v1033_v23 }
  0x52   : > { %1366 = vmatpush.bf16.msra.mxu0 %v10311_v62 }
  0x53   : > { %8892 = vmatmul.msk.bf16.gmra.mxu2 %vm216_vm0, %v524_v8  ;;  %v1031_v8 = vld [vmem:[#allocation2 + $0x39] sm:$0xff] }
  0x54   : > { %8846 = vmatmul.msk.bf16.gmra.mxu3 %vm216_vm0, %v319_v7  ;;  %v10306_v7 = vld [vmem:[#allocation3 + $0xe8] sm:$0xff]  ;;  %v912_v10 = vpack.c.bf16 %v1031_v8, %v1030_v0 }
  0x55   : > { %8869 = vmatmul.msk.bf16.gmra.mxu1 %vm216_vm0, %v291_v9  ;;  %1237 = vmatpush.bf16.msra.mxu3 %v10306_v7  ;;  %v1032_v9 = vld [vmem:[#allocation2 + $0x41] sm:$0xff] }
  0x56   : > { %v1042_v38 = vpack.c.bf16 %v1032_v9, %v1031_v8  ;;  %1367 = vmatpush.bf16.msra.mxu0 %v10310_v16  ;;  %v913_v33 = vpack.c.bf16 %v1033_v23, %v1032_v9  ;;  %v241_v23 = vld [vmem:[%s12858_s3 + $0x30] sm:$0xff] }
  0x61   : > { %8935 = vmatmul.msk.bf16.gmra.mxu0 %vm216_vm0, %v781_v48  ;;  %v1035_v48 = vld [vmem:[#allocation2 + $0x59] sm:$0xff] }
  0x63   : > { %8893 = vmatmul.msk.bf16.gmra.mxu2 %vm216_vm0, %v525_v28 }
  0x64   : > { %8847 = vmatmul.msk.bf16.gmra.mxu3 %vm216_vm0, %v320_v26 }
  0x65   : > { %8870 = vmatmul.msk.bf16.gmra.mxu1 %vm216_vm0, %v292_v29  ;;  %v260_v29 = vld [vmem:[%s10700_s27 + $0x60] sm:$0xf] }
  0x66   : > { %273 = vst.msk [vmem:[#allocation2 + $0x70] sm:$0xf] %vm233_vm1, %v260_v29 }
  0x6d   : > { %v779_v59 = vld [vmem:[#allocation2 + $0x70] sm:$0xf] }
  0x6e   : > { %v1038_v7 = vld [vmem:[#allocation2 + $0x71] sm:$0xff] }
  0x71   : > { %8936 = vmatmul.msk.bf16.gmra.mxu0 %vm216_vm0, %v782_v61  ;;  %v786_v61 = vpack.c.bf16 %v779_v59, %v779_v59  ;;  %v1158_v59 = vld [vmem:[#allocation2 + $0x22] sm:$0xff] }
  0x73   : > { %8894 = vmatmul.msk.bf16.gmra.mxu2 %vm216_vm0, %v526_v44  ;;  %v10305_v44 = vld [vmem:[#allocation3 + $0xe0] sm:$0xff] }
  0x74   : > { %8848 = vmatmul.msk.bf16.gmra.mxu3 %vm216_vm0, %v321_v43 }
  0x75   : > { %8871 = vmatmul.msk.bf16.gmra.mxu1 %vm216_vm0, %v293_v45  ;;  %1238 = vmatpush.bf16.msra.mxu3 %v10305_v44 }
  0x81   : > { %8937 = vmatmul.msk.bf16.gmra.mxu0 %vm216_vm0, %v783_v6  ;;  %v1037_v6 = vld [vmem:[#allocation2 + $0x69] sm:$0xff] }
  0x83   : > { %8980 = vmatmul.msk.bf16.vlgmr.msrb.gmra.mxu2 %vm216_vm0, %v1040_v56  ;;  %v10309_v56 = vld [vmem:[#allocation3 + $0x100] sm:$0xff] }
  0x84   : > { %8911 = vmatmul.msk.bf16.vlgmr.msrb.gmra.mxu3 %vm216_vm0, %v650_v55  ;;  %v1044_v55 = vpack.c.bf16 %v1036_v49, %v1035_v48  ;;  %1368 = vmatpush.bf16.msra.mxu0 %v10309_v56 }
  0x85   : > { %8957 = vmatmul.msk.bf16.vlgmr.msrb.gmra.mxu1 %vm216_vm0, %v910_v57  ;;  %v914_v57 = vpack.c.bf16 %v1035_v48, %v1034_v25  ;;  %v649_v25 = vld [vmem:[#allocation2 + $0x6f] sm:$0xf]  ;;  %v238_v48 = vld [vmem:[%s12858_s3 + $0x18] sm:$0xff] }
  0x91   : > { %8938 = vmatmul.msk.bf16.gmra.mxu0 %vm216_vm0, %v784_v14  ;;  %v1288_v14 = vld [vmem:[#allocation2 + $0x23] sm:$0xff] }
  0x93   : > { %8981 = vmatmul.msk.bf16.gmra.mxu2 %vm216_vm0, %v1041_v58 }
  0x94   : > { %8912 = vmatmul.msk.bf16.gmra.mxu3 %vm216_vm0, %v651_v24 }
  0x95   : > { %8958 = vmatmul.msk.bf16.gmra.mxu1 %vm216_vm0, %v911_v1  ;;  %v10647_v1 = vmov 0  }
  0x96   : > { %10565 = vset.pattern.permute.xlu0 %v10647_v1  ;;  %10566 = vset.pattern.permute.xlu1 %v10647_v1 }
  0x97   : > { %1434 = vperm.xlu0 %10565, %v235_v2   ;;  %10567 = vset.pattern.permute.xlu2 %v10647_v1  ;;  %v1292_v2 = vld [vmem:[#allocation2 + $0x43] sm:$0xff] }
  0x9e   : > { %v385_v15 = vpop.f32.mrf.mxu0 }
  0xa1   : > { %8939 = vmatmul.msk.bf16.gmra.mxu0 %vm216_vm0, %v785_v40  ;;  %v1290_v40 = vld [vmem:[#allocation2 + $0x33] sm:$0xff] }
  0xa2   : > { %v478_v13 = vpop.f32.mrf.mxu1 }
  0xa3   : > { %8982 = vmatmul.msk.bf16.gmra.mxu2 %vm216_vm0, %v1042_v38  ;;  %v1045_v38 = vpack.c.bf16 %v1038_v7, %v1037_v6 }
  0xa4   : > { %8913 = vmatmul.msk.bf16.gmra.mxu3 %vm216_vm0, %v652_v27  ;;  %v655_v27 = vpack.c.bf16 %v648_v5, %v10802_v21 }
  0xa5   : > { %8959 = vmatmul.msk.bf16.gmra.mxu1 %vm216_vm0, %v912_v10  ;;  %v915_v10 = vpack.c.bf16 %v1037_v6, %v1036_v49  ;;  %v247_v49 = vld [vmem:[%s12858_s3 + $0x60] sm:$0xf] }
  0xa6   : > { %v595_v39 = vpop.f32.mrf.mxu2  ;;  %v10834_v22 = vpop.f32.mrf.mxu0 }
  0xa7   : > { %v390_v17 = vpop.f32.mrf.mxu3 }
  0xa8   : > { %v479_v53 = vadd.f32 %v478_v13, %v390_v17  ;;  %v236_v13 = vld [vmem:[%s12858_s3 + $0x8] sm:$0xff] }
  0xa9   : > { %1439 = vperm.xlu0 %10565, %v236_v13  }
  0xaa   : > { %v10832_v18 = vadd.f32 %v595_v39, %v479_v53  ;;  %v480_v19 = vpop.f32.mrf.mxu1 }
  0xae   : > { %v597_v28 = vpop.f32.mrf.mxu2  ;;  %v473_v41 = vpop.f32.mrf.mxu0 }
  0xaf   : > { %v392_v26 = vpop.f32.mrf.mxu3  ;;  %v474_v42 = vadd.f32 %v473_v41, %v385_v15  ;;  %v1300_v15 = vpack.c.bf16 %v1288_v14, %v1287_v11  ;;  %v1159_v14 = vld [vmem:[#allocation2 + $0x2a] sm:$0xff] }
  0xb0   : > { %v481_v30 = vadd.f32 %v480_v19, %v392_v26  ;;  %v1039_v26 = vld [vmem:[#allocation2 + $0x79] sm:$0xf] }
  0xb1   : > { %8940 = vmatmul.msk.bf16.gmra.mxu0 %vm216_vm0, %v786_v61  ;;  %1464 = vperm.xlu0 %10565, %v241_v23   ;;  %v1293_v23 = vld [vmem:[#allocation2 + $0x4b] sm:$0xff] }
  0xb2   : > { %v10840_v36 = vadd.f32 %v597_v28, %v481_v30  ;;  %v483_v37 = vpop.f32.mrf.mxu1  ;;  %v909_v28 = vld [vmem:[#allocation2 + $0x71] sm:$0xf] }
  0xb3   : > { %8983 = vmatmul.msk.bf16.gmra.mxu2 %vm216_vm0, %v1043_v32  ;;  %v656_v32 = vpack.c.bf16 %v649_v25, %v649_v25  ;;  %v916_v35 = vpack.c.bf16 %v909_v28, %v909_v28  ;;  %v1294_v28 = vld [vmem:[#allocation2 + $0x53] sm:$0xff] }
  0xb4   : > { %8914 = vmatmul.msk.bf16.gmra.mxu3 %vm216_vm0, %v653_v31  ;;  %v237_v31 = vld [vmem:[%s12858_s3 + $0x10] sm:$0xff] }
  0xb5   : > { %8960 = vmatmul.msk.bf16.gmra.mxu1 %vm216_vm0, %v913_v33  ;;  %v1046_v33 = vpack.c.bf16 %v1039_v26, %v1039_v26  ;;  %1444 = vperm.xlu1 %10566, %v237_v31   ;;  %v1303_v31 = vpack.c.bf16 %v1294_v28, %v1293_v23 }
  0xb6   : > { %v600_v3 = vpop.f32.mrf.mxu2  ;;  %v10850_v47 = vpop.f32.mrf.mxu0 }
  0xb7   : > { %v395_v54 = vpop.f32.mrf.mxu3 }
  0xb8   : > { %v484_v43 = vadd.f32 %v483_v37, %v395_v54  ;;  %v1289_v37 = vld [vmem:[#allocation2 + $0x2b] sm:$0xff] }
  0xb9   : > { %v1301_v54 = vpack.c.bf16 %v1290_v40, %v1289_v37  ;;  %1479 = vperm.xlu0 %10565, %v244_v34   ;;  %v476_v37 = vadd.f32 %v10850_v47, %v10834_v22  ;;  %v240_v22 = vld [vmem:[%s12858_s3 + $0x28] sm:$0xff]  ;;  %v1295_v47 = vld [vmem:[#allocation2 + $0x5b] sm:$0xff] }
  0xba   : > { %v10846_v45 = vadd.f32 %v600_v3, %v484_v43  ;;  %v10848_v46 = vpop.f32.mrf.mxu1 }
  0xbd   : > { %1449 = vperm.xlu1 %10566, %v238_v48  }
  0xbe   : > { %v10854_v51 = vpop.f32.mrf.mxu2  ;;  %v590_v62 = vpop.f32.mrf.mxu0 }
  0xbf   : > { %v10852_v50 = vpop.f32.mrf.mxu3  ;;  %v10860_v63 = vadd.f32 %v590_v62, %v474_v42 }
  0xc1   : > { %9026 = vmatmul.msk.bf16.vlgmr.msra.gmra.mxu0 %vm216_vm0, %v1300_v15  ;;  %1494 = vperm.xlu0 %10565, %v247_v49   ;;  %v1160_v15 = vld [vmem:[#allocation2 + $0x32] sm:$0xff] }
  0xc2   : > { %v488_v60 = vpop.f32.mrf.mxu1 }
  0xc3   : > { %8984 = vmatmul.msk.bf16.gmra.mxu2 %vm216_vm0, %v1044_v55 }
  0xc4   : > { %8915 = vmatmul.msk.bf16.gmra.mxu3 %vm216_vm0, %v654_v52 }
  0xc5   : > { %8961 = vmatmul.msk.bf16.gmra.mxu1 %vm216_vm0, %v914_v57  ;;  %v1157_v57 = vld [vmem:[#allocation2 + $0x1a] sm:$0xff] }
  0xc6   : > { %v605_v4 = vpop.f32.mrf.mxu2  ;;  %v10885_v53 = vpop.f32.mrf.mxu0  ;;  %v1170_v62 = vpack.c.bf16 %v1158_v59, %v1157_v57 }
  0xc7   : > { %v400_v0 = vpop.f32.mrf.mxu3  ;;  %v625_v48 = vadd.f32 %v10885_v53, %v476_v37  ;;  %v10319_v53 = vld [vmem:[#allocation3 + $0x150] sm:$0xff] }
  0xc8   : > { %v489_v20 = vadd.f32 %v488_v60, %v400_v0  ;;  %v242_v0 = vld [vmem:[%s12858_s3 + $0x38] sm:$0xff] }
  0xc9   : > { %1469 = vperm.xlu1 %10566, %v242_v0  }
  0xca   : > { %v10864_v24 = vadd.f32 %v605_v4, %v489_v20  ;;  %v10866_v58 = vpop.f32.mrf.mxu1  ;;  %v1291_v4 = vld [vmem:[#allocation2 + $0x3b] sm:$0xff] }
  0xcb   : > { %v1302_v5 = vpack.c.bf16 %v1292_v2, %v1291_v4 }
  0xce   : > { %v10873_v9 = vpop.f32.mrf.mxu2  ;;  %v850_v42 = vpop.f32.mrf.mxu0 }
  0xcf   : > { %v10871_v8 = vpop.f32.mrf.mxu3 }
  0xd1   : > { %9027 = vmatmul.msk.bf16.gmra.mxu0 %vm216_vm0, %v1301_v54 }
  0xd2   : > { %v493_v12 = vpop.f32.mrf.mxu1 }
  0xd3   : > { %8985 = vmatmul.msk.bf16.gmra.mxu2 %vm216_vm0, %v1045_v38  ;;  %v10320_v38 = vld [vmem:[#allocation3 + $0x158] sm:$0xff] }
  0xd4   : > { %8916 = vmatmul.msk.bf16.gmra.mxu3 %vm216_vm0, %v655_v27  ;;  %1630 = vmatpush.bf16.msra.mxu1 %v10320_v38 }
  0xd5   : > { %8962 = vmatmul.msk.bf16.gmra.mxu1 %vm216_vm0, %v915_v10  ;;  %v245_v10 = vld [vmem:[%s12858_s3 + $0x50] sm:$0xff] }
  0xd6   : > { %v610_v16 = vpop.f32.mrf.mxu2  ;;  %v852_v56 = vpop.f32.mrf.mxu0  ;;  %1484 = vperm.xlu1 %10566, %v245_v10  }
  0xd7   : > { %v405_v21 = vpop.f32.mrf.mxu3 }
  0xd8   : > { %v494_v17 = vadd.f32 %v493_v12, %v405_v21  ;;  %1631 = vmatpush.bf16.msra.mxu1 %v10319_v53  ;;  %v1299_v53 = vld [vmem:[#allocation2 + $0x7b] sm:$0xf] }
  0xda   : > { %v10883_v39 = vadd.f32 %v610_v16, %v494_v17  ;;  %v10887_v19 = vpop.f32.mrf.mxu1  ;;  %v1171_v17 = vpack.c.bf16 %v1160_v15, %v1159_v14  ;;  %v1163_v14 = vld [vmem:[#allocation2 + $0x4a] sm:$0xff]  ;;  %v1164_v15 = vld [vmem:[#allocation2 + $0x52] sm:$0xff] }
  0xdb   : > { %v1173_v23 = vpack.c.bf16 %v1164_v15, %v1163_v14  ;;  %v1168_v14 = vld [vmem:[#allocation2 + $0x72] sm:$0xff] }
  0xde   : > { %v10894_v30 = vpop.f32.mrf.mxu2  ;;  %v855_v1 = vpop.f32.mrf.mxu0 }
  0xdf   : > { %v10892_v29 = vpop.f32.mrf.mxu3 }
  0xe1   : > { %9028 = vmatmul.msk.bf16.gmra.mxu0 %vm216_vm0, %v1302_v5 }
  0xe2   : > { %v498_v41 = vpop.f32.mrf.mxu1 }
  0xe3   : > { %8986 = vmatmul.msk.bf16.gmra.mxu2 %vm216_vm0, %v1046_v33 }
  0xe4   : > { %8917 = vmatmul.msk.bf16.gmra.mxu3 %vm216_vm0, %v656_v32 }
  0xe5   : > { %8963 = vmatmul.msk.bf16.gmra.mxu1 %vm216_vm0, %v916_v35  ;;  %v239_v35 = vld [vmem:[%s12858_s3 + $0x20] sm:$0xff] }
  0xe6   : > { %v615_v43 = vpop.f32.mrf.mxu2  ;;  %v10930_v13 = vpop.f32.mrf.mxu0  ;;  %1454 = vperm.xlu2 %10567, %v239_v35  }
  0xe7   : > { %v410_v3 = vpop.f32.mrf.mxu3 }
  0xe8   : > { %v499_v44 = vadd.f32 %v498_v41, %v410_v3 }
  0xea   : > { %v10912_v52 = vadd.f32 %v615_v43, %v499_v44  ;;  %v10914_v55 = vpop.f32.mrf.mxu1  ;;  %v1161_v43 = vld [vmem:[#allocation2 + $0x3a] sm:$0xff]  ;;  %v1162_v44 = vld [vmem:[#allocation2 + $0x42] sm:$0xff] }
  0xee   : > { %v10918_v61 = vpop.f32.mrf.mxu2  ;;  %v10932_v26 = vpop.f32.mrf.mxu0  ;;  %1459 = vperm.xlu2 %10567, %v240_v22  }
  0xef   : > { %v10916_v60 = vpop.f32.mrf.mxu3 }
  0xf1   : > { %9029 = vmatmul.msk.bf16.gmra.mxu0 %vm216_vm0, %v1303_v31 }
  0xf2   : > { %v503_v20 = vpop.f32.mrf.mxu1 }
  0xf4   : > { %9003 = vmatmul.msk.bf16.vlgmr.msra.gmra.mxu3 %vm216_vm0, %v1170_v62  ;;  %v1172_v62 = vpack.c.bf16 %v1162_v44, %v1161_v43  ;;  %v1165_v44 = vld [vmem:[#allocation2 + $0x5a] sm:$0xff] }
  0xf6   : > { %v620_v7 = vpop.f32.mrf.mxu2  ;;  %v10944_v54 = vpop.f32.mrf.mxu0 }
  0xf7   : > { %v415_v6 = vpop.f32.mrf.mxu3 }
  0xf8   : > { %v504_v27 = vadd.f32 %v503_v20, %v415_v6  ;;  %v1296_v20 = vld [vmem:[#allocation2 + $0x63] sm:$0xff] }
  0xf9   : > { %v1304_v2 = vpack.c.bf16 %v1296_v20, %v1295_v47  ;;  %v10318_v47 = vld [vmem:[#allocation3 + $0x148] sm:$0xff] }
  0xfa   : > { %v10928_v11 = vadd.f32 %v620_v7, %v504_v27  ;;  %v505_v12 = vpop.f32.mrf.mxu1  ;;  %v243_v27 = vld [vmem:[%s12858_s3 + $0x40] sm:$0xff]  ;;  %1632 = vmatpush.bf16.msra.mxu1 %v10318_v47 }
  0xfb   : > { %1474 = vperm.xlu2 %10567, %v243_v27   ;;  %v1306_v27 = vpack.c.bf16 %v1299_v53, %v1299_v53 }
  0xfe   : > { %v622_v16 = vpop.f32.mrf.mxu2  ;;  %v865_v4 = vpop.f32.mrf.mxu0 }
  0xff   : > { %v417_v21 = vpop.f32.mrf.mxu3 }
 0x101   : > { %9030 = vmatmul.msk.bf16.gmra.mxu0 %vm216_vm0, %v1304_v2 }
 0x102   : > { %v980_v25 = vpop.f32.mrf.mxu1 }
 0x104   : > { %9004 = vmatmul.msk.bf16.gmra.mxu3 %vm216_vm0, %v1171_v17 }
 0x106   : > { %v1110_v33 = vpop.f32.mrf.mxu2  ;;  %v10964_v10 = vpop.f32.mrf.mxu0 }
 0x107   : > { %v720_v32 = vpop.f32.mrf.mxu3 }
 0x108   : > { %v754_v34 = vadd.f32 %v720_v32, %v10860_v63 }
 0x10a   : > { %v884_v40 = vadd.f32 %v850_v42, %v754_v34  ;;  %v10942_v41 = vpop.f32.mrf.mxu1 }
 0x10c   : > { %v1014_v3 = vadd.f32 %v980_v25, %v884_v40  ;;  %v246_v25 = vld [vmem:[%s12858_s3 + $0x58] sm:$0xff] }
 0x10d   : > { %1489 = vperm.xlu2 %10567, %v246_v25  }
 0x10e   : > { %v10947_v49 = vadd.f32 %v1110_v33, %v1014_v3  ;;  %v10949_v57 = vpop.f32.mrf.mxu2  ;;  %v870_v32 = vpop.f32.mrf.mxu0  ;;  %v1298_v33 = vld [vmem:[#allocation2 + $0x73] sm:$0xff] }
 0x10f   : > { %v722_v63 = vpop.f32.mrf.mxu3 }
 0x110   : > { %v755_v59 = vadd.f32 %v722_v63, %v625_v48  ;;  %v1166_v48 = vld [vmem:[#allocation2 + $0x62] sm:$0xff] }
 0x111   : > { %v1174_v22 = vpack.c.bf16 %v1166_v48, %v1165_v44 }
 0x112   : > { %v10954_v42 = vadd.f32 %v852_v56, %v755_v59  ;;  %v985_v0 = vpop.f32.mrf.mxu1 }
 0x114   : > { %9005 = vmatmul.msk.bf16.gmra.mxu3 %vm216_vm0, %v1172_v62 }
 0x116   : > { %v1115_v6 = vpop.f32.mrf.mxu2  ;;  %v10983_v43 = vpop.f32.mrf.mxu0 }
 0x117   : > { %v725_v5 = vpop.f32.mrf.mxu3 }
 0x118   : > { %v756_v7 = vadd.f32 %v725_v5, %v10832_v18 }
 0x11a   : > { %v886_v56 = vadd.f32 %v855_v1, %v756_v7  ;;  %v10962_v38 = vpop.f32.mrf.mxu1  ;;  %v1297_v1 = vld [vmem:[#allocation2 + $0x6b] sm:$0xff] }
 0x11b   : > { %v1305_v34 = vpack.c.bf16 %v1298_v33, %v1297_v1 }
 0x11c   : > { %v1016_v12 = vadd.f32 %v985_v0, %v886_v56 }
 0x11d   : > { %9031 = vmatmul.msk.bf16.gmra.mxu0 %vm216_vm0, %v1305_v34 }
 0x11e   : > { %v10966_v21 = vadd.f32 %v1115_v6, %v1016_v12  ;;  %v10968_v17 = vpop.f32.mrf.mxu2  ;;  %v875_v20 = vpop.f32.mrf.mxu0  ;;  %v1167_v12 = vld [vmem:[#allocation2 + $0x6a] sm:$0xff] }
 0x11f   : > { %v727_v16 = vpop.f32.mrf.mxu3 }
 0x120   : > { %v757_v18 = vadd.f32 %v727_v16, %v10840_v36 }
 0x122   : > { %v10975_v28 = vadd.f32 %v10930_v13, %v757_v18  ;;  %v990_v31 = vpop.f32.mrf.mxu1 }
 0x124   : > { %9006 = vmatmul.msk.bf16.gmra.mxu3 %vm216_vm0, %v1173_v23  ;;  %v1175_v23 = vpack.c.bf16 %v1168_v14, %v1167_v12  ;;  %v10315_v12 = vld [vmem:[#allocation3 + $0x130] sm:$0xff] }
 0x125   : > { %v10323_v14 = vld [vmem:[#allocation3 + $0x170] sm:$0xff] }
 0x126   : > { %v1120_v36 = vpop.f32.mrf.mxu2  ;;  %v10995_v7 = vpop.f32.mrf.mxu0 }
 0x127   : > { %v730_v35 = vpop.f32.mrf.mxu3 }
 0x128   : > { %v758_v37 = vadd.f32 %v730_v35, %v10846_v45 }
 0x12a   : > { %v888_v40 = vadd.f32 %v10932_v26, %v758_v37  ;;  %v10981_v3 = vpop.f32.mrf.mxu1  ;;  %v1169_v37 = vld [vmem:[#allocation2 + $0x7a] sm:$0xf] }
 0x12c   : > { %v1018_v13 = vadd.f32 %v990_v31, %v888_v40 }
 0x12d   : > { %9032 = vmatmul.msk.bf16.gmra.mxu0 %vm216_vm0, %v1306_v27 }
 0x12e   : > { %v10985_v63 = vadd.f32 %v1120_v36, %v1018_v13  ;;  %v10989_v62 = vpop.f32.mrf.mxu2  ;;  %v880_v25 = vpop.f32.mrf.mxu0  ;;  %v10317_v13 = vld [vmem:[#allocation3 + $0x140] sm:$0xff] }
 0x12f   : > { %v10987_v59 = vpop.f32.mrf.mxu3  ;;  %1633 = vmatpush.bf16.msra.mxu1 %v10317_v13 }
 0x132   : > { %v995_v0 = vpop.f32.mrf.mxu1 }
 0x134   : > { %9007 = vmatmul.msk.bf16.gmra.mxu3 %vm216_vm0, %v1174_v22  ;;  %v1176_v22 = vpack.c.bf16 %v1169_v37, %v1169_v37  ;;  %v10327_v37 = vld [vmem:[#allocation3 + $0x190] sm:$0xff] }
 0x136   : > { %v1125_v26 = vpop.f32.mrf.mxu2  ;;  %v882_v35 = vpop.f32.mrf.mxu0 }
 0x137   : > { %v735_v45 = vpop.f32.mrf.mxu3  ;;  %v10313_v35 = vld [vmem:[#allocation3 + $0x120] sm:$0xff] }
 0x138   : > { %v760_v2 = vadd.f32 %v735_v45, %v10864_v24 }
 0x13a   : > { %v890_v5 = vadd.f32 %v865_v4, %v760_v2  ;;  %v10993_v6 = vpop.f32.mrf.mxu1  ;;  %v10324_v2 = vld [vmem:[#allocation3 + $0x178] sm:$0xff] }
 0x13b   : > { %1835 = vmatpush.bf16.msrb.mxu3 %v10324_v2 }
 0x13c   : > { %v1020_v56 = vadd.f32 %v995_v0, %v890_v5 }
 0x13e   : > { %v10998_v15 = vadd.f32 %v1125_v26, %v1020_v56  ;;  %v11002_v18 = vpop.f32.mrf.mxu2  ;;  %v1370_v0 = vpop.f32.mrf.mxu0  ;;  %v10316_v26 = vld [vmem:[#allocation3 + $0x138] sm:$0xff] }
 0x13f   : > { %v11000_v16 = vpop.f32.mrf.mxu3  ;;  %1718 = vmatpush.bf16.msra.mxu2 %v10316_v26  ;;  %1836 = vmatpush.bf16.msrb.mxu3 %v10323_v14 }
 0x142   : > { %v1000_v24 = vpop.f32.mrf.mxu1 }
 0x143   : > { %1719 = vmatpush.bf16.msra.mxu2 %v10315_v12 }
 0x144   : > { %9008 = vmatmul.msk.bf16.gmra.mxu3 %vm216_vm0, %v1175_v23 }
 0x146   : > { %v1130_v1 = vpop.f32.mrf.mxu2  ;;  %v1372_v27 = vpop.f32.mrf.mxu0 }
 0x147   : > { %v740_v4 = vpop.f32.mrf.mxu3 }
 0x148   : > { %v762_v31 = vadd.f32 %v740_v4, %v10883_v39 }
 0x14a   : > { %v892_v33 = vadd.f32 %v870_v32, %v762_v31  ;;  %v11006_v34 = vpop.f32.mrf.mxu1  ;;  %v10328_v31 = vld [vmem:[#allocation3 + $0x198] sm:$0xff] }
 0x14b   : > { %1965 = vmatpush.bf16.msrb.mxu0 %v10328_v31 }
 0x14c   : > { %v1022_v36 = vadd.f32 %v1000_v24, %v892_v33 }
 0x14e   : > { %v11008_v40 = vadd.f32 %v1130_v1, %v1022_v36  ;;  %v11012_v48 = vpop.f32.mrf.mxu2  ;;  %v10322_v1 = vld [vmem:[#allocation3 + $0x168] sm:$0xff]  ;;  %v1375_v33 = vpop.f32.mrf.mxu0  ;;  %v10321_v36 = vld [vmem:[#allocation3 + $0x160] sm:$0xff] }
 0x14f   : > { %v11010_v44 = vpop.f32.mrf.mxu3  ;;  %1837 = vmatpush.bf16.msrb.mxu3 %v10322_v1  ;;  %1966 = vmatpush.bf16.msrb.mxu0 %v10327_v37  ;;  %v11041_v37 = vpop.permute.xlu0 %1434 }
 0x152   : > { %v1005_v47 = vpop.f32.mrf.mxu1 }
 0x153   : > { %1838 = vmatpush.bf16.msrb.mxu3 %v10321_v36 }
 0x154   : > { %9009 = vmatmul.msk.bf16.gmra.mxu3 %vm216_vm0, %v1176_v22 }
 0x156   : > { %v1135_v32 = vpop.f32.mrf.mxu2 }
 0x157   : > { %v745_v39 = vpop.f32.mrf.mxu3 }
 0x158   : > { %v764_v45 = vadd.f32 %v745_v39, %v10912_v52  ;;  %v10314_v52 = vld [vmem:[#allocation3 + $0x128] sm:$0xff] }
 0x159   : > { %1720 = vmatpush.bf16.msra.mxu2 %v10314_v52  ;;  %v10332_v52 = vld [vmem:[#allocation3 + $0x1b8] sm:$0xff] }
 0x15a   : > { %v894_v53 = vadd.f32 %v875_v20, %v764_v45  ;;  %v11016_v5 = vpop.f32.mrf.mxu1  ;;  %v10326_v45 = vld [vmem:[#allocation3 + $0x188] sm:$0xff]  ;;  %2095 = vmatpush.bf16.msrb.mxu1 %v10332_v52 }
 0x15b   : > { %1967 = vmatpush.bf16.msrb.mxu0 %v10326_v45 }
 0x15c   : > { %v1024_v56 = vadd.f32 %v1005_v47, %v894_v53 }
 0x15d   : > { %1721 = vmatpush.bf16.msra.mxu2 %v10313_v35 }
 0x15e   : > { %v11018_v23 = vadd.f32 %v1135_v32, %v1024_v56  ;;  %v11022_v4 = vpop.f32.mrf.mxu2  ;;  %v11025_v32 = vpop.f32.mrf.mxu0  ;;  %v10325_v56 = vld [vmem:[#allocation3 + $0x180] sm:$0xff] }
 0x15f   : > { %v11020_v24 = vpop.f32.mrf.mxu3  ;;  %1968 = vmatpush.bf16.msrb.mxu0 %v10325_v56 }
 0x162   : > { %v1010_v20 = vpop.f32.mrf.mxu1 }
 0x166   : > { %v1140_v22 = vpop.f32.mrf.mxu2  ;;  %v11029_v1 = vpop.f32.mrf.mxu0 }
 0x167   : > { %v750_v13 = vpop.f32.mrf.mxu3 }
 0x168   : > { %v766_v47 = vadd.f32 %v750_v13, %v10928_v11 }
 0x16a   : > { %v896_v39 = vadd.f32 %v880_v25, %v766_v47  ;;  %v1012_v26 = vpop.f32.mrf.mxu1  ;;  %v11035_v25 = vld [vmem:[%s12857_s2] ss:$0 sm:$0xff] }
 0x16c   : > { %v1026_v2 = vadd.f32 %v1010_v20, %v896_v39  ;;  %v1015_v20 = vadd.f32 %v10942_v41, %v10954_v42  ;;  %v11053_v42 = vpop.permute.xlu0 %1439 }
 0x16e   : > { %v11027_v53 = vadd.f32 %v1140_v22, %v1026_v2  ;;  %v1142_v14 = vpop.f32.mrf.mxu2  ;;  %v11039_v36 = vpop.f32.mrf.mxu0  ;;  %v1145_v22 = vadd.f32 %v10949_v57, %v1015_v20  ;;  %v1523_v2 = vld [vmem:[#allocation2 + $0x5] sm:$0xff] }
 0x16f   : > { %v752_v12 = vpop.f32.mrf.mxu3  ;;  %v1757_v57 = vld [vmem:[#allocation2 + $0x7] sm:$0xff] }
 0x176   : > { %v11050_v26 = vpop.f32.mrf.mxu0 }
 0x177   : > { %v1240_v31 = vpop.f32.mrf.mxu3 }
 0x178   : > { %v1274_v11 = vadd.f32 %v1240_v31, %v10947_v49 }
 0x17a   : > { %v1404_v35 = vadd.f32 %v1370_v0, %v1274_v11  ;;  %v1552_v0 = vld [vmem:[#allocation2 + $0x6] sm:$0xff] }
 0x17c   : > { %v1419_v13 = vadd.f32 %v11035_v25, %v1404_v35  ;;  %v10331_v35 = vld [vmem:[#allocation3 + $0x1b0] sm:$0xff] }
 0x17d   : > { %2096 = vmatpush.bf16.msrb.mxu1 %v10331_v35 }
 0x17e   : > { %v11046_v47 = vmul.f32 %v11041_v37, %v1419_v13 }
 0x17f   : > { %v1242_v49 = vpop.f32.mrf.mxu3 }
 0x180   : > { %12897 = vst [vmem:[#allocation6_spill] sm:$0xff] %v11046_v47  ;;  %v1275_v39 = vadd.f32 %v1242_v49, %v1145_v22  ;;  %v1017_v22 = vadd.f32 %v10962_v38, %v10975_v28 }
 0x181   : > { %1510 = vst.msk [vmem:[#allocation2 + $0x10] sm:$0xff] %vm216_vm0, %v11046_v47 }
 0x182   : > { %v1405_v45 = vadd.f32 %v1372_v27, %v1275_v39  ;;  %v11065_v39 = vpop.f32.mrf.mxu0 }
 0x184   : > { %v1420_v41 = vadd.f32 %v11035_v25, %v1405_v45  ;;  %v11067_v45 = vpop.permute.xlu1 %1444 }
 0x186   : > { %v11056_v56 = vmul.f32 %v11053_v42, %v1420_v41 }
 0x187   : > { %v1245_v12 = vpop.f32.mrf.mxu3 }
 0x188   : > { %12898 = vst [vmem:[#allocation7_spill] sm:$0xff] %v11056_v56  ;;  %v1553_v14 = vld [vmem:[#allocation2 + $0xe] sm:$0xff]  ;;  %v1276_v27 = vadd.f32 %v1245_v12, %v10966_v21  ;;  %v486_v21 = vadd.f32 %v10848_v46, %v10852_v50 }
 0x189   : > { %v1524_v52 = vld [vmem:[#allocation2 + $0xd] sm:$0xff]  ;;  %1511 = vst.msk [vmem:[#allocation2 + $0x18] sm:$0xff] %vm216_vm0, %v11056_v56  ;;  %v1565_v11 = vpack.c.bf16 %v1553_v14, %v1552_v0  ;;  %v1147_v0 = vadd.f32 %v10968_v17, %v1017_v22 }
 0x18a   : > { %v1758_v31 = vld [vmem:[#allocation2 + $0xf] sm:$0xff]  ;;  %v1536_v20 = vpack.c.bf16 %v1524_v52, %v1523_v2  ;;  %v1406_v49 = vadd.f32 %v1375_v33, %v1276_v27  ;;  %v629_v2 = vadd.f32 %v10854_v51, %v486_v21  ;;  %v11083_v50 = vpop.f32.mrf.mxu0 }
 0x18b   : > { %v1770_v13 = vpack.c.bf16 %v1758_v31, %v1757_v57  ;;  %9049 = vmatmul.msk.bf16.vlgmr.msra.gmra.mxu1 %vm216_vm0, %v1565_v11 }
 0x18c   : > { %9072 = vmatmul.msk.bf16.vlgmr.msra.gmra.mxu2 %vm216_vm0, %v1536_v20  ;;  %v1421_v41 = vadd.f32 %v11035_v25, %v1406_v49  ;;  %v759_v14 = vadd.f32 %v10987_v59, %v629_v2  ;;  %v11086_v52 = vpop.permute.xlu1 %1449 }
 0x18d   : > { %9095 = vmatmul.msk.bf16.vlgmr.msrb.gmra.mxu3 %vm216_vm0, %v1770_v13 }
 0x18e   : > { %v11075_v38 = vmul.f32 %v11067_v45, %v1421_v41  ;;  %v889_v27 = vadd.f32 %v10944_v54, %v759_v14 }
 0x18f   : > { %v1247_v28 = vpop.f32.mrf.mxu3 }
 0x190   : > { %12899 = vst [vmem:[#allocation8_spill] sm:$0xff] %v11075_v38  ;;  %v1888_v33 = vld [vmem:[#allocation2 + $0x17] sm:$0xff]  ;;  %v1277_v57 = vadd.f32 %v1247_v28, %v1147_v0  ;;  %v1019_v41 = vadd.f32 %v10981_v3, %v889_v27  ;;  %v11099_v0 = vpop.permute.xlu2 %1454  ;;  %v491_v28 = vadd.f32 %v10866_v58, %v10871_v8 }
 0x191   : > { %1512 = vst.msk [vmem:[#allocation2 + $0x20] sm:$0xff] %vm216_vm0, %v11075_v38  ;;  %v1900_v12 = vpack.c.bf16 %v1888_v33, %v1758_v31  ;;  %v1554_v11 = vld [vmem:[#allocation2 + $0x16] sm:$0xff] }
 0x192   : > { %v1407_v46 = vadd.f32 %v11025_v32, %v1277_v57  ;;  %v1525_v20 = vld [vmem:[#allocation2 + $0x15] sm:$0xff]  ;;  %v11105_v2 = vpop.f32.mrf.mxu0 }
 0x193   : > { %9118 = vmatmul.msk.bf16.vlgmr.msrb.gmra.mxu0 %vm216_vm0, %v1900_v12  ;;  %v631_v12 = vadd.f32 %v10873_v9, %v491_v28  ;;  %v11137_v28 = vpop.permute.xlu0 %1464 }
 0x194   : > { %v1422_v17 = vadd.f32 %v11035_v25, %v1407_v46 }
 0x195   : > { %v761_v58 = vadd.f32 %v11000_v16, %v631_v12 }
 0x196   : > { %v11090_v51 = vmul.f32 %v11086_v52, %v1422_v17 }
 0x197   : > { %v1250_v31 = vpop.f32.mrf.mxu3  ;;  %v891_v27 = vadd.f32 %v10964_v10, %v761_v58 }
 0x198   : > { %12900 = vst [vmem:[#allocation9_spill] sm:$0xff] %v11090_v51  ;;  %v1555_v35 = vld [vmem:[#allocation2 + $0x1e] sm:$0xff]  ;;  %v1278_v32 = vadd.f32 %v1250_v31, %v10985_v63  ;;  %v11118_v17 = vpop.permute.xlu2 %1459 }
 0x199   : > { %v1526_v59 = vld [vmem:[#allocation2 + $0x1d] sm:$0xff]  ;;  %1513 = vst.msk [vmem:[#allocation2 + $0x28] sm:$0xff] %vm216_vm0, %v11090_v51  ;;  %v1566_v22 = vpack.c.bf16 %v1555_v35, %v1554_v11 }
 0x19a   : > { %v1760_v13 = vld [vmem:[#allocation2 + $0x1f] sm:$0xff]  ;;  %v1537_v49 = vpack.c.bf16 %v1526_v59, %v1525_v20  ;;  %v1408_v54 = vadd.f32 %v11029_v1, %v1278_v32  ;;  %v11124_v16 = vpop.f32.mrf.mxu0 }
 0x19b   : > { %v1771_v21 = vpack.c.bf16 %v1760_v13, %v1888_v33  ;;  %9050 = vmatmul.msk.bf16.gmra.mxu1 %vm216_vm0, %v1566_v22  ;;  %v1149_v33 = vadd.f32 %v10989_v62, %v1019_v41 }
 0x19c   : > { %9073 = vmatmul.msk.bf16.gmra.mxu2 %vm216_vm0, %v1537_v49  ;;  %v1423_v63 = vadd.f32 %v11035_v25, %v1408_v54  ;;  %v10330_v49 = vld [vmem:[#allocation3 + $0x1a8] sm:$0xff]  ;;  %v496_v54 = vadd.f32 %v10887_v19, %v10892_v29 }
 0x19d   : > { %9096 = vmatmul.msk.bf16.gmra.mxu3 %vm216_vm0, %v1771_v21  ;;  %v1021_v21 = vadd.f32 %v10993_v6, %v891_v27  ;;  %2097 = vmatpush.bf16.msrb.mxu1 %v10330_v49 }
 0x19e   : > { %v11109_v3 = vmul.f32 %v11099_v0, %v1423_v63 }
 0x19f   : > { %v1252_v1 = vpop.f32.mrf.mxu3  ;;  %v1151_v63 = vadd.f32 %v11002_v18, %v1021_v21 }
 0x1a0   : > { %12901 = vst [vmem:[#allocation10_spill] sm:$0xff] %v11109_v3  ;;  %v1890_v57 = vld [vmem:[#allocation2 + $0x27] sm:$0xff]  ;;  %v1279_v14 = vadd.f32 %v1252_v1, %v1149_v33  ;;  %v633_v1 = vadd.f32 %v10894_v30, %v496_v54 }
 0x1a1   : > { %1514 = vst.msk [vmem:[#allocation2 + $0x30] sm:$0xff] %vm216_vm0, %v11109_v3  ;;  %v1901_v46 = vpack.c.bf16 %v1890_v57, %v1760_v13  ;;  %v1556_v9 = vld [vmem:[#allocation2 + $0x26] sm:$0xff] }
 0x1a2   : > { %v1409_v8 = vadd.f32 %v11039_v36, %v1279_v14  ;;  %v1527_v20 = vld [vmem:[#allocation2 + $0x25] sm:$0xff]  ;;  %v11146_v14 = vpop.f32.mrf.mxu0  ;;  %v763_v19 = vadd.f32 %v11010_v44, %v633_v1 }
 0x1a3   : > { %9119 = vmatmul.msk.bf16.gmra.mxu0 %vm216_vm0, %v1901_v46  ;;  %v11152_v46 = vpop.permute.xlu1 %1469 }
 0x1a4   : > { %v1424_v62 = vadd.f32 %v11035_v25, %v1409_v8  ;;  %v893_v58 = vadd.f32 %v10983_v43, %v763_v19 }
 0x1a6   : > { %v11122_v11 = vmul.f32 %v11118_v17, %v1424_v62  ;;  %v1023_v43 = vadd.f32 %v11006_v34, %v893_v58 }
 0x1a7   : > { %v1255_v31 = vpop.f32.mrf.mxu3 }
 0x1a8   : > { %12902 = vst [vmem:[#allocation11_spill] sm:$0xff] %v11122_v11  ;;  %v1557_v35 = vld [vmem:[#allocation2 + $0x2e] sm:$0xff]  ;;  %v1280_v36 = vadd.f32 %v1255_v31, %v10998_v15  ;;  %v1153_v49 = vadd.f32 %v11012_v48, %v1023_v43 }
 0x1a9   : > { %v1528_v59 = vld [vmem:[#allocation2 + $0x2d] sm:$0xff]  ;;  %1515 = vst.msk [vmem:[#allocation2 + $0x38] sm:$0xff] %vm216_vm0, %v11122_v11  ;;  %v1567_v32 = vpack.c.bf16 %v1557_v35, %v1556_v9 }
 0x1aa   : > { %v1762_v13 = vld [vmem:[#allocation2 + $0x2f] sm:$0xff]  ;;  %v1538_v22 = vpack.c.bf16 %v1528_v59, %v1527_v20  ;;  %v1410_v41 = vadd.f32 %v11050_v26, %v1280_v36 }
 0x1ab   : > { %v1772_v10 = vpack.c.bf16 %v1762_v13, %v1890_v57  ;;  %9051 = vmatmul.msk.bf16.gmra.mxu1 %vm216_vm0, %v1567_v32  ;;  %v501_v32 = vadd.f32 %v10914_v55, %v10916_v60 }
 0x1ac   : > { %9074 = vmatmul.msk.bf16.gmra.mxu2 %vm216_vm0, %v1538_v22  ;;  %v1425_v15 = vadd.f32 %v11035_v25, %v1410_v41  ;;  %v11171_v22 = vpop.permute.xlu2 %1474 }
 0x1ad   : > { %9097 = vmatmul.msk.bf16.gmra.mxu3 %vm216_vm0, %v1772_v10  ;;  %12905 = vst [vmem:[#allocation14_spill] sm:$0xff] %v11171_v22  ;;  %v635_v21 = vadd.f32 %v10918_v61, %v501_v32  ;;  %v10334_v32 = vld [vmem:[#allocation3 + $0x1c8] sm:$0xff] }
 0x1ae   : > { %v11141_v6 = vmul.f32 %v11137_v28, %v1425_v15  ;;  %v10329_v15 = vld [vmem:[#allocation3 + $0x1a0] sm:$0xff] }
 0x1af   : > { %v1257_v26 = vpop.f32.mrf.mxu3  ;;  %v765_v60 = vadd.f32 %v11020_v24, %v635_v21  ;;  %2098 = vmatpush.bf16.msrb.mxu1 %v10329_v15  ;;  %v10337_v21 = vld [vmem:[#allocation3 + $0x1e0] sm:$0xff] }
 0x1b0   : > { %12903 = vst [vmem:[#allocation12_spill] sm:$0xff] %v11141_v6  ;;  %v1892_v33 = vld [vmem:[#allocation2 + $0x37] sm:$0xff]  ;;  %v1281_v57 = vadd.f32 %v1257_v26, %v1151_v63  ;;  %v11184_v26 = vpop.permute.xlu0 %1479 }
 0x1b1   : > { %1516 = vst.msk [vmem:[#allocation2 + $0x40] sm:$0xff] %vm216_vm0, %v11141_v6  ;;  %v1902_v12 = vpack.c.bf16 %v1892_v33, %v1762_v13  ;;  %v1558_v8 = vld [vmem:[#allocation2 + $0x36] sm:$0xff]  ;;  %v11161_v13 = vpop.f32.mrf.mxu0  ;;  %v895_v61 = vadd.f32 %v10995_v7, %v765_v60 }
 0x1b2   : > { %v1411_v29 = vadd.f32 %v11065_v39, %v1281_v57  ;;  %v1529_v62 = vld [vmem:[#allocation2 + $0x35] sm:$0xff]  ;;  %12907 = vst [vmem:[#allocation16_spill] sm:$0xff] %v11184_v26 }
 0x1b3   : > { %9120 = vmatmul.msk.bf16.gmra.mxu0 %vm216_vm0, %v1902_v12 }
 0x1b4   : > { %v1426_v18 = vadd.f32 %v11035_v25, %v1411_v29 }
 0x1b6   : > { %v11156_v30 = vmul.f32 %v11152_v46, %v1426_v18 }
 0x1b7   : > { %v1260_v27 = vpop.f32.mrf.mxu3 }
 0x1b8   : > { %12904 = vst [vmem:[#allocation13_spill] sm:$0xff] %v11156_v30  ;;  %v1559_v9 = vld [vmem:[#allocation2 + $0x3e] sm:$0xff]  ;;  %v1282_v44 = vadd.f32 %v1260_v27, %v11008_v40 }
 0x1b9   : > { %v1530_v20 = vld [vmem:[#allocation2 + $0x3d] sm:$0xff]  ;;  %1517 = vst.msk [vmem:[#allocation2 + $0x48] sm:$0xff] %vm216_vm0, %v11156_v30  ;;  %v1568_v39 = vpack.c.bf16 %v1559_v9, %v1558_v8  ;;  %v1402_v55 = vpop.f32.mrf.mxu0 }
 0x1ba   : > { %v1764_v31 = vld [vmem:[#allocation2 + $0x3f] sm:$0xff]  ;;  %v1539_v35 = vpack.c.bf16 %v1530_v20, %v1529_v62  ;;  %v1412_v36 = vadd.f32 %v11083_v50, %v1282_v44  ;;  %v1025_v62 = vadd.f32 %v11016_v5, %v895_v61  ;;  %v11199_v44 = vpop.permute.xlu1 %1484 }
 0x1bb   : > { %v1773_v59 = vpack.c.bf16 %v1764_v31, %v1892_v33  ;;  %9052 = vmatmul.msk.bf16.gmra.mxu1 %vm216_vm0, %v1568_v39  ;;  %v10336_v27 = vld [vmem:[#allocation3 + $0x1d8] sm:$0xff]  ;;  %12909 = vst [vmem:[#allocation18_spill] sm:$0xff] %v11199_v44 }
 0x1bc   : > { %9075 = vmatmul.msk.bf16.gmra.mxu2 %vm216_vm0, %v1539_v35  ;;  %v1427_v40 = vadd.f32 %v11035_v25, %v1412_v36  ;;  %v10340_v9 = vld [vmem:[#allocation3 + $0x1f8] sm:$0xff]  ;;  %v1155_v5 = vadd.f32 %v11022_v4, %v1025_v62 }
 0x1bd   : > { %9098 = vmatmul.msk.bf16.gmra.mxu3 %vm216_vm0, %v1773_v59  ;;  %2225 = vmatpush.bf16.msrb.mxu2 %v10336_v27 }
 0x1be   : > { %v11175_v10 = vmul.f32 %v11171_v22, %v1427_v40  ;;  %2355 = vmatpush.bf16.msra.mxu3 %v10340_v9  ;;  %v10338_v40 = vld [vmem:[#allocation3 + $0x1e8] sm:$0xff] }
 0x1bf   : > { %v1262_v34 = vpop.f32.mrf.mxu3 }
 0x1c0   : > { %12906 = vst [vmem:[#allocation15_spill] sm:$0xff] %v11175_v10  ;;  %v1894_v50 = vld [vmem:[#allocation2 + $0x47] sm:$0xff]  ;;  %v1283_v41 = vadd.f32 %v1262_v34, %v1153_v49 }
 0x1c1   : > { %1518 = vst.msk [vmem:[#allocation2 + $0x50] sm:$0xff] %vm216_vm0, %v11175_v10  ;;  %v1903_v54 = vpack.c.bf16 %v1894_v50, %v1764_v31  ;;  %v1560_v1 = vld [vmem:[#allocation2 + $0x46] sm:$0xff]  ;;  %v10339_v31 = vld [vmem:[#allocation3 + $0x1f0] sm:$0xff] }
 0x1c2   : > { %v1413_v63 = vadd.f32 %v11105_v2, %v1283_v41  ;;  %v1531_v57 = vld [vmem:[#allocation2 + $0x45] sm:$0xff]  ;;  %2356 = vmatpush.bf16.msra.mxu3 %v10339_v31  ;;  %v10343_v41 = vld [vmem:[#allocation3 + $0x210] sm:$0xff] }
 0x1c3   : > { %9121 = vmatmul.msk.bf16.gmra.mxu0 %vm216_vm0, %v1903_v54  ;;  %v10344_v49 = vld [vmem:[#allocation3 + $0x218] sm:$0xff]  ;;  %v10333_v34 = vld [vmem:[#allocation3 + $0x1c0] sm:$0xff] }
 0x1c4   : > { %v1428_v48 = vadd.f32 %v11035_v25, %v1413_v63  ;;  %2485 = vmatpush.bf16.msra.mxu0 %v10344_v49  ;;  %v10347_v49 = vld [vmem:[#allocation3 + $0x230] sm:$0xff] }
 0x1c6   : > { %v11188_v33 = vmul.f32 %v11184_v26, %v1428_v48  ;;  %2357 = vmatpush.bf16.msra.mxu3 %v10338_v40 }
 0x1c7   : > { %v1265_v12 = vpop.f32.mrf.mxu3 }
 0x1c8   : > { %12908 = vst [vmem:[#allocation17_spill] sm:$0xff] %v11188_v33  ;;  %v1561_v19 = vld [vmem:[#allocation2 + $0x4e] sm:$0xff]  ;;  %v1284_v2 = vadd.f32 %v1265_v12, %v11018_v23  ;;  %v10335_v23 = vld [vmem:[#allocation3 + $0x1d0] sm:$0xff]  ;;  %2486 = vmatpush.bf16.msra.mxu0 %v10343_v41 }
 0x1c9   : > { %v1532_v29 = vld [vmem:[#allocation2 + $0x4d] sm:$0xff]  ;;  %1519 = vst.msk [vmem:[#allocation2 + $0x58] sm:$0xff] %vm216_vm0, %v11188_v33  ;;  %v1569_v18 = vpack.c.bf16 %v1561_v19, %v1560_v1  ;;  %2226 = vmatpush.bf16.msrb.mxu2 %v10335_v23 }
 0x1ca   : > { %v1766_v24 = vld [vmem:[#allocation2 + $0x4f] sm:$0xff]  ;;  %v1540_v58 = vpack.c.bf16 %v1532_v29, %v1531_v57  ;;  %v1414_v7 = vadd.f32 %v11124_v16, %v1284_v2  ;;  %2358 = vmatpush.bf16.msra.mxu3 %v10337_v21  ;;  %v2407_v21 = vld [vmem:[#allocation2 + $0x1a] sm:$0xff] }
 0x1cb   : > { %v1774_v8 = vpack.c.bf16 %v1766_v24, %v1894_v50  ;;  %9053 = vmatmul.msk.bf16.gmra.mxu1 %vm216_vm0, %v1569_v18  ;;  %v11210_v50 = vpop.permute.xlu2 %1489  ;;  %v10342_v29 = vld [vmem:[#allocation3 + $0x208] sm:$0xff]  ;;  %v11223_v18 = vpop.permute.xlu0 %1494 }
 0x1cc   : > { %9076 = vmatmul.msk.bf16.gmra.mxu2 %vm216_vm0, %v1540_v58  ;;  %v1429_v20 = vadd.f32 %v11035_v25, %v1414_v7  ;;  %12911 = vst [vmem:[#allocation20_spill] sm:$0xff] %v11210_v50  ;;  %2487 = vmatpush.bf16.msra.mxu0 %v10342_v29  ;;  %v2539_v33 = vld [vmem:[#allocation2 + $0x2b] sm:$0xff] }
 0x1cd   : > { %9099 = vmatmul.msk.bf16.gmra.mxu3 %vm216_vm0, %v1774_v8  ;;  %2227 = vmatpush.bf16.msrb.mxu2 %v10334_v32  ;;  %12913 = vst [vmem:[#allocation22_spill] sm:$0xff] %v11223_v18 }
 0x1ce   : > { %v11203_v16 = vmul.f32 %v11199_v44, %v1429_v20 }
 0x1cf   : > { %v1267_v39 = vpop.f32.mrf.mxu3 }
 0x1d0   : > { %12910 = vst [vmem:[#allocation19_spill] sm:$0xff] %v11203_v16  ;;  %v1896_v35 = vld [vmem:[#allocation2 + $0x57] sm:$0xff]  ;;  %v1285_v59 = vadd.f32 %v1267_v39, %v1155_v5 }
 0x1d1   : > { %1520 = vst.msk [vmem:[#allocation2 + $0x60] sm:$0xff] %vm216_vm0, %v11203_v16  ;;  %v1904_v43 = vpack.c.bf16 %v1896_v35, %v1766_v24  ;;  %v1562_v15 = vld [vmem:[#allocation2 + $0x56] sm:$0xff]  ;;  %2228 = vmatpush.bf16.msrb.mxu2 %v10333_v34  ;;  %v10348_v24 = vld [vmem:[#allocation3 + $0x238] sm:$0xff] }
 0x1d2   : > { %v1415_v36 = vadd.f32 %v11146_v14, %v1285_v59  ;;  %v1533_v14 = vld [vmem:[#allocation2 + $0x55] sm:$0xff]  ;;  %2615 = vmatpush.bf16.msra.mxu1 %v10348_v24  ;;  %v2278_v59 = vld [vmem:[#allocation2 + $0x21] sm:$0xff] }
 0x1d3   : > { %9122 = vmatmul.msk.bf16.gmra.mxu0 %vm216_vm0, %v1904_v43  ;;  %v2018_v39 = vld [vmem:[#allocation2 + $0x18] sm:$0xff]  ;;  %v2017_v43 = vld [vmem:[#allocation2 + $0x10] sm:$0xff]  ;;  %v2408_v34 = vld [vmem:[#allocation2 + $0x22] sm:$0xff] }
 0x1d4   : > { %v1430_v4 = vadd.f32 %v11035_v25, %v1415_v36  ;;  %v2147_v36 = vld [vmem:[#allocation2 + $0x11] sm:$0xff]  ;;  %v2030_v32 = vpack.c.bf16 %v2018_v39, %v2017_v43  ;;  %v2420_v41 = vpack.c.bf16 %v2408_v34, %v2407_v21 }
 0x1d5   : > { %v2544_v30 = vld [vmem:[#allocation2 + $0x53] sm:$0xff] }
 0x1d6   : > { %v11213_v54 = vmul.f32 %v11210_v50, %v1430_v4  ;;  %2616 = vmatpush.bf16.msra.mxu1 %v10347_v49  ;;  %v2549_v50 = vld [vmem:[#allocation2 + $0x7b] sm:$0xf] }
 0x1d7   : > { %v1270_v55 = vpop.f32.mrf.mxu3 }
 0x1d8   : > { %12912 = vst [vmem:[#allocation21_spill] sm:$0xff] %v11213_v54  ;;  %v1563_v60 = vld [vmem:[#allocation2 + $0x5e] sm:$0xff]  ;;  %v1286_v61 = vadd.f32 %v1270_v55, %v11027_v53  ;;  %v10341_v53 = vld [vmem:[#allocation3 + $0x200] sm:$0xff]  ;;  %v2280_v55 = vld [vmem:[#allocation2 + $0x31] sm:$0xff] }
 0x1d9   : > { %v1534_v63 = vld [vmem:[#allocation2 + $0x5d] sm:$0xff]  ;;  %1521 = vst.msk [vmem:[#allocation2 + $0x68] sm:$0xff] %vm216_vm0, %v11213_v54  ;;  %v1570_v1 = vpack.c.bf16 %v1563_v60, %v1562_v15  ;;  %2488 = vmatpush.bf16.msra.mxu0 %v10341_v53  ;;  %v2020_v15 = vld [vmem:[#allocation2 + $0x28] sm:$0xff] }
 0x1da   : > { %v1768_v48 = vld [vmem:[#allocation2 + $0x5f] sm:$0xff]  ;;  %v1541_v57 = vpack.c.bf16 %v1534_v63, %v1533_v14  ;;  %v1416_v19 = vadd.f32 %v11161_v13, %v1286_v61  ;;  %v2150_v14 = vld [vmem:[#allocation2 + $0x29] sm:$0xff] }
 0x1db   : > { %v1775_v12 = vpack.c.bf16 %v1768_v48, %v1896_v35  ;;  %9054 = vmatmul.msk.bf16.gmra.mxu1 %vm216_vm0, %v1570_v1  ;;  %v2148_v35 = vld [vmem:[#allocation2 + $0x19] sm:$0xff]  ;;  %v2161_v61 = vpack.c.bf16 %v2150_v14, %v2278_v59  ;;  %v2291_v1 = vpack.c.bf16 %v2280_v55, %v2150_v14  ;;  %v2409_v53 = vld [vmem:[#allocation2 + $0x2a] sm:$0xff] }
 0x1dc   : > { %9077 = vmatmul.msk.bf16.gmra.mxu2 %vm216_vm0, %v1541_v57  ;;  %v1431_v2 = vadd.f32 %v11035_v25, %v1416_v19  ;;  %v2160_v40 = vpack.c.bf16 %v2148_v35, %v2147_v36  ;;  %v2290_v4 = vpack.c.bf16 %v2278_v59, %v2148_v35  ;;  %v2019_v63 = vld [vmem:[#allocation2 + $0x20] sm:$0xff]  ;;  %v2021_v35 = vld [vmem:[#allocation2 + $0x30] sm:$0xff] }
 0x1dd   : > { %9100 = vmatmul.msk.bf16.gmra.mxu3 %vm216_vm0, %v1775_v12  ;;  %v2410_v12 = vld [vmem:[#allocation2 + $0x32] sm:$0xff]  ;;  %v2411_v14 = vld [vmem:[#allocation2 + $0x3a] sm:$0xff] }
 0x1de   : > { %v11226_v58 = vmul.f32 %v11223_v18, %v1431_v2 }
 0x1df   : > { %v1272_v13 = vpop.f32.mrf.mxu3 }
 0x1e0   : > { %12914 = vst [vmem:[#allocation23_spill] sm:$0xff] %v11226_v58  ;;  %v1898_v8 = vld [vmem:[#allocation2 + $0x67] sm:$0xff]  ;;  %v2421_v13 = vpack.c.bf16 %v2410_v12, %v2409_v53 }
 0x1e1   : > { %1522 = vst.msk [vmem:[#allocation2 + $0x70] sm:$0xf] %vm233_vm1, %v11226_v58  ;;  %v1905_v62 = vpack.c.bf16 %v1898_v8, %v1768_v48  ;;  %v1564_v7 = vld [vmem:[#allocation2 + $0x66] sm:$0xf]  ;;  %v2031_v48 = vpack.c.bf16 %v2020_v15, %v2019_v63 }
 0x1e2   : > { %v1535_v27 = vld [vmem:[#allocation2 + $0x65] sm:$0xf]  ;;  %v1571_v9 = vpack.c.bf16 %v1564_v7, %v1564_v7  ;;  %v10346_v7 = vld [vmem:[#allocation3 + $0x228] sm:$0xff] }
 0x1e3   : > { %9123 = vmatmul.msk.bf16.gmra.mxu0 %vm216_vm0, %v1905_v62  ;;  %v1769_v25 = vld [vmem:[#allocation2 + $0x67] sm:$0xf]  ;;  %v1542_v20 = vpack.c.bf16 %v1535_v27, %v1535_v27  ;;  %2617 = vmatpush.bf16.msra.mxu1 %v10346_v7 }
 0x1e4   : > { %v1776_v23 = vpack.c.bf16 %v1769_v25, %v1769_v25  ;;  %v2022_v25 = vld [vmem:[#allocation2 + $0x38] sm:$0xff]  ;;  %v2546_v11 = vld [vmem:[#allocation2 + $0x63] sm:$0xff] }
 0x1e5   : > { %v2032_v43 = vpack.c.bf16 %v2022_v25, %v2021_v35  ;;  %v2413_v35 = vld [vmem:[#allocation2 + $0x4a] sm:$0xff] }
 0x1e8   : > { %v1899_v31 = vld [vmem:[#allocation2 + $0x6f] sm:$0xf]  ;;  %v2548_v56 = vld [vmem:[#allocation2 + $0x73] sm:$0xff] }
 0x1e9   : > { %v1906_v5 = vpack.c.bf16 %v1899_v31, %v1899_v31  ;;  %v2282_v31 = vld [vmem:[#allocation2 + $0x41] sm:$0xff]  ;;  %v2547_v38 = vld [vmem:[#allocation2 + $0x6b] sm:$0xff] }
 0x1eb   : > { %9055 = vmatmul.msk.bf16.gmra.mxu1 %vm216_vm0, %v1571_v9  ;;  %v2152_v9 = vld [vmem:[#allocation2 + $0x39] sm:$0xff] }
 0x1ec   : > { %9078 = vmatmul.msk.bf16.gmra.mxu2 %vm216_vm0, %v1542_v20  ;;  %v2162_v36 = vpack.c.bf16 %v2152_v9, %v2280_v55 }
 0x1ed   : > { %9101 = vmatmul.msk.bf16.gmra.mxu3 %vm216_vm0, %v1776_v23 }
 0x1f3   : > { %9124 = vmatmul.msk.bf16.gmra.mxu0 %vm216_vm0, %v1906_v5 }
 0x1fb   : > { %9141 = vmatmul.msk.bf16.vlgmr.msrb.gmra.mxu1 %vm216_vm0, %v2030_v32  ;;  %v2292_v32 = vpack.c.bf16 %v2282_v31, %v2152_v9  ;;  %v2414_v9 = vld [vmem:[#allocation2 + $0x52] sm:$0xff] }
 0x1fc   : > { %9164 = vmatmul.msk.bf16.vlgmr.msrb.gmra.mxu2 %vm216_vm0, %v2160_v40 }
 0x1fd   : > { %9187 = vmatmul.msk.bf16.vlgmr.msra.gmra.mxu3 %vm216_vm0, %v2290_v4  ;;  %v2412_v4 = vld [vmem:[#allocation2 + $0x42] sm:$0xff] }
 0x1fe   : > { %v2422_v63 = vpack.c.bf16 %v2412_v4, %v2411_v14  ;;  %v2156_v4 = vld [vmem:[#allocation2 + $0x59] sm:$0xff]  ;;  %v2025_v14 = vld [vmem:[#allocation2 + $0x50] sm:$0xff] }
 0x203   : > { %9210 = vmatmul.msk.bf16.vlgmr.msra.gmra.mxu0 %vm216_vm0, %v2420_v41 }
 0x208   : > { %v1635_v60 = vpop.f32.mrf.mxu1 }
 0x20b   : > { %9142 = vmatmul.msk.bf16.gmra.mxu1 %vm216_vm0, %v2031_v48 }
 0x20c   : > { %9165 = vmatmul.msk.bf16.gmra.mxu2 %vm216_vm0, %v2161_v61  ;;  %v2024_v61 = vld [vmem:[#allocation2 + $0x48] sm:$0xff] }
 0x20d   : > { %9188 = vmatmul.msk.bf16.gmra.mxu3 %vm216_vm0, %v2291_v1  ;;  %v2154_v1 = vld [vmem:[#allocation2 + $0x49] sm:$0xff] }
 0x20f   : > { %v1723_v57 = vpop.f32.mrf.mxu2 }
 0x210   : > { %v1724_v19 = vadd.f32 %v1723_v57, %v1635_v60  ;;  %v1840_v29 = vpop.f32.mrf.mxu3  ;;  %v1637_v24 = vpop.f32.mrf.mxu1 }
 0x211   : > { %v1970_v2 = vpop.f32.mrf.mxu0 }
 0x212   : > { %v1874_v8 = vadd.f32 %v1840_v29, %v1724_v19  ;;  %v2284_v19 = vld [vmem:[#allocation2 + $0x51] sm:$0xff] }
 0x213   : > { %9211 = vmatmul.msk.bf16.gmra.mxu0 %vm216_vm0, %v2421_v13  ;;  %v2163_v13 = vpack.c.bf16 %v2154_v1, %v2282_v31  ;;  %v2293_v7 = vpack.c.bf16 %v2284_v19, %v2154_v1  ;;  %v10345_v31 = vld [vmem:[#allocation3 + $0x220] sm:$0xff] }
 0x214   : > { %v11242_v62 = vadd.f32 %v1970_v2, %v1874_v8  ;;  %v2023_v2 = vld [vmem:[#allocation2 + $0x40] sm:$0xff]  ;;  %2618 = vmatpush.bf16.msra.mxu1 %v10345_v31 }
 0x215   : > { %v2033_v8 = vpack.c.bf16 %v2024_v61, %v2023_v2  ;;  %v2416_v1 = vld [vmem:[#allocation2 + $0x62] sm:$0xff]  ;;  %v2415_v2 = vld [vmem:[#allocation2 + $0x5a] sm:$0xff] }
 0x217   : > { %v1725_v27 = vpop.f32.mrf.mxu2 }
 0x218   : > { %v1726_v20 = vadd.f32 %v1725_v27, %v1637_v24  ;;  %v1842_v23 = vpop.f32.mrf.mxu3  ;;  %v1640_v5 = vpop.f32.mrf.mxu1 }
 0x219   : > { %v1972_v39 = vpop.f32.mrf.mxu0 }
 0x21a   : > { %v1875_v59 = vadd.f32 %v1842_v23, %v1726_v20 }
 0x21b   : > { %9143 = vmatmul.msk.bf16.gmra.mxu1 %vm216_vm0, %v2032_v43  ;;  %v2423_v43 = vpack.c.bf16 %v2414_v9, %v2413_v35  ;;  %v2027_v35 = vld [vmem:[#allocation2 + $0x60] sm:$0xff] }
 0x21c   : > { %v11245_v40 = vadd.f32 %v1972_v39, %v1875_v59  ;;  %9166 = vmatmul.msk.bf16.gmra.mxu2 %vm216_vm0, %v2162_v36 }
 0x21d   : > { %9189 = vmatmul.msk.bf16.gmra.mxu3 %vm216_vm0, %v2292_v32 }
 0x21f   : > { %v1728_v49 = vpop.f32.mrf.mxu2 }
 0x220   : > { %v1729_v34 = vadd.f32 %v1728_v49, %v1640_v5  ;;  %v1845_v21 = vpop.f32.mrf.mxu3  ;;  %v1642_v41 = vpop.f32.mrf.mxu1  ;;  %v2026_v49 = vld [vmem:[#allocation2 + $0x58] sm:$0xff] }
 0x221   : > { %v1975_v15 = vpop.f32.mrf.mxu0 }
 0x222   : > { %v1876_v60 = vadd.f32 %v1845_v21, %v1729_v34  ;;  %v2286_v21 = vld [vmem:[#allocation2 + $0x61] sm:$0xff] }
 0x223   : > { %9212 = vmatmul.msk.bf16.gmra.mxu0 %vm216_vm0, %v2422_v63  ;;  %v2164_v63 = vpack.c.bf16 %v2156_v4, %v2284_v19 }
 0x224   : > { %v11250_v48 = vadd.f32 %v1975_v15, %v1876_v60  ;;  %v2034_v60 = vpack.c.bf16 %v2026_v49, %v2025_v14 }
 0x227   : > { %v1730_v55 = vpop.f32.mrf.mxu2 }
 0x228   : > { %v1731_v57 = vadd.f32 %v1730_v55, %v1642_v41  ;;  %v1847_v12 = vpop.f32.mrf.mxu3  ;;  %v1645_v29 = vpop.f32.mrf.mxu1  ;;  %v2294_v55 = vpack.c.bf16 %v2286_v21, %v2156_v4  ;;  %v2417_v4 = vld [vmem:[#allocation2 + $0x6a] sm:$0xff] }
 0x229   : > { %v1977_v24 = vpop.f32.mrf.mxu0 }
 0x22a   : > { %v1877_v53 = vadd.f32 %v1847_v12, %v1731_v57 }
 0x22b   : > { %9144 = vmatmul.msk.bf16.gmra.mxu1 %vm216_vm0, %v2033_v8  ;;  %v2424_v8 = vpack.c.bf16 %v2416_v1, %v2415_v2  ;;  %v2159_v2 = vld [vmem:[#allocation2 + $0x71] sm:$0xf] }
 0x22c   : > { %v11253_v27 = vadd.f32 %v1977_v24, %v1877_v53  ;;  %9167 = vmatmul.msk.bf16.gmra.mxu2 %vm216_vm0, %v2163_v13 }
 0x22d   : > { %9190 = vmatmul.msk.bf16.gmra.mxu3 %vm216_vm0, %v2293_v7  ;;  %v2028_v7 = vld [vmem:[#allocation2 + $0x68] sm:$0xff] }
 0x22f   : > { %v1733_v25 = vpop.f32.mrf.mxu2 }
 0x230   : > { %v1734_v20 = vadd.f32 %v1733_v25, %v1645_v29  ;;  %v1850_v23 = vpop.f32.mrf.mxu3  ;;  %v11258_v5 = vpop.f32.mrf.mxu1  ;;  %v2158_v25 = vld [vmem:[#allocation2 + $0x69] sm:$0xff] }
 0x231   : > { %v1980_v39 = vpop.f32.mrf.mxu0 }
 0x232   : > { %v1878_v59 = vadd.f32 %v1850_v23, %v1734_v20  ;;  %v2288_v20 = vld [vmem:[#allocation2 + $0x71] sm:$0xff] }
 0x233   : > { %9213 = vmatmul.msk.bf16.gmra.mxu0 %vm216_vm0, %v2423_v43  ;;  %v2165_v43 = vpack.c.bf16 %v2158_v25, %v2286_v21  ;;  %v2295_v31 = vpack.c.bf16 %v2288_v20, %v2158_v25  ;;  %v2289_v21 = vld [vmem:[#allocation2 + $0x79] sm:$0xf] }
 0x234   : > { %v11260_v36 = vadd.f32 %v1980_v39, %v1878_v59  ;;  %v2035_v59 = vpack.c.bf16 %v2028_v7, %v2027_v35  ;;  %v2296_v25 = vpack.c.bf16 %v2289_v21, %v2289_v21  ;;  %v2419_v35 = vld [vmem:[#allocation2 + $0x7a] sm:$0xf] }
 0x237   : > { %v11263_v32 = vpop.f32.mrf.mxu2 }
 0x238   : > { %v11265_v34 = vpop.f32.mrf.mxu3  ;;  %v1650_v41 = vpop.f32.mrf.mxu1 }
 0x239   : > { %v11267_v15 = vpop.f32.mrf.mxu0 }
 0x23b   : > { %9145 = vmatmul.msk.bf16.gmra.mxu1 %vm216_vm0, %v2034_v60 }
 0x23c   : > { %9168 = vmatmul.msk.bf16.gmra.mxu2 %vm216_vm0, %v2164_v63 }
 0x23d   : > { %9191 = vmatmul.msk.bf16.gmra.mxu3 %vm216_vm0, %v2294_v55 }
 0x23f   : > { %v1738_v61 = vpop.f32.mrf.mxu2 }
 0x240   : > { %v1739_v57 = vadd.f32 %v1738_v61, %v1650_v41  ;;  %v1855_v12 = vpop.f32.mrf.mxu3  ;;  %v11272_v29 = vpop.f32.mrf.mxu1  ;;  %v2418_v41 = vld [vmem:[#allocation2 + $0x72] sm:$0xff] }
 0x241   : > { %v1985_v24 = vpop.f32.mrf.mxu0  ;;  %v2425_v1 = vpack.c.bf16 %v2418_v41, %v2417_v4 }
 0x242   : > { %v1880_v53 = vadd.f32 %v1855_v12, %v1739_v57 }
 0x243   : > { %9214 = vmatmul.msk.bf16.gmra.mxu0 %vm216_vm0, %v2424_v8 }
 0x244   : > { %v11274_v13 = vadd.f32 %v1985_v24, %v1880_v53  ;;  %v2029_v24 = vld [vmem:[#allocation2 + $0x70] sm:$0xf] }
 0x245   : > { %v2036_v20 = vpack.c.bf16 %v2029_v24, %v2029_v24 }
 0x247   : > { %v11277_v19 = vpop.f32.mrf.mxu2 }
 0x248   : > { %v11279_v9 = vpop.f32.mrf.mxu3  ;;  %v1655_v23 = vpop.f32.mrf.mxu1 }
 0x249   : > { %v11281_v39 = vpop.f32.mrf.mxu0 }
 0x24b   : > { %9146 = vmatmul.msk.bf16.gmra.mxu1 %vm216_vm0, %v2035_v59 }
 0x24c   : > { %9169 = vmatmul.msk.bf16.gmra.mxu2 %vm216_vm0, %v2165_v43 }
 0x24d   : > { %9192 = vmatmul.msk.bf16.gmra.mxu3 %vm216_vm0, %v2295_v31 }
 0x24f   : > { %v1743_v49 = vpop.f32.mrf.mxu2 }
 0x250   : > { %v1744_v14 = vadd.f32 %v1743_v49, %v1655_v23  ;;  %v1860_v60 = vpop.f32.mrf.mxu3  ;;  %v11286_v63 = vpop.f32.mrf.mxu1  ;;  %v2166_v23 = vpack.c.bf16 %v2159_v2, %v2159_v2  ;;  %v2426_v49 = vpack.c.bf16 %v2419_v35, %v2419_v35  ;;  %v2537_v2 = vld [vmem:[#allocation2 + $0x1b] sm:$0xff] }
 0x251   : > { %v1990_v55 = vpop.f32.mrf.mxu0 }
 0x252   : > { %v1882_v61 = vadd.f32 %v1860_v60, %v1744_v14 }
 0x253   : > { %9215 = vmatmul.msk.bf16.gmra.mxu0 %vm216_vm0, %v2425_v1 }
 0x254   : > { %v11288_v57 = vadd.f32 %v1990_v55, %v1882_v61  ;;  %v2538_v61 = vld [vmem:[#allocation2 + $0x23] sm:$0xff] }
 0x257   : > { %v11291_v12 = vpop.f32.mrf.mxu2 }
 0x258   : > { %v11293_v53 = vpop.f32.mrf.mxu3  ;;  %v1660_v8 = vpop.f32.mrf.mxu1 }
 0x259   : > { %v11295_v7 = vpop.f32.mrf.mxu0 }
 0x25b   : > { %9147 = vmatmul.msk.bf16.gmra.mxu1 %vm216_vm0, %v2036_v20 }
 0x25c   : > { %9170 = vmatmul.msk.bf16.gmra.mxu2 %vm216_vm0, %v2166_v23 }
 0x25d   : > { %9193 = vmatmul.msk.bf16.gmra.mxu3 %vm216_vm0, %v2296_v25  ;;  %v10356_v25 = vld [vmem:[#allocation3 + $0x278] sm:$0xff] }
 0x25e   : > { %2841 = vmatpush.bf16.msra.mxu2 %v10356_v25 }
 0x25f   : > { %v1748_v59 = vpop.f32.mrf.mxu2 }
 0x260   : > { %v1749_v43 = vadd.f32 %v1748_v59, %v1660_v8  ;;  %v1865_v31 = vpop.f32.mrf.mxu3  ;;  %v11300_v4 = vpop.f32.mrf.mxu1  ;;  %v2550_v8 = vpack.c.bf16 %v2538_v61, %v2537_v2 }
 0x261   : > { %v1995_v41 = vpop.f32.mrf.mxu0 }
 0x262   : > { %v1884_v14 = vadd.f32 %v1865_v31, %v1749_v43 }
 0x263   : > { %9216 = vmatmul.msk.bf16.gmra.mxu0 %vm216_vm0, %v2426_v49 }
 0x264   : > { %v11302_v60 = vadd.f32 %v1995_v41, %v1884_v14  ;;  %v2540_v14 = vld [vmem:[#allocation2 + $0x33] sm:$0xff] }
 0x265   : > { %v2551_v2 = vpack.c.bf16 %v2540_v14, %v2539_v33  ;;  %v10355_v14 = vld [vmem:[#allocation3 + $0x270] sm:$0xff] }
 0x266   : > { %2842 = vmatpush.bf16.msra.mxu2 %v10355_v14 }
 0x267   : > { %v11305_v55 = vpop.f32.mrf.mxu2 }
 0x268   : > { %v11307_v1 = vpop.f32.mrf.mxu3  ;;  %v1665_v21 = vpop.f32.mrf.mxu1 }
 0x269   : > { %12915 = vst [vmem:[#allocation24_spill] sm:$0xff] %v11307_v1  ;;  %v11309_v24 = vpop.f32.mrf.mxu0 }
 0x26a   : > { %12916 = vst [vmem:[#allocation25_spill] sm:$0xff] %v11309_v24  ;;  %v10359_v24 = vld [vmem:[#allocation3 + $0x290] sm:$0xff] }
 0x26b   : > { %9233 = vmatmul.msk.bf16.vlgmr.msra.gmra.mxu1 %vm216_vm0, %v2550_v8 }
 0x26f   : > { %v1753_v20 = vpop.f32.mrf.mxu2 }
 0x270   : > { %v1754_v23 = vadd.f32 %v1753_v20, %v1665_v21  ;;  %v1870_v35 = vpop.f32.mrf.mxu3  ;;  %v1667_v59 = vpop.f32.mrf.mxu1 }
 0x271   : > { %v2000_v43 = vpop.f32.mrf.mxu0 }
 0x272   : > { %v1886_v31 = vadd.f32 %v1870_v35, %v1754_v23 }
 0x274   : > { %v11312_v49 = vadd.f32 %v2000_v43, %v1886_v31 }
 0x277   : > { %v1755_v41 = vpop.f32.mrf.mxu2 }
 0x278   : > { %v1872_v58 = vpop.f32.mrf.mxu3  ;;  %v2100_v16 = vpop.f32.mrf.mxu1 }
 0x279   : > { %v2002_v54 = vpop.f32.mrf.mxu0  ;;  %v2134_v61 = vadd.f32 %v2100_v16, %v11242_v62  ;;  %v2541_v62 = vld [vmem:[#allocation2 + $0x3b] sm:$0xff] }
 0x27a   : > { %v2542_v54 = vld [vmem:[#allocation2 + $0x43] sm:$0xff] }
 0x27b   : > { %9234 = vmatmul.msk.bf16.gmra.mxu1 %vm216_vm0, %v2551_v2  ;;  %v2552_v41 = vpack.c.bf16 %v2542_v54, %v2541_v62  ;;  %v2543_v62 = vld [vmem:[#allocation2 + $0x4b] sm:$0xff] }
 0x27f   : > { %v2230_v8 = vpop.f32.mrf.mxu2 }
 0x280   : > { %v2264_v25 = vadd.f32 %v2230_v8, %v2134_v61  ;;  %v2360_v21 = vpop.f32.mrf.mxu3  ;;  %v2102_v20 = vpop.f32.mrf.mxu1 }
 0x281   : > { %v2490_v59 = vpop.f32.mrf.mxu0  ;;  %v11317_v23 = vadd.f32 %v2102_v20, %v11245_v40 }
 0x282   : > { %v2394_v10 = vadd.f32 %v2360_v21, %v2264_v25 }
 0x284   : > { %v11319_v35 = vadd.f32 %v2490_v59, %v2394_v10 }
 0x287   : > { %v11321_v58 = vpop.f32.mrf.mxu2 }
 0x288   : > { %v11323_v43 = vpop.f32.mrf.mxu3  ;;  %v2105_v16 = vpop.f32.mrf.mxu1 }
 0x289   : > { %v11325_v33 = vpop.f32.mrf.mxu0  ;;  %v2136_v31 = vadd.f32 %v2105_v16, %v11250_v48 }
 0x28b   : > { %9235 = vmatmul.msk.bf16.gmra.mxu1 %vm216_vm0, %v2552_v41  ;;  %v2553_v41 = vpack.c.bf16 %v2544_v30, %v2543_v62 }
 0x28f   : > { %v2235_v40 = vpop.f32.mrf.mxu2 }
 0x290   : > { %v2266_v61 = vadd.f32 %v2235_v40, %v2136_v31  ;;  %v2365_v10 = vpop.f32.mrf.mxu3  ;;  %v2107_v2 = vpop.f32.mrf.mxu1 }
 0x291   : > { %v2495_v8 = vpop.f32.mrf.mxu0  ;;  %v11330_v21 = vadd.f32 %v2107_v2, %v11253_v27 }
 0x292   : > { %v2396_v25 = vadd.f32 %v2365_v10, %v2266_v61 }
 0x294   : > { %v11332_v20 = vadd.f32 %v2495_v8, %v2396_v25  ;;  %v10354_v25 = vld [vmem:[#allocation3 + $0x268] sm:$0xff] }
 0x295   : > { %2843 = vmatpush.bf16.msra.mxu2 %v10354_v25 }
 0x297   : > { %v11334_v59 = vpop.f32.mrf.mxu2 }
 0x298   : > { %v11336_v48 = vpop.f32.mrf.mxu3  ;;  %v2110_v54 = vpop.f32.mrf.mxu1 }
 0x299   : > { %v11338_v16 = vpop.f32.mrf.mxu0  ;;  %v2138_v31 = vadd.f32 %v2110_v54, %v11260_v36  ;;  %v2545_v54 = vld [vmem:[#allocation2 + $0x5b] sm:$0xff] }
 0x29b   : > { %9236 = vmatmul.msk.bf16.gmra.mxu1 %vm216_vm0, %v2553_v41 }
 0x29f   : > { %v2240_v14 = vpop.f32.mrf.mxu2 }
 0x2a0   : > { %v2268_v40 = vadd.f32 %v2240_v14, %v2138_v31  ;;  %v2370_v27 = vpop.f32.mrf.mxu3  ;;  %v11342_v61 = vpop.f32.mrf.mxu1  ;;  %v2554_v31 = vpack.c.bf16 %v2546_v11, %v2545_v54 }
 0x2a1   : > { %v2500_v10 = vpop.f32.mrf.mxu0 }
 0x2a2   : > { %v2398_v2 = vadd.f32 %v2370_v27, %v2268_v40 }
 0x2a4   : > { %v11344_v8 = vadd.f32 %v2500_v10, %v2398_v2 }
 0x2a7   : > { %v11346_v6 = vpop.f32.mrf.mxu2 }
 0x2a8   : > { %v11348_v3 = vpop.f32.mrf.mxu3  ;;  %v2115_v36 = vpop.f32.mrf.mxu1 }
 0x2a9   : > { %v11350_v30 = vpop.f32.mrf.mxu0  ;;  %v2140_v62 = vadd.f32 %v2115_v36, %v11274_v13  ;;  %v2555_v36 = vpack.c.bf16 %v2548_v56, %v2547_v38 }
 0x2ab   : > { %9237 = vmatmul.msk.bf16.gmra.mxu1 %vm216_vm0, %v2554_v31 }
 0x2af   : > { %v2245_v41 = vpop.f32.mrf.mxu2 }
 0x2b0   : > { %v2270_v14 = vadd.f32 %v2245_v41, %v2140_v62  ;;  %v2375_v40 = vpop.f32.mrf.mxu3  ;;  %v11354_v27 = vpop.f32.mrf.mxu1  ;;  %v10353_v41 = vld [vmem:[#allocation3 + $0x260] sm:$0xff] }
 0x2b1   : > { %v2505_v10 = vpop.f32.mrf.mxu0  ;;  %2844 = vmatpush.bf16.msra.mxu2 %v10353_v41 }
 0x2b2   : > { %v2400_v2 = vadd.f32 %v2375_v40, %v2270_v14 }
 0x2b4   : > { %v11356_v25 = vadd.f32 %v2505_v10, %v2400_v2 }
 0x2b7   : > { %v11358_v51 = vpop.f32.mrf.mxu2 }
 0x2b8   : > { %v11360_v47 = vpop.f32.mrf.mxu3  ;;  %v2120_v18 = vpop.f32.mrf.mxu1 }
 0x2b9   : > { %v11362_v13 = vpop.f32.mrf.mxu0  ;;  %v2142_v11 = vadd.f32 %v2120_v18, %v11288_v57  ;;  %v2556_v18 = vpack.c.bf16 %v2549_v50, %v2549_v50 }
 0x2bb   : > { %9238 = vmatmul.msk.bf16.gmra.mxu1 %vm216_vm0, %v2555_v36  ;;  %v10360_v36 = vld [vmem:[#allocation3 + $0x298] sm:$0xff] }
 0x2bc   : > { %3046 = vmatpush.bf16.msrb.mxu0 %v10360_v36 }
 0x2bf   : > { %v2250_v54 = vpop.f32.mrf.mxu2 }
 0x2c0   : > { %v2272_v62 = vadd.f32 %v2250_v54, %v2142_v11  ;;  %v2380_v31 = vpop.f32.mrf.mxu3  ;;  %v11366_v14 = vpop.f32.mrf.mxu1  ;;  %v10352_v11 = vld [vmem:[#allocation3 + $0x258] sm:$0xff]  ;;  %3047 = vmatpush.bf16.msrb.mxu0 %v10359_v24 }
 0x2c1   : > { %v2510_v40 = vpop.f32.mrf.mxu0  ;;  %2929 = vmatpush.bf16.msrb.mxu3 %v10352_v11 }
 0x2c2   : > { %v2402_v10 = vadd.f32 %v2380_v31, %v2272_v62 }
 0x2c4   : > { %v11368_v2 = vadd.f32 %v2510_v40, %v2402_v10  ;;  %v10351_v10 = vld [vmem:[#allocation3 + $0x250] sm:$0xff] }
 0x2c5   : > { %2930 = vmatpush.bf16.msrb.mxu3 %v10351_v10 }
 0x2c7   : > { %v11370_v44 = vpop.f32.mrf.mxu2 }
 0x2c8   : > { %v11372_v26 = vpop.f32.mrf.mxu3  ;;  %v2125_v56 = vpop.f32.mrf.mxu1 }
 0x2c9   : > { %v11374_v38 = vpop.f32.mrf.mxu0  ;;  %v2144_v57 = vadd.f32 %v2125_v56, %v11302_v60  ;;  %v10350_v60 = vld [vmem:[#allocation3 + $0x248] sm:$0xff] }
 0x2ca   : > { %12917 = vst [vmem:[#allocation26_spill] sm:$0xff] %v11374_v38  ;;  %v10358_v56 = vld [vmem:[#allocation3 + $0x288] sm:$0xff]  ;;  %2931 = vmatpush.bf16.msrb.mxu3 %v10350_v60 }
 0x2cb   : > { %9239 = vmatmul.msk.bf16.gmra.mxu1 %vm216_vm0, %v2556_v18  ;;  %v10364_v18 = vld [vmem:[#allocation3 + $0x2b8] sm:$0xff]  ;;  %3048 = vmatpush.bf16.msrb.mxu0 %v10358_v56 }
 0x2cc   : > { %3176 = vmatpush.bf16.msrb.mxu1 %v10364_v18 }
 0x2cf   : > { %v2255_v54 = vpop.f32.mrf.mxu2 }
 0x2d0   : > { %v2274_v62 = vadd.f32 %v2255_v54, %v2144_v57  ;;  %v2385_v31 = vpop.f32.mrf.mxu3  ;;  %v11378_v41 = vpop.f32.mrf.mxu1  ;;  %v10349_v54 = vld [vmem:[#allocation3 + $0x240] sm:$0xff] }
 0x2d1   : > { %12918 = vst [vmem:[#allocation27_spill] sm:$0xff] %v11378_v41  ;;  %v2515_v40 = vpop.f32.mrf.mxu0  ;;  %v10357_v41 = vld [vmem:[#allocation3 + $0x280] sm:$0xff]  ;;  %2932 = vmatpush.bf16.msrb.mxu3 %v10349_v54 }
 0x2d2   : > { %v2404_v50 = vadd.f32 %v2385_v31, %v2274_v62  ;;  %v10363_v62 = vld [vmem:[#allocation3 + $0x2b0] sm:$0xff]  ;;  %3049 = vmatpush.bf16.msrb.mxu0 %v10357_v41  ;;  %v10362_v31 = vld [vmem:[#allocation3 + $0x2a8] sm:$0xff]  ;;  %v11396_v41 = vld [vmem:[%s12857_s2 + $0x1] ss:$0 sm:$0xff] }
 0x2d3   : > { %3177 = vmatpush.bf16.msrb.mxu1 %v10363_v62 }
 0x2d4   : > { %v11380_v38 = vadd.f32 %v2515_v40, %v2404_v50 }
 0x2d6   : > { %12919 = vst [vmem:[#allocation28_spill] sm:$0xff] %v11380_v38  ;;  %v10368_v38 = vld [vmem:[#allocation3 + $0x2d8] sm:$0xff] }
 0x2d7   : > { %v11382_v1 = vpop.f32.mrf.mxu2  ;;  %3178 = vmatpush.bf16.msrb.mxu1 %v10362_v31  ;;  %3306 = vmatpush.bf16.msrb.mxu2 %v10368_v38 }
 0x2d8   : > { %12920 = vst [vmem:[#allocation29_spill] sm:$0xff] %v11382_v1  ;;  %v11384_v11 = vpop.f32.mrf.mxu3  ;;  %v2130_v57 = vpop.f32.mrf.mxu1 }
 0x2d9   : > { %12921 = vst [vmem:[#allocation30_spill] sm:$0xff] %v11384_v11  ;;  %v11386_v36 = vpop.f32.mrf.mxu0  ;;  %v2146_v24 = vadd.f32 %v2130_v57, %v11312_v49  ;;  %v10361_v11 = vld [vmem:[#allocation3 + $0x2a0] sm:$0xff]  ;;  %v2265_v49 = vadd.f32 %v11321_v58, %v11317_v23 }
 0x2da   : > { %12922 = vst [vmem:[#allocation31_spill] sm:$0xff] %v11386_v36 }
 0x2db   : > { %3179 = vmatpush.bf16.msrb.mxu1 %v10361_v11  ;;  %v2395_v31 = vadd.f32 %v11323_v43, %v2265_v49  ;;  %v2267_v43 = vadd.f32 %v11334_v59, %v11330_v21 }
 0x2dd   : > { %v2525_v11 = vadd.f32 %v11325_v33, %v2395_v31 }
 0x2df   : > { %v2260_v40 = vpop.f32.mrf.mxu2 }
 0x2e0   : > { %v2276_v10 = vadd.f32 %v2260_v40, %v2146_v24  ;;  %v2390_v50 = vpop.f32.mrf.mxu3  ;;  %v2132_v60 = vpop.f32.mrf.mxu1 }
 0x2e1   : > { %v2520_v56 = vpop.f32.mrf.mxu0  ;;  %v2763_v60 = vld [vmem:[#allocation2 + $0x6] sm:$0xff] }
 0x2e2   : > { %v2406_v18 = vadd.f32 %v2390_v50, %v2276_v10 }
 0x2e4   : > { %v11389_v1 = vadd.f32 %v2520_v56, %v2406_v18  ;;  %v2734_v56 = vld [vmem:[#allocation2 + $0x5] sm:$0xff] }
 0x2e7   : > { %v2262_v36 = vpop.f32.mrf.mxu2 }
 0x2e8   : > { %v2392_v57 = vpop.f32.mrf.mxu3  ;;  %v2620_v54 = vpop.f32.mrf.mxu1 }
 0x2e9   : > { %v2522_v62 = vpop.f32.mrf.mxu0  ;;  %v2654_v24 = vadd.f32 %v2620_v54, %v11319_v35  ;;  %v2968_v35 = vld [vmem:[#allocation2 + $0x7] sm:$0xff] }
 0x2eb   : > { %v2669_v40 = vadd.f32 %v11396_v41, %v2654_v24 }
 0x2ed   : > { %v2682_v38 = vmul.f32 %v2669_v40, %v11041_v37 }
 0x2ef   : > { %v2695_v36 = vmax.f32 %v2682_v38, 0.0  ;;  %v10367_v38 = vld [vmem:[#allocation3 + $0x2d0] sm:$0xff] }
 0x2f0   : > { %v2622_v23 = vpop.f32.mrf.mxu1  ;;  %3307 = vmatpush.bf16.msrb.mxu2 %v10367_v38 }
 0x2f1   : > { %2721 = vst.msk [vmem:[#allocation2 + $0x10] sm:$0xff] %vm216_vm0, %v2695_v36  ;;  %v2655_v58 = vadd.f32 %v2622_v23, %v2525_v11  ;;  %v1736_v11 = vadd.f32 %v11263_v32, %v11258_v5  ;;  %v2397_v36 = vadd.f32 %v11336_v48, %v2267_v43 }
 0x2f3   : > { %v2670_v10 = vadd.f32 %v11396_v41, %v2655_v58  ;;  %v1879_v59 = vadd.f32 %v11265_v34, %v1736_v11  ;;  %v2527_v23 = vadd.f32 %v11338_v16, %v2397_v36 }
 0x2f5   : > { %v2683_v50 = vmul.f32 %v2670_v10, %v11053_v42 }
 0x2f7   : > { %v2696_v18 = vmax.f32 %v2683_v50, 0.0  ;;  %v2009_v50 = vadd.f32 %v11267_v15, %v1879_v59 }
 0x2f8   : > { %v2625_v49 = vpop.f32.mrf.mxu1  ;;  %v2764_v57 = vld [vmem:[#allocation2 + $0xe] sm:$0xff] }
 0x2f9   : > { %v2735_v54 = vld [vmem:[#allocation2 + $0xd] sm:$0xff]  ;;  %2722 = vst.msk [vmem:[#allocation2 + $0x18] sm:$0xff] %vm216_vm0, %v2696_v18  ;;  %v2656_v62 = vadd.f32 %v2625_v49, %v11332_v20  ;;  %v2776_v24 = vpack.c.bf16 %v2764_v57, %v2763_v60 }
 0x2fa   : > { %v2969_v33 = vld [vmem:[#allocation2 + $0xf] sm:$0xff]  ;;  %v2747_v31 = vpack.c.bf16 %v2735_v54, %v2734_v56  ;;  %v2139_v56 = vadd.f32 %v11342_v61, %v2009_v50  ;;  %v1741_v61 = vadd.f32 %v11277_v19, %v11272_v29 }
 0x2fb   : > { %v2981_v40 = vpack.c.bf16 %v2969_v33, %v2968_v35  ;;  %v2671_v21 = vadd.f32 %v11396_v41, %v2656_v62  ;;  %9256 = vmatmul.msk.bf16.vlgmr.msra.gmra.mxu2 %vm216_vm0, %v2776_v24 }
 0x2fc   : > { %9279 = vmatmul.msk.bf16.vlgmr.msrb.gmra.mxu3 %vm216_vm0, %v2747_v31  ;;  %v2269_v34 = vadd.f32 %v11346_v6, %v2139_v56 }
 0x2fd   : > { %9302 = vmatmul.msk.bf16.vlgmr.msrb.gmra.mxu0 %vm216_vm0, %v2981_v40  ;;  %v2684_v20 = vmul.f32 %v2671_v21, %v11067_v45 }
 0x2fe   : > { %v2399_v40 = vadd.f32 %v11348_v3, %v2269_v34 }
 0x2ff   : > { %v2697_v58 = vmax.f32 %v2684_v20, 0.0 }
 0x300   : > { %v2627_v10 = vpop.f32.mrf.mxu1  ;;  %v3099_v5 = vld [vmem:[#allocation2 + $0x17] sm:$0xff]  ;;  %v2529_v11 = vadd.f32 %v11350_v30, %v2399_v40 }
 0x301   : > { %2723 = vst.msk [vmem:[#allocation2 + $0x20] sm:$0xff] %vm216_vm0, %v2697_v58  ;;  %v2657_v32 = vadd.f32 %v2627_v10, %v2527_v23  ;;  %v3111_v48 = vpack.c.bf16 %v3099_v5, %v2969_v33  ;;  %v2765_v43 = vld [vmem:[#allocation2 + $0x16] sm:$0xff] }
 0x302   : > { %v2736_v18 = vld [vmem:[#allocation2 + $0x15] sm:$0xff] }
 0x303   : > { %v2672_v60 = vadd.f32 %v11396_v41, %v2657_v32  ;;  %9325 = vmatmul.msk.bf16.vlgmr.msrb.gmra.mxu1 %vm216_vm0, %v3111_v48 }
 0x305   : > { %v2685_v35 = vmul.f32 %v2672_v60, %v11086_v52 }
 0x307   : > { %v2698_v16 = vmax.f32 %v2685_v35, 0.0 }
 0x308   : > { %v2630_v49 = vpop.f32.mrf.mxu1  ;;  %v2766_v57 = vld [vmem:[#allocation2 + $0x1e] sm:$0xff] }
 0x309   : > { %v2737_v54 = vld [vmem:[#allocation2 + $0x1d] sm:$0xff]  ;;  %2724 = vst.msk [vmem:[#allocation2 + $0x28] sm:$0xff] %vm216_vm0, %v2698_v16  ;;  %v2658_v15 = vadd.f32 %v2630_v49, %v11344_v8  ;;  %v2777_v33 = vpack.c.bf16 %v2766_v57, %v2765_v43  ;;  %v1881_v8 = vadd.f32 %v11279_v9, %v1741_v61  ;;  %v10366_v16 = vld [vmem:[#allocation3 + $0x2c8] sm:$0xff] }
 0x30a   : > { %v2971_v62 = vld [vmem:[#allocation2 + $0x1f] sm:$0xff]  ;;  %v2748_v24 = vpack.c.bf16 %v2737_v54, %v2736_v18  ;;  %3308 = vmatpush.bf16.msrb.mxu2 %v10366_v16 }
 0x30b   : > { %v2982_v31 = vpack.c.bf16 %v2971_v62, %v3099_v5  ;;  %v2673_v6 = vadd.f32 %v11396_v41, %v2658_v15  ;;  %9257 = vmatmul.msk.bf16.gmra.mxu2 %vm216_vm0, %v2777_v33  ;;  %v2011_v19 = vadd.f32 %v11281_v39, %v1881_v8 }
 0x30c   : > { %9280 = vmatmul.msk.bf16.gmra.mxu3 %vm216_vm0, %v2748_v24 }
 0x30d   : > { %9303 = vmatmul.msk.bf16.gmra.mxu0 %vm216_vm0, %v2982_v31  ;;  %v2686_v38 = vmul.f32 %v2673_v6, %v11099_v0  ;;  %v2141_v23 = vadd.f32 %v11354_v27, %v2011_v19  ;;  %v1746_v27 = vadd.f32 %v11291_v12, %v11286_v63  ;;  %v12924_v19 = vld [vmem:[#allocation26_spill] sm:$0xff] }
 0x30f   : > { %v2699_v36 = vmax.f32 %v2686_v38, 0.0  ;;  %v2271_v9 = vadd.f32 %v11358_v51, %v2141_v23  ;;  %v1883_v18 = vadd.f32 %v11293_v53, %v1746_v27 }
 0x310   : > { %v2632_v21 = vpop.f32.mrf.mxu1  ;;  %v3101_v20 = vld [vmem:[#allocation2 + $0x27] sm:$0xff] }
 0x311   : > { %2725 = vst.msk [vmem:[#allocation2 + $0x30] sm:$0xff] %vm216_vm0, %v2699_v36  ;;  %v2659_v3 = vadd.f32 %v2632_v21, %v2529_v11  ;;  %v3112_v29 = vpack.c.bf16 %v3101_v20, %v2971_v62  ;;  %v2767_v10 = vld [vmem:[#allocation2 + $0x26] sm:$0xff]  ;;  %v2401_v51 = vadd.f32 %v11360_v47, %v2271_v9  ;;  %v2013_v62 = vadd.f32 %v11295_v7, %v1883_v18  ;;  %v12929_v18 = vld [vmem:[#allocation28_spill] sm:$0xff] }
 0x312   : > { %v2738_v5 = vld [vmem:[#allocation2 + $0x25] sm:$0xff] }
 0x313   : > { %v2674_v59 = vadd.f32 %v11396_v41, %v2659_v3  ;;  %9326 = vmatmul.msk.bf16.gmra.mxu1 %vm216_vm0, %v3112_v29  ;;  %v2531_v49 = vadd.f32 %v11362_v13, %v2401_v51  ;;  %v2143_v33 = vadd.f32 %v11366_v14, %v2013_v62  ;;  %v1751_v14 = vadd.f32 %v11305_v55, %v11300_v4  ;;  %v12923_v29 = vld [vmem:[#allocation24_spill] sm:$0xff]  ;;  %v10365_v55 = vld [vmem:[#allocation3 + $0x2c0] sm:$0xff] }
 0x314   : > { %3309 = vmatpush.bf16.msrb.mxu2 %v10365_v55 }
 0x315   : > { %v2687_v58 = vmul.f32 %v2674_v59, %v11118_v17  ;;  %v2273_v53 = vadd.f32 %v11370_v44, %v2143_v33  ;;  %v10376_v33 = vld [vmem:[#allocation3 + $0x318] sm:$0xff] }
 0x316   : > { %3566 = vmatpush.bf16.msra.mxu0 %v10376_v33  ;;  %v3228_v33 = vld [vmem:[#allocation2 + $0x10] sm:$0xff] }
 0x317   : > { %v2700_v30 = vmax.f32 %v2687_v58, 0.0 }
 0x318   : > { %v2635_v32 = vpop.f32.mrf.mxu1  ;;  %v2768_v48 = vld [vmem:[#allocation2 + $0x2e] sm:$0xff] }
 0x319   : > { %v2739_v50 = vld [vmem:[#allocation2 + $0x2d] sm:$0xff]  ;;  %2726 = vst.msk [vmem:[#allocation2 + $0x38] sm:$0xff] %vm216_vm0, %v2700_v30  ;;  %v2660_v39 = vadd.f32 %v2635_v32, %v11356_v25  ;;  %v2778_v56 = vpack.c.bf16 %v2768_v48, %v2767_v10  ;;  %v12925_v30 = vld [vmem:[#allocation25_spill] sm:$0xff] }
 0x31a   : > { %v2973_v60 = vld [vmem:[#allocation2 + $0x2f] sm:$0xff]  ;;  %v2749_v35 = vpack.c.bf16 %v2739_v50, %v2738_v5  ;;  %v12927_v50 = vld [vmem:[#allocation16_spill] sm:$0xff] }
 0x31b   : > { %v2983_v34 = vpack.c.bf16 %v2973_v60, %v3101_v20  ;;  %v2675_v43 = vadd.f32 %v11396_v41, %v2660_v39  ;;  %9258 = vmatmul.msk.bf16.gmra.mxu2 %vm216_vm0, %v2778_v56  ;;  %v2403_v20 = vadd.f32 %v11372_v26, %v2273_v53  ;;  %v12926_v32 = vld [vmem:[#allocation27_spill] sm:$0xff]  ;;  %v12928_v39 = vld [vmem:[#allocation29_spill] sm:$0xff] }
 0x31c   : > { %9281 = vmatmul.msk.bf16.gmra.mxu3 %vm216_vm0, %v2749_v35 }
 0x31d   : > { %9304 = vmatmul.msk.bf16.gmra.mxu0 %vm216_vm0, %v2983_v34  ;;  %v2688_v25 = vmul.f32 %v2675_v43, %v11137_v28  ;;  %v2533_v59 = vadd.f32 %v12924_v19, %v2403_v20  ;;  %v10380_v20 = vld [vmem:[#allocation3 + $0x338] sm:$0xff] }
 0x31e   : > { %3696 = vmatpush.bf16.msra.mxu1 %v10380_v20 }
 0x31f   : > { %v2701_v57 = vmax.f32 %v2688_v25, 0.0 }
 0x320   : > { %v2637_v54 = vpop.f32.mrf.mxu1  ;;  %v3103_v63 = vld [vmem:[#allocation2 + $0x37] sm:$0xff] }
 0x321   : > { %2727 = vst.msk [vmem:[#allocation2 + $0x40] sm:$0xff] %vm216_vm0, %v2701_v57  ;;  %v2661_v47 = vadd.f32 %v2637_v54, %v2531_v49  ;;  %v3113_v12 = vpack.c.bf16 %v3103_v63, %v2973_v60  ;;  %v2769_v31 = vld [vmem:[#allocation2 + $0x36] sm:$0xff] }
 0x322   : > { %v2740_v61 = vld [vmem:[#allocation2 + $0x35] sm:$0xff] }
 0x323   : > { %v2676_v15 = vadd.f32 %v11396_v41, %v2661_v47  ;;  %9327 = vmatmul.msk.bf16.gmra.mxu1 %vm216_vm0, %v3113_v12  ;;  %v12930_v47 = vld [vmem:[#allocation30_spill] sm:$0xff] }
 0x325   : > { %v2689_v24 = vmul.f32 %v2676_v15, %v11152_v46  ;;  %v10372_v15 = vld [vmem:[#allocation3 + $0x2f8] sm:$0xff] }
 0x326   : > { %3436 = vmatpush.bf16.msra.mxu3 %v10372_v15  ;;  %v10383_v15 = vld [vmem:[#allocation3 + $0x350] sm:$0xff] }
 0x327   : > { %v2702_v13 = vmax.f32 %v2689_v24, 0.0  ;;  %v12931_v24 = vld [vmem:[#allocation18_spill] sm:$0xff] }
 0x328   : > { %v2640_v40 = vpop.f32.mrf.mxu1  ;;  %v2770_v6 = vld [vmem:[#allocation2 + $0x3e] sm:$0xff] }
 0x329   : > { %v2741_v38 = vld [vmem:[#allocation2 + $0x3d] sm:$0xff]  ;;  %2728 = vst.msk [vmem:[#allocation2 + $0x48] sm:$0xff] %vm216_vm0, %v2702_v13  ;;  %v2662_v7 = vadd.f32 %v2640_v40, %v11368_v2  ;;  %v2779_v11 = vpack.c.bf16 %v2770_v6, %v2769_v31  ;;  %v1885_v2 = vadd.f32 %v12923_v29, %v1751_v14  ;;  %v10374_v14 = vld [vmem:[#allocation3 + $0x308] sm:$0xff]  ;;  %v10369_v29 = vld [vmem:[#allocation3 + $0x2e0] sm:$0xff] }
 0x32a   : > { %v2975_v8 = vld [vmem:[#allocation2 + $0x3f] sm:$0xff]  ;;  %v2750_v36 = vpack.c.bf16 %v2741_v38, %v2740_v61  ;;  %v12932_v61 = vld [vmem:[#allocation31_spill] sm:$0xff] }
 0x32b   : > { %v2984_v21 = vpack.c.bf16 %v2975_v8, %v3103_v63  ;;  %v2677_v44 = vadd.f32 %v11396_v41, %v2662_v7  ;;  %9259 = vmatmul.msk.bf16.gmra.mxu2 %vm216_vm0, %v2779_v11  ;;  %v2015_v10 = vadd.f32 %v12925_v30, %v1885_v2  ;;  %v10371_v13 = vld [vmem:[#allocation3 + $0x2f0] sm:$0xff]  ;;  %v10373_v2 = vld [vmem:[#allocation3 + $0x300] sm:$0xff] }
 0x32c   : > { %9282 = vmatmul.msk.bf16.gmra.mxu3 %vm216_vm0, %v2750_v36  ;;  %v10375_v31 = vld [vmem:[#allocation3 + $0x310] sm:$0xff] }
 0x32d   : > { %9305 = vmatmul.msk.bf16.gmra.mxu0 %vm216_vm0, %v2984_v21  ;;  %v2690_v3 = vmul.f32 %v2677_v44, %v11171_v22  ;;  %v2145_v48 = vadd.f32 %v12926_v32, %v2015_v10  ;;  %3437 = vmatpush.bf16.msra.mxu3 %v10371_v13  ;;  %v10370_v21 = vld [vmem:[#allocation3 + $0x2e8] sm:$0xff]  ;;  %v12933_v44 = vld [vmem:[#allocation20_spill] sm:$0xff] }
 0x32e   : > { %3567 = vmatpush.bf16.msra.mxu0 %v10375_v31 }
 0x32f   : > { %v2703_v23 = vmax.f32 %v2690_v3, 0.0  ;;  %v2275_v56 = vadd.f32 %v12928_v39, %v2145_v48  ;;  %v10378_v39 = vld [vmem:[#allocation3 + $0x328] sm:$0xff] }
 0x330   : > { %v2642_v58 = vpop.f32.mrf.mxu1  ;;  %v3105_v9 = vld [vmem:[#allocation2 + $0x47] sm:$0xff] }
 0x331   : > { %2729 = vst.msk [vmem:[#allocation2 + $0x50] sm:$0xff] %vm216_vm0, %v2703_v23  ;;  %v2663_v26 = vadd.f32 %v2642_v58, %v2533_v59  ;;  %v3114_v4 = vpack.c.bf16 %v3105_v9, %v2975_v8  ;;  %v2771_v34 = vld [vmem:[#allocation2 + $0x46] sm:$0xff]  ;;  %v2405_v12 = vadd.f32 %v12930_v47, %v2275_v56  ;;  %3438 = vmatpush.bf16.msra.mxu3 %v10370_v21  ;;  %v10379_v58 = vld [vmem:[#allocation3 + $0x330] sm:$0xff] }
 0x332   : > { %v2742_v16 = vld [vmem:[#allocation2 + $0x45] sm:$0xff]  ;;  %3568 = vmatpush.bf16.msra.mxu0 %v10374_v14  ;;  %3697 = vmatpush.bf16.msra.mxu1 %v10379_v58  ;;  %v3229_v47 = vld [vmem:[#allocation2 + $0x18] sm:$0xff] }
 0x333   : > { %v2678_v5 = vadd.f32 %v11396_v41, %v2663_v26  ;;  %9328 = vmatmul.msk.bf16.gmra.mxu1 %vm216_vm0, %v3114_v4  ;;  %v2535_v40 = vadd.f32 %v12932_v61, %v2405_v12  ;;  %v12934_v56 = vld [vmem:[#allocation22_spill] sm:$0xff]  ;;  %v3359_v12 = vld [vmem:[#allocation2 + $0x19] sm:$0xff]  ;;  %v3241_v13 = vpack.c.bf16 %v3229_v47, %v3228_v33 }
 0x334   : > { %v3620_v58 = vld [vmem:[#allocation2 + $0x2a] sm:$0xff] }
 0x335   : > { %v2691_v60 = vmul.f32 %v2678_v5, %v12927_v50  ;;  %3439 = vmatpush.bf16.msra.mxu3 %v10369_v29  ;;  %v10389_v50 = vld [vmem:[#allocation3 + $0x380] sm:$0xff] }
 0x336   : > { %3569 = vmatpush.bf16.msra.mxu0 %v10373_v2  ;;  %3698 = vmatpush.bf16.msra.mxu1 %v10378_v39  ;;  %v3493_v39 = vld [vmem:[#allocation2 + $0x41] sm:$0xff] }
 0x337   : > { %v2704_v35 = vmax.f32 %v2691_v60, 0.0  ;;  %v10384_v60 = vld [vmem:[#allocation3 + $0x358] sm:$0xff] }
 0x338   : > { %v2645_v27 = vpop.f32.mrf.mxu1  ;;  %v2772_v51 = vld [vmem:[#allocation2 + $0x4e] sm:$0xff]  ;;  %3826 = vmatpush.bf16.msra.mxu2 %v10384_v60 }
 0x339   : > { %v2743_v43 = vld [vmem:[#allocation2 + $0x4d] sm:$0xff]  ;;  %2730 = vst.msk [vmem:[#allocation2 + $0x58] sm:$0xff] %vm216_vm0, %v2704_v35  ;;  %v2664_v49 = vadd.f32 %v2645_v27, %v12929_v18  ;;  %v2780_v57 = vpack.c.bf16 %v2772_v51, %v2771_v34 }
 0x33a   : > { %v2977_v25 = vld [vmem:[#allocation2 + $0x4f] sm:$0xff]  ;;  %v2751_v54 = vpack.c.bf16 %v2743_v43, %v2742_v16 }
 0x33b   : > { %v2985_v63 = vpack.c.bf16 %v2977_v25, %v3105_v9  ;;  %v2679_v62 = vadd.f32 %v11396_v41, %v2664_v49  ;;  %9260 = vmatmul.msk.bf16.gmra.mxu2 %vm216_vm0, %v2780_v57  ;;  %v10377_v16 = vld [vmem:[#allocation3 + $0x320] sm:$0xff] }
 0x33c   : > { %9283 = vmatmul.msk.bf16.gmra.mxu3 %vm216_vm0, %v2751_v54  ;;  %3699 = vmatpush.bf16.msra.mxu1 %v10377_v16 }
 0x33d   : > { %9306 = vmatmul.msk.bf16.gmra.mxu0 %vm216_vm0, %v2985_v63  ;;  %v2692_v53 = vmul.f32 %v2679_v62, %v12931_v24  ;;  %v3489_v62 = vld [vmem:[#allocation2 + $0x21] sm:$0xff]  ;;  %3827 = vmatpush.bf16.msra.mxu2 %v10383_v15 }
 0x33e   : > { %v3501_v61 = vpack.c.bf16 %v3489_v62, %v3359_v12 }
 0x33f   : > { %v2705_v6 = vmax.f32 %v2692_v53, 0.0  ;;  %v3358_v53 = vld [vmem:[#allocation2 + $0x11] sm:$0xff] }
 0x340   : > { %v2647_v38 = vpop.f32.mrf.mxu1  ;;  %v3107_v8 = vld [vmem:[#allocation2 + $0x57] sm:$0xff]  ;;  %v3371_v31 = vpack.c.bf16 %v3359_v12, %v3358_v53 }
 0x341   : > { %2731 = vst.msk [vmem:[#allocation2 + $0x60] sm:$0xff] %vm216_vm0, %v2705_v6  ;;  %v2665_v7 = vadd.f32 %v2647_v38, %v2535_v40  ;;  %v3115_v11 = vpack.c.bf16 %v3107_v8, %v2977_v25  ;;  %v2773_v59 = vld [vmem:[#allocation2 + $0x56] sm:$0xff]  ;;  %v3619_v40 = vld [vmem:[#allocation2 + $0x22] sm:$0xff] }
 0x342   : > { %v2744_v23 = vld [vmem:[#allocation2 + $0x55] sm:$0xff] }
 0x343   : > { %v2680_v36 = vadd.f32 %v11396_v41, %v2665_v7  ;;  %9329 = vmatmul.msk.bf16.gmra.mxu1 %vm216_vm0, %v3115_v11  ;;  %v3618_v6 = vld [vmem:[#allocation2 + $0x1a] sm:$0xff]  ;;  %v3361_v7 = vld [vmem:[#allocation2 + $0x29] sm:$0xff]  ;;  %v3491_v11 = vld [vmem:[#allocation2 + $0x31] sm:$0xff] }
 0x344   : > { %v3631_v38 = vpack.c.bf16 %v3619_v40, %v3618_v6  ;;  %v3372_v20 = vpack.c.bf16 %v3361_v7, %v3489_v62  ;;  %v3495_v40 = vld [vmem:[#allocation2 + $0x51] sm:$0xff] }
 0x345   : > { %v2693_v3 = vmul.f32 %v2680_v36, %v12933_v44  ;;  %v3230_v36 = vld [vmem:[#allocation2 + $0x20] sm:$0xff] }
 0x347   : > { %v2706_v19 = vmax.f32 %v2693_v3, 0.0  ;;  %v3502_v3 = vpack.c.bf16 %v3491_v11, %v3361_v7 }
 0x348   : > { %v2650_v9 = vpop.f32.mrf.mxu1  ;;  %v2774_v26 = vld [vmem:[#allocation2 + $0x5e] sm:$0xff] }
 0x349   : > { %v2745_v4 = vld [vmem:[#allocation2 + $0x5d] sm:$0xff]  ;;  %2732 = vst.msk [vmem:[#allocation2 + $0x68] sm:$0xff] %vm216_vm0, %v2706_v19  ;;  %v2666_v30 = vadd.f32 %v2650_v9, %v11389_v1  ;;  %v2781_v10 = vpack.c.bf16 %v2774_v26, %v2773_v59  ;;  %v3621_v19 = vld [vmem:[#allocation2 + $0x32] sm:$0xff] }
 0x34a   : > { %v2979_v55 = vld [vmem:[#allocation2 + $0x5f] sm:$0xff]  ;;  %v2752_v5 = vpack.c.bf16 %v2745_v4, %v2744_v23  ;;  %v3632_v4 = vpack.c.bf16 %v3621_v19, %v3620_v58  ;;  %v10381_v19 = vld [vmem:[#allocation3 + $0x340] sm:$0xff] }
 0x34b   : > { %v2986_v32 = vpack.c.bf16 %v2979_v55, %v3107_v8  ;;  %v2681_v48 = vadd.f32 %v11396_v41, %v2666_v30  ;;  %9261 = vmatmul.msk.bf16.gmra.mxu2 %vm216_vm0, %v2781_v10  ;;  %v3231_v8 = vld [vmem:[#allocation2 + $0x28] sm:$0xff]  ;;  %v10382_v30 = vld [vmem:[#allocation3 + $0x348] sm:$0xff] }
 0x34c   : > { %9284 = vmatmul.msk.bf16.gmra.mxu3 %vm216_vm0, %v2752_v5  ;;  %v3242_v14 = vpack.c.bf16 %v3231_v8, %v3230_v36  ;;  %3828 = vmatpush.bf16.msra.mxu2 %v10382_v30 }
 0x34d   : > { %9307 = vmatmul.msk.bf16.gmra.mxu0 %vm216_vm0, %v2986_v32  ;;  %v2694_v35 = vmul.f32 %v2681_v48, %v12934_v56  ;;  %v3233_v32 = vld [vmem:[#allocation2 + $0x38] sm:$0xff] }
 0x34e   : > { %v3363_v48 = vld [vmem:[#allocation2 + $0x39] sm:$0xff] }
 0x34f   : > { %v2707_v1 = vmax.f32 %v2694_v35, 0.0 }
 0x350   : > { %v3109_v34 = vld [vmem:[#allocation2 + $0x67] sm:$0xff]  ;;  %v2652_v27 = vpop.f32.mrf.mxu1  ;;  %3829 = vmatpush.bf16.msra.mxu2 %v10381_v19 }
 0x351   : > { %2733 = vst.msk [vmem:[#allocation2 + $0x70] sm:$0xf] %vm233_vm1, %v2707_v1  ;;  %v3116_v41 = vpack.c.bf16 %v3109_v34, %v2979_v55  ;;  %v2775_v51 = vld [vmem:[#allocation2 + $0x66] sm:$0xf]  ;;  %v3232_v1 = vld [vmem:[#allocation2 + $0x30] sm:$0xff] }
 0x352   : > { %v2746_v43 = vld [vmem:[#allocation2 + $0x65] sm:$0xf]  ;;  %v2782_v18 = vpack.c.bf16 %v2775_v51, %v2775_v51  ;;  %v3243_v27 = vpack.c.bf16 %v3233_v32, %v3232_v1  ;;  %v3503_v51 = vpack.c.bf16 %v3493_v39, %v3363_v48  ;;  %v3367_v32 = vld [vmem:[#allocation2 + $0x59] sm:$0xff] }
 0x353   : > { %9330 = vmatmul.msk.bf16.gmra.mxu1 %vm216_vm0, %v3116_v41  ;;  %v2980_v25 = vld [vmem:[#allocation2 + $0x67] sm:$0xf]  ;;  %v2753_v49 = vpack.c.bf16 %v2746_v43, %v2746_v43  ;;  %v3373_v41 = vpack.c.bf16 %v3363_v48, %v3491_v11 }
 0x354   : > { %v2987_v57 = vpack.c.bf16 %v2980_v25, %v2980_v25  ;;  %v3497_v48 = vld [vmem:[#allocation2 + $0x61] sm:$0xff] }
 0x358   : > { %v3110_v54 = vld [vmem:[#allocation2 + $0x6f] sm:$0xf] }
 0x359   : > { %v3117_v63 = vpack.c.bf16 %v3110_v54, %v3110_v54 }
 0x35b   : > { %9262 = vmatmul.msk.bf16.gmra.mxu2 %vm216_vm0, %v2782_v18 }
 0x35c   : > { %9285 = vmatmul.msk.bf16.gmra.mxu3 %vm216_vm0, %v2753_v49  ;;  %v3623_v49 = vld [vmem:[#allocation2 + $0x42] sm:$0xff] }
 0x35d   : > { %9308 = vmatmul.msk.bf16.gmra.mxu0 %vm216_vm0, %v2987_v57 }
 0x363   : > { %9331 = vmatmul.msk.bf16.gmra.mxu1 %vm216_vm0, %v3117_v63  ;;  %v3622_v63 = vld [vmem:[#allocation2 + $0x3a] sm:$0xff] }
 0x364   : > { %v3633_v62 = vpack.c.bf16 %v3623_v49, %v3622_v63  ;;  %v3626_v49 = vld [vmem:[#allocation2 + $0x5a] sm:$0xff] }
 0x36b   : > { %9348 = vmatmul.msk.bf16.vlgmr.msrb.gmra.mxu2 %vm216_vm0, %v3241_v13  ;;  %v3235_v13 = vld [vmem:[#allocation2 + $0x48] sm:$0xff] }
 0x36c   : > { %9371 = vmatmul.msk.bf16.vlgmr.msra.gmra.mxu3 %vm216_vm0, %v3371_v31  ;;  %v3365_v31 = vld [vmem:[#allocation2 + $0x49] sm:$0xff] }
 0x36d   : > { %9394 = vmatmul.msk.bf16.vlgmr.msra.gmra.mxu0 %vm216_vm0, %v3501_v61  ;;  %v3374_v36 = vpack.c.bf16 %v3365_v31, %v3493_v39  ;;  %v3236_v39 = vld [vmem:[#allocation2 + $0x50] sm:$0xff] }
 0x373   : > { %9417 = vmatmul.msk.bf16.vlgmr.msra.gmra.mxu1 %vm216_vm0, %v3631_v38  ;;  %v3234_v38 = vld [vmem:[#allocation2 + $0x40] sm:$0xff] }
 0x374   : > { %v3244_v11 = vpack.c.bf16 %v3235_v13, %v3234_v38  ;;  %v3499_v13 = vld [vmem:[#allocation2 + $0x71] sm:$0xff] }
 0x37a   : > { %v3051_v21 = vpop.f32.mrf.mxu0 }
 0x37b   : > { %9349 = vmatmul.msk.bf16.gmra.mxu2 %vm216_vm0, %v3242_v14 }
 0x37c   : > { %9372 = vmatmul.msk.bf16.gmra.mxu3 %vm216_vm0, %v3372_v20 }
 0x37d   : > { %9395 = vmatmul.msk.bf16.gmra.mxu0 %vm216_vm0, %v3502_v3 }
 0x37e   : > { %v2846_v29 = vpop.f32.mrf.mxu2 }
 0x37f   : > { %v2934_v2 = vpop.f32.mrf.mxu3 }
 0x380   : > { %v2935_v59 = vadd.f32 %v2934_v2, %v2846_v29  ;;  %v3181_v23 = vpop.f32.mrf.mxu1  ;;  %v3625_v29 = vld [vmem:[#allocation2 + $0x52] sm:$0xff] }
 0x382   : > { %v3053_v9 = vpop.f32.mrf.mxu0  ;;  %v3085_v26 = vadd.f32 %v3051_v21, %v2935_v59  ;;  %v3504_v21 = vpack.c.bf16 %v3495_v40, %v3365_v31 }
 0x383   : > { %9418 = vmatmul.msk.bf16.gmra.mxu1 %vm216_vm0, %v3632_v4 }
 0x384   : > { %v11517_v55 = vadd.f32 %v3181_v23, %v3085_v26  ;;  %v3624_v23 = vld [vmem:[#allocation2 + $0x4a] sm:$0xff] }
 0x385   : > { %v3634_v26 = vpack.c.bf16 %v3625_v29, %v3624_v23  ;;  %v3500_v23 = vld [vmem:[#allocation2 + $0x79] sm:$0xf] }
 0x386   : > { %v2848_v10 = vpop.f32.mrf.mxu2 }
 0x387   : > { %v2936_v5 = vpop.f32.mrf.mxu3 }
 0x388   : > { %v2937_v60 = vadd.f32 %v2936_v5, %v2848_v10  ;;  %v3183_v35 = vpop.f32.mrf.mxu1  ;;  %v3237_v5 = vld [vmem:[#allocation2 + $0x58] sm:$0xff] }
 0x389   : > { %v3245_v1 = vpack.c.bf16 %v3237_v5, %v3236_v39  ;;  %v3240_v5 = vld [vmem:[#allocation2 + $0x70] sm:$0xf]  ;;  %v3507_v39 = vpack.c.bf16 %v3500_v23, %v3500_v23 }
 0x38a   : > { %v3056_v34 = vpop.f32.mrf.mxu0  ;;  %v3086_v16 = vadd.f32 %v3053_v9, %v2937_v60 }
 0x38b   : > { %9350 = vmatmul.msk.bf16.gmra.mxu2 %vm216_vm0, %v3243_v27 }
 0x38c   : > { %v11520_v43 = vadd.f32 %v3183_v35, %v3086_v16  ;;  %9373 = vmatmul.msk.bf16.gmra.mxu3 %vm216_vm0, %v3373_v41  ;;  %v3505_v16 = vpack.c.bf16 %v3497_v48, %v3367_v32 }
 0x38d   : > { %9396 = vmatmul.msk.bf16.gmra.mxu0 %vm216_vm0, %v3503_v51  ;;  %v3627_v51 = vld [vmem:[#allocation2 + $0x62] sm:$0xff] }
 0x38e   : > { %v2851_v25 = vpop.f32.mrf.mxu2  ;;  %v3635_v63 = vpack.c.bf16 %v3627_v51, %v3626_v49 }
 0x38f   : > { %v2939_v18 = vpop.f32.mrf.mxu3 }
 0x390   : > { %v2940_v57 = vadd.f32 %v2939_v18, %v2851_v25  ;;  %v3186_v54 = vpop.f32.mrf.mxu1 }
 0x392   : > { %v3058_v47 = vpop.f32.mrf.mxu0  ;;  %v3087_v12 = vadd.f32 %v3056_v34, %v2940_v57  ;;  %v3375_v34 = vpack.c.bf16 %v3367_v32, %v3495_v40  ;;  %v3370_v32 = vld [vmem:[#allocation2 + $0x71] sm:$0xf] }
 0x393   : > { %9419 = vmatmul.msk.bf16.gmra.mxu1 %vm216_vm0, %v3633_v62 }
 0x394   : > { %v11525_v15 = vadd.f32 %v3186_v54, %v3087_v12 }
 0x396   : > { %v2853_v33 = vpop.f32.mrf.mxu2 }
 0x397   : > { %v2941_v53 = vpop.f32.mrf.mxu3 }
 0x398   : > { %v2942_v61 = vadd.f32 %v2941_v53, %v2853_v33  ;;  %v3188_v6 = vpop.f32.mrf.mxu1  ;;  %v3239_v33 = vld [vmem:[#allocation2 + $0x68] sm:$0xff] }
 0x399   : > { %v3369_v53 = vld [vmem:[#allocation2 + $0x69] sm:$0xff] }
 0x39a   : > { %v3061_v8 = vpop.f32.mrf.mxu0  ;;  %v3088_v7 = vadd.f32 %v3058_v47, %v2942_v61  ;;  %v3238_v61 = vld [vmem:[#allocation2 + $0x60] sm:$0xff]  ;;  %v3376_v38 = vpack.c.bf16 %v3369_v53, %v3497_v48 }
 0x39b   : > { %9351 = vmatmul.msk.bf16.gmra.mxu2 %vm216_vm0, %v3244_v11 }
 0x39c   : > { %v11528_v14 = vadd.f32 %v3188_v6, %v3088_v7  ;;  %9374 = vmatmul.msk.bf16.gmra.mxu3 %vm216_vm0, %v3374_v36  ;;  %v3246_v6 = vpack.c.bf16 %v3239_v33, %v3238_v61  ;;  %v3628_v36 = vld [vmem:[#allocation2 + $0x6a] sm:$0xff] }
 0x39d   : > { %9397 = vmatmul.msk.bf16.gmra.mxu0 %vm216_vm0, %v3504_v21  ;;  %v3629_v21 = vld [vmem:[#allocation2 + $0x72] sm:$0xff] }
 0x39e   : > { %v2856_v20 = vpop.f32.mrf.mxu2  ;;  %v3636_v19 = vpack.c.bf16 %v3629_v21, %v3628_v36 }
 0x39f   : > { %v2944_v3 = vpop.f32.mrf.mxu3 }
 0x3a0   : > { %v2945_v2 = vadd.f32 %v2944_v3, %v2856_v20  ;;  %v3191_v59 = vpop.f32.mrf.mxu1 }
 0x3a2   : > { %v11533_v58 = vpop.f32.mrf.mxu0  ;;  %v3089_v9 = vadd.f32 %v3061_v8, %v2945_v2  ;;  %v3506_v8 = vpack.c.bf16 %v3499_v13, %v3369_v53  ;;  %v3749_v13 = vld [vmem:[#allocation2 + $0x23] sm:$0xff] }
 0x3a3   : > { %9420 = vmatmul.msk.bf16.gmra.mxu1 %vm216_vm0, %v3634_v26 }
 0x3a4   : > { %v11535_v4 = vadd.f32 %v3191_v59, %v3089_v9 }
 0x3a6   : > { %v11538_v30 = vpop.f32.mrf.mxu2 }
 0x3a7   : > { %v11540_v10 = vpop.f32.mrf.mxu3 }
 0x3a8   : > { %v11542_v60 = vpop.f32.mrf.mxu1 }
 0x3aa   : > { %v3066_v35 = vpop.f32.mrf.mxu0 }
 0x3ab   : > { %9352 = vmatmul.msk.bf16.gmra.mxu2 %vm216_vm0, %v3245_v1  ;;  %v3247_v1 = vpack.c.bf16 %v3240_v5, %v3240_v5  ;;  %v3751_v5 = vld [vmem:[#allocation2 + $0x33] sm:$0xff] }
 0x3ac   : > { %9375 = vmatmul.msk.bf16.gmra.mxu3 %vm216_vm0, %v3375_v34  ;;  %v3377_v34 = vpack.c.bf16 %v3370_v32, %v3370_v32 }
 0x3ad   : > { %9398 = vmatmul.msk.bf16.gmra.mxu0 %vm216_vm0, %v3505_v16  ;;  %v3630_v16 = vld [vmem:[#allocation2 + $0x7a] sm:$0xf] }
 0x3ae   : > { %v2861_v27 = vpop.f32.mrf.mxu2 }
 0x3af   : > { %v2949_v41 = vpop.f32.mrf.mxu3 }
 0x3b0   : > { %v2950_v25 = vadd.f32 %v2949_v41, %v2861_v27  ;;  %v3196_v18 = vpop.f32.mrf.mxu1 }
 0x3b2   : > { %v11547_v57 = vpop.f32.mrf.mxu0  ;;  %v3091_v54 = vadd.f32 %v3066_v35, %v2950_v25  ;;  %v3637_v25 = vpack.c.bf16 %v3630_v16, %v3630_v16 }
 0x3b3   : > { %9421 = vmatmul.msk.bf16.gmra.mxu1 %vm216_vm0, %v3635_v63 }
 0x3b4   : > { %v11549_v47 = vadd.f32 %v3196_v18, %v3091_v54 }
 0x3b6   : > { %v11552_v12 = vpop.f32.mrf.mxu2 }
 0x3b7   : > { %v11554_v62 = vpop.f32.mrf.mxu3 }
 0x3b8   : > { %v11556_v31 = vpop.f32.mrf.mxu1 }
 0x3ba   : > { %v3071_v40 = vpop.f32.mrf.mxu0 }
 0x3bb   : > { %9353 = vmatmul.msk.bf16.gmra.mxu2 %vm216_vm0, %v3246_v6 }
 0x3bc   : > { %9376 = vmatmul.msk.bf16.gmra.mxu3 %vm216_vm0, %v3376_v38 }
 0x3bd   : > { %9399 = vmatmul.msk.bf16.gmra.mxu0 %vm216_vm0, %v3506_v8 }
 0x3be   : > { %v2866_v7 = vpop.f32.mrf.mxu2 }
 0x3bf   : > { %v2954_v11 = vpop.f32.mrf.mxu3 }
 0x3c0   : > { %v2955_v20 = vadd.f32 %v2954_v11, %v2866_v7  ;;  %v3201_v3 = vpop.f32.mrf.mxu1 }
 0x3c2   : > { %v11561_v29 = vpop.f32.mrf.mxu0  ;;  %v3093_v2 = vadd.f32 %v3071_v40, %v2955_v20  ;;  %v3748_v40 = vld [vmem:[#allocation2 + $0x1b] sm:$0xff] }
 0x3c3   : > { %9422 = vmatmul.msk.bf16.gmra.mxu1 %vm216_vm0, %v3636_v19  ;;  %v3761_v38 = vpack.c.bf16 %v3749_v13, %v3748_v40 }
 0x3c4   : > { %v11563_v59 = vadd.f32 %v3201_v3, %v3093_v2  ;;  %v10392_v2 = vld [vmem:[#allocation3 + $0x398] sm:$0xff] }
 0x3c5   : > { %4052 = vmatpush.bf16.msrb.mxu3 %v10392_v2 }
 0x3c6   : > { %v11566_v9 = vpop.f32.mrf.mxu2 }
 0x3c7   : > { %v11568_v26 = vpop.f32.mrf.mxu3 }
 0x3c8   : > { %v11570_v48 = vpop.f32.mrf.mxu1 }
 0x3ca   : > { %v3076_v35 = vpop.f32.mrf.mxu0 }
 0x3cb   : > { %9354 = vmatmul.msk.bf16.gmra.mxu2 %vm216_vm0, %v3247_v1 }
 0x3cc   : > { %9377 = vmatmul.msk.bf16.gmra.mxu3 %vm216_vm0, %v3377_v34 }
 0x3cd   : > { %9400 = vmatmul.msk.bf16.gmra.mxu0 %vm216_vm0, %v3507_v39  ;;  %v3750_v39 = vld [vmem:[#allocation2 + $0x2b] sm:$0xff] }
 0x3ce   : > { %v2871_v27 = vpop.f32.mrf.mxu2  ;;  %v3762_v1 = vpack.c.bf16 %v3751_v5, %v3750_v39  ;;  %v10391_v5 = vld [vmem:[#allocation3 + $0x390] sm:$0xff] }
 0x3cf   : > { %v2959_v41 = vpop.f32.mrf.mxu3  ;;  %4053 = vmatpush.bf16.msrb.mxu3 %v10391_v5 }
 0x3d0   : > { %v2960_v51 = vadd.f32 %v2959_v41, %v2871_v27  ;;  %v3206_v18 = vpop.f32.mrf.mxu1 }
 0x3d2   : > { %v11575_v49 = vpop.f32.mrf.mxu0  ;;  %v3095_v54 = vadd.f32 %v3076_v35, %v2960_v51 }
 0x3d3   : > { %12935 = vst [vmem:[#allocation24_spill] sm:$0xff] %v11575_v49  ;;  %9423 = vmatmul.msk.bf16.gmra.mxu1 %vm216_vm0, %v3637_v25  ;;  %v10395_v49 = vld [vmem:[#allocation3 + $0x3b0] sm:$0xff] }
 0x3d4   : > { %v11577_v63 = vadd.f32 %v3206_v18, %v3095_v54 }
 0x3d6   : > { %v11580_v33 = vpop.f32.mrf.mxu2 }
 0x3d7   : > { %v11582_v53 = vpop.f32.mrf.mxu3 }
 0x3d8   : > { %v11584_v61 = vpop.f32.mrf.mxu1 }
 0x3d9   : > { %12936 = vst [vmem:[#allocation26_spill] sm:$0xff] %v11584_v61  ;;  %v10396_v61 = vld [vmem:[#allocation3 + $0x3b8] sm:$0xff] }
 0x3da   : > { %v3081_v6 = vpop.f32.mrf.mxu0  ;;  %4257 = vmatpush.bf16.msrb.mxu1 %v10396_v61  ;;  %v10393_v61 = vld [vmem:[#allocation3 + $0x3a0] sm:$0xff] }
 0x3db   : > { %9440 = vmatmul.msk.bf16.vlgmr.msra.gmra.mxu2 %vm216_vm0, %v3761_v38 }
 0x3de   : > { %v2876_v8 = vpop.f32.mrf.mxu2  ;;  %4258 = vmatpush.bf16.msrb.mxu1 %v10395_v49  ;;  %v10398_v49 = vld [vmem:[#allocation3 + $0x3c8] sm:$0xff] }
 0x3df   : > { %v2964_v7 = vpop.f32.mrf.mxu3 }
 0x3e0   : > { %v2965_v11 = vadd.f32 %v2964_v7, %v2876_v8  ;;  %v3211_v36 = vpop.f32.mrf.mxu1  ;;  %v3752_v7 = vld [vmem:[#allocation2 + $0x3b] sm:$0xff] }
 0x3e2   : > { %v3083_v21 = vpop.f32.mrf.mxu0  ;;  %v3097_v20 = vadd.f32 %v3081_v6, %v2965_v11  ;;  %v3753_v6 = vld [vmem:[#allocation2 + $0x43] sm:$0xff] }
 0x3e4   : > { %v11587_v3 = vadd.f32 %v3211_v36, %v3097_v20  ;;  %v3763_v36 = vpack.c.bf16 %v3753_v6, %v3752_v7 }
 0x3e6   : > { %v2878_v19 = vpop.f32.mrf.mxu2 }
 0x3e7   : > { %v2966_v23 = vpop.f32.mrf.mxu3 }
 0x3e8   : > { %v3213_v32 = vpop.f32.mrf.mxu1 }
 0x3ea   : > { %v3571_v35 = vpop.f32.mrf.mxu0 }
 0x3eb   : > { %9441 = vmatmul.msk.bf16.gmra.mxu2 %vm216_vm0, %v3762_v1  ;;  %v3755_v1 = vld [vmem:[#allocation2 + $0x53] sm:$0xff] }
 0x3ee   : > { %v3311_v34 = vpop.f32.mrf.mxu2 }
 0x3ef   : > { %v3441_v16 = vpop.f32.mrf.mxu3  ;;  %v3345_v27 = vadd.f32 %v3311_v34, %v11517_v55 }
 0x3f0   : > { %v3701_v41 = vpop.f32.mrf.mxu1 }
 0x3f1   : > { %v3475_v51 = vadd.f32 %v3441_v16, %v3345_v27  ;;  %v3754_v27 = vld [vmem:[#allocation2 + $0x4b] sm:$0xff] }
 0x3f2   : > { %v11591_v25 = vpop.f32.mrf.mxu0 }
 0x3f3   : > { %v3605_v18 = vadd.f32 %v3571_v35, %v3475_v51 }
 0x3f5   : > { %v11593_v54 = vadd.f32 %v3701_v41, %v3605_v18  ;;  %v3764_v41 = vpack.c.bf16 %v3755_v1, %v3754_v27 }
 0x3f6   : > { %v3313_v13 = vpop.f32.mrf.mxu2 }
 0x3f7   : > { %v11595_v40 = vpop.f32.mrf.mxu3  ;;  %v11598_v38 = vadd.f32 %v3313_v13, %v11520_v43 }
 0x3f8   : > { %v11600_v8 = vpop.f32.mrf.mxu1 }
 0x3fa   : > { %v3576_v11 = vpop.f32.mrf.mxu0 }
 0x3fb   : > { %9442 = vmatmul.msk.bf16.gmra.mxu2 %vm216_vm0, %v3763_v36 }
 0x3fe   : > { %v3316_v55 = vpop.f32.mrf.mxu2 }
 0x3ff   : > { %v3446_v21 = vpop.f32.mrf.mxu3  ;;  %v3347_v20 = vadd.f32 %v3316_v55, %v11525_v15 }
 0x400   : > { %v3706_v2 = vpop.f32.mrf.mxu1 }
 0x401   : > { %v3477_v19 = vadd.f32 %v3446_v21, %v3347_v20  ;;  %v3757_v20 = vld [vmem:[#allocation2 + $0x63] sm:$0xff] }
 0x402   : > { %v11604_v23 = vpop.f32.mrf.mxu0 }
 0x403   : > { %v3607_v32 = vadd.f32 %v3576_v11, %v3477_v19  ;;  %v3756_v19 = vld [vmem:[#allocation2 + $0x5b] sm:$0xff] }
 0x405   : > { %v11606_v43 = vadd.f32 %v3706_v2, %v3607_v32  ;;  %v3765_v32 = vpack.c.bf16 %v3757_v20, %v3756_v19  ;;  %v3759_v20 = vld [vmem:[#allocation2 + $0x73] sm:$0xff] }
 0x406   : > { %v3318_v39 = vpop.f32.mrf.mxu2 }
 0x407   : > { %v11608_v35 = vpop.f32.mrf.mxu3  ;;  %v11611_v34 = vadd.f32 %v3318_v39, %v11528_v14 }
 0x408   : > { %v11613_v16 = vpop.f32.mrf.mxu1 }
 0x40a   : > { %v3581_v15 = vpop.f32.mrf.mxu0 }
 0x40b   : > { %9443 = vmatmul.msk.bf16.gmra.mxu2 %vm216_vm0, %v3764_v41 }
 0x40e   : > { %v3321_v51 = vpop.f32.mrf.mxu2 }
 0x40f   : > { %v3451_v18 = vpop.f32.mrf.mxu3  ;;  %v3349_v13 = vadd.f32 %v3321_v51, %v11535_v4  ;;  %v10390_v4 = vld [vmem:[#allocation3 + $0x388] sm:$0xff] }
 0x410   : > { %v3711_v6 = vpop.f32.mrf.mxu1  ;;  %4054 = vmatpush.bf16.msrb.mxu3 %v10390_v4 }
 0x411   : > { %v3479_v7 = vadd.f32 %v3451_v18, %v3349_v13 }
 0x412   : > { %v11617_v11 = vpop.f32.mrf.mxu0 }
 0x413   : > { %v3609_v36 = vadd.f32 %v3581_v15, %v3479_v7 }
 0x414   : > { %4055 = vmatpush.bf16.msrb.mxu3 %v10389_v50 }
 0x415   : > { %v11619_v55 = vadd.f32 %v3711_v6, %v3609_v36  ;;  %v3758_v36 = vld [vmem:[#allocation2 + $0x6b] sm:$0xff] }
 0x416   : > { %v11621_v14 = vpop.f32.mrf.mxu2  ;;  %v3766_v56 = vpack.c.bf16 %v3759_v20, %v3758_v36 }
 0x417   : > { %v11623_v21 = vpop.f32.mrf.mxu3 }
 0x418   : > { %v11625_v2 = vpop.f32.mrf.mxu1 }
 0x41a   : > { %v3586_v5 = vpop.f32.mrf.mxu0 }
 0x41b   : > { %9444 = vmatmul.msk.bf16.gmra.mxu2 %vm216_vm0, %v3765_v32 }
 0x41e   : > { %v3326_v39 = vpop.f32.mrf.mxu2 }
 0x41f   : > { %v3456_v1 = vpop.f32.mrf.mxu3  ;;  %v3351_v27 = vadd.f32 %v3326_v39, %v11549_v47 }
 0x420   : > { %v3716_v15 = vpop.f32.mrf.mxu1 }
 0x421   : > { %v3481_v41 = vadd.f32 %v3456_v1, %v3351_v27 }
 0x422   : > { %v11629_v51 = vpop.f32.mrf.mxu0 }
 0x423   : > { %v3611_v18 = vadd.f32 %v3586_v5, %v3481_v41  ;;  %v3760_v41 = vld [vmem:[#allocation2 + $0x7b] sm:$0xf] }
 0x424   : > { %v3767_v36 = vpack.c.bf16 %v3760_v41, %v3760_v41 }
 0x425   : > { %v11631_v13 = vadd.f32 %v3716_v15, %v3611_v18 }
 0x426   : > { %v11633_v6 = vpop.f32.mrf.mxu2 }
 0x427   : > { %v11635_v7 = vpop.f32.mrf.mxu3 }
 0x428   : > { %v11637_v19 = vpop.f32.mrf.mxu1 }
 0x42a   : > { %v3591_v32 = vpop.f32.mrf.mxu0 }
 0x42b   : > { %9445 = vmatmul.msk.bf16.gmra.mxu2 %vm216_vm0, %v3766_v56 }
 0x42e   : > { %v3331_v47 = vpop.f32.mrf.mxu2 }
 0x42f   : > { %v3461_v4 = vpop.f32.mrf.mxu3  ;;  %v3353_v39 = vadd.f32 %v3331_v47, %v11563_v59 }
 0x430   : > { %v3721_v1 = vpop.f32.mrf.mxu1 }
 0x431   : > { %v3483_v5 = vadd.f32 %v3461_v4, %v3353_v39 }
 0x432   : > { %v11641_v27 = vpop.f32.mrf.mxu0 }
 0x433   : > { %12937 = vst [vmem:[#allocation25_spill] sm:$0xff] %v11641_v27  ;;  %v3613_v15 = vadd.f32 %v3591_v32, %v3483_v5 }
 0x435   : > { %v11643_v18 = vadd.f32 %v3721_v1, %v3613_v15  ;;  %v10388_v15 = vld [vmem:[#allocation3 + $0x378] sm:$0xff] }
 0x436   : > { %v11645_v44 = vpop.f32.mrf.mxu2  ;;  %4140 = vmatpush.bf16.msrb.mxu0 %v10388_v15  ;;  %v10385_v15 = vld [vmem:[#allocation3 + $0x360] sm:$0xff] }
 0x437   : > { %v11647_v24 = vpop.f32.mrf.mxu3 }
 0x438   : > { %v11649_v20 = vpop.f32.mrf.mxu1 }
 0x439   : > { %12938 = vst [vmem:[#allocation27_spill] sm:$0xff] %v11649_v20 }
 0x43a   : > { %v3596_v56 = vpop.f32.mrf.mxu0 }
 0x43b   : > { %9446 = vmatmul.msk.bf16.gmra.mxu2 %vm216_vm0, %v3767_v36  ;;  %v10387_v36 = vld [vmem:[#allocation3 + $0x370] sm:$0xff] }
 0x43c   : > { %4141 = vmatpush.bf16.msrb.mxu0 %v10387_v36 }
 0x43e   : > { %v3336_v59 = vpop.f32.mrf.mxu2 }
 0x43f   : > { %v3466_v47 = vpop.f32.mrf.mxu3  ;;  %v3355_v4 = vadd.f32 %v3336_v59, %v11577_v63  ;;  %v10386_v59 = vld [vmem:[#allocation3 + $0x368] sm:$0xff] }
 0x440   : > { %v3726_v32 = vpop.f32.mrf.mxu1  ;;  %4142 = vmatpush.bf16.msrb.mxu0 %v10386_v59  ;;  %v10397_v59 = vld [vmem:[#allocation3 + $0x3c0] sm:$0xff] }
 0x441   : > { %v3485_v39 = vadd.f32 %v3466_v47, %v3355_v4  ;;  %v10394_v47 = vld [vmem:[#allocation3 + $0x3a8] sm:$0xff] }
 0x442   : > { %v11653_v1 = vpop.f32.mrf.mxu0  ;;  %4259 = vmatpush.bf16.msrb.mxu1 %v10394_v47 }
 0x443   : > { %12939 = vst [vmem:[#allocation29_spill] sm:$0xff] %v11653_v1  ;;  %v3615_v5 = vadd.f32 %v3596_v56, %v3485_v39  ;;  %v10400_v56 = vld [vmem:[#allocation3 + $0x3d8] sm:$0xff]  ;;  %v10399_v1 = vld [vmem:[#allocation3 + $0x3d0] sm:$0xff] }
 0x444   : > { %4387 = vmatpush.bf16.msrb.mxu2 %v10400_v56  ;;  %4143 = vmatpush.bf16.msrb.mxu0 %v10385_v15  ;;  %v3476_v56 = vadd.f32 %v11595_v40, %v11598_v38 }
 0x445   : > { %v11655_v22 = vadd.f32 %v3726_v32, %v3615_v5 }
 0x446   : > { %v11657_v41 = vpop.f32.mrf.mxu2  ;;  %4260 = vmatpush.bf16.msrb.mxu1 %v10393_v61 }
 0x447   : > { %12940 = vst [vmem:[#allocation28_spill] sm:$0xff] %v11655_v22  ;;  %v11659_v20 = vpop.f32.mrf.mxu3 }
 0x448   : > { %12941 = vst [vmem:[#allocation30_spill] sm:$0xff] %v11657_v41  ;;  %v11661_v50 = vpop.f32.mrf.mxu1  ;;  %4388 = vmatpush.bf16.msrb.mxu2 %v10399_v1 }
 0x449   : > { %12942 = vst [vmem:[#allocation31_spill] sm:$0xff] %v11659_v20 }
 0x44a   : > { %12943 = vst [vmem:[#allocation32_spill] sm:$0xff] %v11661_v50  ;;  %v3601_v63 = vpop.f32.mrf.mxu0 }
 0x44c   : > { %4389 = vmatpush.bf16.msrb.mxu2 %v10398_v49 }
 0x44e   : > { %v3341_v4 = vpop.f32.mrf.mxu2 }
 0x44f   : > { %v3471_v39 = vpop.f32.mrf.mxu3  ;;  %v3357_v32 = vadd.f32 %v3341_v4, %v11587_v3  ;;  %v10404_v3 = vld [vmem:[#allocation3 + $0x3f8] sm:$0xff]  ;;  %v12944_v4 = vld [vmem:[#allocation6_spill] sm:$0xff] }
 0x450   : > { %v3731_v5 = vpop.f32.mrf.mxu1  ;;  %4517 = vmatpush.bf16.msra.mxu3 %v10404_v3  ;;  %4390 = vmatpush.bf16.msrb.mxu2 %v10397_v59  ;;  %v3974_v3 = vld [vmem:[#allocation2 + $0x6] sm:$0xff] }
 0x451   : > { %v3487_v50 = vadd.f32 %v3471_v39, %v3357_v32  ;;  %v2708_v39 = vmul.f32 2.0, %v12944_v4 }
 0x452   : > { %v3603_v22 = vpop.f32.mrf.mxu0 }
 0x453   : > { %v3617_v36 = vadd.f32 %v3601_v63, %v3487_v50  ;;  %v11671_v22 = vld [vmem:[%s12857_s2 + $0x2] ss:$0 sm:$0xff] }
 0x455   : > { %v11664_v20 = vadd.f32 %v3731_v5, %v3617_v36  ;;  %v12945_v36 = vld [vmem:[#allocation7_spill] sm:$0xff] }
 0x456   : > { %v3343_v41 = vpop.f32.mrf.mxu2  ;;  %v2709_v49 = vmul.f32 2.0, %v12945_v36 }
 0x457   : > { %v3473_v27 = vpop.f32.mrf.mxu3  ;;  %v3606_v41 = vadd.f32 %v11591_v25, %v3476_v56  ;;  %v3478_v25 = vadd.f32 %v11608_v35, %v11611_v34  ;;  %v3945_v56 = vld [vmem:[#allocation2 + $0x5] sm:$0xff] }
 0x458   : > { %v3733_v47 = vpop.f32.mrf.mxu1 }
 0x459   : > { %v3736_v32 = vadd.f32 %v11600_v8, %v3606_v41  ;;  %v2947_v47 = vadd.f32 %v11540_v10, %v11538_v30 }
 0x45b   : > { %v3090_v30 = vadd.f32 %v11533_v58, %v2947_v47  ;;  %v10403_v47 = vld [vmem:[#allocation3 + $0x3f0] sm:$0xff] }
 0x45c   : > { %4518 = vmatpush.bf16.msra.mxu3 %v10403_v47 }
 0x45e   : > { %v3831_v1 = vpop.f32.mrf.mxu2 }
 0x45f   : > { %v3865_v50 = vadd.f32 %v3831_v1, %v11593_v54  ;;  %v4179_v1 = vld [vmem:[#allocation2 + $0x7] sm:$0xff] }
 0x461   : > { %v3880_v27 = vadd.f32 %v11671_v22, %v3865_v50 }
 0x463   : > { %v3893_v63 = vmul.f32 %v3880_v27, %v11041_v37  ;;  %v3608_v27 = vadd.f32 %v11604_v23, %v3478_v25  ;;  %v12946_v23 = vld [vmem:[#allocation8_spill] sm:$0xff] }
 0x465   : > { %v3906_v5 = vmul.f32 0.1, %v3893_v63 }
 0x466   : > { %v3833_v40 = vpop.f32.mrf.mxu2 }
 0x467   : > { %v3919_v38 = vadd.f32 %v3906_v5, %v2708_v39  ;;  %v3866_v15 = vadd.f32 %v3833_v40, %v3736_v32  ;;  %v3738_v40 = vadd.f32 %v11613_v16, %v3608_v27 }
 0x469   : > { %3932 = vst.msk [vmem:[#allocation2 + $0x10] sm:$0xff] %vm216_vm0, %v3919_v38  ;;  %v3881_v61 = vadd.f32 %v11671_v22, %v3866_v15  ;;  %v3220_v15 = vadd.f32 %v11542_v60, %v3090_v30  ;;  %v12947_v60 = vld [vmem:[#allocation9_spill] sm:$0xff] }
 0x46b   : > { %v3894_v54 = vmul.f32 %v3881_v61, %v11053_v42  ;;  %v3350_v58 = vadd.f32 %v11621_v14, %v3220_v15  ;;  %v2952_v14 = vadd.f32 %v11554_v62, %v11552_v12 }
 0x46d   : > { %v3907_v59 = vmul.f32 0.1, %v3894_v54  ;;  %v3480_v16 = vadd.f32 %v11623_v21, %v3350_v58  ;;  %v3092_v12 = vadd.f32 %v11547_v57, %v2952_v14 }
 0x46e   : > { %v3836_v8 = vpop.f32.mrf.mxu2 }
 0x46f   : > { %v3920_v50 = vadd.f32 %v3907_v59, %v2709_v49  ;;  %v3867_v41 = vadd.f32 %v3836_v8, %v11606_v43  ;;  %v2710_v43 = vmul.f32 2.0, %v12946_v23 }
 0x470   : > { %v3975_v63 = vld [vmem:[#allocation2 + $0xe] sm:$0xff] }
 0x471   : > { %v3946_v4 = vld [vmem:[#allocation2 + $0xd] sm:$0xff]  ;;  %3933 = vst.msk [vmem:[#allocation2 + $0x18] sm:$0xff] %vm216_vm0, %v3920_v50  ;;  %v3882_v35 = vadd.f32 %v11671_v22, %v3867_v41  ;;  %v3987_v34 = vpack.c.bf16 %v3975_v63, %v3974_v3  ;;  %v2711_v3 = vmul.f32 2.0, %v12947_v60 }
 0x472   : > { %v4180_v39 = vld [vmem:[#allocation2 + $0xf] sm:$0xff]  ;;  %v3958_v32 = vpack.c.bf16 %v3946_v4, %v3945_v56  ;;  %v3610_v4 = vadd.f32 %v11617_v11, %v3480_v16 }
 0x473   : > { %v4192_v5 = vpack.c.bf16 %v4180_v39, %v4179_v1  ;;  %v3895_v10 = vmul.f32 %v3882_v35, %v11067_v45  ;;  %9463 = vmatmul.msk.bf16.vlgmr.msrb.gmra.mxu3 %vm216_vm0, %v3987_v34  ;;  %v12948_v11 = vld [vmem:[#allocation10_spill] sm:$0xff] }
 0x474   : > { %9486 = vmatmul.msk.bf16.vlgmr.msrb.gmra.mxu0 %vm216_vm0, %v3958_v32 }
 0x475   : > { %9509 = vmatmul.msk.bf16.vlgmr.msrb.gmra.mxu1 %vm216_vm0, %v4192_v5  ;;  %v3908_v38 = vmul.f32 0.1, %v3895_v10  ;;  %v3740_v10 = vadd.f32 %v11625_v2, %v3610_v4 }
 0x476   : > { %v3838_v61 = vpop.f32.mrf.mxu2 }
 0x477   : > { %v3921_v54 = vadd.f32 %v3908_v38, %v2710_v43  ;;  %v3868_v25 = vadd.f32 %v3838_v61, %v3738_v40  ;;  %v3222_v43 = vadd.f32 %v11556_v31, %v3092_v12 }
 0x478   : > { %v4310_v36 = vld [vmem:[#allocation2 + $0x17] sm:$0xff] }
 0x479   : > { %3934 = vst.msk [vmem:[#allocation2 + $0x20] sm:$0xff] %vm216_vm0, %v3921_v54  ;;  %v3883_v49 = vadd.f32 %v11671_v22, %v3868_v25  ;;  %v4322_v59 = vpack.c.bf16 %v4310_v36, %v4180_v39  ;;  %v3976_v27 = vld [vmem:[#allocation2 + $0x16] sm:$0xff]  ;;  %v3352_v57 = vadd.f32 %v11633_v6, %v3222_v43 }
 0x47a   : > { %v3947_v63 = vld [vmem:[#allocation2 + $0x15] sm:$0xff] }
 0x47b   : > { %v3896_v8 = vmul.f32 %v3883_v49, %v11086_v52  ;;  %9532 = vmatmul.msk.bf16.vlgmr.msrb.gmra.mxu2 %vm216_vm0, %v4322_v59  ;;  %v3482_v2 = vadd.f32 %v11635_v7, %v3352_v57  ;;  %v2957_v59 = vadd.f32 %v11568_v26, %v11566_v9 }
 0x47d   : > { %v3909_v56 = vmul.f32 0.1, %v3896_v8  ;;  %v3094_v9 = vadd.f32 %v11561_v29, %v2957_v59 }
 0x47e   : > { %v3841_v1 = vpop.f32.mrf.mxu2 }
 0x47f   : > { %v3922_v50 = vadd.f32 %v3909_v56, %v2711_v3  ;;  %v3869_v41 = vadd.f32 %v3841_v1, %v11619_v55  ;;  %v2712_v55 = vmul.f32 2.0, %v12948_v11  ;;  %v3612_v3 = vadd.f32 %v11629_v51, %v3482_v2  ;;  %v12950_v51 = vld [vmem:[#allocation12_spill] sm:$0xff]  ;;  %v12951_v11 = vld [vmem:[#allocation13_spill] sm:$0xff] }
 0x480   : > { %v3977_v39 = vld [vmem:[#allocation2 + $0x1e] sm:$0xff] }
 0x481   : > { %v3948_v35 = vld [vmem:[#allocation2 + $0x1d] sm:$0xff]  ;;  %3935 = vst.msk [vmem:[#allocation2 + $0x28] sm:$0xff] %vm216_vm0, %v3922_v50  ;;  %v3884_v21 = vadd.f32 %v11671_v22, %v3869_v41  ;;  %v3988_v32 = vpack.c.bf16 %v3977_v39, %v3976_v27  ;;  %v3742_v4 = vadd.f32 %v11637_v19, %v3612_v3 }
 0x482   : > { %v4182_v34 = vld [vmem:[#allocation2 + $0x1f] sm:$0xff]  ;;  %v3959_v5 = vpack.c.bf16 %v3948_v35, %v3947_v63  ;;  %v10402_v63 = vld [vmem:[#allocation3 + $0x3e8] sm:$0xff]  ;;  %v3224_v35 = vadd.f32 %v11570_v48, %v3094_v9 }
 0x483   : > { %v4193_v30 = vpack.c.bf16 %v4182_v34, %v4310_v36  ;;  %v3897_v62 = vmul.f32 %v3884_v21, %v11099_v0  ;;  %9464 = vmatmul.msk.bf16.gmra.mxu3 %vm216_vm0, %v3988_v32  ;;  %v12949_v36 = vld [vmem:[#allocation11_spill] sm:$0xff]  ;;  %v12959_v9 = vld [vmem:[#allocation16_spill] sm:$0xff] }
 0x484   : > { %9487 = vmatmul.msk.bf16.gmra.mxu0 %vm216_vm0, %v3959_v5  ;;  %v2713_v49 = vmul.f32 2.0, %v12949_v36  ;;  %4519 = vmatpush.bf16.msra.mxu3 %v10402_v63  ;;  %v3354_v29 = vadd.f32 %v11645_v44, %v3224_v35  ;;  %v10401_v63 = vld [vmem:[#allocation3 + $0x3e0] sm:$0xff] }
 0x485   : > { %9510 = vmatmul.msk.bf16.gmra.mxu1 %vm216_vm0, %v4193_v30  ;;  %v3910_v23 = vmul.f32 0.1, %v3897_v62 }
 0x486   : > { %v3843_v40 = vpop.f32.mrf.mxu2  ;;  %v3484_v19 = vadd.f32 %v11647_v24, %v3354_v29 }
 0x487   : > { %v3923_v38 = vadd.f32 %v3910_v23, %v2712_v55  ;;  %v3870_v15 = vadd.f32 %v3843_v40, %v3740_v10  ;;  %v2715_v55 = vmul.f32 2.0, %v12951_v11  ;;  %v2962_v10 = vadd.f32 %v11582_v53, %v11580_v33  ;;  %v12954_v53 = vld [vmem:[#allocation14_spill] sm:$0xff] }
 0x488   : > { %v4312_v61 = vld [vmem:[#allocation2 + $0x27] sm:$0xff]  ;;  %4520 = vmatpush.bf16.msra.mxu3 %v10401_v63 }
 0x489   : > { %3936 = vst.msk [vmem:[#allocation2 + $0x30] sm:$0xff] %vm216_vm0, %v3923_v38  ;;  %v3885_v54 = vadd.f32 %v11671_v22, %v3870_v15  ;;  %v4323_v25 = vpack.c.bf16 %v4312_v61, %v4182_v34  ;;  %v3978_v16 = vld [vmem:[#allocation2 + $0x26] sm:$0xff] }
 0x48a   : > { %v3949_v60 = vld [vmem:[#allocation2 + $0x25] sm:$0xff] }
 0x48b   : > { %v3898_v58 = vmul.f32 %v3885_v54, %v11118_v17  ;;  %9533 = vmatmul.msk.bf16.gmra.mxu2 %vm216_vm0, %v4323_v25  ;;  %v12952_v15 = vld [vmem:[#allocation25_spill] sm:$0xff] }
 0x48c   : > { %v3614_v57 = vadd.f32 %v12952_v15, %v3484_v19  ;;  %v10412_v15 = vld [vmem:[#allocation3 + $0x438] sm:$0xff] }
 0x48d   : > { %v3911_v31 = vmul.f32 0.1, %v3898_v58  ;;  %4777 = vmatpush.bf16.msra.mxu1 %v10412_v15 }
 0x48e   : > { %v3846_v47 = vpop.f32.mrf.mxu2 }
 0x48f   : > { %v3924_v6 = vadd.f32 %v3911_v31, %v2713_v49  ;;  %v3871_v8 = vadd.f32 %v3846_v47, %v11631_v13  ;;  %v2714_v13 = vmul.f32 2.0, %v12950_v51  ;;  %v12953_v49 = vld [vmem:[#allocation24_spill] sm:$0xff]  ;;  %v12956_v47 = vld [vmem:[#allocation27_spill] sm:$0xff] }
 0x490   : > { %v3979_v56 = vld [vmem:[#allocation2 + $0x2e] sm:$0xff]  ;;  %v3096_v33 = vadd.f32 %v12953_v49, %v2962_v10 }
 0x491   : > { %v3950_v14 = vld [vmem:[#allocation2 + $0x2d] sm:$0xff]  ;;  %3937 = vst.msk [vmem:[#allocation2 + $0x38] sm:$0xff] %vm216_vm0, %v3924_v6  ;;  %v3886_v7 = vadd.f32 %v11671_v22, %v3871_v8  ;;  %v3989_v50 = vpack.c.bf16 %v3979_v56, %v3978_v16  ;;  %v3744_v6 = vadd.f32 %v12956_v47, %v3614_v57  ;;  %v12967_v47 = vld [vmem:[#allocation20_spill] sm:$0xff] }
 0x492   : > { %v4184_v1 = vld [vmem:[#allocation2 + $0x2f] sm:$0xff]  ;;  %v3960_v41 = vpack.c.bf16 %v3950_v14, %v3949_v60 }
 0x493   : > { %v4194_v27 = vpack.c.bf16 %v4184_v1, %v4312_v61  ;;  %v3899_v26 = vmul.f32 %v3886_v7, %v11137_v28  ;;  %9465 = vmatmul.msk.bf16.gmra.mxu3 %vm216_vm0, %v3989_v50  ;;  %v12957_v16 = vld [vmem:[#allocation26_spill] sm:$0xff]  ;;  %v12960_v51 = vld [vmem:[#allocation31_spill] sm:$0xff] }
 0x494   : > { %9488 = vmatmul.msk.bf16.gmra.mxu0 %vm216_vm0, %v3960_v41  ;;  %v3226_v60 = vadd.f32 %v12957_v16, %v3096_v33  ;;  %v12965_v57 = vld [vmem:[#allocation19_spill] sm:$0xff] }
 0x495   : > { %9511 = vmatmul.msk.bf16.gmra.mxu1 %vm216_vm0, %v4194_v27  ;;  %v3912_v39 = vmul.f32 0.1, %v3899_v26  ;;  %v10410_v16 = vld [vmem:[#allocation3 + $0x428] sm:$0xff] }
 0x496   : > { %v3848_v34 = vpop.f32.mrf.mxu2 }
 0x497   : > { %v3925_v21 = vadd.f32 %v3912_v39, %v2714_v13  ;;  %v3872_v32 = vadd.f32 %v3848_v34, %v3742_v4  ;;  %v12961_v4 = vld [vmem:[#allocation17_spill] sm:$0xff] }
 0x498   : > { %v4314_v5 = vld [vmem:[#allocation2 + $0x37] sm:$0xff]  ;;  %v2717_v39 = vmul.f32 2.0, %v12961_v4 }
 0x499   : > { %3938 = vst.msk [vmem:[#allocation2 + $0x40] sm:$0xff] %vm216_vm0, %v3925_v21  ;;  %v3887_v30 = vadd.f32 %v11671_v22, %v3872_v32  ;;  %v4324_v12 = vpack.c.bf16 %v4314_v5, %v4184_v1  ;;  %v3980_v40 = vld [vmem:[#allocation2 + $0x36] sm:$0xff]  ;;  %v12958_v1 = vld [vmem:[#allocation30_spill] sm:$0xff] }
 0x49a   : > { %v3951_v38 = vld [vmem:[#allocation2 + $0x35] sm:$0xff]  ;;  %v3356_v7 = vadd.f32 %v12958_v1, %v3226_v60  ;;  %v10416_v60 = vld [vmem:[#allocation3 + $0x458] sm:$0xff] }
 0x49b   : > { %v3900_v62 = vmul.f32 %v3887_v30, %v11152_v46  ;;  %9534 = vmatmul.msk.bf16.gmra.mxu2 %vm216_vm0, %v4324_v12  ;;  %v12962_v32 = vld [vmem:[#allocation28_spill] sm:$0xff]  ;;  %v12963_v12 = vld [vmem:[#allocation29_spill] sm:$0xff] }
 0x49c   : > { %v3486_v13 = vadd.f32 %v12960_v51, %v3356_v7  ;;  %4907 = vmatpush.bf16.msra.mxu2 %v10416_v60  ;;  %v10405_v7 = vld [vmem:[#allocation3 + $0x400] sm:$0xff]  ;;  %v10415_v51 = vld [vmem:[#allocation3 + $0x450] sm:$0xff] }
 0x49d   : > { %v3913_v48 = vmul.f32 0.1, %v3900_v62  ;;  %v4572_v60 = vld [vmem:[#allocation2 + $0x29] sm:$0xff] }
 0x49e   : > { %v3851_v23 = vpop.f32.mrf.mxu2  ;;  %v3616_v62 = vadd.f32 %v12963_v12, %v3486_v13  ;;  %v12970_v12 = vld [vmem:[#allocation23_spill] sm:$0xff] }
 0x49f   : > { %v3926_v44 = vadd.f32 %v3913_v48, %v2715_v55  ;;  %v3873_v43 = vadd.f32 %v3851_v23, %v11643_v18  ;;  %v12955_v18 = vld [vmem:[#allocation15_spill] sm:$0xff] }
 0x4a0   : > { %v3981_v61 = vld [vmem:[#allocation2 + $0x3e] sm:$0xff]  ;;  %v2716_v59 = vmul.f32 2.0, %v12955_v18  ;;  %4908 = vmatpush.bf16.msra.mxu2 %v10415_v51 }
 0x4a1   : > { %v3952_v54 = vld [vmem:[#allocation2 + $0x3d] sm:$0xff]  ;;  %3939 = vst.msk [vmem:[#allocation2 + $0x48] sm:$0xff] %vm216_vm0, %v3926_v44  ;;  %v3888_v24 = vadd.f32 %v11671_v22, %v3873_v43  ;;  %v3990_v58 = vpack.c.bf16 %v3981_v61, %v3980_v40  ;;  %v12964_v43 = vld [vmem:[#allocation18_spill] sm:$0xff]  ;;  %v2718_v61 = vmul.f32 2.0, %v12965_v57 }
 0x4a2   : > { %v4186_v25 = vld [vmem:[#allocation2 + $0x3f] sm:$0xff]  ;;  %v3961_v2 = vpack.c.bf16 %v3952_v54, %v3951_v38 }
 0x4a3   : > { %v4195_v36 = vpack.c.bf16 %v4186_v25, %v4314_v5  ;;  %v3901_v31 = vmul.f32 %v3888_v24, %v12954_v53  ;;  %9466 = vmatmul.msk.bf16.gmra.mxu3 %vm216_vm0, %v3990_v58  ;;  %v10408_v38 = vld [vmem:[#allocation3 + $0x418] sm:$0xff]  ;;  %v12966_v54 = vld [vmem:[#allocation32_spill] sm:$0xff]  ;;  %v10430_v53 = vld [vmem:[#allocation3 + $0x4c8] sm:$0xff] }
 0x4a4   : > { %9489 = vmatmul.msk.bf16.gmra.mxu0 %vm216_vm0, %v3961_v2  ;;  %v10407_v2 = vld [vmem:[#allocation3 + $0x410] sm:$0xff] }
 0x4a5   : > { %9512 = vmatmul.msk.bf16.gmra.mxu1 %vm216_vm0, %v4195_v36  ;;  %v3914_v8 = vmul.f32 0.1, %v3901_v31  ;;  %4647 = vmatpush.bf16.msra.mxu0 %v10408_v38  ;;  %v10411_v36 = vld [vmem:[#allocation3 + $0x430] sm:$0xff] }
 0x4a6   : > { %v3853_v3 = vpop.f32.mrf.mxu2  ;;  %4778 = vmatpush.bf16.msra.mxu1 %v10411_v36  ;;  %v4439_v36 = vld [vmem:[#allocation2 + $0x10] sm:$0xff] }
 0x4a7   : > { %v3927_v56 = vadd.f32 %v3914_v8, %v2716_v59  ;;  %v3874_v14 = vadd.f32 %v3853_v3, %v3744_v6  ;;  %v10406_v8 = vld [vmem:[#allocation3 + $0x408] sm:$0xff]  ;;  %v12968_v3 = vld [vmem:[#allocation21_spill] sm:$0xff] }
 0x4a8   : > { %v4316_v50 = vld [vmem:[#allocation2 + $0x47] sm:$0xff] }
 0x4a9   : > { %3940 = vst.msk [vmem:[#allocation2 + $0x50] sm:$0xff] %vm216_vm0, %v3927_v56  ;;  %v3889_v41 = vadd.f32 %v11671_v22, %v3874_v14  ;;  %v4325_v27 = vpack.c.bf16 %v4316_v50, %v4186_v25  ;;  %v3982_v5 = vld [vmem:[#allocation2 + $0x46] sm:$0xff]  ;;  %v3746_v25 = vadd.f32 %v12966_v54, %v3616_v62  ;;  %4648 = vmatpush.bf16.msra.mxu0 %v10407_v2  ;;  %v2719_v56 = vmul.f32 2.0, %v12968_v3  ;;  %v10419_v2 = vld [vmem:[#allocation3 + $0x470] sm:$0xff] }
 0x4aa   : > { %v3953_v30 = vld [vmem:[#allocation2 + $0x45] sm:$0xff]  ;;  %4779 = vmatpush.bf16.msra.mxu1 %v10410_v16  ;;  %v2720_v62 = vmul.f32 2.0, %v12970_v12  ;;  %v4702_v3 = vld [vmem:[#allocation2 + $0x31] sm:$0xff] }
 0x4ab   : > { %v3902_v26 = vmul.f32 %v3889_v41, %v12959_v9  ;;  %9535 = vmatmul.msk.bf16.gmra.mxu2 %vm216_vm0, %v4325_v27  ;;  %v4442_v16 = vld [vmem:[#allocation2 + $0x28] sm:$0xff] }
 0x4ad   : > { %v3915_v35 = vmul.f32 0.1, %v3902_v26  ;;  %4649 = vmatpush.bf16.msra.mxu0 %v10406_v8 }
 0x4ae   : > { %v3856_v34 = vpop.f32.mrf.mxu2 }
 0x4af   : > { %v3928_v21 = vadd.f32 %v3915_v35, %v2717_v39  ;;  %v3875_v29 = vadd.f32 %v3856_v34, %v12962_v32 }
 0x4b0   : > { %v3983_v19 = vld [vmem:[#allocation2 + $0x4e] sm:$0xff] }
 0x4b1   : > { %v3954_v11 = vld [vmem:[#allocation2 + $0x4d] sm:$0xff]  ;;  %3941 = vst.msk [vmem:[#allocation2 + $0x58] sm:$0xff] %vm216_vm0, %v3928_v21  ;;  %v3890_v48 = vadd.f32 %v11671_v22, %v3875_v29  ;;  %v3991_v10 = vpack.c.bf16 %v3983_v19, %v3982_v5  ;;  %4650 = vmatpush.bf16.msra.mxu0 %v10405_v7 }
 0x4b2   : > { %v4188_v55 = vld [vmem:[#allocation2 + $0x4f] sm:$0xff]  ;;  %v3962_v23 = vpack.c.bf16 %v3954_v11, %v3953_v30 }
 0x4b3   : > { %v4196_v44 = vpack.c.bf16 %v4188_v55, %v4316_v50  ;;  %v3903_v40 = vmul.f32 %v3890_v48, %v12964_v43  ;;  %9467 = vmatmul.msk.bf16.gmra.mxu3 %vm216_vm0, %v3991_v10  ;;  %v10409_v50 = vld [vmem:[#allocation3 + $0x420] sm:$0xff]  ;;  %v10414_v30 = vld [vmem:[#allocation3 + $0x448] sm:$0xff]  ;;  %v4971_v43 = vld [vmem:[#allocation2 + $0x7b] sm:$0xf] }
 0x4b4   : > { %9490 = vmatmul.msk.bf16.gmra.mxu0 %vm216_vm0, %v3962_v23  ;;  %4780 = vmatpush.bf16.msra.mxu1 %v10409_v50  ;;  %v12969_v29 = vld [vmem:[#allocation22_spill] sm:$0xff] }
 0x4b5   : > { %9513 = vmatmul.msk.bf16.gmra.mxu1 %vm216_vm0, %v4196_v44  ;;  %v3916_v24 = vmul.f32 0.1, %v3903_v40  ;;  %4909 = vmatpush.bf16.msra.mxu2 %v10414_v30  ;;  %v10413_v48 = vld [vmem:[#allocation3 + $0x440] sm:$0xff] }
 0x4b6   : > { %v3858_v58 = vpop.f32.mrf.mxu2 }
 0x4b7   : > { %v3929_v49 = vadd.f32 %v3916_v24, %v2718_v61  ;;  %v3876_v33 = vadd.f32 %v3858_v58, %v3746_v25  ;;  %v4440_v25 = vld [vmem:[#allocation2 + $0x18] sm:$0xff]  ;;  %v4700_v58 = vld [vmem:[#allocation2 + $0x21] sm:$0xff] }
 0x4b8   : > { %v4318_v31 = vld [vmem:[#allocation2 + $0x57] sm:$0xff]  ;;  %v4583_v50 = vpack.c.bf16 %v4572_v60, %v4700_v58 }
 0x4b9   : > { %3942 = vst.msk [vmem:[#allocation2 + $0x60] sm:$0xff] %vm216_vm0, %v3929_v49  ;;  %v3891_v18 = vadd.f32 %v11671_v22, %v3876_v33  ;;  %v4326_v59 = vpack.c.bf16 %v4318_v31, %v4188_v55  ;;  %v3984_v63 = vld [vmem:[#allocation2 + $0x56] sm:$0xff]  ;;  %4910 = vmatpush.bf16.msra.mxu2 %v10413_v48  ;;  %v4452_v33 = vpack.c.bf16 %v4440_v25, %v4439_v36 }
 0x4ba   : > { %v3955_v26 = vld [vmem:[#allocation2 + $0x55] sm:$0xff] }
 0x4bb   : > { %v3904_v6 = vmul.f32 %v3891_v18, %v12967_v47  ;;  %9536 = vmatmul.msk.bf16.gmra.mxu2 %vm216_vm0, %v4326_v59  ;;  %v4570_v24 = vld [vmem:[#allocation2 + $0x19] sm:$0xff]  ;;  %v4569_v49 = vld [vmem:[#allocation2 + $0x11] sm:$0xff]  ;;  %v4830_v59 = vld [vmem:[#allocation2 + $0x22] sm:$0xff] }
 0x4bc   : > { %v4712_v18 = vpack.c.bf16 %v4700_v58, %v4570_v24  ;;  %v10425_v47 = vld [vmem:[#allocation3 + $0x4a0] sm:$0xff] }
 0x4bd   : > { %v3917_v14 = vmul.f32 0.1, %v3904_v6  ;;  %v4829_v6 = vld [vmem:[#allocation2 + $0x1a] sm:$0xff] }
 0x4be   : > { %v3861_v1 = vpop.f32.mrf.mxu2  ;;  %v4842_v8 = vpack.c.bf16 %v4830_v59, %v4829_v6  ;;  %v4706_v59 = vld [vmem:[#allocation2 + $0x51] sm:$0xff] }
 0x4bf   : > { %v3930_v41 = vadd.f32 %v3917_v14, %v2719_v56  ;;  %v3877_v27 = vadd.f32 %v3861_v1, %v11664_v20  ;;  %v10420_v20 = vld [vmem:[#allocation3 + $0x478] sm:$0xff] }
 0x4c0   : > { %v3985_v13 = vld [vmem:[#allocation2 + $0x5e] sm:$0xff]  ;;  %5037 = vmatpush.bf16.msrb.mxu3 %v10420_v20 }
 0x4c1   : > { %v3956_v4 = vld [vmem:[#allocation2 + $0x5d] sm:$0xff]  ;;  %3943 = vst.msk [vmem:[#allocation2 + $0x68] sm:$0xff] %vm216_vm0, %v3930_v41  ;;  %v3892_v35 = vadd.f32 %v11671_v22, %v3877_v27  ;;  %v3992_v34 = vpack.c.bf16 %v3985_v13, %v3984_v63  ;;  %v4713_v41 = vpack.c.bf16 %v4702_v3, %v4572_v60  ;;  %v4832_v63 = vld [vmem:[#allocation2 + $0x32] sm:$0xff]  ;;  %v4831_v13 = vld [vmem:[#allocation2 + $0x2a] sm:$0xff] }
 0x4c2   : > { %v4190_v39 = vld [vmem:[#allocation2 + $0x5f] sm:$0xff]  ;;  %v3963_v21 = vpack.c.bf16 %v3956_v4, %v3955_v26 }
 0x4c3   : > { %v4197_v32 = vpack.c.bf16 %v4190_v39, %v4318_v31  ;;  %v3905_v5 = vmul.f32 %v3892_v35, %v12969_v29  ;;  %9468 = vmatmul.msk.bf16.gmra.mxu3 %vm216_vm0, %v3992_v34  ;;  %v4582_v31 = vpack.c.bf16 %v4570_v24, %v4569_v49  ;;  %v4441_v14 = vld [vmem:[#allocation2 + $0x20] sm:$0xff]  ;;  %v10418_v34 = vld [vmem:[#allocation3 + $0x468] sm:$0xff]  ;;  %v4446_v49 = vld [vmem:[#allocation2 + $0x48] sm:$0xff] }
 0x4c4   : > { %9491 = vmatmul.msk.bf16.gmra.mxu0 %vm216_vm0, %v3963_v21  ;;  %5038 = vmatpush.bf16.msrb.mxu3 %v10419_v2  ;;  %v4453_v7 = vpack.c.bf16 %v4442_v16, %v4441_v14  ;;  %v4574_v20 = vld [vmem:[#allocation2 + $0x39] sm:$0xff] }
 0x4c5   : > { %9514 = vmatmul.msk.bf16.gmra.mxu1 %vm216_vm0, %v4197_v32  ;;  %v3918_v19 = vmul.f32 0.1, %v3905_v5  ;;  %v4444_v5 = vld [vmem:[#allocation2 + $0x38] sm:$0xff]  ;;  %v4584_v48 = vpack.c.bf16 %v4574_v20, %v4702_v3 }
 0x4c6   : > { %v3863_v22 = vpop.f32.mrf.mxu2 }
 0x4c7   : > { %v3931_v11 = vadd.f32 %v3918_v19, %v2720_v62  ;;  %v4704_v62 = vld [vmem:[#allocation2 + $0x41] sm:$0xff]  ;;  %v4443_v22 = vld [vmem:[#allocation2 + $0x30] sm:$0xff] }
 0x4c8   : > { %v4320_v55 = vld [vmem:[#allocation2 + $0x67] sm:$0xff]  ;;  %5039 = vmatpush.bf16.msrb.mxu3 %v10418_v34 }
 0x4c9   : > { %3944 = vst.msk [vmem:[#allocation2 + $0x70] sm:$0xf] %vm233_vm1, %v3931_v11  ;;  %v4327_v10 = vpack.c.bf16 %v4320_v55, %v4190_v39  ;;  %v3986_v23 = vld [vmem:[#allocation2 + $0x66] sm:$0xf]  ;;  %v4843_v39 = vpack.c.bf16 %v4832_v63, %v4831_v13  ;;  %v4454_v55 = vpack.c.bf16 %v4444_v5, %v4443_v22 }
 0x4ca   : > { %v3957_v44 = vld [vmem:[#allocation2 + $0x65] sm:$0xf]  ;;  %v3993_v38 = vpack.c.bf16 %v3986_v23, %v3986_v23  ;;  %v4714_v23 = vpack.c.bf16 %v4704_v62, %v4574_v20 }
 0x4cb   : > { %9537 = vmatmul.msk.bf16.gmra.mxu2 %vm216_vm0, %v4327_v10  ;;  %v4191_v40 = vld [vmem:[#allocation2 + $0x67] sm:$0xf]  ;;  %v3964_v15 = vpack.c.bf16 %v3957_v44, %v3957_v44 }
 0x4cc   : > { %v4198_v57 = vpack.c.bf16 %v4191_v40, %v4191_v40  ;;  %v10417_v63 = vld [vmem:[#allocation3 + $0x460] sm:$0xff] }
 0x4cd   : > { %5040 = vmatpush.bf16.msrb.mxu3 %v10417_v63  ;;  %v4708_v20 = vld [vmem:[#allocation2 + $0x61] sm:$0xff] }
 0x4d0   : > { %v4321_v61 = vld [vmem:[#allocation2 + $0x6f] sm:$0xf] }
 0x4d1   : > { %v4328_v54 = vpack.c.bf16 %v4321_v61, %v4321_v61 }
 0x4d3   : > { %9469 = vmatmul.msk.bf16.gmra.mxu3 %vm216_vm0, %v3993_v38  ;;  %v4834_v38 = vld [vmem:[#allocation2 + $0x42] sm:$0xff] }
 0x4d4   : > { %9492 = vmatmul.msk.bf16.gmra.mxu0 %vm216_vm0, %v3964_v15 }
 0x4d5   : > { %9515 = vmatmul.msk.bf16.gmra.mxu1 %vm216_vm0, %v4198_v57 }
 0x4db   : > { %9538 = vmatmul.msk.bf16.gmra.mxu2 %vm216_vm0, %v4328_v54  ;;  %v4833_v54 = vld [vmem:[#allocation2 + $0x3a] sm:$0xff] }
 0x4dc   : > { %v4844_v24 = vpack.c.bf16 %v4834_v38, %v4833_v54  ;;  %v4837_v38 = vld [vmem:[#allocation2 + $0x5a] sm:$0xff] }
 0x4e3   : > { %9555 = vmatmul.msk.bf16.vlgmr.msra.gmra.mxu3 %vm216_vm0, %v4452_v33  ;;  %v4576_v33 = vld [vmem:[#allocation2 + $0x49] sm:$0xff] }
 0x4e4   : > { %9578 = vmatmul.msk.bf16.vlgmr.msra.gmra.mxu0 %vm216_vm0, %v4582_v31  ;;  %v4585_v3 = vpack.c.bf16 %v4576_v33, %v4704_v62  ;;  %v4715_v14 = vpack.c.bf16 %v4706_v59, %v4576_v33  ;;  %v4447_v62 = vld [vmem:[#allocation2 + $0x50] sm:$0xff] }
 0x4e5   : > { %9601 = vmatmul.msk.bf16.vlgmr.msra.gmra.mxu1 %vm216_vm0, %v4712_v18 }
 0x4eb   : > { %9624 = vmatmul.msk.bf16.vlgmr.msra.gmra.mxu2 %vm216_vm0, %v4842_v8  ;;  %v4445_v8 = vld [vmem:[#allocation2 + $0x40] sm:$0xff] }
 0x4ec   : > { %v4455_v60 = vpack.c.bf16 %v4446_v49, %v4445_v8  ;;  %v4710_v49 = vld [vmem:[#allocation2 + $0x71] sm:$0xff] }
 0x4f1   : > { %v4145_v56 = vpop.f32.mrf.mxu0 }
 0x4f2   : > { %v4262_v1 = vpop.f32.mrf.mxu1 }
 0x4f3   : > { %9556 = vmatmul.msk.bf16.gmra.mxu3 %vm216_vm0, %v4453_v7 }
 0x4f4   : > { %9579 = vmatmul.msk.bf16.gmra.mxu0 %vm216_vm0, %v4583_v50  ;;  %v4836_v50 = vld [vmem:[#allocation2 + $0x52] sm:$0xff] }
 0x4f5   : > { %9602 = vmatmul.msk.bf16.gmra.mxu1 %vm216_vm0, %v4713_v41 }
 0x4f6   : > { %v4057_v27 = vpop.f32.mrf.mxu3 }
 0x4f7   : > { %v4146_v26 = vadd.f32 %v4145_v56, %v4057_v27 }
 0x4f9   : > { %v4147_v51 = vpop.f32.mrf.mxu0  ;;  %v4296_v35 = vadd.f32 %v4262_v1, %v4146_v26 }
 0x4fa   : > { %v4264_v4 = vpop.f32.mrf.mxu1 }
 0x4fb   : > { %9625 = vmatmul.msk.bf16.gmra.mxu2 %vm216_vm0, %v4843_v39 }
 0x4fe   : > { %v4059_v21 = vpop.f32.mrf.mxu3  ;;  %v4392_v32 = vpop.f32.mrf.mxu2 }
 0x4ff   : > { %v4148_v30 = vadd.f32 %v4147_v51, %v4059_v21  ;;  %v11806_v12 = vadd.f32 %v4392_v32, %v4296_v35  ;;  %v4835_v51 = vld [vmem:[#allocation2 + $0x4a] sm:$0xff]  ;;  %v4448_v21 = vld [vmem:[#allocation2 + $0x58] sm:$0xff] }
 0x500   : > { %v4578_v32 = vld [vmem:[#allocation2 + $0x59] sm:$0xff]  ;;  %v4456_v22 = vpack.c.bf16 %v4448_v21, %v4447_v62  ;;  %v4581_v21 = vld [vmem:[#allocation2 + $0x71] sm:$0xf] }
 0x501   : > { %v4150_v19 = vpop.f32.mrf.mxu0  ;;  %v4297_v10 = vadd.f32 %v4264_v4, %v4148_v30  ;;  %v4845_v4 = vpack.c.bf16 %v4836_v50, %v4835_v51  ;;  %v4711_v51 = vld [vmem:[#allocation2 + $0x79] sm:$0xf] }
 0x502   : > { %v4267_v11 = vpop.f32.mrf.mxu1 }
 0x503   : > { %9557 = vmatmul.msk.bf16.gmra.mxu3 %vm216_vm0, %v4454_v55  ;;  %v4716_v55 = vpack.c.bf16 %v4708_v20, %v4578_v32 }
 0x504   : > { %9580 = vmatmul.msk.bf16.gmra.mxu0 %vm216_vm0, %v4584_v48 }
 0x505   : > { %9603 = vmatmul.msk.bf16.gmra.mxu1 %vm216_vm0, %v4714_v23  ;;  %v4838_v23 = vld [vmem:[#allocation2 + $0x62] sm:$0xff] }
 0x506   : > { %v4062_v44 = vpop.f32.mrf.mxu3  ;;  %v4394_v40 = vpop.f32.mrf.mxu2 }
 0x507   : > { %v4151_v15 = vadd.f32 %v4150_v19, %v4062_v44  ;;  %v11811_v57 = vadd.f32 %v4394_v40, %v4297_v10 }
 0x509   : > { %v4152_v61 = vpop.f32.mrf.mxu0  ;;  %v4298_v58 = vadd.f32 %v4267_v11, %v4151_v15  ;;  %v4586_v11 = vpack.c.bf16 %v4578_v32, %v4706_v59 }
 0x50a   : > { %v4269_v25 = vpop.f32.mrf.mxu1 }
 0x50b   : > { %9626 = vmatmul.msk.bf16.gmra.mxu2 %vm216_vm0, %v4844_v24 }
 0x50e   : > { %v4064_v2 = vpop.f32.mrf.mxu3  ;;  %v4397_v36 = vpop.f32.mrf.mxu2 }
 0x50f   : > { %v4153_v31 = vadd.f32 %v4152_v61, %v4064_v2  ;;  %v11814_v18 = vadd.f32 %v4397_v36, %v4298_v58  ;;  %v4846_v61 = vpack.c.bf16 %v4838_v23, %v4837_v38  ;;  %v4450_v58 = vld [vmem:[#allocation2 + $0x68] sm:$0xff] }
 0x510   : > { %v4580_v2 = vld [vmem:[#allocation2 + $0x69] sm:$0xff] }
 0x511   : > { %v4155_v6 = vpop.f32.mrf.mxu0  ;;  %v4299_v56 = vadd.f32 %v4269_v25, %v4153_v31  ;;  %v4449_v31 = vld [vmem:[#allocation2 + $0x60] sm:$0xff]  ;;  %v4587_v8 = vpack.c.bf16 %v4580_v2, %v4708_v20 }
 0x512   : > { %v4272_v16 = vpop.f32.mrf.mxu1 }
 0x513   : > { %9558 = vmatmul.msk.bf16.gmra.mxu3 %vm216_vm0, %v4455_v60 }
 0x514   : > { %9581 = vmatmul.msk.bf16.gmra.mxu0 %vm216_vm0, %v4585_v3 }
 0x515   : > { %9604 = vmatmul.msk.bf16.gmra.mxu1 %vm216_vm0, %v4715_v14  ;;  %v4840_v14 = vld [vmem:[#allocation2 + $0x72] sm:$0xff] }
 0x516   : > { %v4067_v1 = vpop.f32.mrf.mxu3  ;;  %v4399_v7 = vpop.f32.mrf.mxu2 }
 0x517   : > { %v4156_v41 = vadd.f32 %v4155_v6, %v4067_v1  ;;  %v11819_v27 = vadd.f32 %v4399_v7, %v4299_v56  ;;  %v4457_v6 = vpack.c.bf16 %v4450_v58, %v4449_v31  ;;  %v4839_v56 = vld [vmem:[#allocation2 + $0x6a] sm:$0xff]  ;;  %v4959_v31 = vld [vmem:[#allocation2 + $0x1b] sm:$0xff] }
 0x519   : > { %v11821_v26 = vpop.f32.mrf.mxu0  ;;  %v4300_v39 = vadd.f32 %v4272_v16, %v4156_v41  ;;  %v4717_v16 = vpack.c.bf16 %v4710_v49, %v4580_v2  ;;  %v4847_v41 = vpack.c.bf16 %v4840_v14, %v4839_v56  ;;  %v4960_v2 = vld [vmem:[#allocation2 + $0x23] sm:$0xff] }
 0x51a   : > { %v11823_v13 = vpop.f32.mrf.mxu1 }
 0x51b   : > { %9627 = vmatmul.msk.bf16.gmra.mxu2 %vm216_vm0, %v4845_v4 }
 0x51e   : > { %v11826_v35 = vpop.f32.mrf.mxu3  ;;  %v4402_v34 = vpop.f32.mrf.mxu2 }
 0x51f   : > { %v11828_v5 = vadd.f32 %v4402_v34, %v4300_v39  ;;  %v4451_v34 = vld [vmem:[#allocation2 + $0x70] sm:$0xf] }
 0x521   : > { %v4160_v30 = vpop.f32.mrf.mxu0 }
 0x522   : > { %v4277_v19 = vpop.f32.mrf.mxu1 }
 0x523   : > { %9559 = vmatmul.msk.bf16.gmra.mxu3 %vm216_vm0, %v4456_v22  ;;  %v4588_v22 = vpack.c.bf16 %v4581_v21, %v4581_v21 }
 0x524   : > { %9582 = vmatmul.msk.bf16.gmra.mxu0 %vm216_vm0, %v4586_v11  ;;  %v4841_v11 = vld [vmem:[#allocation2 + $0x7a] sm:$0xf] }
 0x525   : > { %9605 = vmatmul.msk.bf16.gmra.mxu1 %vm216_vm0, %v4716_v55 }
 0x526   : > { %v4072_v48 = vpop.f32.mrf.mxu3  ;;  %v11833_v10 = vpop.f32.mrf.mxu2 }
 0x527   : > { %v4161_v44 = vadd.f32 %v4160_v30, %v4072_v48  ;;  %v4718_v30 = vpack.c.bf16 %v4711_v51, %v4711_v51 }
 0x529   : > { %v11835_v40 = vpop.f32.mrf.mxu0  ;;  %v4302_v54 = vadd.f32 %v4277_v19, %v4161_v44  ;;  %v4458_v19 = vpack.c.bf16 %v4451_v34, %v4451_v34  ;;  %v4848_v44 = vpack.c.bf16 %v4841_v11, %v4841_v11 }
 0x52a   : > { %v11837_v15 = vpop.f32.mrf.mxu1 }
 0x52b   : > { %9628 = vmatmul.msk.bf16.gmra.mxu2 %vm216_vm0, %v4846_v61 }
 0x52e   : > { %v11840_v25 = vpop.f32.mrf.mxu3  ;;  %v4407_v24 = vpop.f32.mrf.mxu2 }
 0x52f   : > { %v11842_v36 = vadd.f32 %v4407_v24, %v4302_v54 }
 0x531   : > { %v4165_v33 = vpop.f32.mrf.mxu0 }
 0x532   : > { %v4282_v59 = vpop.f32.mrf.mxu1 }
 0x533   : > { %9560 = vmatmul.msk.bf16.gmra.mxu3 %vm216_vm0, %v4457_v6  ;;  %v4972_v6 = vpack.c.bf16 %v4960_v2, %v4959_v31 }
 0x534   : > { %9583 = vmatmul.msk.bf16.gmra.mxu0 %vm216_vm0, %v4587_v8 }
 0x535   : > { %9606 = vmatmul.msk.bf16.gmra.mxu1 %vm216_vm0, %v4717_v16 }
 0x536   : > { %v4077_v60 = vpop.f32.mrf.mxu3  ;;  %v11847_v3 = vpop.f32.mrf.mxu2 }
 0x537   : > { %v4166_v1 = vadd.f32 %v4165_v33, %v4077_v60 }
 0x539   : > { %v11849_v7 = vpop.f32.mrf.mxu0  ;;  %v4304_v63 = vadd.f32 %v4282_v59, %v4166_v1 }
 0x53a   : > { %v11851_v50 = vpop.f32.mrf.mxu1 }
 0x53b   : > { %9629 = vmatmul.msk.bf16.gmra.mxu2 %vm216_vm0, %v4847_v41  ;;  %v10428_v41 = vld [vmem:[#allocation3 + $0x4b8] sm:$0xff] }
 0x53c   : > { %5237 = vmatpush.bf16.msrb.mxu0 %v10428_v41 }
 0x53e   : > { %v11854_v4 = vpop.f32.mrf.mxu3  ;;  %v4412_v39 = vpop.f32.mrf.mxu2 }
 0x53f   : > { %v11856_v32 = vadd.f32 %v4412_v39, %v4304_v63  ;;  %v4962_v39 = vld [vmem:[#allocation2 + $0x33] sm:$0xff] }
 0x541   : > { %v4170_v20 = vpop.f32.mrf.mxu0 }
 0x542   : > { %v4287_v62 = vpop.f32.mrf.mxu1 }
 0x543   : > { %9561 = vmatmul.msk.bf16.gmra.mxu3 %vm216_vm0, %v4458_v19 }
 0x544   : > { %9584 = vmatmul.msk.bf16.gmra.mxu0 %vm216_vm0, %v4588_v22 }
 0x545   : > { %9607 = vmatmul.msk.bf16.gmra.mxu1 %vm216_vm0, %v4718_v30 }
 0x546   : > { %v4082_v55 = vpop.f32.mrf.mxu3  ;;  %v11861_v48 = vpop.f32.mrf.mxu2 }
 0x547   : > { %v4171_v23 = vadd.f32 %v4170_v20, %v4082_v55  ;;  %v4961_v20 = vld [vmem:[#allocation2 + $0x2b] sm:$0xff] }
 0x549   : > { %v11863_v38 = vpop.f32.mrf.mxu0  ;;  %v4306_v54 = vadd.f32 %v4287_v62, %v4171_v23  ;;  %v4973_v62 = vpack.c.bf16 %v4962_v39, %v4961_v20 }
 0x54a   : > { %v11865_v61 = vpop.f32.mrf.mxu1 }
 0x54b   : > { %12971 = vst [vmem:[#allocation6_spill] sm:$0xff] %v11865_v61  ;;  %9630 = vmatmul.msk.bf16.gmra.mxu2 %vm216_vm0, %v4848_v44 }
 0x54e   : > { %v11868_v24 = vpop.f32.mrf.mxu3  ;;  %v4417_v58 = vpop.f32.mrf.mxu2 }
 0x54f   : > { %v11870_v49 = vadd.f32 %v4417_v58, %v4306_v54 }
 0x551   : > { %v4175_v33 = vpop.f32.mrf.mxu0 }
 0x552   : > { %v4292_v59 = vpop.f32.mrf.mxu1 }
 0x553   : > { %9647 = vmatmul.msk.bf16.vlgmr.msrb.gmra.mxu3 %vm216_vm0, %v4972_v6 }
 0x556   : > { %v4087_v8 = vpop.f32.mrf.mxu3  ;;  %v11873_v16 = vpop.f32.mrf.mxu2 }
 0x557   : > { %12972 = vst [vmem:[#allocation7_spill] sm:$0xff] %v11873_v16  ;;  %v4176_v60 = vadd.f32 %v4175_v33, %v4087_v8  ;;  %v4964_v33 = vld [vmem:[#allocation2 + $0x43] sm:$0xff]  ;;  %v4963_v8 = vld [vmem:[#allocation2 + $0x3b] sm:$0xff] }
 0x559   : > { %v4177_v56 = vpop.f32.mrf.mxu0  ;;  %v4308_v1 = vadd.f32 %v4292_v59, %v4176_v60 }
 0x55a   : > { %v4294_v14 = vpop.f32.mrf.mxu1  ;;  %v4974_v56 = vpack.c.bf16 %v4964_v33, %v4963_v8 }
 0x55e   : > { %v4089_v63 = vpop.f32.mrf.mxu3  ;;  %v4422_v51 = vpop.f32.mrf.mxu2 }
 0x55f   : > { %v11875_v34 = vadd.f32 %v4422_v51, %v4308_v1 }
 0x561   : > { %v4652_v21 = vpop.f32.mrf.mxu0 }
 0x562   : > { %v4782_v30 = vpop.f32.mrf.mxu1 }
 0x563   : > { %9648 = vmatmul.msk.bf16.gmra.mxu3 %vm216_vm0, %v4973_v62 }
 0x566   : > { %v4424_v19 = vpop.f32.mrf.mxu2  ;;  %v4522_v22 = vpop.f32.mrf.mxu3 }
 0x567   : > { %v4556_v11 = vadd.f32 %v4522_v22, %v11806_v12  ;;  %v10427_v12 = vld [vmem:[#allocation3 + $0x4b0] sm:$0xff] }
 0x568   : > { %5238 = vmatpush.bf16.msrb.mxu0 %v10427_v12  ;;  %v4968_v12 = vld [vmem:[#allocation2 + $0x63] sm:$0xff] }
 0x569   : > { %v11879_v55 = vpop.f32.mrf.mxu0  ;;  %v4686_v23 = vadd.f32 %v4652_v21, %v4556_v11  ;;  %v4965_v11 = vld [vmem:[#allocation2 + $0x4b] sm:$0xff] }
 0x56a   : > { %v11881_v44 = vpop.f32.mrf.mxu1 }
 0x56b   : > { %v4816_v54 = vadd.f32 %v4782_v30, %v4686_v23  ;;  %v4966_v30 = vld [vmem:[#allocation2 + $0x53] sm:$0xff] }
 0x56e   : > { %v4524_v58 = vpop.f32.mrf.mxu3  ;;  %v4912_v2 = vpop.f32.mrf.mxu2 }
 0x56f   : > { %v11884_v31 = vadd.f32 %v4524_v58, %v11811_v57  ;;  %v11886_v59 = vadd.f32 %v4912_v2, %v4816_v54  ;;  %v4975_v54 = vpack.c.bf16 %v4966_v30, %v4965_v11 }
 0x571   : > { %v4657_v6 = vpop.f32.mrf.mxu0 }
 0x572   : > { %v4787_v60 = vpop.f32.mrf.mxu1 }
 0x573   : > { %9649 = vmatmul.msk.bf16.gmra.mxu3 %vm216_vm0, %v4974_v56 }
 0x576   : > { %v4527_v14 = vpop.f32.mrf.mxu3  ;;  %v11889_v1 = vpop.f32.mrf.mxu2 }
 0x577   : > { %v4558_v41 = vadd.f32 %v4527_v14, %v11814_v18 }
 0x579   : > { %v11892_v63 = vpop.f32.mrf.mxu0  ;;  %v4688_v51 = vadd.f32 %v4657_v6, %v4558_v41 }
 0x57a   : > { %v11894_v57 = vpop.f32.mrf.mxu1 }
 0x57b   : > { %v4818_v39 = vadd.f32 %v4787_v60, %v4688_v51  ;;  %v4967_v51 = vld [vmem:[#allocation2 + $0x5b] sm:$0xff] }
 0x57e   : > { %v4529_v21 = vpop.f32.mrf.mxu3  ;;  %v4917_v20 = vpop.f32.mrf.mxu2 }
 0x57f   : > { %v11897_v62 = vadd.f32 %v4529_v21, %v11819_v27  ;;  %v11899_v19 = vadd.f32 %v4917_v20, %v4818_v39  ;;  %v4976_v21 = vpack.c.bf16 %v4968_v12, %v4967_v51  ;;  %v10426_v20 = vld [vmem:[#allocation3 + $0x4a8] sm:$0xff] }
 0x580   : > { %5239 = vmatpush.bf16.msrb.mxu0 %v10426_v20 }
 0x581   : > { %v4662_v22 = vpop.f32.mrf.mxu0 }
 0x582   : > { %v4792_v23 = vpop.f32.mrf.mxu1 }
 0x583   : > { %9650 = vmatmul.msk.bf16.gmra.mxu3 %vm216_vm0, %v4975_v54 }
 0x584   : > { %5240 = vmatpush.bf16.msrb.mxu0 %v10425_v47 }
 0x586   : > { %v4532_v18 = vpop.f32.mrf.mxu3  ;;  %v11902_v58 = vpop.f32.mrf.mxu2 }
 0x587   : > { %v4560_v2 = vadd.f32 %v4532_v18, %v11828_v5 }
 0x589   : > { %v11905_v33 = vpop.f32.mrf.mxu0  ;;  %v4690_v6 = vadd.f32 %v4662_v22, %v4560_v2 }
 0x58a   : > { %v11907_v8 = vpop.f32.mrf.mxu1 }
 0x58b   : > { %v4820_v27 = vadd.f32 %v4792_v23, %v4690_v6 }
 0x58e   : > { %v11909_v60 = vpop.f32.mrf.mxu3  ;;  %v4922_v56 = vpop.f32.mrf.mxu2 }
 0x58f   : > { %v11911_v14 = vadd.f32 %v4922_v56, %v4820_v27  ;;  %v4969_v27 = vld [vmem:[#allocation2 + $0x6b] sm:$0xff]  ;;  %v4970_v56 = vld [vmem:[#allocation2 + $0x73] sm:$0xff] }
 0x590   : > { %v4977_v20 = vpack.c.bf16 %v4970_v56, %v4969_v27  ;;  %v4978_v56 = vpack.c.bf16 %v4971_v43, %v4971_v43  ;;  %v10423_v43 = vld [vmem:[#allocation3 + $0x490] sm:$0xff] }
 0x591   : > { %v4667_v41 = vpop.f32.mrf.mxu0 }
 0x592   : > { %v4797_v39 = vpop.f32.mrf.mxu1 }
 0x593   : > { %9651 = vmatmul.msk.bf16.gmra.mxu3 %vm216_vm0, %v4976_v21 }
 0x596   : > { %v4537_v5 = vpop.f32.mrf.mxu3  ;;  %v11914_v30 = vpop.f32.mrf.mxu2 }
 0x597   : > { %v4562_v22 = vadd.f32 %v4537_v5, %v11842_v36 }
 0x599   : > { %v11917_v11 = vpop.f32.mrf.mxu0  ;;  %v4692_v23 = vadd.f32 %v4667_v41, %v4562_v22 }
 0x59a   : > { %v11919_v54 = vpop.f32.mrf.mxu1 }
 0x59b   : > { %v4822_v18 = vadd.f32 %v4797_v39, %v4692_v23 }
 0x59e   : > { %v11921_v2 = vpop.f32.mrf.mxu3  ;;  %v4927_v6 = vpop.f32.mrf.mxu2 }
 0x59f   : > { %v11923_v12 = vadd.f32 %v4927_v6, %v4822_v18 }
 0x5a1   : > { %v4672_v51 = vpop.f32.mrf.mxu0 }
 0x5a2   : > { %v4802_v21 = vpop.f32.mrf.mxu1 }
 0x5a3   : > { %9652 = vmatmul.msk.bf16.gmra.mxu3 %vm216_vm0, %v4977_v20 }
 0x5a6   : > { %v4542_v29 = vpop.f32.mrf.mxu3  ;;  %v11926_v36 = vpop.f32.mrf.mxu2 }
 0x5a7   : > { %v4564_v41 = vadd.f32 %v4542_v29, %v11856_v32 }
 0x5a9   : > { %v11929_v5 = vpop.f32.mrf.mxu0  ;;  %v4694_v39 = vadd.f32 %v4672_v51, %v4564_v41 }
 0x5aa   : > { %v11931_v22 = vpop.f32.mrf.mxu1 }
 0x5ab   : > { %12973 = vst [vmem:[#allocation8_spill] sm:$0xff] %v11931_v22  ;;  %v4824_v23 = vadd.f32 %v4802_v21, %v4694_v39  ;;  %v10424_v21 = vld [vmem:[#allocation3 + $0x498] sm:$0xff] }
 0x5ac   : > { %v10432_v39 = vld [vmem:[#allocation3 + $0x4d8] sm:$0xff]  ;;  %5325 = vmatpush.bf16.msrb.mxu1 %v10424_v21 }
 0x5ad   : > { %5442 = vmatpush.bf16.msrb.mxu2 %v10432_v39 }
 0x5ae   : > { %v11933_v18 = vpop.f32.mrf.mxu3  ;;  %v4932_v6 = vpop.f32.mrf.mxu2 }
 0x5af   : > { %v11935_v27 = vadd.f32 %v4932_v6, %v4824_v23  ;;  %v10431_v6 = vld [vmem:[#allocation3 + $0x4d0] sm:$0xff] }
 0x5b0   : > { %5326 = vmatpush.bf16.msrb.mxu1 %v10423_v43  ;;  %v10434_v43 = vld [vmem:[#allocation3 + $0x4e8] sm:$0xff] }
 0x5b1   : > { %v4677_v20 = vpop.f32.mrf.mxu0  ;;  %5443 = vmatpush.bf16.msrb.mxu2 %v10431_v6 }
 0x5b2   : > { %v4807_v9 = vpop.f32.mrf.mxu1 }
 0x5b3   : > { %9653 = vmatmul.msk.bf16.gmra.mxu3 %vm216_vm0, %v4978_v56 }
 0x5b5   : > { %5444 = vmatpush.bf16.msrb.mxu2 %v10430_v53 }
 0x5b6   : > { %v4547_v29 = vpop.f32.mrf.mxu3  ;;  %v11938_v32 = vpop.f32.mrf.mxu2 }
 0x5b7   : > { %12974 = vst [vmem:[#allocation9_spill] sm:$0xff] %v11938_v32  ;;  %v4566_v51 = vadd.f32 %v4547_v29, %v11870_v49  ;;  %v10436_v29 = vld [vmem:[#allocation3 + $0x4f8] sm:$0xff] }
 0x5b8   : > { %5572 = vmatpush.bf16.msra.mxu3 %v10436_v29  ;;  %v10433_v29 = vld [vmem:[#allocation3 + $0x4e0] sm:$0xff] }
 0x5b9   : > { %v11941_v41 = vpop.f32.mrf.mxu0  ;;  %v4696_v47 = vadd.f32 %v4677_v20, %v4566_v51  ;;  %v10421_v20 = vld [vmem:[#allocation3 + $0x480] sm:$0xff] }
 0x5ba   : > { %12975 = vst [vmem:[#allocation10_spill] sm:$0xff] %v11941_v41  ;;  %v11943_v16 = vpop.f32.mrf.mxu1  ;;  %v10422_v41 = vld [vmem:[#allocation3 + $0x488] sm:$0xff]  ;;  %v10429_v51 = vld [vmem:[#allocation3 + $0x4c0] sm:$0xff] }
 0x5bb   : > { %12976 = vst [vmem:[#allocation11_spill] sm:$0xff] %v11943_v16  ;;  %v4826_v23 = vadd.f32 %v4807_v9, %v4696_v47  ;;  %5327 = vmatpush.bf16.msrb.mxu1 %v10422_v41  ;;  %v10435_v9 = vld [vmem:[#allocation3 + $0x4f0] sm:$0xff]  ;;  %5445 = vmatpush.bf16.msrb.mxu2 %v10429_v51  ;;  %v10440_v41 = vld [vmem:[#allocation3 + $0x518] sm:$0xff] }
 0x5bc   : > { %5573 = vmatpush.bf16.msra.mxu3 %v10435_v9  ;;  %5702 = vmatpush.bf16.msra.mxu0 %v10440_v41 }
 0x5be   : > { %v11945_v61 = vpop.f32.mrf.mxu3  ;;  %v4937_v56 = vpop.f32.mrf.mxu2 }
 0x5bf   : > { %12977 = vst [vmem:[#allocation12_spill] sm:$0xff] %v11945_v61  ;;  %v11947_v32 = vadd.f32 %v4937_v56, %v4826_v23  ;;  %5328 = vmatpush.bf16.msrb.mxu1 %v10421_v20  ;;  %v11957_v20 = vld [vmem:[%s12857_s2 + $0x3] ss:$0 sm:$0xff] }
 0x5c0   : > { %5574 = vmatpush.bf16.msra.mxu3 %v10434_v43 }
 0x5c1   : > { %12978 = vst [vmem:[#allocation13_spill] sm:$0xff] %v11947_v32  ;;  %v4682_v49 = vpop.f32.mrf.mxu0 }
 0x5c2   : > { %v4812_v22 = vpop.f32.mrf.mxu1 }
 0x5c4   : > { %5575 = vmatpush.bf16.msra.mxu3 %v10433_v29 }
 0x5c6   : > { %v4552_v21 = vpop.f32.mrf.mxu3  ;;  %v11949_v39 = vpop.f32.mrf.mxu2 }
 0x5c7   : > { %v4568_v47 = vadd.f32 %v4552_v21, %v11875_v34 }
 0x5c9   : > { %v4684_v23 = vpop.f32.mrf.mxu0  ;;  %v4698_v6 = vadd.f32 %v4682_v49, %v4568_v47  ;;  %v4687_v49 = vadd.f32 %v11879_v55, %v11884_v31  ;;  %v5130_v55 = vld [vmem:[#allocation2 + $0x5] sm:$0xff] }
 0x5ca   : > { %v4814_v56 = vpop.f32.mrf.mxu1  ;;  %v5364_v31 = vld [vmem:[#allocation2 + $0x7] sm:$0xff] }
 0x5cb   : > { %v4828_v16 = vadd.f32 %v4812_v22, %v4698_v6  ;;  %v4817_v21 = vadd.f32 %v11881_v44, %v4687_v49  ;;  %v5159_v6 = vld [vmem:[#allocation2 + $0x6] sm:$0xff]  ;;  %v4689_v49 = vadd.f32 %v11892_v63, %v11897_v62 }
 0x5ce   : > { %v4554_v53 = vpop.f32.mrf.mxu3  ;;  %v4942_v32 = vpop.f32.mrf.mxu2 }
 0x5cf   : > { %v11952_v61 = vadd.f32 %v4942_v32, %v4828_v16  ;;  %v4947_v32 = vadd.f32 %v11889_v1, %v4817_v21  ;;  %v4158_v21 = vadd.f32 %v11821_v26, %v11826_v35 }
 0x5d6   : > { %v5042_v34 = vpop.f32.mrf.mxu3  ;;  %v4944_v51 = vpop.f32.mrf.mxu2 }
 0x5d7   : > { %v5076_v22 = vadd.f32 %v5042_v34, %v11886_v59  ;;  %v10439_v34 = vld [vmem:[#allocation3 + $0x510] sm:$0xff] }
 0x5d8   : > { %5703 = vmatpush.bf16.msra.mxu0 %v10439_v34 }
 0x5d9   : > { %v5091_v9 = vadd.f32 %v11957_v20, %v5076_v22 }
 0x5db   : > { %v11965_v16 = vmul.f32 %v5091_v9, %v11041_v37 }
 0x5dd   : > { %12979 = vst [vmem:[#allocation25_spill] sm:$0xff] %v11965_v16 }
 0x5de   : > { %5117 = vst.msk [vmem:[#allocation2 + $0x10] sm:$0xff] %vm216_vm0, %v11965_v16  ;;  %v5044_v47 = vpop.f32.mrf.mxu3 }
 0x5df   : > { %v5077_v23 = vadd.f32 %v5044_v47, %v4947_v32  ;;  %v4819_v32 = vadd.f32 %v11894_v57, %v4689_v49 }
 0x5e1   : > { %v5092_v43 = vadd.f32 %v11957_v20, %v5077_v23  ;;  %v4949_v62 = vadd.f32 %v11902_v58, %v4819_v32 }
 0x5e3   : > { %v11972_v59 = vmul.f32 %v5092_v43, %v11053_v42  ;;  %v4301_v43 = vadd.f32 %v11823_v13, %v4158_v21 }
 0x5e5   : > { %12980 = vst [vmem:[#allocation24_spill] sm:$0xff] %v11972_v59  ;;  %v5160_v56 = vld [vmem:[#allocation2 + $0xe] sm:$0xff]  ;;  %v4431_v26 = vadd.f32 %v11833_v10, %v4301_v43 }
 0x5e6   : > { %v5131_v44 = vld [vmem:[#allocation2 + $0xd] sm:$0xff]  ;;  %5118 = vst.msk [vmem:[#allocation2 + $0x18] sm:$0xff] %vm216_vm0, %v11972_v59  ;;  %v5172_v1 = vpack.c.bf16 %v5160_v56, %v5159_v6  ;;  %v5047_v51 = vpop.f32.mrf.mxu3 }
 0x5e7   : > { %v5365_v29 = vld [vmem:[#allocation2 + $0xf] sm:$0xff]  ;;  %v5143_v41 = vpack.c.bf16 %v5131_v44, %v5130_v55  ;;  %v5078_v22 = vadd.f32 %v5047_v51, %v11899_v19  ;;  %v4561_v57 = vadd.f32 %v11909_v60, %v4431_v26  ;;  %v4163_v51 = vadd.f32 %v11835_v40, %v11840_v25 }
 0x5e8   : > { %v5377_v53 = vpack.c.bf16 %v5365_v29, %v5364_v31  ;;  %9670 = vmatmul.msk.bf16.vlgmr.msrb.gmra.mxu0 %vm216_vm0, %v5172_v1 }
 0x5e9   : > { %9693 = vmatmul.msk.bf16.vlgmr.msrb.gmra.mxu1 %vm216_vm0, %v5143_v41  ;;  %v5093_v9 = vadd.f32 %v11957_v20, %v5078_v22  ;;  %v4691_v10 = vadd.f32 %v11905_v33, %v4561_v57  ;;  %v4303_v32 = vadd.f32 %v11837_v15, %v4163_v51  ;;  %v10438_v57 = vld [vmem:[#allocation3 + $0x508] sm:$0xff] }
 0x5ea   : > { %9716 = vmatmul.msk.bf16.vlgmr.msrb.gmra.mxu2 %vm216_vm0, %v5377_v53  ;;  %5704 = vmatpush.bf16.msra.mxu0 %v10438_v57  ;;  %v12993_v57 = vld [vmem:[#allocation12_spill] sm:$0xff] }
 0x5eb   : > { %v11987_v47 = vmul.f32 %v5093_v9, %v11067_v45  ;;  %v4821_v49 = vadd.f32 %v11907_v8, %v4691_v10  ;;  %v4433_v40 = vadd.f32 %v11847_v3, %v4303_v32  ;;  %v4173_v32 = vadd.f32 %v11863_v38, %v11868_v24  ;;  %v12992_v38 = vld [vmem:[#allocation7_spill] sm:$0xff] }
 0x5ed   : > { %12981 = vst [vmem:[#allocation15_spill] sm:$0xff] %v11987_v47  ;;  %v5495_v63 = vld [vmem:[#allocation2 + $0x17] sm:$0xff]  ;;  %v4951_v33 = vadd.f32 %v11914_v30, %v4821_v49  ;;  %v4563_v8 = vadd.f32 %v11921_v2, %v4433_v40 }
 0x5ee   : > { %5119 = vst.msk [vmem:[#allocation2 + $0x20] sm:$0xff] %vm216_vm0, %v11987_v47  ;;  %v5507_v19 = vpack.c.bf16 %v5495_v63, %v5365_v29  ;;  %v5049_v23 = vpop.f32.mrf.mxu3  ;;  %v5161_v58 = vld [vmem:[#allocation2 + $0x16] sm:$0xff] }
 0x5ef   : > { %v5079_v6 = vadd.f32 %v5049_v23, %v4949_v62  ;;  %v5132_v31 = vld [vmem:[#allocation2 + $0x15] sm:$0xff] }
 0x5f0   : > { %9739 = vmatmul.msk.bf16.vlgmr.msra.gmra.mxu3 %vm216_vm0, %v5507_v19 }
 0x5f1   : > { %v5094_v35 = vadd.f32 %v11957_v20, %v5079_v6 }
 0x5f3   : > { %v11998_v55 = vmul.f32 %v5094_v35, %v11086_v52 }
 0x5f5   : > { %12982 = vst [vmem:[#allocation27_spill] sm:$0xff] %v11998_v55  ;;  %v5162_v56 = vld [vmem:[#allocation2 + $0x1e] sm:$0xff] }
 0x5f6   : > { %v5133_v44 = vld [vmem:[#allocation2 + $0x1d] sm:$0xff]  ;;  %5120 = vst.msk [vmem:[#allocation2 + $0x28] sm:$0xff] %vm216_vm0, %v11998_v55  ;;  %v5173_v13 = vpack.c.bf16 %v5162_v56, %v5161_v58  ;;  %v5052_v53 = vpop.f32.mrf.mxu3  ;;  %v4693_v58 = vadd.f32 %v11917_v11, %v4563_v8  ;;  %v4168_v56 = vadd.f32 %v11849_v7, %v11854_v4 }
 0x5f7   : > { %v5367_v29 = vld [vmem:[#allocation2 + $0x1f] sm:$0xff]  ;;  %v5144_v1 = vpack.c.bf16 %v5133_v44, %v5132_v31  ;;  %v5080_v34 = vadd.f32 %v5052_v53, %v11911_v14 }
 0x5f8   : > { %v5378_v41 = vpack.c.bf16 %v5367_v29, %v5495_v63  ;;  %9671 = vmatmul.msk.bf16.gmra.mxu0 %vm216_vm0, %v5173_v13  ;;  %v4823_v44 = vadd.f32 %v11919_v54, %v4693_v58  ;;  %v12994_v58 = vld [vmem:[#allocation16_spill] sm:$0xff] }
 0x5f9   : > { %9694 = vmatmul.msk.bf16.gmra.mxu1 %vm216_vm0, %v5144_v1  ;;  %v5095_v60 = vadd.f32 %v11957_v20, %v5080_v34 }
 0x5fa   : > { %9717 = vmatmul.msk.bf16.gmra.mxu2 %vm216_vm0, %v5378_v41  ;;  %v4305_v41 = vadd.f32 %v11851_v50, %v4168_v56 }
 0x5fb   : > { %v12012_v22 = vmul.f32 %v5095_v60, %v11099_v0 }
 0x5fc   : > { %v4435_v7 = vadd.f32 %v11861_v48, %v4305_v41 }
 0x5fd   : > { %12983 = vst [vmem:[#allocation26_spill] sm:$0xff] %v12012_v22  ;;  %v5497_v9 = vld [vmem:[#allocation2 + $0x27] sm:$0xff] }
 0x5fe   : > { %5121 = vst.msk [vmem:[#allocation2 + $0x30] sm:$0xff] %vm216_vm0, %v12012_v22  ;;  %v5508_v14 = vpack.c.bf16 %v5497_v9, %v5367_v29  ;;  %v5054_v21 = vpop.f32.mrf.mxu3  ;;  %v5163_v30 = vld [vmem:[#allocation2 + $0x26] sm:$0xff]  ;;  %v4565_v54 = vadd.f32 %v11933_v18, %v4435_v7 }
 0x5ff   : > { %v5081_v63 = vadd.f32 %v5054_v21, %v4951_v33  ;;  %v5134_v19 = vld [vmem:[#allocation2 + $0x25] sm:$0xff] }
 0x600   : > { %9740 = vmatmul.msk.bf16.gmra.mxu3 %vm216_vm0, %v5508_v14  ;;  %v4695_v48 = vadd.f32 %v11929_v5, %v4565_v54  ;;  %v12990_v5 = vld [vmem:[#allocation9_spill] sm:$0xff]  ;;  %v12996_v7 = vld [vmem:[#allocation10_spill] sm:$0xff] }
 0x601   : > { %v5096_v25 = vadd.f32 %v11957_v20, %v5081_v63  ;;  %v12987_v63 = vld [vmem:[#allocation8_spill] sm:$0xff]  ;;  %v12997_v54 = vld [vmem:[#allocation13_spill] sm:$0xff] }
 0x602   : > { %v4825_v40 = vadd.f32 %v12987_v63, %v4695_v48 }
 0x603   : > { %v12023_v62 = vmul.f32 %v5096_v25, %v11118_v17  ;;  %v12988_v25 = vld [vmem:[#allocation14_spill] sm:$0xff] }
 0x605   : > { %12984 = vst [vmem:[#allocation30_spill] sm:$0xff] %v12023_v62  ;;  %v5164_v23 = vld [vmem:[#allocation2 + $0x2e] sm:$0xff] }
 0x606   : > { %v5135_v43 = vld [vmem:[#allocation2 + $0x2d] sm:$0xff]  ;;  %5122 = vst.msk [vmem:[#allocation2 + $0x38] sm:$0xff] %vm216_vm0, %v12023_v62  ;;  %v5174_v15 = vpack.c.bf16 %v5164_v23, %v5163_v30  ;;  %v5057_v3 = vpop.f32.mrf.mxu3 }
 0x607   : > { %v5369_v6 = vld [vmem:[#allocation2 + $0x2f] sm:$0xff]  ;;  %v5145_v26 = vpack.c.bf16 %v5135_v43, %v5134_v19  ;;  %v5082_v2 = vadd.f32 %v5057_v3, %v11923_v12  ;;  %v4953_v12 = vadd.f32 %v11926_v36, %v4823_v44  ;;  %v4955_v19 = vadd.f32 %v12990_v5, %v4825_v40 }
 0x608   : > { %v5379_v35 = vpack.c.bf16 %v5369_v6, %v5497_v9  ;;  %9672 = vmatmul.msk.bf16.gmra.mxu0 %vm216_vm0, %v5174_v15  ;;  %v10437_v23 = vld [vmem:[#allocation3 + $0x500] sm:$0xff]  ;;  %v10442_v5 = vld [vmem:[#allocation3 + $0x528] sm:$0xff] }
 0x609   : > { %9695 = vmatmul.msk.bf16.gmra.mxu1 %vm216_vm0, %v5145_v26  ;;  %v5097_v31 = vadd.f32 %v11957_v20, %v5082_v2  ;;  %5705 = vmatpush.bf16.msra.mxu0 %v10437_v23  ;;  %v10451_v23 = vld [vmem:[#allocation3 + $0x570] sm:$0xff] }
 0x60a   : > { %9718 = vmatmul.msk.bf16.gmra.mxu2 %vm216_vm0, %v5379_v35 }
 0x60b   : > { %v12037_v29 = vmul.f32 %v5097_v31, %v11137_v28 }
 0x60d   : > { %12985 = vst [vmem:[#allocation31_spill] sm:$0xff] %v12037_v29  ;;  %v5499_v11 = vld [vmem:[#allocation2 + $0x37] sm:$0xff] }
 0x60e   : > { %5123 = vst.msk [vmem:[#allocation2 + $0x40] sm:$0xff] %vm216_vm0, %v12037_v29  ;;  %v5509_v13 = vpack.c.bf16 %v5499_v11, %v5369_v6  ;;  %v5059_v1 = vpop.f32.mrf.mxu3  ;;  %v5165_v36 = vld [vmem:[#allocation2 + $0x36] sm:$0xff]  ;;  %v12991_v6 = vld [vmem:[#allocation6_spill] sm:$0xff] }
 0x60f   : > { %v5083_v53 = vadd.f32 %v5059_v1, %v4953_v12  ;;  %v5136_v34 = vld [vmem:[#allocation2 + $0x35] sm:$0xff]  ;;  %v4307_v15 = vadd.f32 %v12991_v6, %v4173_v32 }
 0x610   : > { %9741 = vmatmul.msk.bf16.gmra.mxu3 %vm216_vm0, %v5509_v13  ;;  %v13001_v6 = vld [vmem:[#allocation20_spill] sm:$0xff]  ;;  %v10462_v29 = vld [vmem:[#allocation3 + $0x5c8] sm:$0xff] }
 0x611   : > { %v5098_v4 = vadd.f32 %v11957_v20, %v5083_v53  ;;  %v4437_v24 = vadd.f32 %v12992_v38, %v4307_v15 }
 0x613   : > { %v12048_v10 = vmul.f32 %v5098_v4, %v11152_v46  ;;  %v4567_v3 = vadd.f32 %v12993_v57, %v4437_v24 }
 0x615   : > { %12986 = vst [vmem:[#allocation17_spill] sm:$0xff] %v12048_v10  ;;  %v5166_v60 = vld [vmem:[#allocation2 + $0x3e] sm:$0xff]  ;;  %v4697_v4 = vadd.f32 %v12996_v7, %v4567_v3 }
 0x616   : > { %v5137_v51 = vld [vmem:[#allocation2 + $0x3d] sm:$0xff]  ;;  %5124 = vst.msk [vmem:[#allocation2 + $0x48] sm:$0xff] %vm216_vm0, %v12048_v10  ;;  %v5175_v50 = vpack.c.bf16 %v5166_v60, %v5165_v36  ;;  %v5062_v14 = vpop.f32.mrf.mxu3 }
 0x617   : > { %v5371_v49 = vld [vmem:[#allocation2 + $0x3f] sm:$0xff]  ;;  %v5146_v9 = vpack.c.bf16 %v5137_v51, %v5136_v34  ;;  %v5084_v21 = vadd.f32 %v5062_v14, %v11935_v27  ;;  %v12999_v14 = vld [vmem:[#allocation18_spill] sm:$0xff] }
 0x618   : > { %v5380_v33 = vpack.c.bf16 %v5371_v49, %v5499_v11  ;;  %9673 = vmatmul.msk.bf16.gmra.mxu0 %vm216_vm0, %v5175_v50  ;;  %v10444_v34 = vld [vmem:[#allocation3 + $0x538] sm:$0xff]  ;;  %v10447_v50 = vld [vmem:[#allocation3 + $0x550] sm:$0xff] }
 0x619   : > { %9696 = vmatmul.msk.bf16.gmra.mxu1 %vm216_vm0, %v5146_v9  ;;  %v5099_v18 = vadd.f32 %v11957_v20, %v5084_v21  ;;  %v10448_v60 = vld [vmem:[#allocation3 + $0x558] sm:$0xff]  ;;  %v12998_v9 = vld [vmem:[#allocation11_spill] sm:$0xff] }
 0x61a   : > { %9719 = vmatmul.msk.bf16.gmra.mxu2 %vm216_vm0, %v5380_v33  ;;  %5832 = vmatpush.bf16.msra.mxu1 %v10444_v34  ;;  %v4827_v33 = vadd.f32 %v12998_v9, %v4697_v4 }
 0x61b   : > { %v12062_v8 = vmul.f32 %v5099_v18, %v12988_v25  ;;  %5962 = vmatpush.bf16.msra.mxu2 %v10448_v60 }
 0x61c   : > { %v4957_v18 = vadd.f32 %v11949_v39, %v4827_v33  ;;  %v10441_v39 = vld [vmem:[#allocation3 + $0x520] sm:$0xff]  ;;  %v5625_v33 = vld [vmem:[#allocation2 + $0x18] sm:$0xff] }
 0x61d   : > { %12989 = vst [vmem:[#allocation28_spill] sm:$0xff] %v12062_v8  ;;  %v5501_v30 = vld [vmem:[#allocation2 + $0x47] sm:$0xff] }
 0x61e   : > { %5125 = vst.msk [vmem:[#allocation2 + $0x50] sm:$0xff] %vm216_vm0, %v12062_v8  ;;  %v5510_v27 = vpack.c.bf16 %v5501_v30, %v5371_v49  ;;  %v5064_v43 = vpop.f32.mrf.mxu3  ;;  %v5167_v31 = vld [vmem:[#allocation2 + $0x46] sm:$0xff]  ;;  %v10443_v49 = vld [vmem:[#allocation3 + $0x530] sm:$0xff] }
 0x61f   : > { %v5085_v26 = vadd.f32 %v5064_v43, %v4955_v19  ;;  %v5138_v56 = vld [vmem:[#allocation2 + $0x45] sm:$0xff]  ;;  %5833 = vmatpush.bf16.msra.mxu1 %v10443_v49  ;;  %5963 = vmatpush.bf16.msra.mxu2 %v10447_v50  ;;  %v10446_v19 = vld [vmem:[#allocation3 + $0x548] sm:$0xff] }
 0x620   : > { %9742 = vmatmul.msk.bf16.gmra.mxu3 %vm216_vm0, %v5510_v27  ;;  %v10445_v43 = vld [vmem:[#allocation3 + $0x540] sm:$0xff] }
 0x621   : > { %v5100_v35 = vadd.f32 %v11957_v20, %v5085_v26 }
 0x623   : > { %v12073_v2 = vmul.f32 %v5100_v35, %v12994_v58  ;;  %5834 = vmatpush.bf16.msra.mxu1 %v10442_v5  ;;  %5964 = vmatpush.bf16.msra.mxu2 %v10446_v19 }
 0x625   : > { %12995 = vst [vmem:[#allocation29_spill] sm:$0xff] %v12073_v2  ;;  %v5168_v44 = vld [vmem:[#allocation2 + $0x4e] sm:$0xff] }
 0x626   : > { %v5139_v11 = vld [vmem:[#allocation2 + $0x4d] sm:$0xff]  ;;  %5126 = vst.msk [vmem:[#allocation2 + $0x58] sm:$0xff] %vm216_vm0, %v12073_v2  ;;  %v5176_v13 = vpack.c.bf16 %v5168_v44, %v5167_v31  ;;  %v5067_v53 = vpop.f32.mrf.mxu3 }
 0x627   : > { %v5373_v12 = vld [vmem:[#allocation2 + $0x4f] sm:$0xff]  ;;  %v5147_v1 = vpack.c.bf16 %v5139_v11, %v5138_v56  ;;  %v5086_v36 = vadd.f32 %v5067_v53, %v12997_v54  ;;  %5835 = vmatpush.bf16.msra.mxu1 %v10441_v39  ;;  %5965 = vmatpush.bf16.msra.mxu2 %v10445_v43 }
 0x628   : > { %v5381_v41 = vpack.c.bf16 %v5373_v12, %v5501_v30  ;;  %9674 = vmatmul.msk.bf16.gmra.mxu0 %vm216_vm0, %v5176_v13  ;;  %v10452_v30 = vld [vmem:[#allocation3 + $0x578] sm:$0xff]  ;;  %v10450_v13 = vld [vmem:[#allocation3 + $0x568] sm:$0xff]  ;;  %v13003_v53 = vld [vmem:[#allocation22_spill] sm:$0xff] }
 0x629   : > { %9697 = vmatmul.msk.bf16.gmra.mxu1 %vm216_vm0, %v5147_v1  ;;  %v5101_v51 = vadd.f32 %v11957_v20, %v5086_v36  ;;  %6092 = vmatpush.bf16.msrb.mxu3 %v10452_v30  ;;  %v5627_v43 = vld [vmem:[#allocation2 + $0x28] sm:$0xff] }
 0x62a   : > { %9720 = vmatmul.msk.bf16.gmra.mxu2 %vm216_vm0, %v5381_v41  ;;  %v10449_v41 = vld [vmem:[#allocation3 + $0x560] sm:$0xff] }
 0x62b   : > { %v12085_v48 = vmul.f32 %v5101_v51, %v12999_v14  ;;  %v6146_v2 = vld [vmem:[#allocation2 + $0x2b] sm:$0xff] }
 0x62d   : > { %13000 = vst [vmem:[#allocation19_spill] sm:$0xff] %v12085_v48  ;;  %v5503_v21 = vld [vmem:[#allocation2 + $0x57] sm:$0xff]  ;;  %6093 = vmatpush.bf16.msrb.mxu3 %v10451_v23 }
 0x62e   : > { %5127 = vst.msk [vmem:[#allocation2 + $0x60] sm:$0xff] %vm216_vm0, %v12085_v48  ;;  %v5511_v32 = vpack.c.bf16 %v5503_v21, %v5373_v12  ;;  %v5069_v63 = vpop.f32.mrf.mxu3  ;;  %v5169_v26 = vld [vmem:[#allocation2 + $0x56] sm:$0xff]  ;;  %v10456_v12 = vld [vmem:[#allocation3 + $0x598] sm:$0xff] }
 0x62f   : > { %v5087_v40 = vadd.f32 %v5069_v63, %v4957_v18  ;;  %v5140_v38 = vld [vmem:[#allocation2 + $0x55] sm:$0xff]  ;;  %6222 = vmatpush.bf16.msrb.mxu0 %v10456_v12  ;;  %v5885_v18 = vld [vmem:[#allocation2 + $0x21] sm:$0xff] }
 0x630   : > { %9743 = vmatmul.msk.bf16.gmra.mxu3 %vm216_vm0, %v5511_v32  ;;  %v5624_v32 = vld [vmem:[#allocation2 + $0x10] sm:$0xff]  ;;  %v6014_v23 = vld [vmem:[#allocation2 + $0x1a] sm:$0xff] }
 0x631   : > { %v5102_v27 = vadd.f32 %v11957_v20, %v5087_v40  ;;  %6094 = vmatpush.bf16.msrb.mxu3 %v10450_v13  ;;  %v5754_v63 = vld [vmem:[#allocation2 + $0x11] sm:$0xff]  ;;  %v5637_v30 = vpack.c.bf16 %v5625_v33, %v5624_v32 }
 0x632   : > { %v10455_v40 = vld [vmem:[#allocation3 + $0x590] sm:$0xff] }
 0x633   : > { %v12093_v15 = vmul.f32 %v5102_v27, %v13001_v6  ;;  %6223 = vmatpush.bf16.msrb.mxu0 %v10455_v40  ;;  %v6015_v27 = vld [vmem:[#allocation2 + $0x22] sm:$0xff]  ;;  %v6151_v8 = vld [vmem:[#allocation2 + $0x53] sm:$0xff] }
 0x634   : > { %v6027_v39 = vpack.c.bf16 %v6015_v27, %v6014_v23  ;;  %v10461_v6 = vld [vmem:[#allocation3 + $0x5c0] sm:$0xff] }
 0x635   : > { %13002 = vst [vmem:[#allocation32_spill] sm:$0xff] %v12093_v15  ;;  %v5170_v24 = vld [vmem:[#allocation2 + $0x5e] sm:$0xff]  ;;  %6095 = vmatpush.bf16.msrb.mxu3 %v10449_v41 }
 0x636   : > { %v5141_v35 = vld [vmem:[#allocation2 + $0x5d] sm:$0xff]  ;;  %5128 = vst.msk [vmem:[#allocation2 + $0x68] sm:$0xff] %vm216_vm0, %v12093_v15  ;;  %v5177_v3 = vpack.c.bf16 %v5170_v24, %v5169_v26  ;;  %v5072_v44 = vpop.f32.mrf.mxu3  ;;  %v5757_v26 = vld [vmem:[#allocation2 + $0x29] sm:$0xff] }
 0x637   : > { %v5375_v57 = vld [vmem:[#allocation2 + $0x5f] sm:$0xff]  ;;  %v5148_v31 = vpack.c.bf16 %v5141_v35, %v5140_v38  ;;  %v5088_v11 = vadd.f32 %v5072_v44, %v11952_v61  ;;  %v5887_v38 = vld [vmem:[#allocation2 + $0x31] sm:$0xff] }
 0x638   : > { %v5382_v56 = vpack.c.bf16 %v5375_v57, %v5503_v21  ;;  %9675 = vmatmul.msk.bf16.gmra.mxu0 %vm216_vm0, %v5177_v3  ;;  %v5755_v21 = vld [vmem:[#allocation2 + $0x19] sm:$0xff]  ;;  %v5898_v44 = vpack.c.bf16 %v5887_v38, %v5757_v26 }
 0x639   : > { %9698 = vmatmul.msk.bf16.gmra.mxu1 %vm216_vm0, %v5148_v31  ;;  %v5103_v1 = vadd.f32 %v11957_v20, %v5088_v11  ;;  %v5767_v5 = vpack.c.bf16 %v5755_v21, %v5754_v63  ;;  %v5897_v19 = vpack.c.bf16 %v5885_v18, %v5755_v21  ;;  %v6017_v11 = vld [vmem:[#allocation2 + $0x32] sm:$0xff] }
 0x63a   : > { %9721 = vmatmul.msk.bf16.gmra.mxu2 %vm216_vm0, %v5382_v56  ;;  %v5768_v56 = vpack.c.bf16 %v5757_v26, %v5885_v18  ;;  %v5628_v18 = vld [vmem:[#allocation2 + $0x30] sm:$0xff] }
 0x63b   : > { %v12103_v7 = vmul.f32 %v5103_v1, %v13003_v53 }
 0x63d   : > { %13004 = vst [vmem:[#allocation21_spill] sm:$0xff] %v12103_v7  ;;  %v5505_v4 = vld [vmem:[#allocation2 + $0x67] sm:$0xff] }
 0x63e   : > { %5129 = vst.msk [vmem:[#allocation2 + $0x70] sm:$0xf] %vm233_vm1, %v12103_v7  ;;  %v5512_v61 = vpack.c.bf16 %v5505_v4, %v5375_v57  ;;  %v5074_v54 = vpop.f32.mrf.mxu3  ;;  %v5171_v36 = vld [vmem:[#allocation2 + $0x66] sm:$0xf]  ;;  %v6016_v4 = vld [vmem:[#allocation2 + $0x2a] sm:$0xff]  ;;  %v6147_v7 = vld [vmem:[#allocation2 + $0x33] sm:$0xff] }
 0x63f   : > { %v5142_v34 = vld [vmem:[#allocation2 + $0x65] sm:$0xf]  ;;  %v5178_v51 = vpack.c.bf16 %v5171_v36, %v5171_v36  ;;  %v6028_v54 = vpack.c.bf16 %v6017_v11, %v6016_v4  ;;  %v10454_v36 = vld [vmem:[#allocation3 + $0x588] sm:$0xff] }
 0x640   : > { %9744 = vmatmul.msk.bf16.gmra.mxu3 %vm216_vm0, %v5512_v61  ;;  %v5376_v60 = vld [vmem:[#allocation2 + $0x67] sm:$0xf]  ;;  %v5149_v20 = vpack.c.bf16 %v5142_v34, %v5142_v34  ;;  %6224 = vmatpush.bf16.msrb.mxu0 %v10454_v36  ;;  %v5891_v11 = vld [vmem:[#allocation2 + $0x51] sm:$0xff] }
 0x641   : > { %v5383_v49 = vpack.c.bf16 %v5376_v60, %v5376_v60  ;;  %v5626_v57 = vld [vmem:[#allocation2 + $0x20] sm:$0xff]  ;;  %v5629_v60 = vld [vmem:[#allocation2 + $0x38] sm:$0xff] }
 0x642   : > { %v5638_v31 = vpack.c.bf16 %v5627_v43, %v5626_v57  ;;  %v5639_v63 = vpack.c.bf16 %v5629_v60, %v5628_v18  ;;  %v6021_v60 = vld [vmem:[#allocation2 + $0x52] sm:$0xff]  ;;  %v6020_v18 = vld [vmem:[#allocation2 + $0x4a] sm:$0xff] }
 0x645   : > { %v5506_v50 = vld [vmem:[#allocation2 + $0x6f] sm:$0xf] }
 0x646   : > { %v5513_v9 = vpack.c.bf16 %v5506_v50, %v5506_v50  ;;  %v5889_v50 = vld [vmem:[#allocation2 + $0x41] sm:$0xff] }
 0x648   : > { %9676 = vmatmul.msk.bf16.gmra.mxu0 %vm216_vm0, %v5178_v51  ;;  %v5759_v51 = vld [vmem:[#allocation2 + $0x39] sm:$0xff] }
 0x649   : > { %9699 = vmatmul.msk.bf16.gmra.mxu1 %vm216_vm0, %v5149_v20  ;;  %v5769_v40 = vpack.c.bf16 %v5759_v51, %v5887_v38 }
 0x64a   : > { %9722 = vmatmul.msk.bf16.gmra.mxu2 %vm216_vm0, %v5383_v49 }
 0x650   : > { %9745 = vmatmul.msk.bf16.gmra.mxu3 %vm216_vm0, %v5513_v9 }
 0x658   : > { %9762 = vmatmul.msk.bf16.vlgmr.msra.gmra.mxu0 %vm216_vm0, %v5637_v30  ;;  %v5899_v30 = vpack.c.bf16 %v5889_v50, %v5759_v51 }
 0x659   : > { %9785 = vmatmul.msk.bf16.vlgmr.msra.gmra.mxu1 %vm216_vm0, %v5767_v5 }
 0x65a   : > { %9808 = vmatmul.msk.bf16.vlgmr.msra.gmra.mxu2 %vm216_vm0, %v5897_v19  ;;  %v6019_v19 = vld [vmem:[#allocation2 + $0x42] sm:$0xff] }
 0x660   : > { %9831 = vmatmul.msk.bf16.vlgmr.msrb.gmra.mxu3 %vm216_vm0, %v6027_v39 }
 0x665   : > { %v5242_v24 = vpop.f32.mrf.mxu0 }
 0x666   : > { %v5330_v35 = vpop.f32.mrf.mxu1 }
 0x667   : > { %v5331_v3 = vadd.f32 %v5330_v35, %v5242_v24  ;;  %v6018_v24 = vld [vmem:[#allocation2 + $0x3a] sm:$0xff] }
 0x668   : > { %9763 = vmatmul.msk.bf16.gmra.mxu0 %vm216_vm0, %v5638_v31  ;;  %v6029_v57 = vpack.c.bf16 %v6019_v19, %v6018_v24  ;;  %v5761_v31 = vld [vmem:[#allocation2 + $0x49] sm:$0xff] }
 0x669   : > { %9786 = vmatmul.msk.bf16.gmra.mxu1 %vm216_vm0, %v5768_v56  ;;  %v5900_v36 = vpack.c.bf16 %v5891_v11, %v5761_v31 }
 0x66a   : > { %9809 = vmatmul.msk.bf16.gmra.mxu2 %vm216_vm0, %v5898_v44 }
 0x66d   : > { %v5447_v12 = vpop.f32.mrf.mxu2  ;;  %v5244_v1 = vpop.f32.mrf.mxu0 }
 0x66e   : > { %v5481_v13 = vadd.f32 %v5447_v12, %v5331_v3  ;;  %v5332_v41 = vpop.f32.mrf.mxu1  ;;  %v5631_v3 = vld [vmem:[#allocation2 + $0x48] sm:$0xff] }
 0x66f   : > { %v5333_v61 = vadd.f32 %v5332_v41, %v5244_v1  ;;  %v5630_v41 = vld [vmem:[#allocation2 + $0x40] sm:$0xff] }
 0x670   : > { %9832 = vmatmul.msk.bf16.gmra.mxu3 %vm216_vm0, %v6028_v54  ;;  %v5770_v54 = vpack.c.bf16 %v5761_v31, %v5889_v50  ;;  %v6030_v50 = vpack.c.bf16 %v6021_v60, %v6020_v18  ;;  %v6023_v31 = vld [vmem:[#allocation2 + $0x62] sm:$0xff]  ;;  %v5895_v60 = vld [vmem:[#allocation2 + $0x71] sm:$0xff] }
 0x671   : > { %v5634_v18 = vld [vmem:[#allocation2 + $0x60] sm:$0xff] }
 0x673   : > { %v5577_v34 = vpop.f32.mrf.mxu3 }
 0x674   : > { %v12120_v49 = vadd.f32 %v5577_v34, %v5481_v13 }
 0x675   : > { %v5449_v20 = vpop.f32.mrf.mxu2  ;;  %v5247_v33 = vpop.f32.mrf.mxu0 }
 0x676   : > { %v5482_v9 = vadd.f32 %v5449_v20, %v5333_v61  ;;  %v5335_v21 = vpop.f32.mrf.mxu1  ;;  %v5640_v61 = vpack.c.bf16 %v5631_v3, %v5630_v41  ;;  %v6022_v41 = vld [vmem:[#allocation2 + $0x5a] sm:$0xff] }
 0x677   : > { %v5336_v32 = vadd.f32 %v5335_v21, %v5247_v33 }
 0x678   : > { %9764 = vmatmul.msk.bf16.gmra.mxu0 %vm216_vm0, %v5639_v63 }
 0x679   : > { %9787 = vmatmul.msk.bf16.gmra.mxu1 %vm216_vm0, %v5769_v40  ;;  %v5633_v40 = vld [vmem:[#allocation2 + $0x58] sm:$0xff] }
 0x67a   : > { %9810 = vmatmul.msk.bf16.gmra.mxu2 %vm216_vm0, %v5899_v30  ;;  %v5763_v30 = vld [vmem:[#allocation2 + $0x59] sm:$0xff] }
 0x67b   : > { %v5579_v5 = vpop.f32.mrf.mxu3 }
 0x67c   : > { %v12125_v23 = vadd.f32 %v5579_v5, %v5482_v9 }
 0x67d   : > { %v5452_v27 = vpop.f32.mrf.mxu2  ;;  %v5249_v43 = vpop.f32.mrf.mxu0 }
 0x67e   : > { %v5483_v39 = vadd.f32 %v5452_v27, %v5336_v32  ;;  %v5337_v26 = vpop.f32.mrf.mxu1  ;;  %v10453_v32 = vld [vmem:[#allocation3 + $0x580] sm:$0xff] }
 0x67f   : > { %v5338_v35 = vadd.f32 %v5337_v26, %v5249_v43  ;;  %6225 = vmatpush.bf16.msrb.mxu0 %v10453_v32  ;;  %v5893_v27 = vld [vmem:[#allocation2 + $0x61] sm:$0xff]  ;;  %v5632_v26 = vld [vmem:[#allocation2 + $0x50] sm:$0xff] }
 0x680   : > { %9833 = vmatmul.msk.bf16.gmra.mxu3 %vm216_vm0, %v6029_v57  ;;  %v5771_v57 = vpack.c.bf16 %v5763_v30, %v5891_v11 }
 0x683   : > { %v5582_v38 = vpop.f32.mrf.mxu3 }
 0x684   : > { %v12128_v44 = vadd.f32 %v5582_v38, %v5483_v39  ;;  %v5901_v38 = vpack.c.bf16 %v5893_v27, %v5763_v30 }
 0x685   : > { %v5454_v56 = vpop.f32.mrf.mxu2  ;;  %v5252_v13 = vpop.f32.mrf.mxu0 }
 0x686   : > { %v5484_v12 = vadd.f32 %v5454_v56, %v5338_v35  ;;  %v5340_v1 = vpop.f32.mrf.mxu1  ;;  %v5641_v35 = vpack.c.bf16 %v5633_v40, %v5632_v26 }
 0x687   : > { %v5341_v4 = vadd.f32 %v5340_v1, %v5252_v13 }
 0x688   : > { %9765 = vmatmul.msk.bf16.gmra.mxu0 %vm216_vm0, %v5640_v61  ;;  %v5635_v61 = vld [vmem:[#allocation2 + $0x68] sm:$0xff] }
 0x689   : > { %9788 = vmatmul.msk.bf16.gmra.mxu1 %vm216_vm0, %v5770_v54  ;;  %v5765_v54 = vld [vmem:[#allocation2 + $0x69] sm:$0xff] }
 0x68a   : > { %9811 = vmatmul.msk.bf16.gmra.mxu2 %vm216_vm0, %v5900_v36  ;;  %v5902_v40 = vpack.c.bf16 %v5895_v60, %v5765_v54 }
 0x68b   : > { %v5584_v34 = vpop.f32.mrf.mxu3 }
 0x68c   : > { %v12133_v20 = vadd.f32 %v5584_v34, %v5484_v12 }
 0x68d   : > { %v5457_v51 = vpop.f32.mrf.mxu2  ;;  %v12135_v33 = vpop.f32.mrf.mxu0 }
 0x68e   : > { %v5485_v9 = vadd.f32 %v5457_v51, %v5341_v4  ;;  %v12137_v21 = vpop.f32.mrf.mxu1  ;;  %v6031_v4 = vpack.c.bf16 %v6023_v31, %v6022_v41 }
 0x690   : > { %9834 = vmatmul.msk.bf16.gmra.mxu3 %vm216_vm0, %v6030_v50  ;;  %v5642_v50 = vpack.c.bf16 %v5635_v61, %v5634_v18  ;;  %v6026_v18 = vld [vmem:[#allocation2 + $0x7a] sm:$0xf] }
 0x693   : > { %v5587_v63 = vpop.f32.mrf.mxu3 }
 0x694   : > { %v12142_v19 = vadd.f32 %v5587_v63, %v5485_v9  ;;  %v5772_v63 = vpack.c.bf16 %v5765_v54, %v5893_v27  ;;  %v5896_v27 = vld [vmem:[#allocation2 + $0x79] sm:$0xf] }
 0x695   : > { %v12140_v5 = vpop.f32.mrf.mxu2  ;;  %v5257_v39 = vpop.f32.mrf.mxu0  ;;  %v5903_v54 = vpack.c.bf16 %v5896_v27, %v5896_v27 }
 0x696   : > { %v5345_v43 = vpop.f32.mrf.mxu1 }
 0x697   : > { %v5346_v24 = vadd.f32 %v5345_v43, %v5257_v39  ;;  %v6024_v39 = vld [vmem:[#allocation2 + $0x6a] sm:$0xff]  ;;  %v6025_v43 = vld [vmem:[#allocation2 + $0x72] sm:$0xff] }
 0x698   : > { %9766 = vmatmul.msk.bf16.gmra.mxu0 %vm216_vm0, %v5641_v35 }
 0x699   : > { %9789 = vmatmul.msk.bf16.gmra.mxu1 %vm216_vm0, %v5771_v57 }
 0x69a   : > { %9812 = vmatmul.msk.bf16.gmra.mxu2 %vm216_vm0, %v5901_v38  ;;  %v6032_v38 = vpack.c.bf16 %v6025_v43, %v6024_v39 }
 0x69b   : > { %v12147_v3 = vpop.f32.mrf.mxu3 }
 0x69d   : > { %v5462_v56 = vpop.f32.mrf.mxu2  ;;  %v12149_v13 = vpop.f32.mrf.mxu0 }
 0x69e   : > { %v5487_v12 = vadd.f32 %v5462_v56, %v5346_v24  ;;  %v12151_v1 = vpop.f32.mrf.mxu1  ;;  %v5636_v56 = vld [vmem:[#allocation2 + $0x70] sm:$0xf] }
 0x6a0   : > { %9835 = vmatmul.msk.bf16.gmra.mxu3 %vm216_vm0, %v6031_v4 }
 0x6a3   : > { %v5592_v11 = vpop.f32.mrf.mxu3 }
 0x6a4   : > { %v12156_v34 = vadd.f32 %v5592_v11, %v5487_v12  ;;  %v5766_v12 = vld [vmem:[#allocation2 + $0x71] sm:$0xf] }
 0x6a5   : > { %v12154_v36 = vpop.f32.mrf.mxu2  ;;  %v5262_v51 = vpop.f32.mrf.mxu0 }
 0x6a6   : > { %v5350_v9 = vpop.f32.mrf.mxu1 }
 0x6a7   : > { %v5351_v32 = vadd.f32 %v5350_v9, %v5262_v51  ;;  %v5643_v51 = vpack.c.bf16 %v5636_v56, %v5636_v56  ;;  %v5773_v9 = vpack.c.bf16 %v5766_v12, %v5766_v12  ;;  %v6144_v12 = vld [vmem:[#allocation2 + $0x1b] sm:$0xff] }
 0x6a8   : > { %9767 = vmatmul.msk.bf16.gmra.mxu0 %vm216_vm0, %v5642_v50 }
 0x6a9   : > { %9790 = vmatmul.msk.bf16.gmra.mxu1 %vm216_vm0, %v5772_v63  ;;  %v6033_v63 = vpack.c.bf16 %v6026_v18, %v6026_v18 }
 0x6aa   : > { %9813 = vmatmul.msk.bf16.gmra.mxu2 %vm216_vm0, %v5902_v40 }
 0x6ab   : > { %v12161_v30 = vpop.f32.mrf.mxu3 }
 0x6ad   : > { %v5467_v26 = vpop.f32.mrf.mxu2  ;;  %v12163_v35 = vpop.f32.mrf.mxu0 }
 0x6ae   : > { %v5489_v24 = vadd.f32 %v5467_v26, %v5351_v32  ;;  %v12165_v57 = vpop.f32.mrf.mxu1 }
 0x6b0   : > { %9836 = vmatmul.msk.bf16.gmra.mxu3 %vm216_vm0, %v6032_v38 }
 0x6b3   : > { %v5597_v31 = vpop.f32.mrf.mxu3 }
 0x6b4   : > { %v12170_v4 = vadd.f32 %v5597_v31, %v5489_v24  ;;  %v6145_v24 = vld [vmem:[#allocation2 + $0x23] sm:$0xff] }
 0x6b5   : > { %v12168_v41 = vpop.f32.mrf.mxu2  ;;  %v5267_v11 = vpop.f32.mrf.mxu0 }
 0x6b6   : > { %v5355_v61 = vpop.f32.mrf.mxu1 }
 0x6b7   : > { %v5356_v60 = vadd.f32 %v5355_v61, %v5267_v11  ;;  %v6157_v61 = vpack.c.bf16 %v6145_v24, %v6144_v12 }
 0x6b8   : > { %9768 = vmatmul.msk.bf16.gmra.mxu0 %vm216_vm0, %v5643_v51 }
 0x6b9   : > { %9791 = vmatmul.msk.bf16.gmra.mxu1 %vm216_vm0, %v5773_v9 }
 0x6ba   : > { %9814 = vmatmul.msk.bf16.gmra.mxu2 %vm216_vm0, %v5903_v54  ;;  %v10464_v54 = vld [vmem:[#allocation3 + $0x5d8] sm:$0xff] }
 0x6bb   : > { %v12175_v32 = vpop.f32.mrf.mxu3  ;;  %6448 = vmatpush.bf16.msrb.mxu1 %v10464_v54 }
 0x6bd   : > { %v5472_v50 = vpop.f32.mrf.mxu2  ;;  %v12177_v39 = vpop.f32.mrf.mxu0 }
 0x6be   : > { %v5491_v40 = vadd.f32 %v5472_v50, %v5356_v60  ;;  %13005 = vst [vmem:[#allocation23_spill] sm:$0xff] %v12177_v39  ;;  %v12179_v43 = vpop.f32.mrf.mxu1 }
 0x6bf   : > { %13006 = vst [vmem:[#allocation8_spill] sm:$0xff] %v12179_v43 }
 0x6c0   : > { %9837 = vmatmul.msk.bf16.gmra.mxu3 %vm216_vm0, %v6033_v63 }
 0x6c3   : > { %v5602_v26 = vpop.f32.mrf.mxu3 }
 0x6c4   : > { %v12184_v27 = vadd.f32 %v5602_v26, %v5491_v40 }
 0x6c5   : > { %v12182_v38 = vpop.f32.mrf.mxu2  ;;  %v5272_v31 = vpop.f32.mrf.mxu0 }
 0x6c6   : > { %13007 = vst [vmem:[#allocation9_spill] sm:$0xff] %v12182_v38  ;;  %v5360_v56 = vpop.f32.mrf.mxu1 }
 0x6c7   : > { %v5361_v11 = vadd.f32 %v5360_v56, %v5272_v31  ;;  %v6158_v31 = vpack.c.bf16 %v6147_v7, %v6146_v2  ;;  %v10463_v7 = vld [vmem:[#allocation3 + $0x5d0] sm:$0xff] }
 0x6c8   : > { %9854 = vmatmul.msk.bf16.vlgmr.msrb.gmra.mxu0 %vm216_vm0, %v6157_v61  ;;  %6449 = vmatpush.bf16.msrb.mxu1 %v10463_v7 }
 0x6cb   : > { %v12187_v60 = vpop.f32.mrf.mxu3 }
 0x6cc   : > { %13008 = vst [vmem:[#allocation6_spill] sm:$0xff] %v12187_v60  ;;  %6450 = vmatpush.bf16.msrb.mxu1 %v10462_v29 }
 0x6cd   : > { %v5477_v51 = vpop.f32.mrf.mxu2  ;;  %v5274_v18 = vpop.f32.mrf.mxu0 }
 0x6ce   : > { %v5493_v9 = vadd.f32 %v5477_v51, %v5361_v11  ;;  %v5362_v50 = vpop.f32.mrf.mxu1 }
 0x6d0   : > { %6451 = vmatpush.bf16.msrb.mxu1 %v10461_v6 }
 0x6d3   : > { %v5607_v63 = vpop.f32.mrf.mxu3 }
 0x6d4   : > { %v12189_v40 = vadd.f32 %v5607_v63, %v5493_v9  ;;  %v6149_v9 = vld [vmem:[#allocation2 + $0x43] sm:$0xff] }
 0x6d5   : > { %v5479_v15 = vpop.f32.mrf.mxu2  ;;  %v5707_v26 = vpop.f32.mrf.mxu0 }
 0x6d6   : > { %v5837_v48 = vpop.f32.mrf.mxu1  ;;  %v5741_v24 = vadd.f32 %v5707_v26, %v12120_v49 }
 0x6d8   : > { %v5871_v56 = vadd.f32 %v5837_v48, %v5741_v24  ;;  %9855 = vmatmul.msk.bf16.gmra.mxu0 %vm216_vm0, %v6158_v31  ;;  %v6148_v48 = vld [vmem:[#allocation2 + $0x3b] sm:$0xff] }
 0x6d9   : > { %v6159_v24 = vpack.c.bf16 %v6149_v9, %v6148_v48 }
 0x6db   : > { %v5609_v12 = vpop.f32.mrf.mxu3 }
 0x6dd   : > { %v5967_v61 = vpop.f32.mrf.mxu2  ;;  %v5709_v11 = vpop.f32.mrf.mxu0 }
 0x6de   : > { %v6001_v54 = vadd.f32 %v5967_v61, %v5871_v56  ;;  %v12193_v51 = vpop.f32.mrf.mxu1  ;;  %v12196_v18 = vadd.f32 %v5709_v11, %v12125_v23 }
 0x6e3   : > { %v6097_v15 = vpop.f32.mrf.mxu3 }
 0x6e4   : > { %v12200_v63 = vadd.f32 %v6097_v15, %v6001_v54 }
 0x6e5   : > { %v12198_v50 = vpop.f32.mrf.mxu2  ;;  %v5712_v49 = vpop.f32.mrf.mxu0 }
 0x6e6   : > { %v5842_v2 = vpop.f32.mrf.mxu1  ;;  %v5743_v26 = vadd.f32 %v5712_v49, %v12128_v44 }
 0x6e8   : > { %v5873_v31 = vadd.f32 %v5842_v2, %v5743_v26  ;;  %9856 = vmatmul.msk.bf16.gmra.mxu0 %vm216_vm0, %v6159_v24  ;;  %v6150_v2 = vld [vmem:[#allocation2 + $0x4b] sm:$0xff] }
 0x6e9   : > { %v6160_v7 = vpack.c.bf16 %v6151_v8, %v6150_v2 }
 0x6eb   : > { %v12204_v56 = vpop.f32.mrf.mxu3 }
 0x6ed   : > { %v5972_v23 = vpop.f32.mrf.mxu2  ;;  %v5714_v61 = vpop.f32.mrf.mxu0 }
 0x6ee   : > { %v6003_v12 = vadd.f32 %v5972_v23, %v5873_v31  ;;  %v12206_v11 = vpop.f32.mrf.mxu1  ;;  %v12209_v54 = vadd.f32 %v5714_v61, %v12133_v20 }
 0x6f3   : > { %v6102_v15 = vpop.f32.mrf.mxu3 }
 0x6f4   : > { %v12213_v44 = vadd.f32 %v6102_v15, %v6003_v12  ;;  %v6153_v15 = vld [vmem:[#allocation2 + $0x63] sm:$0xff] }
 0x6f5   : > { %v12211_v10 = vpop.f32.mrf.mxu2  ;;  %v5717_v9 = vpop.f32.mrf.mxu0 }
 0x6f6   : > { %v5847_v49 = vpop.f32.mrf.mxu1  ;;  %v5745_v48 = vadd.f32 %v5717_v9, %v12142_v19  ;;  %v6152_v9 = vld [vmem:[#allocation2 + $0x5b] sm:$0xff] }
 0x6f7   : > { %v6161_v2 = vpack.c.bf16 %v6153_v15, %v6152_v9 }
 0x6f8   : > { %v5875_v26 = vadd.f32 %v5847_v49, %v5745_v48  ;;  %9857 = vmatmul.msk.bf16.gmra.mxu0 %vm216_vm0, %v6160_v7 }
 0x6fb   : > { %v12217_v24 = vpop.f32.mrf.mxu3 }
 0x6fd   : > { %v5977_v31 = vpop.f32.mrf.mxu2  ;;  %v12219_v23 = vpop.f32.mrf.mxu0 }
 0x6fe   : > { %v6005_v20 = vadd.f32 %v5977_v31, %v5875_v26  ;;  %v12221_v61 = vpop.f32.mrf.mxu1 }
 0x703   : > { %v6107_v12 = vpop.f32.mrf.mxu3 }
 0x704   : > { %v12225_v22 = vadd.f32 %v6107_v12, %v6005_v20  ;;  %v6154_v20 = vld [vmem:[#allocation2 + $0x6b] sm:$0xff]  ;;  %v6155_v12 = vld [vmem:[#allocation2 + $0x73] sm:$0xff] }
 0x705   : > { %v12223_v62 = vpop.f32.mrf.mxu2  ;;  %v5722_v8 = vpop.f32.mrf.mxu0 }
 0x706   : > { %v5852_v19 = vpop.f32.mrf.mxu1  ;;  %v5747_v49 = vadd.f32 %v5722_v8, %v12156_v34 }
 0x708   : > { %v5877_v48 = vadd.f32 %v5852_v19, %v5747_v49  ;;  %9858 = vmatmul.msk.bf16.gmra.mxu0 %vm216_vm0, %v6161_v2  ;;  %v6162_v19 = vpack.c.bf16 %v6155_v12, %v6154_v20 }
 0x70b   : > { %v12229_v7 = vpop.f32.mrf.mxu3 }
 0x70d   : > { %v5982_v26 = vpop.f32.mrf.mxu2  ;;  %v12231_v29 = vpop.f32.mrf.mxu0 }
 0x70e   : > { %v6007_v31 = vadd.f32 %v5982_v26, %v5877_v48  ;;  %v12233_v55 = vpop.f32.mrf.mxu1 }
 0x713   : > { %v6112_v47 = vpop.f32.mrf.mxu3 }
 0x714   : > { %v12237_v16 = vadd.f32 %v6112_v47, %v6007_v31  ;;  %v6156_v47 = vld [vmem:[#allocation2 + $0x7b] sm:$0xf] }
 0x715   : > { %v12235_v59 = vpop.f32.mrf.mxu2  ;;  %v5727_v34 = vpop.f32.mrf.mxu0 }
 0x716   : > { %v5857_v15 = vpop.f32.mrf.mxu1  ;;  %v5749_v8 = vadd.f32 %v5727_v34, %v12170_v4  ;;  %v6163_v4 = vpack.c.bf16 %v6156_v47, %v6156_v47  ;;  %v10459_v47 = vld [vmem:[#allocation3 + $0x5b0] sm:$0xff] }
 0x718   : > { %v5879_v9 = vadd.f32 %v5857_v15, %v5749_v8  ;;  %9859 = vmatmul.msk.bf16.gmra.mxu0 %vm216_vm0, %v6162_v19  ;;  %v10460_v8 = vld [vmem:[#allocation3 + $0x5b8] sm:$0xff] }
 0x719   : > { %v10468_v19 = vld [vmem:[#allocation3 + $0x5f8] sm:$0xff]  ;;  %6536 = vmatpush.bf16.msrb.mxu2 %v10460_v8 }
 0x71a   : > { %6653 = vmatpush.bf16.msra.mxu3 %v10468_v19 }
 0x71b   : > { %v12241_v49 = vpop.f32.mrf.mxu3 }
 0x71d   : > { %v5987_v2 = vpop.f32.mrf.mxu2  ;;  %v12243_v26 = vpop.f32.mrf.mxu0  ;;  %6537 = vmatpush.bf16.msrb.mxu2 %v10459_v47 }
 0x71e   : > { %v6009_v48 = vadd.f32 %v5987_v2, %v5879_v9  ;;  %v12245_v53 = vpop.f32.mrf.mxu1 }
 0x723   : > { %v6117_v31 = vpop.f32.mrf.mxu3 }
 0x724   : > { %v12249_v58 = vadd.f32 %v6117_v31, %v6009_v48  ;;  %v10467_v31 = vld [vmem:[#allocation3 + $0x5f0] sm:$0xff] }
 0x725   : > { %v12247_v14 = vpop.f32.mrf.mxu2  ;;  %v5732_v20 = vpop.f32.mrf.mxu0  ;;  %6654 = vmatpush.bf16.msra.mxu3 %v10467_v31  ;;  %v10470_v31 = vld [vmem:[#allocation3 + $0x608] sm:$0xff] }
 0x726   : > { %v5862_v12 = vpop.f32.mrf.mxu1  ;;  %v5751_v34 = vadd.f32 %v5732_v20, %v12184_v27  ;;  %v10458_v27 = vld [vmem:[#allocation3 + $0x5a8] sm:$0xff] }
 0x727   : > { %v10466_v20 = vld [vmem:[#allocation3 + $0x5e8] sm:$0xff]  ;;  %6538 = vmatpush.bf16.msrb.mxu2 %v10458_v27 }
 0x728   : > { %v5881_v15 = vadd.f32 %v5862_v12, %v5751_v34  ;;  %9860 = vmatmul.msk.bf16.gmra.mxu0 %vm216_vm0, %v6163_v4  ;;  %v10472_v12 = vld [vmem:[#allocation3 + $0x618] sm:$0xff] }
 0x729   : > { %6655 = vmatpush.bf16.msra.mxu3 %v10466_v20  ;;  %6783 = vmatpush.bf16.msra.mxu0 %v10472_v12  ;;  %v10469_v12 = vld [vmem:[#allocation3 + $0x600] sm:$0xff] }
 0x72b   : > { %v12253_v9 = vpop.f32.mrf.mxu3 }
 0x72d   : > { %v5992_v6 = vpop.f32.mrf.mxu2  ;;  %v12255_v60 = vpop.f32.mrf.mxu0 }
 0x72e   : > { %v6011_v2 = vadd.f32 %v5992_v6, %v5881_v15  ;;  %13009 = vst [vmem:[#allocation7_spill] sm:$0xff] %v12255_v60  ;;  %v12257_v48 = vpop.f32.mrf.mxu1  ;;  %v10457_v6 = vld [vmem:[#allocation3 + $0x5a0] sm:$0xff] }
 0x72f   : > { %13010 = vst [vmem:[#allocation12_spill] sm:$0xff] %v12257_v48  ;;  %v10465_v60 = vld [vmem:[#allocation3 + $0x5e0] sm:$0xff]  ;;  %v10471_v48 = vld [vmem:[#allocation3 + $0x610] sm:$0xff]  ;;  %6539 = vmatpush.bf16.msrb.mxu2 %v10457_v6 }
 0x730   : > { %6656 = vmatpush.bf16.msra.mxu3 %v10465_v60  ;;  %6784 = vmatpush.bf16.msra.mxu0 %v10471_v48 }
 0x733   : > { %v6122_v4 = vpop.f32.mrf.mxu3 }
 0x734   : > { %v12261_v8 = vadd.f32 %v6122_v4, %v6011_v2  ;;  %6785 = vmatpush.bf16.msra.mxu0 %v10470_v31 }
 0x735   : > { %v12259_v34 = vpop.f32.mrf.mxu2  ;;  %v5737_v15 = vpop.f32.mrf.mxu0 }
 0x736   : > { %13011 = vst [vmem:[#allocation10_spill] sm:$0xff] %v12259_v34  ;;  %v5867_v19 = vpop.f32.mrf.mxu1  ;;  %v5753_v38 = vadd.f32 %v5737_v15, %v12189_v40  ;;  %v10476_v34 = vld [vmem:[#allocation3 + $0x638] sm:$0xff]  ;;  %v5872_v15 = vadd.f32 %v12193_v51, %v12196_v18 }
 0x737   : > { %13012 = vst [vmem:[#allocation13_spill] sm:$0xff] %v12261_v8  ;;  %6913 = vmatpush.bf16.msra.mxu1 %v10476_v34  ;;  %v6341_v51 = vld [vmem:[#allocation2 + $0x5] sm:$0xff] }
 0x738   : > { %v5883_v47 = vadd.f32 %v5867_v19, %v5753_v38  ;;  %6786 = vmatpush.bf16.msra.mxu0 %v10469_v12  ;;  %v12271_v38 = vld [vmem:[%s12857_s2 + $0x4] ss:$0 sm:$0xff]  ;;  %v6002_v34 = vadd.f32 %v12198_v50, %v5872_v15  ;;  %v6575_v18 = vld [vmem:[#allocation2 + $0x7] sm:$0xff] }
 0x73b   : > { %v12264_v43 = vpop.f32.mrf.mxu3 }
 0x73d   : > { %v5997_v27 = vpop.f32.mrf.mxu2  ;;  %v5739_v2 = vpop.f32.mrf.mxu0 }
 0x73e   : > { %v6013_v20 = vadd.f32 %v5997_v27, %v5883_v47  ;;  %v5869_v4 = vpop.f32.mrf.mxu1  ;;  %v6132_v47 = vadd.f32 %v12204_v56, %v6002_v34 }
 0x73f   : > { %v6370_v4 = vld [vmem:[#allocation2 + $0x6] sm:$0xff] }
 0x743   : > { %v6127_v8 = vpop.f32.mrf.mxu3 }
 0x744   : > { %v12266_v39 = vadd.f32 %v6127_v8, %v6013_v20 }
 0x745   : > { %v5999_v60 = vpop.f32.mrf.mxu2  ;;  %v6227_v40 = vpop.f32.mrf.mxu0 }
 0x746   : > { %v6261_v48 = vadd.f32 %v6227_v40, %v12200_v63 }
 0x748   : > { %v6276_v19 = vadd.f32 %v12271_v38, %v6261_v48 }
 0x74a   : > { %v6289_v6 = vmul.f32 %v6276_v19, %v11041_v37 }
 0x74b   : > { %v6129_v8 = vpop.f32.mrf.mxu3 }
 0x74c   : > { %v6302_v31 = vmax.f32 %v6289_v6, 0.0  ;;  %v10475_v6 = vld [vmem:[#allocation3 + $0x630] sm:$0xff]  ;;  %v5874_v8 = vadd.f32 %v12206_v11, %v12209_v54  ;;  %v5343_v11 = vadd.f32 %v12137_v21, %v12135_v33 }
 0x74d   : > { %v6229_v27 = vpop.f32.mrf.mxu0  ;;  %6914 = vmatpush.bf16.msra.mxu1 %v10475_v6 }
 0x74e   : > { %6328 = vst.msk [vmem:[#allocation2 + $0x10] sm:$0xff] %vm216_vm0, %v6302_v31  ;;  %v6262_v20 = vadd.f32 %v6229_v27, %v6132_v47  ;;  %v6004_v31 = vadd.f32 %v12211_v10, %v5874_v8 }
 0x750   : > { %v6277_v2 = vadd.f32 %v12271_v38, %v6262_v20  ;;  %v6134_v27 = vadd.f32 %v12217_v24, %v6004_v31 }
 0x752   : > { %v6290_v63 = vmul.f32 %v6277_v2, %v11053_v42 }
 0x754   : > { %v6303_v12 = vmax.f32 %v6290_v63, 0.0 }
 0x755   : > { %v6232_v60 = vpop.f32.mrf.mxu0  ;;  %v6371_v50 = vld [vmem:[#allocation2 + $0xe] sm:$0xff] }
 0x756   : > { %v6342_v40 = vld [vmem:[#allocation2 + $0xd] sm:$0xff]  ;;  %6329 = vst.msk [vmem:[#allocation2 + $0x18] sm:$0xff] %vm216_vm0, %v6303_v12  ;;  %v6263_v56 = vadd.f32 %v6232_v60, %v12213_v44  ;;  %v6383_v15 = vpack.c.bf16 %v6371_v50, %v6370_v4 }
 0x757   : > { %v6576_v48 = vld [vmem:[#allocation2 + $0xf] sm:$0xff]  ;;  %v6354_v19 = vpack.c.bf16 %v6342_v40, %v6341_v51  ;;  %v5486_v51 = vadd.f32 %v12140_v5, %v5343_v11 }
 0x758   : > { %v6588_v34 = vpack.c.bf16 %v6576_v48, %v6575_v18  ;;  %v6278_v47 = vadd.f32 %v12271_v38, %v6263_v56  ;;  %9877 = vmatmul.msk.bf16.vlgmr.msrb.gmra.mxu1 %vm216_vm0, %v6383_v15 }
 0x759   : > { %9900 = vmatmul.msk.bf16.vlgmr.msrb.gmra.mxu2 %vm216_vm0, %v6354_v19  ;;  %v5616_v10 = vadd.f32 %v12147_v3, %v5486_v51 }
 0x75a   : > { %9923 = vmatmul.msk.bf16.vlgmr.msra.gmra.mxu3 %vm216_vm0, %v6588_v34  ;;  %v6291_v44 = vmul.f32 %v6278_v47, %v11067_v45 }
 0x75b   : > { %v5746_v12 = vadd.f32 %v12219_v23, %v5616_v10 }
 0x75c   : > { %v6304_v20 = vmax.f32 %v6291_v44, 0.0 }
 0x75d   : > { %v6234_v2 = vpop.f32.mrf.mxu0  ;;  %v6706_v63 = vld [vmem:[#allocation2 + $0x17] sm:$0xff]  ;;  %v5876_v3 = vadd.f32 %v12221_v61, %v5746_v12  ;;  %v5348_v61 = vadd.f32 %v12151_v1, %v12149_v13 }
 0x75e   : > { %6330 = vst.msk [vmem:[#allocation2 + $0x20] sm:$0xff] %vm216_vm0, %v6304_v20  ;;  %v6264_v54 = vadd.f32 %v6234_v2, %v6134_v27  ;;  %v6718_v4 = vpack.c.bf16 %v6706_v63, %v6576_v48  ;;  %v6372_v50 = vld [vmem:[#allocation2 + $0x16] sm:$0xff] }
 0x75f   : > { %v6343_v40 = vld [vmem:[#allocation2 + $0x15] sm:$0xff]  ;;  %v6006_v23 = vadd.f32 %v12223_v62, %v5876_v3  ;;  %v5488_v2 = vadd.f32 %v12154_v36, %v5348_v61 }
 0x760   : > { %v6279_v18 = vadd.f32 %v12271_v38, %v6264_v54  ;;  %9946 = vmatmul.msk.bf16.vlgmr.msra.gmra.mxu0 %vm216_vm0, %v6718_v4 }
 0x761   : > { %v6136_v47 = vadd.f32 %v12229_v7, %v6006_v23  ;;  %v5618_v62 = vadd.f32 %v12161_v30, %v5488_v2 }
 0x762   : > { %v6292_v24 = vmul.f32 %v6279_v18, %v11086_v52 }
 0x763   : > { %v5748_v11 = vadd.f32 %v12231_v29, %v5618_v62 }
 0x764   : > { %v6305_v60 = vmax.f32 %v6292_v24, 0.0 }
 0x765   : > { %v6237_v33 = vpop.f32.mrf.mxu0  ;;  %v6373_v21 = vld [vmem:[#allocation2 + $0x1e] sm:$0xff]  ;;  %v5878_v30 = vadd.f32 %v12233_v55, %v5748_v11  ;;  %v5353_v55 = vadd.f32 %v12165_v57, %v12163_v35 }
 0x766   : > { %v6344_v56 = vld [vmem:[#allocation2 + $0x1d] sm:$0xff]  ;;  %6331 = vst.msk [vmem:[#allocation2 + $0x28] sm:$0xff] %vm216_vm0, %v6305_v60  ;;  %v6265_v5 = vadd.f32 %v6237_v33, %v12225_v22  ;;  %v6384_v48 = vpack.c.bf16 %v6373_v21, %v6372_v50  ;;  %v10474_v50 = vld [vmem:[#allocation3 + $0x628] sm:$0xff] }
 0x767   : > { %v6578_v15 = vld [vmem:[#allocation2 + $0x1f] sm:$0xff]  ;;  %v6355_v19 = vpack.c.bf16 %v6344_v56, %v6343_v40  ;;  %6915 = vmatpush.bf16.msra.mxu1 %v10474_v50  ;;  %v6008_v29 = vadd.f32 %v12235_v59, %v5878_v30 }
 0x768   : > { %v6589_v34 = vpack.c.bf16 %v6578_v15, %v6706_v63  ;;  %v6280_v6 = vadd.f32 %v12271_v38, %v6265_v5  ;;  %9878 = vmatmul.msk.bf16.gmra.mxu1 %vm216_vm0, %v6384_v48  ;;  %v13014_v11 = vld [vmem:[#allocation8_spill] sm:$0xff] }
 0x769   : > { %9901 = vmatmul.msk.bf16.gmra.mxu2 %vm216_vm0, %v6355_v19  ;;  %v5490_v19 = vadd.f32 %v12168_v41, %v5353_v55 }
 0x76a   : > { %9924 = vmatmul.msk.bf16.gmra.mxu3 %vm216_vm0, %v6589_v34  ;;  %v6293_v8 = vmul.f32 %v6280_v6, %v11099_v0 }
 0x76b   : > { %v5620_v59 = vadd.f32 %v12175_v32, %v5490_v19 }
 0x76c   : > { %v6306_v22 = vmax.f32 %v6293_v8, 0.0 }
 0x76d   : > { %v6239_v31 = vpop.f32.mrf.mxu0  ;;  %v6708_v44 = vld [vmem:[#allocation2 + $0x27] sm:$0xff]  ;;  %v5750_v3 = vadd.f32 %v12243_v26, %v5620_v59 }
 0x76e   : > { %6332 = vst.msk [vmem:[#allocation2 + $0x30] sm:$0xff] %vm216_vm0, %v6306_v22  ;;  %v6266_v27 = vadd.f32 %v6239_v31, %v6136_v47  ;;  %v6719_v20 = vpack.c.bf16 %v6708_v44, %v6578_v15  ;;  %v6374_v4 = vld [vmem:[#allocation2 + $0x26] sm:$0xff] }
 0x76f   : > { %v6345_v51 = vld [vmem:[#allocation2 + $0x25] sm:$0xff]  ;;  %v5880_v32 = vadd.f32 %v12245_v53, %v5750_v3 }
 0x770   : > { %v6281_v63 = vadd.f32 %v12271_v38, %v6266_v27  ;;  %9947 = vmatmul.msk.bf16.gmra.mxu0 %vm216_vm0, %v6719_v20  ;;  %v10480_v59 = vld [vmem:[#allocation3 + $0x658] sm:$0xff]  ;;  %v13021_v3 = vld [vmem:[#allocation10_spill] sm:$0xff] }
 0x771   : > { %v6010_v26 = vadd.f32 %v12247_v14, %v5880_v32  ;;  %v13016_v14 = vld [vmem:[#allocation6_spill] sm:$0xff]  ;;  %7043 = vmatpush.bf16.msra.mxu2 %v10480_v59 }
 0x772   : > { %v6294_v7 = vmul.f32 %v6281_v63, %v11118_v17  ;;  %v7096_v59 = vld [vmem:[#allocation2 + $0x21] sm:$0xff] }
 0x773   : > { %v6140_v2 = vadd.f32 %v12253_v9, %v6010_v26  ;;  %v10482_v26 = vld [vmem:[#allocation3 + $0x668] sm:$0xff] }
 0x774   : > { %v6307_v54 = vmax.f32 %v6294_v7, 0.0  ;;  %v13013_v7 = vld [vmem:[#allocation23_spill] sm:$0xff] }
 0x775   : > { %v6242_v13 = vpop.f32.mrf.mxu0  ;;  %v6375_v1 = vld [vmem:[#allocation2 + $0x2e] sm:$0xff]  ;;  %v5358_v53 = vadd.f32 %v13014_v11, %v13013_v7 }
 0x776   : > { %v6346_v18 = vld [vmem:[#allocation2 + $0x2d] sm:$0xff]  ;;  %6333 = vst.msk [vmem:[#allocation2 + $0x38] sm:$0xff] %vm216_vm0, %v6307_v54  ;;  %v6267_v36 = vadd.f32 %v6242_v13, %v12237_v16  ;;  %v6385_v24 = vpack.c.bf16 %v6375_v1, %v6374_v4  ;;  %v6138_v16 = vadd.f32 %v12241_v49, %v6008_v29  ;;  %v13015_v13 = vld [vmem:[#allocation9_spill] sm:$0xff] }
 0x777   : > { %v6580_v10 = vld [vmem:[#allocation2 + $0x2f] sm:$0xff]  ;;  %v6356_v12 = vpack.c.bf16 %v6346_v18, %v6345_v51  ;;  %v5492_v1 = vadd.f32 %v13015_v13, %v5358_v53  ;;  %v10487_v53 = vld [vmem:[#allocation3 + $0x690] sm:$0xff] }
 0x778   : > { %v6590_v60 = vpack.c.bf16 %v6580_v10, %v6708_v44  ;;  %v6282_v40 = vadd.f32 %v12271_v38, %v6267_v36  ;;  %9879 = vmatmul.msk.bf16.gmra.mxu1 %vm216_vm0, %v6385_v24  ;;  %v10473_v51 = vld [vmem:[#allocation3 + $0x620] sm:$0xff]  ;;  %v13018_v24 = vld [vmem:[#allocation7_spill] sm:$0xff] }
 0x779   : > { %9902 = vmatmul.msk.bf16.gmra.mxu2 %vm216_vm0, %v6356_v12  ;;  %6916 = vmatpush.bf16.msra.mxu1 %v10473_v51  ;;  %v5622_v9 = vadd.f32 %v13016_v14, %v5492_v1 }
 0x77a   : > { %9925 = vmatmul.msk.bf16.gmra.mxu3 %vm216_vm0, %v6590_v60  ;;  %v6295_v33 = vmul.f32 %v6282_v40, %v11137_v28 }
 0x77b   : > { %v5752_v12 = vadd.f32 %v13018_v24, %v5622_v9  ;;  %v10492_v24 = vld [vmem:[#allocation3 + $0x6b8] sm:$0xff] }
 0x77c   : > { %v6308_v21 = vmax.f32 %v6295_v33, 0.0 }
 0x77d   : > { %v6244_v56 = vpop.f32.mrf.mxu0  ;;  %v6710_v15 = vld [vmem:[#allocation2 + $0x37] sm:$0xff]  ;;  %7433 = vmatpush.bf16.msrb.mxu1 %v10492_v24 }
 0x77e   : > { %6334 = vst.msk [vmem:[#allocation2 + $0x40] sm:$0xff] %vm216_vm0, %v6308_v21  ;;  %v6268_v5 = vadd.f32 %v6244_v56, %v6138_v16  ;;  %v6720_v48 = vpack.c.bf16 %v6710_v15, %v6580_v10  ;;  %v6376_v23 = vld [vmem:[#allocation2 + $0x36] sm:$0xff]  ;;  %v13019_v21 = vld [vmem:[#allocation13_spill] sm:$0xff] }
 0x77f   : > { %v6347_v8 = vld [vmem:[#allocation2 + $0x35] sm:$0xff] }
 0x780   : > { %v6283_v34 = vadd.f32 %v12271_v38, %v6268_v5  ;;  %9948 = vmatmul.msk.bf16.gmra.mxu0 %vm216_vm0, %v6720_v48  ;;  %v13017_v10 = vld [vmem:[#allocation16_spill] sm:$0xff] }
 0x781   : > { %v13020_v48 = vld [vmem:[#allocation12_spill] sm:$0xff] }
 0x782   : > { %v6296_v49 = vmul.f32 %v6283_v34, %v11152_v46  ;;  %v5882_v19 = vadd.f32 %v13020_v48, %v5752_v12  ;;  %v10486_v12 = vld [vmem:[#allocation3 + $0x688] sm:$0xff] }
 0x784   : > { %v6309_v6 = vmax.f32 %v6296_v49, 0.0  ;;  %v10484_v49 = vld [vmem:[#allocation3 + $0x678] sm:$0xff] }
 0x785   : > { %v6247_v35 = vpop.f32.mrf.mxu0  ;;  %v6377_v57 = vld [vmem:[#allocation2 + $0x3e] sm:$0xff]  ;;  %7173 = vmatpush.bf16.msrb.mxu3 %v10484_v49  ;;  %v6835_v49 = vld [vmem:[#allocation2 + $0x10] sm:$0xff] }
 0x786   : > { %v6348_v47 = vld [vmem:[#allocation2 + $0x3d] sm:$0xff]  ;;  %6335 = vst.msk [vmem:[#allocation2 + $0x48] sm:$0xff] %vm216_vm0, %v6309_v6  ;;  %v6269_v41 = vadd.f32 %v6247_v35, %v12249_v58  ;;  %v6386_v31 = vpack.c.bf16 %v6377_v57, %v6376_v23  ;;  %v6012_v6 = vadd.f32 %v13021_v3, %v5882_v19  ;;  %v13022_v23 = vld [vmem:[#allocation18_spill] sm:$0xff]  ;;  %v6965_v3 = vld [vmem:[#allocation2 + $0x11] sm:$0xff] }
 0x787   : > { %v6582_v22 = vld [vmem:[#allocation2 + $0x3f] sm:$0xff]  ;;  %v6357_v44 = vpack.c.bf16 %v6348_v47, %v6347_v8 }
 0x788   : > { %v6591_v61 = vpack.c.bf16 %v6582_v22, %v6710_v15  ;;  %v6284_v27 = vadd.f32 %v12271_v38, %v6269_v41  ;;  %9880 = vmatmul.msk.bf16.gmra.mxu1 %vm216_vm0, %v6386_v31  ;;  %v10479_v35 = vld [vmem:[#allocation3 + $0x650] sm:$0xff]  ;;  %v6142_v47 = vadd.f32 %v12264_v43, %v6012_v6  ;;  %v10477_v43 = vld [vmem:[#allocation3 + $0x640] sm:$0xff] }
 0x789   : > { %9903 = vmatmul.msk.bf16.gmra.mxu2 %vm216_vm0, %v6357_v44  ;;  %v10483_v57 = vld [vmem:[#allocation3 + $0x670] sm:$0xff] }
 0x78a   : > { %9926 = vmatmul.msk.bf16.gmra.mxu3 %vm216_vm0, %v6591_v61  ;;  %v6297_v20 = vmul.f32 %v6284_v27, %v12988_v25  ;;  %7044 = vmatpush.bf16.msra.mxu2 %v10479_v35  ;;  %v10478_v27 = vld [vmem:[#allocation3 + $0x648] sm:$0xff]  ;;  %v6836_v19 = vld [vmem:[#allocation2 + $0x18] sm:$0xff] }
 0x78b   : > { %7174 = vmatpush.bf16.msrb.mxu3 %v10483_v57  ;;  %v6848_v6 = vpack.c.bf16 %v6836_v19, %v6835_v49  ;;  %v10491_v35 = vld [vmem:[#allocation3 + $0x6b0] sm:$0xff] }
 0x78c   : > { %v6310_v58 = vmax.f32 %v6297_v20, 0.0  ;;  %v10488_v20 = vld [vmem:[#allocation3 + $0x698] sm:$0xff]  ;;  %7434 = vmatpush.bf16.msrb.mxu1 %v10491_v35 }
 0x78d   : > { %v6249_v63 = vpop.f32.mrf.mxu0  ;;  %v6712_v62 = vld [vmem:[#allocation2 + $0x47] sm:$0xff]  ;;  %7303 = vmatpush.bf16.msrb.mxu0 %v10488_v20  ;;  %v7229_v19 = vld [vmem:[#allocation2 + $0x3a] sm:$0xff] }
 0x78e   : > { %6336 = vst.msk [vmem:[#allocation2 + $0x50] sm:$0xff] %vm216_vm0, %v6310_v58  ;;  %v6270_v54 = vadd.f32 %v6249_v63, %v6140_v2  ;;  %v6721_v4 = vpack.c.bf16 %v6712_v62, %v6582_v22  ;;  %v6378_v50 = vld [vmem:[#allocation2 + $0x46] sm:$0xff]  ;;  %v13023_v2 = vld [vmem:[#allocation20_spill] sm:$0xff]  ;;  %7045 = vmatpush.bf16.msra.mxu2 %v10478_v27 }
 0x78f   : > { %v6349_v30 = vld [vmem:[#allocation2 + $0x45] sm:$0xff]  ;;  %7175 = vmatpush.bf16.msrb.mxu3 %v10482_v26 }
 0x790   : > { %v6285_v18 = vadd.f32 %v12271_v38, %v6270_v54  ;;  %9949 = vmatmul.msk.bf16.gmra.mxu0 %vm216_vm0, %v6721_v4  ;;  %v10481_v63 = vld [vmem:[#allocation3 + $0x660] sm:$0xff]  ;;  %v6837_v27 = vld [vmem:[#allocation2 + $0x20] sm:$0xff] }
 0x791   : > { %7304 = vmatpush.bf16.msrb.mxu0 %v10487_v53 }
 0x792   : > { %v6298_v36 = vmul.f32 %v6285_v18, %v13017_v10  ;;  %7046 = vmatpush.bf16.msra.mxu2 %v10477_v43 }
 0x793   : > { %7176 = vmatpush.bf16.msrb.mxu3 %v10481_v63  ;;  %v7228_v63 = vld [vmem:[#allocation2 + $0x32] sm:$0xff] }
 0x794   : > { %v6311_v60 = vmax.f32 %v6298_v36, 0.0 }
 0x795   : > { %v6252_v40 = vpop.f32.mrf.mxu0  ;;  %v6379_v29 = vld [vmem:[#allocation2 + $0x4e] sm:$0xff]  ;;  %7305 = vmatpush.bf16.msrb.mxu0 %v10486_v12  ;;  %v7100_v12 = vld [vmem:[#allocation2 + $0x41] sm:$0xff] }
 0x796   : > { %v6350_v33 = vld [vmem:[#allocation2 + $0x4d] sm:$0xff]  ;;  %6337 = vst.msk [vmem:[#allocation2 + $0x58] sm:$0xff] %vm216_vm0, %v6311_v60  ;;  %v6271_v56 = vadd.f32 %v6252_v40, %v13019_v21  ;;  %v6387_v15 = vpack.c.bf16 %v6379_v29, %v6378_v50 }
 0x797   : > { %v6584_v16 = vld [vmem:[#allocation2 + $0x4f] sm:$0xff]  ;;  %v6358_v55 = vpack.c.bf16 %v6350_v33, %v6349_v30 }
 0x798   : > { %v6592_v5 = vpack.c.bf16 %v6584_v16, %v6712_v62  ;;  %v6286_v34 = vadd.f32 %v12271_v38, %v6271_v56  ;;  %9881 = vmatmul.msk.bf16.gmra.mxu1 %vm216_vm0, %v6387_v15  ;;  %v13024_v60 = vld [vmem:[#allocation22_spill] sm:$0xff] }
 0x799   : > { %9904 = vmatmul.msk.bf16.gmra.mxu2 %vm216_vm0, %v6358_v55  ;;  %v10485_v40 = vld [vmem:[#allocation3 + $0x680] sm:$0xff] }
 0x79a   : > { %9927 = vmatmul.msk.bf16.gmra.mxu3 %vm216_vm0, %v6592_v5  ;;  %v6299_v8 = vmul.f32 %v6286_v34, %v13022_v23  ;;  %7306 = vmatpush.bf16.msrb.mxu0 %v10485_v40  ;;  %v6966_v34 = vld [vmem:[#allocation2 + $0x19] sm:$0xff] }
 0x79b   : > { %v7108_v57 = vpack.c.bf16 %v7096_v59, %v6966_v34 }
 0x79c   : > { %v6312_v22 = vmax.f32 %v6299_v8, 0.0  ;;  %v6978_v8 = vpack.c.bf16 %v6966_v34, %v6965_v3 }
 0x79d   : > { %v6254_v41 = vpop.f32.mrf.mxu0  ;;  %v6714_v31 = vld [vmem:[#allocation2 + $0x57] sm:$0xff] }
 0x79e   : > { %6338 = vst.msk [vmem:[#allocation2 + $0x60] sm:$0xff] %vm216_vm0, %v6312_v22  ;;  %v6272_v44 = vadd.f32 %v6254_v41, %v6142_v47  ;;  %v6722_v61 = vpack.c.bf16 %v6714_v31, %v6584_v16  ;;  %v6380_v7 = vld [vmem:[#allocation2 + $0x56] sm:$0xff]  ;;  %v7226_v47 = vld [vmem:[#allocation2 + $0x22] sm:$0xff] }
 0x79f   : > { %v6351_v11 = vld [vmem:[#allocation2 + $0x55] sm:$0xff] }
 0x7a0   : > { %v6287_v32 = vadd.f32 %v12271_v38, %v6272_v44  ;;  %9950 = vmatmul.msk.bf16.gmra.mxu0 %vm216_vm0, %v6722_v61  ;;  %v7225_v22 = vld [vmem:[#allocation2 + $0x1a] sm:$0xff]  ;;  %v6968_v44 = vld [vmem:[#allocation2 + $0x29] sm:$0xff]  ;;  %v7098_v61 = vld [vmem:[#allocation2 + $0x31] sm:$0xff] }
 0x7a1   : > { %v7238_v41 = vpack.c.bf16 %v7226_v47, %v7225_v22  ;;  %v6979_v20 = vpack.c.bf16 %v6968_v44, %v7096_v59  ;;  %v7102_v47 = vld [vmem:[#allocation2 + $0x51] sm:$0xff] }
 0x7a2   : > { %v6300_v58 = vmul.f32 %v6287_v32, %v13023_v2  ;;  %v7367_v2 = vld [vmem:[#allocation2 + $0x7b] sm:$0xf] }
 0x7a4   : > { %v6313_v62 = vmax.f32 %v6300_v58, 0.0  ;;  %v7109_v58 = vpack.c.bf16 %v7098_v61, %v6968_v44 }
 0x7a5   : > { %v6257_v54 = vpop.f32.mrf.mxu0  ;;  %v6381_v4 = vld [vmem:[#allocation2 + $0x5e] sm:$0xff] }
 0x7a6   : > { %v6352_v51 = vld [vmem:[#allocation2 + $0x5d] sm:$0xff]  ;;  %6339 = vst.msk [vmem:[#allocation2 + $0x68] sm:$0xff] %vm216_vm0, %v6313_v62  ;;  %v6273_v1 = vadd.f32 %v6257_v54, %v12266_v39  ;;  %v6388_v18 = vpack.c.bf16 %v6381_v4, %v6380_v7  ;;  %v7227_v54 = vld [vmem:[#allocation2 + $0x2a] sm:$0xff] }
 0x7a7   : > { %v6586_v13 = vld [vmem:[#allocation2 + $0x5f] sm:$0xff]  ;;  %v6359_v14 = vpack.c.bf16 %v6352_v51, %v6351_v11  ;;  %v7239_v51 = vpack.c.bf16 %v7228_v63, %v7227_v54 }
 0x7a8   : > { %v6593_v9 = vpack.c.bf16 %v6586_v13, %v6714_v31  ;;  %v6288_v36 = vadd.f32 %v12271_v38, %v6273_v1  ;;  %9882 = vmatmul.msk.bf16.gmra.mxu1 %vm216_vm0, %v6388_v18  ;;  %v6838_v31 = vld [vmem:[#allocation2 + $0x28] sm:$0xff]  ;;  %v10490_v1 = vld [vmem:[#allocation3 + $0x6a8] sm:$0xff] }
 0x7a9   : > { %9905 = vmatmul.msk.bf16.gmra.mxu2 %vm216_vm0, %v6359_v14  ;;  %v6849_v26 = vpack.c.bf16 %v6838_v31, %v6837_v27  ;;  %7435 = vmatpush.bf16.msrb.mxu1 %v10490_v1  ;;  %v6840_v14 = vld [vmem:[#allocation2 + $0x38] sm:$0xff]  ;;  %v6841_v31 = vld [vmem:[#allocation2 + $0x40] sm:$0xff] }
 0x7aa   : > { %9928 = vmatmul.msk.bf16.gmra.mxu3 %vm216_vm0, %v6593_v9  ;;  %v6301_v50 = vmul.f32 %v6288_v36, %v13024_v60  ;;  %v6970_v9 = vld [vmem:[#allocation2 + $0x39] sm:$0xff] }
 0x7ac   : > { %v6314_v39 = vmax.f32 %v6301_v50, 0.0 }
 0x7ad   : > { %v6716_v30 = vld [vmem:[#allocation2 + $0x67] sm:$0xff]  ;;  %v6259_v29 = vpop.f32.mrf.mxu0 }
 0x7ae   : > { %6340 = vst.msk [vmem:[#allocation2 + $0x70] sm:$0xf] %vm233_vm1, %v6314_v39  ;;  %v6723_v38 = vpack.c.bf16 %v6716_v30, %v6586_v13  ;;  %v6382_v33 = vld [vmem:[#allocation2 + $0x66] sm:$0xf]  ;;  %v6839_v30 = vld [vmem:[#allocation2 + $0x30] sm:$0xff] }
 0x7af   : > { %v6353_v16 = vld [vmem:[#allocation2 + $0x65] sm:$0xf]  ;;  %v6389_v56 = vpack.c.bf16 %v6382_v33, %v6382_v33  ;;  %v6850_v29 = vpack.c.bf16 %v6840_v14, %v6839_v30  ;;  %v7110_v33 = vpack.c.bf16 %v7100_v12, %v6970_v9  ;;  %v6974_v14 = vld [vmem:[#allocation2 + $0x59] sm:$0xff] }
 0x7b0   : > { %9951 = vmatmul.msk.bf16.gmra.mxu0 %vm216_vm0, %v6723_v38  ;;  %v6587_v21 = vld [vmem:[#allocation2 + $0x67] sm:$0xf]  ;;  %v6360_v15 = vpack.c.bf16 %v6353_v16, %v6353_v16  ;;  %v6980_v38 = vpack.c.bf16 %v6970_v9, %v7098_v61  ;;  %v6982_v30 = vpack.c.bf16 %v6974_v14, %v7102_v47 }
 0x7b1   : > { %v6594_v55 = vpack.c.bf16 %v6587_v21, %v6587_v21 }
 0x7b5   : > { %v6717_v5 = vld [vmem:[#allocation2 + $0x6f] sm:$0xf] }
 0x7b6   : > { %v6724_v48 = vpack.c.bf16 %v6717_v5, %v6717_v5 }
 0x7b8   : > { %9883 = vmatmul.msk.bf16.gmra.mxu1 %vm216_vm0, %v6389_v56  ;;  %v7230_v56 = vld [vmem:[#allocation2 + $0x42] sm:$0xff] }
 0x7b9   : > { %9906 = vmatmul.msk.bf16.gmra.mxu2 %vm216_vm0, %v6360_v15  ;;  %v7240_v59 = vpack.c.bf16 %v7230_v56, %v7229_v19 }
 0x7ba   : > { %9929 = vmatmul.msk.bf16.gmra.mxu3 %vm216_vm0, %v6594_v55 }
 0x7c0   : > { %9952 = vmatmul.msk.bf16.gmra.mxu0 %vm216_vm0, %v6724_v48 }
 0x7c8   : > { %9969 = vmatmul.msk.bf16.vlgmr.msra.gmra.mxu1 %vm216_vm0, %v6848_v6  ;;  %v6842_v6 = vld [vmem:[#allocation2 + $0x48] sm:$0xff] }
 0x7c9   : > { %9992 = vmatmul.msk.bf16.vlgmr.msra.gmra.mxu2 %vm216_vm0, %v6978_v8  ;;  %v6972_v8 = vld [vmem:[#allocation2 + $0x49] sm:$0xff]  ;;  %v6851_v61 = vpack.c.bf16 %v6842_v6, %v6841_v31 }
 0x7ca   : > { %10015 = vmatmul.msk.bf16.vlgmr.msrb.gmra.mxu3 %vm216_vm0, %v7108_v57  ;;  %v7111_v27 = vpack.c.bf16 %v7102_v47, %v6972_v8  ;;  %v6845_v47 = vld [vmem:[#allocation2 + $0x60] sm:$0xff] }
 0x7d0   : > { %10038 = vmatmul.msk.bf16.vlgmr.msrb.gmra.mxu0 %vm216_vm0, %v7238_v41 }
 0x7d5   : > { %v6453_v32 = vpop.f32.mrf.mxu1 }
 0x7d8   : > { %9970 = vmatmul.msk.bf16.gmra.mxu1 %vm216_vm0, %v6849_v26 }
 0x7d9   : > { %9993 = vmatmul.msk.bf16.gmra.mxu2 %vm216_vm0, %v6979_v20 }
 0x7da   : > { %10016 = vmatmul.msk.bf16.gmra.mxu3 %vm216_vm0, %v7109_v58  ;;  %v7232_v58 = vld [vmem:[#allocation2 + $0x52] sm:$0xff] }
 0x7dc   : > { %v6541_v43 = vpop.f32.mrf.mxu2 }
 0x7dd   : > { %v6542_v62 = vadd.f32 %v6541_v43, %v6453_v32  ;;  %v6658_v7 = vpop.f32.mrf.mxu3  ;;  %v6455_v11 = vpop.f32.mrf.mxu1  ;;  %v6981_v32 = vpack.c.bf16 %v6972_v8, %v7100_v12  ;;  %v7106_v8 = vld [vmem:[#allocation2 + $0x71] sm:$0xff] }
 0x7de   : > { %v6788_v53 = vpop.f32.mrf.mxu0 }
 0x7df   : > { %v6692_v4 = vadd.f32 %v6658_v7, %v6542_v62 }
 0x7e0   : > { %10039 = vmatmul.msk.bf16.gmra.mxu0 %vm216_vm0, %v7239_v51 }
 0x7e1   : > { %v12394_v13 = vadd.f32 %v6788_v53, %v6692_v4  ;;  %v10489_v4 = vld [vmem:[#allocation3 + $0x6a0] sm:$0xff] }
 0x7e2   : > { %7436 = vmatpush.bf16.msrb.mxu1 %v10489_v4  ;;  %v6847_v4 = vld [vmem:[#allocation2 + $0x70] sm:$0xf] }
 0x7e4   : > { %v6543_v18 = vpop.f32.mrf.mxu2 }
 0x7e5   : > { %v6544_v36 = vadd.f32 %v6543_v18, %v6455_v11  ;;  %v6660_v24 = vpop.f32.mrf.mxu3  ;;  %v6458_v50 = vpop.f32.mrf.mxu1  ;;  %v7231_v11 = vld [vmem:[#allocation2 + $0x4a] sm:$0xff]  ;;  %v6844_v18 = vld [vmem:[#allocation2 + $0x58] sm:$0xff] }
 0x7e6   : > { %v6790_v39 = vpop.f32.mrf.mxu0  ;;  %v7241_v54 = vpack.c.bf16 %v7232_v58, %v7231_v11 }
 0x7e7   : > { %v6693_v40 = vadd.f32 %v6660_v24, %v6544_v36  ;;  %v7104_v36 = vld [vmem:[#allocation2 + $0x61] sm:$0xff] }
 0x7e8   : > { %9971 = vmatmul.msk.bf16.gmra.mxu1 %vm216_vm0, %v6850_v29 }
 0x7e9   : > { %v12397_v16 = vadd.f32 %v6790_v39, %v6693_v40  ;;  %9994 = vmatmul.msk.bf16.gmra.mxu2 %vm216_vm0, %v6980_v38  ;;  %v7112_v40 = vpack.c.bf16 %v7104_v36, %v6974_v14  ;;  %v7234_v38 = vld [vmem:[#allocation2 + $0x62] sm:$0xff] }
 0x7ea   : > { %10017 = vmatmul.msk.bf16.gmra.mxu3 %vm216_vm0, %v7110_v33 }
 0x7ec   : > { %v6546_v21 = vpop.f32.mrf.mxu2 }
 0x7ed   : > { %v6547_v15 = vadd.f32 %v6546_v21, %v6458_v50  ;;  %v6663_v55 = vpop.f32.mrf.mxu3  ;;  %v6460_v5 = vpop.f32.mrf.mxu1  ;;  %v6843_v50 = vld [vmem:[#allocation2 + $0x50] sm:$0xff] }
 0x7ee   : > { %v6793_v48 = vpop.f32.mrf.mxu0  ;;  %v6852_v39 = vpack.c.bf16 %v6844_v18, %v6843_v50  ;;  %v6977_v18 = vld [vmem:[#allocation2 + $0x71] sm:$0xf] }
 0x7ef   : > { %v6694_v34 = vadd.f32 %v6663_v55, %v6547_v15  ;;  %v7233_v55 = vld [vmem:[#allocation2 + $0x5a] sm:$0xff] }
 0x7f0   : > { %10040 = vmatmul.msk.bf16.gmra.mxu0 %vm216_vm0, %v7240_v59  ;;  %v6846_v59 = vld [vmem:[#allocation2 + $0x68] sm:$0xff] }
 0x7f1   : > { %v12402_v49 = vadd.f32 %v6793_v48, %v6694_v34  ;;  %v7242_v48 = vpack.c.bf16 %v7234_v38, %v7233_v55 }
 0x7f4   : > { %v6548_v3 = vpop.f32.mrf.mxu2 }
 0x7f5   : > { %v6549_v35 = vadd.f32 %v6548_v3, %v6460_v5  ;;  %v6665_v57 = vpop.f32.mrf.mxu3  ;;  %v6463_v22 = vpop.f32.mrf.mxu1  ;;  %v6976_v3 = vld [vmem:[#allocation2 + $0x69] sm:$0xff] }
 0x7f6   : > { %v6795_v41 = vpop.f32.mrf.mxu0  ;;  %v7113_v31 = vpack.c.bf16 %v7106_v8, %v6976_v3 }
 0x7f7   : > { %v6695_v44 = vadd.f32 %v6665_v57, %v6549_v35 }
 0x7f8   : > { %9972 = vmatmul.msk.bf16.gmra.mxu1 %vm216_vm0, %v6851_v61  ;;  %v7235_v61 = vld [vmem:[#allocation2 + $0x6a] sm:$0xff] }
 0x7f9   : > { %v12405_v26 = vadd.f32 %v6795_v41, %v6695_v44  ;;  %9995 = vmatmul.msk.bf16.gmra.mxu2 %vm216_vm0, %v6981_v32  ;;  %v6983_v41 = vpack.c.bf16 %v6976_v3, %v7104_v36  ;;  %v7236_v32 = vld [vmem:[#allocation2 + $0x72] sm:$0xff]  ;;  %v7356_v3 = vld [vmem:[#allocation2 + $0x23] sm:$0xff] }
 0x7fa   : > { %10018 = vmatmul.msk.bf16.gmra.mxu3 %vm216_vm0, %v7111_v27 }
 0x7fc   : > { %v6551_v20 = vpop.f32.mrf.mxu2 }
 0x7fd   : > { %v6552_v43 = vadd.f32 %v6551_v20, %v6463_v22  ;;  %v6668_v63 = vpop.f32.mrf.mxu3  ;;  %v12410_v62 = vpop.f32.mrf.mxu1  ;;  %v6853_v22 = vpack.c.bf16 %v6846_v59, %v6845_v47 }
 0x7fe   : > { %v6798_v7 = vpop.f32.mrf.mxu0 }
 0x7ff   : > { %v6696_v53 = vadd.f32 %v6668_v63, %v6552_v43 }
 0x800   : > { %10041 = vmatmul.msk.bf16.gmra.mxu0 %vm216_vm0, %v7241_v54 }
 0x801   : > { %v12412_v51 = vadd.f32 %v6798_v7, %v6696_v53  ;;  %v7243_v7 = vpack.c.bf16 %v7236_v32, %v7235_v61  ;;  %v7107_v53 = vld [vmem:[#allocation2 + $0x79] sm:$0xf] }
 0x802   : > { %v7114_v50 = vpack.c.bf16 %v7107_v53, %v7107_v53  ;;  %v7358_v53 = vld [vmem:[#allocation2 + $0x33] sm:$0xff] }
 0x804   : > { %v12415_v1 = vpop.f32.mrf.mxu2 }
 0x805   : > { %v12417_v9 = vpop.f32.mrf.mxu3  ;;  %v6468_v24 = vpop.f32.mrf.mxu1 }
 0x806   : > { %v12419_v12 = vpop.f32.mrf.mxu0 }
 0x808   : > { %9973 = vmatmul.msk.bf16.gmra.mxu1 %vm216_vm0, %v6852_v39  ;;  %v6854_v39 = vpack.c.bf16 %v6847_v4, %v6847_v4 }
 0x809   : > { %9996 = vmatmul.msk.bf16.gmra.mxu2 %vm216_vm0, %v6982_v30  ;;  %v6984_v30 = vpack.c.bf16 %v6977_v18, %v6977_v18 }
 0x80a   : > { %10019 = vmatmul.msk.bf16.gmra.mxu3 %vm216_vm0, %v7112_v40  ;;  %v7237_v40 = vld [vmem:[#allocation2 + $0x7a] sm:$0xf] }
 0x80c   : > { %v6556_v29 = vpop.f32.mrf.mxu2 }
 0x80d   : > { %v6557_v33 = vadd.f32 %v6556_v29, %v6468_v24  ;;  %v6673_v21 = vpop.f32.mrf.mxu3  ;;  %v12424_v56 = vpop.f32.mrf.mxu1 }
 0x80e   : > { %v6803_v15 = vpop.f32.mrf.mxu0 }
 0x80f   : > { %v6698_v5 = vadd.f32 %v6673_v21, %v6557_v33  ;;  %v7244_v21 = vpack.c.bf16 %v7237_v40, %v7237_v40 }
 0x810   : > { %10042 = vmatmul.msk.bf16.gmra.mxu0 %vm216_vm0, %v7242_v48 }
 0x811   : > { %v12426_v19 = vadd.f32 %v6803_v15, %v6698_v5 }
 0x814   : > { %v12429_v34 = vpop.f32.mrf.mxu2 }
 0x815   : > { %v12431_v6 = vpop.f32.mrf.mxu3  ;;  %v6473_v35 = vpop.f32.mrf.mxu1 }
 0x816   : > { %v12433_v57 = vpop.f32.mrf.mxu0 }
 0x818   : > { %9974 = vmatmul.msk.bf16.gmra.mxu1 %vm216_vm0, %v6853_v22  ;;  %v7355_v22 = vld [vmem:[#allocation2 + $0x1b] sm:$0xff] }
 0x819   : > { %9997 = vmatmul.msk.bf16.gmra.mxu2 %vm216_vm0, %v6983_v41  ;;  %v7368_v41 = vpack.c.bf16 %v7356_v3, %v7355_v22  ;;  %v7360_v22 = vld [vmem:[#allocation2 + $0x43] sm:$0xff] }
 0x81a   : > { %10020 = vmatmul.msk.bf16.gmra.mxu3 %vm216_vm0, %v7113_v31  ;;  %v10500_v31 = vld [vmem:[#allocation3 + $0x6f8] sm:$0xff] }
 0x81b   : > { %7659 = vmatpush.bf16.msrb.mxu2 %v10500_v31 }
 0x81c   : > { %v6561_v44 = vpop.f32.mrf.mxu2 }
 0x81d   : > { %v6562_v27 = vadd.f32 %v6561_v44, %v6473_v35  ;;  %v6678_v20 = vpop.f32.mrf.mxu3  ;;  %v12438_v58 = vpop.f32.mrf.mxu1 }
 0x81e   : > { %v6808_v43 = vpop.f32.mrf.mxu0 }
 0x81f   : > { %v6700_v63 = vadd.f32 %v6678_v20, %v6562_v27 }
 0x820   : > { %10043 = vmatmul.msk.bf16.gmra.mxu0 %vm216_vm0, %v7243_v7 }
 0x821   : > { %v12440_v11 = vadd.f32 %v6808_v43, %v6700_v63 }
 0x824   : > { %v12443_v54 = vpop.f32.mrf.mxu2 }
 0x825   : > { %v12445_v14 = vpop.f32.mrf.mxu3  ;;  %v6478_v36 = vpop.f32.mrf.mxu1 }
 0x826   : > { %v12447_v24 = vpop.f32.mrf.mxu0 }
 0x828   : > { %9975 = vmatmul.msk.bf16.gmra.mxu1 %vm216_vm0, %v6854_v39 }
 0x829   : > { %9998 = vmatmul.msk.bf16.gmra.mxu2 %vm216_vm0, %v6984_v30 }
 0x82a   : > { %10021 = vmatmul.msk.bf16.gmra.mxu3 %vm216_vm0, %v7114_v50  ;;  %v7357_v50 = vld [vmem:[#allocation2 + $0x2b] sm:$0xff] }
 0x82b   : > { %v7369_v30 = vpack.c.bf16 %v7358_v53, %v7357_v50 }
 0x82c   : > { %v6566_v29 = vpop.f32.mrf.mxu2 }
 0x82d   : > { %v6567_v38 = vadd.f32 %v6566_v29, %v6478_v36  ;;  %v6683_v33 = vpop.f32.mrf.mxu3  ;;  %v12452_v15 = vpop.f32.mrf.mxu1 }
 0x82e   : > { %v6813_v55 = vpop.f32.mrf.mxu0 }
 0x82f   : > { %v6702_v5 = vadd.f32 %v6683_v33, %v6567_v38 }
 0x830   : > { %10044 = vmatmul.msk.bf16.gmra.mxu0 %vm216_vm0, %v7244_v21 }
 0x831   : > { %v12454_v48 = vadd.f32 %v6813_v55, %v6702_v5 }
 0x834   : > { %v12457_v59 = vpop.f32.mrf.mxu2 }
 0x835   : > { %v12459_v8 = vpop.f32.mrf.mxu3  ;;  %v6483_v35 = vpop.f32.mrf.mxu1 }
 0x836   : > { %13025 = vst [vmem:[#allocation11_spill] sm:$0xff] %v12459_v8  ;;  %v12461_v47 = vpop.f32.mrf.mxu0 }
 0x837   : > { %13026 = vst [vmem:[#allocation23_spill] sm:$0xff] %v12461_v47  ;;  %v10495_v47 = vld [vmem:[#allocation3 + $0x6d0] sm:$0xff] }
 0x838   : > { %10061 = vmatmul.msk.bf16.vlgmr.msrb.gmra.mxu1 %vm216_vm0, %v7368_v41 }
 0x83c   : > { %v6571_v44 = vpop.f32.mrf.mxu2 }
 0x83d   : > { %v6572_v61 = vadd.f32 %v6571_v44, %v6483_v35  ;;  %v6688_v32 = vpop.f32.mrf.mxu3  ;;  %v6485_v27 = vpop.f32.mrf.mxu1  ;;  %v7359_v44 = vld [vmem:[#allocation2 + $0x3b] sm:$0xff] }
 0x83e   : > { %v6818_v20 = vpop.f32.mrf.mxu0  ;;  %v10499_v27 = vld [vmem:[#allocation3 + $0x6f0] sm:$0xff] }
 0x83f   : > { %v6704_v43 = vadd.f32 %v6688_v32, %v6572_v61  ;;  %v7370_v32 = vpack.c.bf16 %v7360_v22, %v7359_v44  ;;  %7660 = vmatpush.bf16.msrb.mxu2 %v10499_v27 }
 0x841   : > { %v12464_v63 = vadd.f32 %v6818_v20, %v6704_v43 }
 0x844   : > { %v6573_v7 = vpop.f32.mrf.mxu2 }
 0x845   : > { %v6690_v4 = vpop.f32.mrf.mxu3  ;;  %v6918_v36 = vpop.f32.mrf.mxu1 }
 0x846   : > { %v6820_v18 = vpop.f32.mrf.mxu0  ;;  %v6952_v39 = vadd.f32 %v6918_v36, %v12394_v13 }
 0x848   : > { %10062 = vmatmul.msk.bf16.gmra.mxu1 %vm216_vm0, %v7369_v30 }
 0x84c   : > { %v7048_v40 = vpop.f32.mrf.mxu2 }
 0x84d   : > { %v7082_v29 = vadd.f32 %v7048_v40, %v6952_v39  ;;  %v7178_v38 = vpop.f32.mrf.mxu3  ;;  %v6920_v33 = vpop.f32.mrf.mxu1  ;;  %v7362_v39 = vld [vmem:[#allocation2 + $0x53] sm:$0xff] }
 0x84e   : > { %v7308_v21 = vpop.f32.mrf.mxu0  ;;  %v12469_v5 = vadd.f32 %v6920_v33, %v12397_v16 }
 0x84f   : > { %v7212_v55 = vadd.f32 %v7178_v38, %v7082_v29  ;;  %v7361_v29 = vld [vmem:[#allocation2 + $0x4b] sm:$0xff] }
 0x850   : > { %v7371_v33 = vpack.c.bf16 %v7362_v39, %v7361_v29 }
 0x851   : > { %v12471_v3 = vadd.f32 %v7308_v21, %v7212_v55 }
 0x854   : > { %v12473_v35 = vpop.f32.mrf.mxu2 }
 0x855   : > { %v12475_v41 = vpop.f32.mrf.mxu3  ;;  %v6923_v13 = vpop.f32.mrf.mxu1 }
 0x856   : > { %v12477_v31 = vpop.f32.mrf.mxu0  ;;  %v6954_v61 = vadd.f32 %v6923_v13, %v12402_v49 }
 0x858   : > { %10063 = vmatmul.msk.bf16.gmra.mxu1 %vm216_vm0, %v7370_v32  ;;  %v10498_v32 = vld [vmem:[#allocation3 + $0x6e8] sm:$0xff] }
 0x859   : > { %7661 = vmatpush.bf16.msrb.mxu2 %v10498_v32 }
 0x85c   : > { %v7053_v16 = vpop.f32.mrf.mxu2 }
 0x85d   : > { %v7084_v20 = vadd.f32 %v7053_v16, %v6954_v61  ;;  %v7183_v43 = vpop.f32.mrf.mxu3  ;;  %v6925_v7 = vpop.f32.mrf.mxu1  ;;  %v7364_v16 = vld [vmem:[#allocation2 + $0x63] sm:$0xff] }
 0x85e   : > { %v7313_v53 = vpop.f32.mrf.mxu0  ;;  %v12482_v18 = vadd.f32 %v6925_v7, %v12405_v26  ;;  %v7363_v7 = vld [vmem:[#allocation2 + $0x5b] sm:$0xff] }
 0x85f   : > { %v7214_v4 = vadd.f32 %v7183_v43, %v7084_v20 }
 0x861   : > { %v12484_v36 = vadd.f32 %v7313_v53, %v7214_v4  ;;  %v7372_v4 = vpack.c.bf16 %v7364_v16, %v7363_v7 }
 0x864   : > { %v12486_v50 = vpop.f32.mrf.mxu2 }
 0x865   : > { %v12488_v49 = vpop.f32.mrf.mxu3  ;;  %v6928_v30 = vpop.f32.mrf.mxu1 }
 0x866   : > { %v12490_v40 = vpop.f32.mrf.mxu0  ;;  %v6956_v38 = vadd.f32 %v6928_v30, %v12412_v51 }
 0x868   : > { %10064 = vmatmul.msk.bf16.gmra.mxu1 %vm216_vm0, %v7371_v33 }
 0x86c   : > { %v7058_v21 = vpop.f32.mrf.mxu2 }
 0x86d   : > { %v7086_v55 = vadd.f32 %v7058_v21, %v6956_v38  ;;  %v7188_v26 = vpop.f32.mrf.mxu3  ;;  %v12494_v22 = vpop.f32.mrf.mxu1 }
 0x86e   : > { %v7318_v13 = vpop.f32.mrf.mxu0 }
 0x86f   : > { %v7216_v44 = vadd.f32 %v7188_v26, %v7086_v55 }
 0x871   : > { %v12496_v61 = vadd.f32 %v7318_v13, %v7216_v44  ;;  %v7365_v13 = vld [vmem:[#allocation2 + $0x6b] sm:$0xff]  ;;  %v7366_v44 = vld [vmem:[#allocation2 + $0x73] sm:$0xff] }
 0x874   : > { %v12498_v27 = vpop.f32.mrf.mxu2 }
 0x875   : > { %v12500_v20 = vpop.f32.mrf.mxu3  ;;  %v6933_v51 = vpop.f32.mrf.mxu1 }
 0x876   : > { %v12502_v43 = vpop.f32.mrf.mxu0  ;;  %v6958_v53 = vadd.f32 %v6933_v51, %v12426_v19  ;;  %v7373_v51 = vpack.c.bf16 %v7366_v44, %v7365_v13 }
 0x878   : > { %10065 = vmatmul.msk.bf16.gmra.mxu1 %vm216_vm0, %v7372_v4 }
 0x87c   : > { %v7063_v39 = vpop.f32.mrf.mxu2 }
 0x87d   : > { %v7088_v30 = vadd.f32 %v7063_v39, %v6958_v53  ;;  %v7193_v29 = vpop.f32.mrf.mxu3  ;;  %v12506_v38 = vpop.f32.mrf.mxu1 }
 0x87e   : > { %v7323_v33 = vpop.f32.mrf.mxu0 }
 0x87f   : > { %v7218_v21 = vadd.f32 %v7193_v29, %v7088_v30 }
 0x881   : > { %v12508_v55 = vadd.f32 %v7323_v33, %v7218_v21  ;;  %v10497_v33 = vld [vmem:[#allocation3 + $0x6e0] sm:$0xff] }
 0x882   : > { %7662 = vmatpush.bf16.msrb.mxu2 %v10497_v33 }
 0x884   : > { %v12510_v26 = vpop.f32.mrf.mxu2 }
 0x885   : > { %v12512_v32 = vpop.f32.mrf.mxu3  ;;  %v6938_v60 = vpop.f32.mrf.mxu1 }
 0x886   : > { %v12514_v19 = vpop.f32.mrf.mxu0  ;;  %v6960_v16 = vadd.f32 %v6938_v60, %v12440_v11  ;;  %v7374_v60 = vpack.c.bf16 %v7367_v2, %v7367_v2  ;;  %v10503_v2 = vld [vmem:[#allocation3 + $0x710] sm:$0xff] }
 0x888   : > { %10066 = vmatmul.msk.bf16.gmra.mxu1 %vm216_vm0, %v7373_v51  ;;  %v10496_v51 = vld [vmem:[#allocation3 + $0x6d8] sm:$0xff] }
 0x889   : > { %7747 = vmatpush.bf16.msra.mxu3 %v10496_v51 }
 0x88c   : > { %v7068_v7 = vpop.f32.mrf.mxu2 }
 0x88d   : > { %v7090_v53 = vadd.f32 %v7068_v7, %v6960_v16  ;;  %v7198_v4 = vpop.f32.mrf.mxu3  ;;  %v12518_v39 = vpop.f32.mrf.mxu1  ;;  %v10504_v7 = vld [vmem:[#allocation3 + $0x718] sm:$0xff]  ;;  %7748 = vmatpush.bf16.msra.mxu3 %v10495_v47 }
 0x88e   : > { %v7328_v30 = vpop.f32.mrf.mxu0  ;;  %7864 = vmatpush.bf16.msra.mxu0 %v10504_v7  ;;  %v10493_v7 = vld [vmem:[#allocation3 + $0x6c0] sm:$0xff] }
 0x88f   : > { %v7220_v29 = vadd.f32 %v7198_v4, %v7090_v53 }
 0x891   : > { %v12520_v21 = vadd.f32 %v7328_v30, %v7220_v29 }
 0x892   : > { %7865 = vmatpush.bf16.msra.mxu0 %v10503_v2 }
 0x894   : > { %v12522_v23 = vpop.f32.mrf.mxu2 }
 0x895   : > { %v12524_v10 = vpop.f32.mrf.mxu3  ;;  %v6943_v11 = vpop.f32.mrf.mxu1 }
 0x896   : > { %v12526_v13 = vpop.f32.mrf.mxu0  ;;  %v6962_v44 = vadd.f32 %v6943_v11, %v12454_v48  ;;  %v10502_v11 = vld [vmem:[#allocation3 + $0x708] sm:$0xff] }
 0x897   : > { %13027 = vst [vmem:[#allocation8_spill] sm:$0xff] %v12526_v13  ;;  %v10508_v13 = vld [vmem:[#allocation3 + $0x738] sm:$0xff]  ;;  %7866 = vmatpush.bf16.msra.mxu0 %v10502_v11 }
 0x898   : > { %10067 = vmatmul.msk.bf16.gmra.mxu1 %vm216_vm0, %v7374_v60  ;;  %v10494_v60 = vld [vmem:[#allocation3 + $0x6c8] sm:$0xff]  ;;  %v10512_v11 = vld [vmem:[#allocation3 + $0x758] sm:$0xff] }
 0x899   : > { %7749 = vmatpush.bf16.msra.mxu3 %v10494_v60  ;;  %7994 = vmatpush.bf16.msra.mxu1 %v10508_v13  ;;  %v7083_v13 = vadd.f32 %v12473_v35, %v12469_v5 }
 0x89a   : > { %8124 = vmatpush.bf16.msra.mxu2 %v10512_v11 }
 0x89c   : > { %v7073_v16 = vpop.f32.mrf.mxu2 }
 0x89d   : > { %v7092_v53 = vadd.f32 %v7073_v16, %v6962_v44  ;;  %v7203_v4 = vpop.f32.mrf.mxu3  ;;  %v12530_v30 = vpop.f32.mrf.mxu1  ;;  %7750 = vmatpush.bf16.msra.mxu3 %v10493_v7 }
 0x89e   : > { %v7333_v29 = vpop.f32.mrf.mxu0 }
 0x89f   : > { %v7222_v33 = vadd.f32 %v7203_v4, %v7092_v53  ;;  %v10501_v53 = vld [vmem:[#allocation3 + $0x700] sm:$0xff]  ;;  %v10507_v4 = vld [vmem:[#allocation3 + $0x730] sm:$0xff] }
 0x8a0   : > { %7867 = vmatpush.bf16.msra.mxu0 %v10501_v53  ;;  %7995 = vmatpush.bf16.msra.mxu1 %v10507_v4  ;;  %v13032_v4 = vld [vmem:[#allocation25_spill] sm:$0xff] }
 0x8a1   : > { %v12532_v8 = vadd.f32 %v7333_v29, %v7222_v33  ;;  %v10506_v29 = vld [vmem:[#allocation3 + $0x728] sm:$0xff] }
 0x8a3   : > { %13028 = vst [vmem:[#allocation9_spill] sm:$0xff] %v12532_v8 }
 0x8a4   : > { %v12534_v48 = vpop.f32.mrf.mxu2  ;;  %7996 = vmatpush.bf16.msra.mxu1 %v10506_v29 }
 0x8a5   : > { %13029 = vst [vmem:[#allocation6_spill] sm:$0xff] %v12534_v48  ;;  %v12536_v25 = vpop.f32.mrf.mxu3  ;;  %v6948_v44 = vpop.f32.mrf.mxu1 }
 0x8a6   : > { %13030 = vst [vmem:[#allocation7_spill] sm:$0xff] %v12536_v25  ;;  %v12538_v16 = vpop.f32.mrf.mxu0  ;;  %v6964_v51 = vadd.f32 %v6948_v44, %v12464_v63  ;;  %v12548_v44 = vld [vmem:[%s12857_s2 + $0x5] ss:$0 sm:$0xff] }
 0x8a7   : > { %13031 = vst [vmem:[#allocation13_spill] sm:$0xff] %v12538_v16  ;;  %v10505_v16 = vld [vmem:[#allocation3 + $0x720] sm:$0xff] }
 0x8a8   : > { %7997 = vmatpush.bf16.msra.mxu1 %v10505_v16 }
 0x8ac   : > { %v7078_v47 = vpop.f32.mrf.mxu2 }
 0x8ad   : > { %v7094_v33 = vadd.f32 %v7078_v47, %v6964_v51  ;;  %v7208_v2 = vpop.f32.mrf.mxu3  ;;  %v6950_v8 = vpop.f32.mrf.mxu1  ;;  %v6315_v47 = vmul.f32 2.0, %v13032_v4 }
 0x8ae   : > { %v7338_v25 = vpop.f32.mrf.mxu0 }
 0x8af   : > { %v7224_v48 = vadd.f32 %v7208_v2, %v7094_v33 }
 0x8b1   : > { %v12541_v60 = vadd.f32 %v7338_v25, %v7224_v48  ;;  %v7213_v25 = vadd.f32 %v12475_v41, %v7083_v13  ;;  %v7085_v41 = vadd.f32 %v12486_v50, %v12482_v18 }
 0x8b3   : > { %v7343_v5 = vadd.f32 %v12477_v31, %v7213_v25  ;;  %v7786_v31 = vld [vmem:[#allocation2 + $0x7] sm:$0xff]  ;;  %v7215_v4 = vadd.f32 %v12488_v49, %v7085_v41 }
 0x8b4   : > { %v7080_v63 = vpop.f32.mrf.mxu2 }
 0x8b5   : > { %v7210_v51 = vpop.f32.mrf.mxu3  ;;  %v7438_v8 = vpop.f32.mrf.mxu1  ;;  %v13033_v63 = vld [vmem:[#allocation24_spill] sm:$0xff]  ;;  %v7345_v49 = vadd.f32 %v12490_v40, %v7215_v4 }
 0x8b6   : > { %v7340_v7 = vpop.f32.mrf.mxu0  ;;  %v7472_v53 = vadd.f32 %v7438_v8, %v12471_v3  ;;  %v6316_v13 = vmul.f32 2.0, %v13033_v63 }
 0x8b7   : > { %v7581_v7 = vld [vmem:[#allocation2 + $0x6] sm:$0xff] }
 0x8b8   : > { %v7487_v48 = vadd.f32 %v12548_v44, %v7472_v53  ;;  %v7552_v53 = vld [vmem:[#allocation2 + $0x5] sm:$0xff] }
 0x8ba   : > { %v7500_v16 = vmul.f32 %v7487_v48, %v11041_v37 }
 0x8bc   : > { %v7513_v35 = vmul.f32 0.1, %v7500_v16  ;;  %v6554_v16 = vadd.f32 %v12415_v1, %v12410_v62  ;;  %v13034_v1 = vld [vmem:[#allocation15_spill] sm:$0xff] }
 0x8bd   : > { %v7440_v29 = vpop.f32.mrf.mxu1 }
 0x8be   : > { %v7526_v33 = vadd.f32 %v7513_v35, %v6315_v47  ;;  %v7473_v2 = vadd.f32 %v7440_v29, %v7343_v5  ;;  %v6697_v62 = vadd.f32 %v12417_v9, %v6554_v16 }
 0x8c0   : > { %7539 = vst.msk [vmem:[#allocation2 + $0x10] sm:$0xff] %vm216_vm0, %v7526_v33  ;;  %v7488_v11 = vadd.f32 %v12548_v44, %v7473_v2 }
 0x8c2   : > { %v7501_v3 = vmul.f32 %v7488_v11, %v11053_v42 }
 0x8c4   : > { %v7514_v51 = vmul.f32 0.1, %v7501_v3 }
 0x8c5   : > { %v7443_v8 = vpop.f32.mrf.mxu1 }
 0x8c6   : > { %v7527_v25 = vadd.f32 %v7514_v51, %v6316_v13  ;;  %v7474_v48 = vadd.f32 %v7443_v8, %v12484_v36  ;;  %v6317_v36 = vmul.f32 2.0, %v13034_v1  ;;  %v6827_v13 = vadd.f32 %v12419_v12, %v6697_v62 }
 0x8c7   : > { %v7582_v47 = vld [vmem:[#allocation2 + $0xe] sm:$0xff] }
 0x8c8   : > { %v7553_v5 = vld [vmem:[#allocation2 + $0xd] sm:$0xff]  ;;  %7540 = vst.msk [vmem:[#allocation2 + $0x18] sm:$0xff] %vm216_vm0, %v7527_v25  ;;  %v7489_v18 = vadd.f32 %v12548_v44, %v7474_v48  ;;  %v7594_v50 = vpack.c.bf16 %v7582_v47, %v7581_v7  ;;  %v6957_v9 = vadd.f32 %v12494_v22, %v6827_v13 }
 0x8c9   : > { %v7787_v35 = vld [vmem:[#allocation2 + $0xf] sm:$0xff]  ;;  %v7565_v29 = vpack.c.bf16 %v7553_v5, %v7552_v53  ;;  %v10511_v53 = vld [vmem:[#allocation3 + $0x750] sm:$0xff] }
 0x8ca   : > { %v7799_v33 = vpack.c.bf16 %v7787_v35, %v7786_v31  ;;  %v7502_v2 = vmul.f32 %v7489_v18, %v11067_v45  ;;  %10084 = vmatmul.msk.bf16.vlgmr.msrb.gmra.mxu2 %vm216_vm0, %v7594_v50  ;;  %v7087_v40 = vadd.f32 %v12498_v27, %v6957_v9  ;;  %v13035_v25 = vld [vmem:[#allocation27_spill] sm:$0xff] }
 0x8cb   : > { %10107 = vmatmul.msk.bf16.vlgmr.msra.gmra.mxu3 %vm216_vm0, %v7565_v29  ;;  %8125 = vmatpush.bf16.msra.mxu2 %v10511_v53  ;;  %v6318_v48 = vmul.f32 2.0, %v13035_v25  ;;  %v13037_v53 = vld [vmem:[#allocation30_spill] sm:$0xff] }
 0x8cc   : > { %10130 = vmatmul.msk.bf16.vlgmr.msra.gmra.mxu0 %vm216_vm0, %v7799_v33  ;;  %v7515_v11 = vmul.f32 0.1, %v7502_v2  ;;  %v7217_v22 = vadd.f32 %v12500_v20, %v7087_v40  ;;  %v6320_v9 = vmul.f32 2.0, %v13037_v53 }
 0x8cd   : > { %v7445_v3 = vpop.f32.mrf.mxu1 }
 0x8ce   : > { %v7528_v41 = vadd.f32 %v7515_v11, %v6317_v36  ;;  %v7475_v63 = vadd.f32 %v7445_v3, %v7345_v49  ;;  %v7347_v20 = vadd.f32 %v12502_v43, %v7217_v22 }
 0x8cf   : > { %v7917_v51 = vld [vmem:[#allocation2 + $0x17] sm:$0xff] }
 0x8d0   : > { %7541 = vst.msk [vmem:[#allocation2 + $0x20] sm:$0xff] %vm216_vm0, %v7528_v41  ;;  %v7490_v8 = vadd.f32 %v12548_v44, %v7475_v63  ;;  %v7929_v7 = vpack.c.bf16 %v7917_v51, %v7787_v35  ;;  %v7583_v5 = vld [vmem:[#allocation2 + $0x16] sm:$0xff]  ;;  %v6559_v35 = vadd.f32 %v12429_v34, %v12424_v56  ;;  %v13036_v34 = vld [vmem:[#allocation26_spill] sm:$0xff] }
 0x8d1   : > { %v7554_v18 = vld [vmem:[#allocation2 + $0x15] sm:$0xff] }
 0x8d2   : > { %v7503_v31 = vmul.f32 %v7490_v8, %v11086_v52  ;;  %10153 = vmatmul.msk.bf16.vlgmr.msra.gmra.mxu1 %vm216_vm0, %v7929_v7  ;;  %v6699_v56 = vadd.f32 %v12431_v6, %v6559_v35 }
 0x8d4   : > { %v7516_v16 = vmul.f32 0.1, %v7503_v31  ;;  %v6829_v63 = vadd.f32 %v12433_v57, %v6699_v56 }
 0x8d5   : > { %v7448_v12 = vpop.f32.mrf.mxu1 }
 0x8d6   : > { %v7529_v4 = vadd.f32 %v7516_v16, %v6318_v48  ;;  %v7476_v47 = vadd.f32 %v7448_v12, %v12496_v61  ;;  %v6319_v61 = vmul.f32 2.0, %v13036_v34  ;;  %v6959_v6 = vadd.f32 %v12506_v38, %v6829_v63 }
 0x8d7   : > { %v7584_v50 = vld [vmem:[#allocation2 + $0x1e] sm:$0xff]  ;;  %v6564_v12 = vadd.f32 %v12443_v54, %v12438_v58  ;;  %v13038_v54 = vld [vmem:[#allocation31_spill] sm:$0xff] }
 0x8d8   : > { %v7555_v29 = vld [vmem:[#allocation2 + $0x1d] sm:$0xff]  ;;  %7542 = vst.msk [vmem:[#allocation2 + $0x28] sm:$0xff] %vm216_vm0, %v7529_v4  ;;  %v7491_v27 = vadd.f32 %v12548_v44, %v7476_v47  ;;  %v7595_v2 = vpack.c.bf16 %v7584_v50, %v7583_v5  ;;  %v7089_v43 = vadd.f32 %v12510_v26, %v6959_v6  ;;  %v10510_v50 = vld [vmem:[#allocation3 + $0x748] sm:$0xff] }
 0x8d9   : > { %v7789_v33 = vld [vmem:[#allocation2 + $0x1f] sm:$0xff]  ;;  %v7566_v62 = vpack.c.bf16 %v7555_v29, %v7554_v18  ;;  %v6701_v58 = vadd.f32 %v12445_v14, %v6564_v12  ;;  %8126 = vmatpush.bf16.msra.mxu2 %v10510_v50 }
 0x8da   : > { %v7800_v1 = vpack.c.bf16 %v7789_v33, %v7917_v51  ;;  %v7504_v36 = vmul.f32 %v7491_v27, %v11099_v0  ;;  %10085 = vmatmul.msk.bf16.gmra.mxu2 %vm216_vm0, %v7595_v2  ;;  %v7219_v38 = vadd.f32 %v12512_v32, %v7089_v43  ;;  %v6321_v32 = vmul.f32 2.0, %v13038_v54  ;;  %v13045_v50 = vld [vmem:[#allocation16_spill] sm:$0xff] }
 0x8db   : > { %10108 = vmatmul.msk.bf16.gmra.mxu3 %vm216_vm0, %v7566_v62 }
 0x8dc   : > { %10131 = vmatmul.msk.bf16.gmra.mxu0 %vm216_vm0, %v7800_v1  ;;  %v7517_v49 = vmul.f32 0.1, %v7504_v36  ;;  %v7349_v29 = vadd.f32 %v12514_v19, %v7219_v38  ;;  %v6831_v1 = vadd.f32 %v12447_v24, %v6701_v58  ;;  %v13046_v58 = vld [vmem:[#allocation6_spill] sm:$0xff] }
 0x8dd   : > { %v7450_v11 = vpop.f32.mrf.mxu1 }
 0x8de   : > { %v7530_v3 = vadd.f32 %v7517_v49, %v6319_v61  ;;  %v7477_v41 = vadd.f32 %v7450_v11, %v7347_v20  ;;  %v6961_v14 = vadd.f32 %v12518_v39, %v6831_v1  ;;  %v13039_v20 = vld [vmem:[#allocation17_spill] sm:$0xff] }
 0x8df   : > { %v7919_v13 = vld [vmem:[#allocation2 + $0x27] sm:$0xff]  ;;  %v6322_v49 = vmul.f32 2.0, %v13039_v20 }
 0x8e0   : > { %7543 = vst.msk [vmem:[#allocation2 + $0x30] sm:$0xff] %vm216_vm0, %v7530_v3  ;;  %v7492_v51 = vadd.f32 %v12548_v44, %v7477_v41  ;;  %v7930_v8 = vpack.c.bf16 %v7919_v13, %v7789_v33  ;;  %v7585_v48 = vld [vmem:[#allocation2 + $0x26] sm:$0xff]  ;;  %v7091_v19 = vadd.f32 %v12522_v23, %v6961_v14 }
 0x8e1   : > { %v7556_v16 = vld [vmem:[#allocation2 + $0x25] sm:$0xff] }
 0x8e2   : > { %v7505_v7 = vmul.f32 %v7492_v51, %v11118_v17  ;;  %10154 = vmatmul.msk.bf16.gmra.mxu1 %vm216_vm0, %v7930_v8  ;;  %v6569_v51 = vadd.f32 %v12457_v59, %v12452_v15  ;;  %v7221_v39 = vadd.f32 %v12524_v10, %v7091_v19  ;;  %v13042_v10 = vld [vmem:[#allocation28_spill] sm:$0xff] }
 0x8e3   : > { %v6323_v59 = vmul.f32 2.0, %v13042_v10 }
 0x8e4   : > { %v7518_v31 = vmul.f32 0.1, %v7505_v7 }
 0x8e5   : > { %v7453_v40 = vpop.f32.mrf.mxu1 }
 0x8e6   : > { %v7531_v25 = vadd.f32 %v7518_v31, %v6320_v9  ;;  %v7478_v57 = vadd.f32 %v7453_v40, %v12508_v55  ;;  %v13040_v31 = vld [vmem:[#allocation14_spill] sm:$0xff] }
 0x8e7   : > { %v7586_v4 = vld [vmem:[#allocation2 + $0x2e] sm:$0xff] }
 0x8e8   : > { %v7557_v47 = vld [vmem:[#allocation2 + $0x2d] sm:$0xff]  ;;  %7544 = vst.msk [vmem:[#allocation2 + $0x38] sm:$0xff] %vm216_vm0, %v7531_v25  ;;  %v7493_v26 = vadd.f32 %v12548_v44, %v7478_v57  ;;  %v7596_v18 = vpack.c.bf16 %v7586_v4, %v7585_v48  ;;  %v13043_v25 = vld [vmem:[#allocation8_spill] sm:$0xff] }
 0x8e9   : > { %v7791_v5 = vld [vmem:[#allocation2 + $0x2f] sm:$0xff]  ;;  %v7567_v35 = vpack.c.bf16 %v7557_v47, %v7556_v16  ;;  %v7351_v57 = vadd.f32 %v13043_v25, %v7221_v39 }
 0x8ea   : > { %v7801_v22 = vpack.c.bf16 %v7791_v5, %v7919_v13  ;;  %v7506_v55 = vmul.f32 %v7493_v26, %v11137_v28  ;;  %10086 = vmatmul.msk.bf16.gmra.mxu2 %vm216_vm0, %v7596_v18  ;;  %v13044_v4 = vld [vmem:[#allocation23_spill] sm:$0xff] }
 0x8eb   : > { %10109 = vmatmul.msk.bf16.gmra.mxu3 %vm216_vm0, %v7567_v35  ;;  %v10509_v35 = vld [vmem:[#allocation3 + $0x740] sm:$0xff] }
 0x8ec   : > { %10132 = vmatmul.msk.bf16.gmra.mxu0 %vm216_vm0, %v7801_v22  ;;  %v7519_v33 = vmul.f32 0.1, %v7506_v55  ;;  %8127 = vmatpush.bf16.msra.mxu2 %v10509_v35 }
 0x8ed   : > { %v7455_v27 = vpop.f32.mrf.mxu1 }
 0x8ee   : > { %v7532_v2 = vadd.f32 %v7519_v33, %v6321_v32  ;;  %v7479_v62 = vadd.f32 %v7455_v27, %v7349_v29  ;;  %v13047_v32 = vld [vmem:[#allocation29_spill] sm:$0xff] }
 0x8ef   : > { %v7921_v36 = vld [vmem:[#allocation2 + $0x37] sm:$0xff]  ;;  %v6324_v29 = vmul.f32 2.0, %v13047_v32 }
 0x8f0   : > { %7545 = vst.msk [vmem:[#allocation2 + $0x40] sm:$0xff] %vm216_vm0, %v7532_v2  ;;  %v7494_v56 = vadd.f32 %v12548_v44, %v7479_v62  ;;  %v7931_v34 = vpack.c.bf16 %v7921_v36, %v7791_v5  ;;  %v7587_v63 = vld [vmem:[#allocation2 + $0x36] sm:$0xff]  ;;  %v13048_v62 = vld [vmem:[#allocation9_spill] sm:$0xff] }
 0x8f1   : > { %v7558_v13 = vld [vmem:[#allocation2 + $0x35] sm:$0xff] }
 0x8f2   : > { %v7507_v61 = vmul.f32 %v7494_v56, %v11152_v46  ;;  %10155 = vmatmul.msk.bf16.gmra.mxu1 %vm216_vm0, %v7931_v34  ;;  %v13049_v34 = vld [vmem:[#allocation7_spill] sm:$0xff] }
 0x8f4   : > { %v7520_v11 = vmul.f32 0.1, %v7507_v61 }
 0x8f5   : > { %v7458_v3 = vpop.f32.mrf.mxu1 }
 0x8f6   : > { %v7533_v41 = vadd.f32 %v7520_v11, %v6322_v49  ;;  %v7480_v24 = vadd.f32 %v7458_v3, %v12520_v21  ;;  %v13041_v21 = vld [vmem:[#allocation11_spill] sm:$0xff] }
 0x8f7   : > { %v7588_v8 = vld [vmem:[#allocation2 + $0x3e] sm:$0xff]  ;;  %v6703_v15 = vadd.f32 %v13041_v21, %v6569_v51  ;;  %v13051_v51 = vld [vmem:[#allocation19_spill] sm:$0xff] }
 0x8f8   : > { %v7559_v6 = vld [vmem:[#allocation2 + $0x3d] sm:$0xff]  ;;  %7546 = vst.msk [vmem:[#allocation2 + $0x48] sm:$0xff] %vm216_vm0, %v7533_v41  ;;  %v7495_v23 = vadd.f32 %v12548_v44, %v7480_v24  ;;  %v7597_v43 = vpack.c.bf16 %v7588_v8, %v7587_v63  ;;  %v13050_v41 = vld [vmem:[#allocation18_spill] sm:$0xff]  ;;  %v6325_v39 = vmul.f32 2.0, %v13051_v51 }
 0x8f9   : > { %v7793_v7 = vld [vmem:[#allocation2 + $0x3f] sm:$0xff]  ;;  %v7568_v53 = vpack.c.bf16 %v7559_v6, %v7558_v13  ;;  %v6833_v47 = vadd.f32 %v13044_v4, %v6703_v15 }
 0x8fa   : > { %v7802_v9 = vpack.c.bf16 %v7793_v7, %v7921_v36  ;;  %v7508_v40 = vmul.f32 %v7495_v23, %v13040_v31  ;;  %10087 = vmatmul.msk.bf16.gmra.mxu2 %vm216_vm0, %v7597_v43  ;;  %v10516_v63 = vld [vmem:[#allocation3 + $0x778] sm:$0xff]  ;;  %v10515_v43 = vld [vmem:[#allocation3 + $0x770] sm:$0xff] }
 0x8fb   : > { %10110 = vmatmul.msk.bf16.gmra.mxu3 %vm216_vm0, %v7568_v53  ;;  %v6963_v22 = vadd.f32 %v12530_v30, %v6833_v47  ;;  %v10520_v13 = vld [vmem:[#allocation3 + $0x798] sm:$0xff]  ;;  %v10519_v53 = vld [vmem:[#allocation3 + $0x790] sm:$0xff] }
 0x8fc   : > { %10133 = vmatmul.msk.bf16.gmra.mxu0 %vm216_vm0, %v7802_v9  ;;  %v7521_v48 = vmul.f32 0.1, %v7508_v40  ;;  %v13052_v8 = vld [vmem:[#allocation13_spill] sm:$0xff]  ;;  %8254 = vmatpush.bf16.msrb.mxu3 %v10516_v63 }
 0x8fd   : > { %v7460_v16 = vpop.f32.mrf.mxu1  ;;  %v7093_v54 = vadd.f32 %v13046_v58, %v6963_v22  ;;  %8384 = vmatpush.bf16.msrb.mxu0 %v10520_v13  ;;  %v10523_v58 = vld [vmem:[#allocation3 + $0x7b0] sm:$0xff] }
 0x8fe   : > { %v7534_v12 = vadd.f32 %v7521_v48, %v6323_v59  ;;  %v7481_v38 = vadd.f32 %v7460_v16, %v7351_v57  ;;  %v13053_v59 = vld [vmem:[#allocation20_spill] sm:$0xff]  ;;  %v10514_v57 = vld [vmem:[#allocation3 + $0x768] sm:$0xff]  ;;  %v10524_v16 = vld [vmem:[#allocation3 + $0x7b8] sm:$0xff] }
 0x8ff   : > { %v7923_v5 = vld [vmem:[#allocation2 + $0x47] sm:$0xff]  ;;  %v7223_v14 = vadd.f32 %v13049_v34, %v7093_v54  ;;  %v10518_v48 = vld [vmem:[#allocation3 + $0x788] sm:$0xff]  ;;  %8514 = vmatpush.bf16.msrb.mxu1 %v10524_v16 }
 0x900   : > { %7547 = vst.msk [vmem:[#allocation2 + $0x50] sm:$0xff] %vm216_vm0, %v7534_v12  ;;  %v7496_v26 = vadd.f32 %v12548_v44, %v7481_v38  ;;  %v7932_v18 = vpack.c.bf16 %v7923_v5, %v7793_v7  ;;  %v7589_v36 = vld [vmem:[#allocation2 + $0x46] sm:$0xff]  ;;  %8255 = vmatpush.bf16.msrb.mxu3 %v10515_v43  ;;  %v13054_v12 = vld [vmem:[#allocation32_spill] sm:$0xff] }
 0x901   : > { %v7560_v56 = vld [vmem:[#allocation2 + $0x45] sm:$0xff]  ;;  %v7353_v6 = vadd.f32 %v13052_v8, %v7223_v14  ;;  %8385 = vmatpush.bf16.msrb.mxu0 %v10519_v53  ;;  %v6326_v38 = vmul.f32 2.0, %v13054_v12  ;;  %v10527_v43 = vld [vmem:[#allocation3 + $0x7d0] sm:$0xff]  ;;  %v8046_v53 = vld [vmem:[#allocation2 + $0x10] sm:$0xff] }
 0x902   : > { %v7509_v55 = vmul.f32 %v7496_v26, %v13045_v50  ;;  %10156 = vmatmul.msk.bf16.gmra.mxu1 %vm216_vm0, %v7932_v18  ;;  %v10517_v26 = vld [vmem:[#allocation3 + $0x780] sm:$0xff]  ;;  %v13056_v34 = vld [vmem:[#allocation21_spill] sm:$0xff]  ;;  %v8309_v12 = vld [vmem:[#allocation2 + $0x31] sm:$0xff] }
 0x903   : > { %8515 = vmatpush.bf16.msrb.mxu1 %v10523_v58  ;;  %v6327_v14 = vmul.f32 2.0, %v13056_v34  ;;  %v8179_v16 = vld [vmem:[#allocation2 + $0x29] sm:$0xff] }
 0x904   : > { %v7522_v33 = vmul.f32 0.1, %v7509_v55  ;;  %8256 = vmatpush.bf16.msrb.mxu3 %v10514_v57 }
 0x905   : > { %v7463_v27 = vpop.f32.mrf.mxu1  ;;  %8386 = vmatpush.bf16.msrb.mxu0 %v10518_v48  ;;  %v8049_v48 = vld [vmem:[#allocation2 + $0x28] sm:$0xff] }
 0x906   : > { %v7535_v2 = vadd.f32 %v7522_v33, %v6324_v29  ;;  %v7482_v1 = vadd.f32 %v7463_v27, %v13048_v62 }
 0x907   : > { %v7590_v61 = vld [vmem:[#allocation2 + $0x4e] sm:$0xff] }
 0x908   : > { %v7561_v30 = vld [vmem:[#allocation2 + $0x4d] sm:$0xff]  ;;  %7548 = vst.msk [vmem:[#allocation2 + $0x58] sm:$0xff] %vm216_vm0, %v7535_v2  ;;  %v7497_v20 = vadd.f32 %v12548_v44, %v7482_v1  ;;  %v7598_v49 = vpack.c.bf16 %v7590_v61, %v7589_v36 }
 0x909   : > { %v7795_v19 = vld [vmem:[#allocation2 + $0x4f] sm:$0xff]  ;;  %v7569_v11 = vpack.c.bf16 %v7561_v30, %v7560_v56  ;;  %8387 = vmatpush.bf16.msrb.mxu0 %v10517_v26  ;;  %v8320_v26 = vpack.c.bf16 %v8309_v12, %v8179_v16 }
 0x90a   : > { %v7803_v3 = vpack.c.bf16 %v7795_v19, %v7923_v5  ;;  %v7510_v24 = vmul.f32 %v7497_v20, %v13050_v41  ;;  %10088 = vmatmul.msk.bf16.gmra.mxu2 %vm216_vm0, %v7598_v49  ;;  %v10513_v5 = vld [vmem:[#allocation3 + $0x760] sm:$0xff]  ;;  %v10522_v56 = vld [vmem:[#allocation3 + $0x7a8] sm:$0xff] }
 0x90b   : > { %10111 = vmatmul.msk.bf16.gmra.mxu3 %vm216_vm0, %v7569_v11  ;;  %v13055_v1 = vld [vmem:[#allocation22_spill] sm:$0xff]  ;;  %8516 = vmatpush.bf16.msrb.mxu1 %v10522_v56  ;;  %v8181_v56 = vld [vmem:[#allocation2 + $0x39] sm:$0xff] }
 0x90c   : > { %10134 = vmatmul.msk.bf16.gmra.mxu0 %vm216_vm0, %v7803_v3  ;;  %v7523_v7 = vmul.f32 0.1, %v7510_v24  ;;  %8257 = vmatpush.bf16.msrb.mxu3 %v10513_v5  ;;  %v10521_v20 = vld [vmem:[#allocation3 + $0x7a0] sm:$0xff] }
 0x90d   : > { %v7465_v23 = vpop.f32.mrf.mxu1 }
 0x90e   : > { %v7536_v9 = vadd.f32 %v7523_v7, %v6325_v39  ;;  %v7483_v40 = vadd.f32 %v7465_v23, %v7353_v6  ;;  %v8047_v6 = vld [vmem:[#allocation2 + $0x18] sm:$0xff]  ;;  %v8307_v23 = vld [vmem:[#allocation2 + $0x21] sm:$0xff] }
 0x90f   : > { %v7925_v21 = vld [vmem:[#allocation2 + $0x57] sm:$0xff]  ;;  %8517 = vmatpush.bf16.msrb.mxu1 %v10521_v20  ;;  %v8190_v5 = vpack.c.bf16 %v8179_v16, %v8307_v23 }
 0x910   : > { %7549 = vst.msk [vmem:[#allocation2 + $0x60] sm:$0xff] %vm216_vm0, %v7536_v9  ;;  %v7498_v15 = vadd.f32 %v12548_v44, %v7483_v40  ;;  %v7933_v10 = vpack.c.bf16 %v7925_v21, %v7795_v19  ;;  %v7591_v22 = vld [vmem:[#allocation2 + $0x56] sm:$0xff]  ;;  %v8059_v40 = vpack.c.bf16 %v8047_v6, %v8046_v53 }
 0x911   : > { %v7562_v55 = vld [vmem:[#allocation2 + $0x55] sm:$0xff] }
 0x912   : > { %v7511_v25 = vmul.f32 %v7498_v15, %v13053_v59  ;;  %10157 = vmatmul.msk.bf16.gmra.mxu1 %vm216_vm0, %v7933_v10  ;;  %v8177_v7 = vld [vmem:[#allocation2 + $0x19] sm:$0xff]  ;;  %v8176_v9 = vld [vmem:[#allocation2 + $0x11] sm:$0xff]  ;;  %v8437_v10 = vld [vmem:[#allocation2 + $0x22] sm:$0xff] }
 0x913   : > { %v8319_v15 = vpack.c.bf16 %v8307_v23, %v8177_v7 }
 0x914   : > { %v7524_v4 = vmul.f32 0.1, %v7511_v25  ;;  %v8436_v25 = vld [vmem:[#allocation2 + $0x1a] sm:$0xff] }
 0x915   : > { %v7468_v47 = vpop.f32.mrf.mxu1  ;;  %v8449_v57 = vpack.c.bf16 %v8437_v10, %v8436_v25  ;;  %v8313_v10 = vld [vmem:[#allocation2 + $0x51] sm:$0xff] }
 0x916   : > { %v7537_v18 = vadd.f32 %v7524_v4, %v6326_v38  ;;  %v7484_v35 = vadd.f32 %v7468_v47, %v12541_v60  ;;  %v10528_v60 = vld [vmem:[#allocation3 + $0x7d8] sm:$0xff] }
 0x917   : > { %v7592_v54 = vld [vmem:[#allocation2 + $0x5e] sm:$0xff]  ;;  %8644 = vmatpush.bf16.msrb.mxu2 %v10528_v60 }
 0x918   : > { %v7563_v32 = vld [vmem:[#allocation2 + $0x5d] sm:$0xff]  ;;  %7550 = vst.msk [vmem:[#allocation2 + $0x68] sm:$0xff] %vm216_vm0, %v7537_v18  ;;  %v7499_v33 = vadd.f32 %v12548_v44, %v7484_v35  ;;  %v7599_v27 = vpack.c.bf16 %v7592_v54, %v7591_v22  ;;  %v8439_v22 = vld [vmem:[#allocation2 + $0x32] sm:$0xff]  ;;  %v8438_v54 = vld [vmem:[#allocation2 + $0x2a] sm:$0xff] }
 0x919   : > { %v7797_v29 = vld [vmem:[#allocation2 + $0x5f] sm:$0xff]  ;;  %v7570_v2 = vpack.c.bf16 %v7563_v32, %v7562_v55 }
 0x91a   : > { %v7804_v62 = vpack.c.bf16 %v7797_v29, %v7925_v21  ;;  %v7512_v36 = vmul.f32 %v7499_v33, %v13055_v1  ;;  %10089 = vmatmul.msk.bf16.gmra.mxu2 %vm216_vm0, %v7599_v27  ;;  %v8189_v21 = vpack.c.bf16 %v8177_v7, %v8176_v9  ;;  %v8048_v38 = vld [vmem:[#allocation2 + $0x20] sm:$0xff]  ;;  %v8450_v33 = vpack.c.bf16 %v8439_v22, %v8438_v54  ;;  %v8051_v60 = vld [vmem:[#allocation2 + $0x38] sm:$0xff]  ;;  %v10525_v22 = vld [vmem:[#allocation3 + $0x7c0] sm:$0xff] }
 0x91b   : > { %10112 = vmatmul.msk.bf16.gmra.mxu3 %vm216_vm0, %v7570_v2  ;;  %8645 = vmatpush.bf16.msrb.mxu2 %v10527_v43  ;;  %v8060_v47 = vpack.c.bf16 %v8049_v48, %v8048_v38  ;;  %v10526_v2 = vld [vmem:[#allocation3 + $0x7c8] sm:$0xff] }
 0x91c   : > { %10135 = vmatmul.msk.bf16.gmra.mxu0 %vm216_vm0, %v7804_v62  ;;  %v7525_v61 = vmul.f32 0.1, %v7512_v36 }
 0x91d   : > { %v7470_v44 = vpop.f32.mrf.mxu1 }
 0x91e   : > { %v7538_v30 = vadd.f32 %v7525_v61, %v6327_v14  ;;  %v8311_v14 = vld [vmem:[#allocation2 + $0x41] sm:$0xff]  ;;  %v8050_v44 = vld [vmem:[#allocation2 + $0x30] sm:$0xff] }
 0x91f   : > { %v7927_v19 = vld [vmem:[#allocation2 + $0x67] sm:$0xff]  ;;  %8646 = vmatpush.bf16.msrb.mxu2 %v10526_v2  ;;  %v8061_v20 = vpack.c.bf16 %v8051_v60, %v8050_v44  ;;  %v8185_v60 = vld [vmem:[#allocation2 + $0x59] sm:$0xff] }
 0x920   : > { %7551 = vst.msk [vmem:[#allocation2 + $0x70] sm:$0xf] %vm233_vm1, %v7538_v30  ;;  %v7934_v49 = vpack.c.bf16 %v7927_v19, %v7797_v29  ;;  %v7593_v11 = vld [vmem:[#allocation2 + $0x66] sm:$0xf] }
 0x921   : > { %v7564_v3 = vld [vmem:[#allocation2 + $0x65] sm:$0xf]  ;;  %v7600_v63 = vpack.c.bf16 %v7593_v11, %v7593_v11  ;;  %v8321_v11 = vpack.c.bf16 %v8311_v14, %v8181_v56 }
 0x922   : > { %10158 = vmatmul.msk.bf16.gmra.mxu1 %vm216_vm0, %v7934_v49  ;;  %v7798_v24 = vld [vmem:[#allocation2 + $0x67] sm:$0xf]  ;;  %v7571_v13 = vpack.c.bf16 %v7564_v3, %v7564_v3  ;;  %v8191_v49 = vpack.c.bf16 %v8181_v56, %v8309_v12 }
 0x923   : > { %v7805_v51 = vpack.c.bf16 %v7798_v24, %v7798_v24  ;;  %8647 = vmatpush.bf16.msrb.mxu2 %v10525_v22 }
 0x927   : > { %v7928_v39 = vld [vmem:[#allocation2 + $0x6f] sm:$0xf] }
 0x928   : > { %v7935_v8 = vpack.c.bf16 %v7928_v39, %v7928_v39  ;;  %v8446_v22 = vld [vmem:[#allocation2 + $0x6a] sm:$0xff] }
 0x92a   : > { %10090 = vmatmul.msk.bf16.gmra.mxu2 %vm216_vm0, %v7600_v63 }
 0x92b   : > { %10113 = vmatmul.msk.bf16.gmra.mxu3 %vm216_vm0, %v7571_v13  ;;  %v8441_v13 = vld [vmem:[#allocation2 + $0x42] sm:$0xff] }
 0x92c   : > { %10136 = vmatmul.msk.bf16.gmra.mxu0 %vm216_vm0, %v7805_v51 }
 0x932   : > { %10159 = vmatmul.msk.bf16.gmra.mxu1 %vm216_vm0, %v7935_v8  ;;  %v8440_v8 = vld [vmem:[#allocation2 + $0x3a] sm:$0xff] }
 0x933   : > { %v8451_v23 = vpack.c.bf16 %v8441_v13, %v8440_v8  ;;  %v8445_v13 = vld [vmem:[#allocation2 + $0x62] sm:$0xff]  ;;  %v8444_v8 = vld [vmem:[#allocation2 + $0x5a] sm:$0xff] }
 0x93a   : > { %10176 = vmatmul.msk.bf16.vlgmr.msra.gmra.mxu2 %vm216_vm0, %v8059_v40  ;;  %v8053_v40 = vld [vmem:[#allocation2 + $0x48] sm:$0xff] }
 0x93b   : > { %10199 = vmatmul.msk.bf16.vlgmr.msrb.gmra.mxu3 %vm216_vm0, %v8189_v21  ;;  %v8183_v21 = vld [vmem:[#allocation2 + $0x49] sm:$0xff] }
 0x93c   : > { %10222 = vmatmul.msk.bf16.vlgmr.msrb.gmra.mxu0 %vm216_vm0, %v8319_v15  ;;  %v8192_v38 = vpack.c.bf16 %v8183_v21, %v8311_v14 }
 0x942   : > { %10245 = vmatmul.msk.bf16.vlgmr.msrb.gmra.mxu1 %vm216_vm0, %v8449_v57  ;;  %v8052_v57 = vld [vmem:[#allocation2 + $0x40] sm:$0xff] }
 0x943   : > { %v8062_v12 = vpack.c.bf16 %v8053_v40, %v8052_v57 }
 0x949   : > { %v7869_v4 = vpop.f32.mrf.mxu0 }
 0x94a   : > { %10177 = vmatmul.msk.bf16.gmra.mxu2 %vm216_vm0, %v8060_v47 }
 0x94b   : > { %10200 = vmatmul.msk.bf16.gmra.mxu3 %vm216_vm0, %v8190_v5 }
 0x94c   : > { %10223 = vmatmul.msk.bf16.gmra.mxu0 %vm216_vm0, %v8320_v26 }
 0x94d   : > { %v7664_v18 = vpop.f32.mrf.mxu2 }
 0x94e   : > { %v7752_v35 = vpop.f32.mrf.mxu3 }
 0x94f   : > { %v7753_v55 = vadd.f32 %v7752_v35, %v7664_v18  ;;  %v7999_v58 = vpop.f32.mrf.mxu1  ;;  %v8443_v18 = vld [vmem:[#allocation2 + $0x52] sm:$0xff] }
 0x951   : > { %v7871_v32 = vpop.f32.mrf.mxu0  ;;  %v7903_v29 = vadd.f32 %v7869_v4, %v7753_v55  ;;  %v8322_v4 = vpack.c.bf16 %v8313_v10, %v8183_v21  ;;  %v8057_v21 = vld [vmem:[#allocation2 + $0x68] sm:$0xff] }
 0x952   : > { %10246 = vmatmul.msk.bf16.gmra.mxu1 %vm216_vm0, %v8450_v33 }
 0x953   : > { %v12682_v27 = vadd.f32 %v7999_v58, %v7903_v29  ;;  %v8442_v58 = vld [vmem:[#allocation2 + $0x4a] sm:$0xff] }
 0x954   : > { %v8452_v29 = vpack.c.bf16 %v8443_v18, %v8442_v58 }
 0x955   : > { %v7666_v62 = vpop.f32.mrf.mxu2 }
 0x956   : > { %v7754_v36 = vpop.f32.mrf.mxu3 }
 0x957   : > { %v7755_v34 = vadd.f32 %v7754_v36, %v7666_v62  ;;  %v8001_v61 = vpop.f32.mrf.mxu1  ;;  %v8055_v36 = vld [vmem:[#allocation2 + $0x58] sm:$0xff] }
 0x959   : > { %v7874_v30 = vpop.f32.mrf.mxu0  ;;  %v7904_v19 = vadd.f32 %v7871_v32, %v7755_v34  ;;  %v8315_v34 = vld [vmem:[#allocation2 + $0x61] sm:$0xff] }
 0x95a   : > { %10178 = vmatmul.msk.bf16.gmra.mxu2 %vm216_vm0, %v8061_v20  ;;  %v8193_v20 = vpack.c.bf16 %v8185_v60, %v8313_v10 }
 0x95b   : > { %v12685_v3 = vadd.f32 %v8001_v61, %v7904_v19  ;;  %10201 = vmatmul.msk.bf16.gmra.mxu3 %vm216_vm0, %v8191_v49  ;;  %v8054_v61 = vld [vmem:[#allocation2 + $0x50] sm:$0xff]  ;;  %v8323_v49 = vpack.c.bf16 %v8315_v34, %v8185_v60 }
 0x95c   : > { %10224 = vmatmul.msk.bf16.gmra.mxu0 %vm216_vm0, %v8321_v11  ;;  %v8063_v19 = vpack.c.bf16 %v8055_v36, %v8054_v61  ;;  %v8318_v36 = vld [vmem:[#allocation2 + $0x79] sm:$0xf] }
 0x95d   : > { %v7669_v24 = vpop.f32.mrf.mxu2 }
 0x95e   : > { %v7757_v63 = vpop.f32.mrf.mxu3 }
 0x95f   : > { %v7758_v51 = vadd.f32 %v7757_v63, %v7669_v24  ;;  %v8004_v39 = vpop.f32.mrf.mxu1 }
 0x961   : > { %v7876_v6 = vpop.f32.mrf.mxu0  ;;  %v7905_v7 = vadd.f32 %v7874_v30, %v7758_v51 }
 0x962   : > { %10247 = vmatmul.msk.bf16.gmra.mxu1 %vm216_vm0, %v8451_v23  ;;  %v8453_v23 = vpack.c.bf16 %v8445_v13, %v8444_v8  ;;  %v8448_v13 = vld [vmem:[#allocation2 + $0x7a] sm:$0xf] }
 0x963   : > { %v12690_v43 = vadd.f32 %v8004_v39, %v7905_v7 }
 0x965   : > { %v7671_v53 = vpop.f32.mrf.mxu2 }
 0x966   : > { %v7759_v9 = vpop.f32.mrf.mxu3 }
 0x967   : > { %v7760_v15 = vadd.f32 %v7759_v9, %v7671_v53  ;;  %v8006_v25 = vpop.f32.mrf.mxu1 }
 0x969   : > { %v7879_v48 = vpop.f32.mrf.mxu0  ;;  %v7906_v16 = vadd.f32 %v7876_v6, %v7760_v15  ;;  %v8187_v15 = vld [vmem:[#allocation2 + $0x69] sm:$0xff] }
 0x96a   : > { %10179 = vmatmul.msk.bf16.gmra.mxu2 %vm216_vm0, %v8062_v12 }
 0x96b   : > { %v12693_v47 = vadd.f32 %v8006_v25, %v7906_v16  ;;  %10202 = vmatmul.msk.bf16.gmra.mxu3 %vm216_vm0, %v8192_v38  ;;  %v8317_v25 = vld [vmem:[#allocation2 + $0x71] sm:$0xff] }
 0x96c   : > { %10225 = vmatmul.msk.bf16.gmra.mxu0 %vm216_vm0, %v8322_v4  ;;  %v8194_v4 = vpack.c.bf16 %v8187_v15, %v8315_v34  ;;  %v8058_v34 = vld [vmem:[#allocation2 + $0x70] sm:$0xf] }
 0x96d   : > { %v7674_v5 = vpop.f32.mrf.mxu2 }
 0x96e   : > { %v7762_v26 = vpop.f32.mrf.mxu3 }
 0x96f   : > { %v7763_v35 = vadd.f32 %v7762_v26, %v7674_v5  ;;  %v8009_v55 = vpop.f32.mrf.mxu1  ;;  %v8324_v5 = vpack.c.bf16 %v8317_v25, %v8187_v15 }
 0x971   : > { %v7881_v54 = vpop.f32.mrf.mxu0  ;;  %v7907_v32 = vadd.f32 %v7879_v48, %v7763_v35  ;;  %v8056_v48 = vld [vmem:[#allocation2 + $0x60] sm:$0xff] }
 0x972   : > { %10248 = vmatmul.msk.bf16.gmra.mxu1 %vm216_vm0, %v8452_v29  ;;  %v8064_v38 = vpack.c.bf16 %v8057_v21, %v8056_v48  ;;  %v8566_v48 = vld [vmem:[#allocation2 + $0x1b] sm:$0xff] }
 0x973   : > { %v12698_v33 = vadd.f32 %v8009_v55, %v7907_v32  ;;  %v8447_v55 = vld [vmem:[#allocation2 + $0x72] sm:$0xff] }
 0x975   : > { %v7676_v2 = vpop.f32.mrf.mxu2 }
 0x976   : > { %v7764_v62 = vpop.f32.mrf.mxu3 }
 0x977   : > { %v7765_v56 = vadd.f32 %v7764_v62, %v7676_v2  ;;  %v8011_v14 = vpop.f32.mrf.mxu1  ;;  %v8454_v2 = vpack.c.bf16 %v8447_v55, %v8446_v22 }
 0x979   : > { %v7884_v44 = vpop.f32.mrf.mxu0  ;;  %v7908_v30 = vadd.f32 %v7881_v54, %v7765_v56 }
 0x97a   : > { %10180 = vmatmul.msk.bf16.gmra.mxu2 %vm216_vm0, %v8063_v19 }
 0x97b   : > { %v12701_v11 = vadd.f32 %v8011_v14, %v7908_v30  ;;  %10203 = vmatmul.msk.bf16.gmra.mxu3 %vm216_vm0, %v8193_v20  ;;  %v8188_v14 = vld [vmem:[#allocation2 + $0x71] sm:$0xf]  ;;  %v8325_v30 = vpack.c.bf16 %v8318_v36, %v8318_v36 }
 0x97c   : > { %10226 = vmatmul.msk.bf16.gmra.mxu0 %vm216_vm0, %v8323_v49  ;;  %v8065_v49 = vpack.c.bf16 %v8058_v34, %v8058_v34 }
 0x97d   : > { %v7679_v24 = vpop.f32.mrf.mxu2 }
 0x97e   : > { %v7767_v63 = vpop.f32.mrf.mxu3 }
 0x97f   : > { %v7768_v51 = vadd.f32 %v7767_v63, %v7679_v24  ;;  %v8014_v39 = vpop.f32.mrf.mxu1  ;;  %v8195_v24 = vpack.c.bf16 %v8188_v14, %v8188_v14 }
 0x981   : > { %v7886_v6 = vpop.f32.mrf.mxu0  ;;  %v7909_v7 = vadd.f32 %v7884_v44, %v7768_v51 }
 0x982   : > { %10249 = vmatmul.msk.bf16.gmra.mxu1 %vm216_vm0, %v8453_v23 }
 0x983   : > { %v12706_v53 = vadd.f32 %v8014_v39, %v7909_v7 }
 0x985   : > { %v7681_v9 = vpop.f32.mrf.mxu2 }
 0x986   : > { %v7769_v40 = vpop.f32.mrf.mxu3 }
 0x987   : > { %v7770_v10 = vadd.f32 %v7769_v40, %v7681_v9  ;;  %v8016_v57 = vpop.f32.mrf.mxu1 }
 0x989   : > { %v7889_v16 = vpop.f32.mrf.mxu0  ;;  %v7910_v12 = vadd.f32 %v7886_v6, %v7770_v10  ;;  %v8455_v6 = vpack.c.bf16 %v8448_v13, %v8448_v13  ;;  %v8567_v10 = vld [vmem:[#allocation2 + $0x23] sm:$0xff] }
 0x98a   : > { %10181 = vmatmul.msk.bf16.gmra.mxu2 %vm216_vm0, %v8064_v38  ;;  %v8579_v38 = vpack.c.bf16 %v8567_v10, %v8566_v48 }
 0x98b   : > { %v12709_v26 = vadd.f32 %v8016_v57, %v7910_v12  ;;  %10204 = vmatmul.msk.bf16.gmra.mxu3 %vm216_vm0, %v8194_v4 }
 0x98c   : > { %10227 = vmatmul.msk.bf16.gmra.mxu0 %vm216_vm0, %v8324_v5 }
 0x98d   : > { %v7684_v18 = vpop.f32.mrf.mxu2 }
 0x98e   : > { %v7772_v35 = vpop.f32.mrf.mxu3 }
 0x98f   : > { %v7773_v58 = vadd.f32 %v7772_v35, %v7684_v18  ;;  %v8019_v54 = vpop.f32.mrf.mxu1 }
 0x991   : > { %v7891_v32 = vpop.f32.mrf.mxu0  ;;  %v7911_v29 = vadd.f32 %v7889_v16, %v7773_v58 }
 0x992   : > { %10250 = vmatmul.msk.bf16.gmra.mxu1 %vm216_vm0, %v8454_v2  ;;  %v8569_v2 = vld [vmem:[#allocation2 + $0x33] sm:$0xff] }
 0x993   : > { %v12714_v62 = vadd.f32 %v8019_v54, %v7911_v29 }
 0x995   : > { %v7686_v60 = vpop.f32.mrf.mxu2 }
 0x996   : > { %v7774_v56 = vpop.f32.mrf.mxu3 }
 0x997   : > { %v7775_v61 = vadd.f32 %v7774_v56, %v7686_v60  ;;  %v8021_v44 = vpop.f32.mrf.mxu1  ;;  %v8568_v60 = vld [vmem:[#allocation2 + $0x2b] sm:$0xff] }
 0x998   : > { %v8580_v34 = vpack.c.bf16 %v8569_v2, %v8568_v60 }
 0x999   : > { %v7894_v19 = vpop.f32.mrf.mxu0  ;;  %v7912_v20 = vadd.f32 %v7891_v32, %v7775_v61 }
 0x99a   : > { %10182 = vmatmul.msk.bf16.gmra.mxu2 %vm216_vm0, %v8065_v49 }
 0x99b   : > { %v12717_v63 = vadd.f32 %v8021_v44, %v7912_v20  ;;  %10205 = vmatmul.msk.bf16.gmra.mxu3 %vm216_vm0, %v8195_v24 }
 0x99c   : > { %10228 = vmatmul.msk.bf16.gmra.mxu0 %vm216_vm0, %v8325_v30 }
 0x99d   : > { %v7689_v51 = vpop.f32.mrf.mxu2 }
 0x99e   : > { %v7777_v39 = vpop.f32.mrf.mxu3 }
 0x99f   : > { %v7778_v8 = vadd.f32 %v7777_v39, %v7689_v51  ;;  %v8024_v7 = vpop.f32.mrf.mxu1  ;;  %v8571_v39 = vld [vmem:[#allocation2 + $0x43] sm:$0xff] }
 0x9a1   : > { %v7896_v23 = vpop.f32.mrf.mxu0  ;;  %v7913_v9 = vadd.f32 %v7894_v19, %v7778_v8 }
 0x9a2   : > { %10251 = vmatmul.msk.bf16.gmra.mxu1 %vm216_vm0, %v8455_v6 }
 0x9a3   : > { %v12722_v40 = vadd.f32 %v8024_v7, %v7913_v9  ;;  %v8570_v7 = vld [vmem:[#allocation2 + $0x3b] sm:$0xff] }
 0x9a5   : > { %v7691_v21 = vpop.f32.mrf.mxu2 }
 0x9a6   : > { %v7779_v15 = vpop.f32.mrf.mxu3 }
 0x9a7   : > { %v7780_v25 = vadd.f32 %v7779_v15, %v7691_v21  ;;  %v8026_v57 = vpop.f32.mrf.mxu1  ;;  %v8581_v21 = vpack.c.bf16 %v8571_v39, %v8570_v7  ;;  %v8574_v39 = vld [vmem:[#allocation2 + $0x5b] sm:$0xff] }
 0x9a9   : > { %v7899_v16 = vpop.f32.mrf.mxu0  ;;  %v7914_v12 = vadd.f32 %v7896_v23, %v7780_v25 }
 0x9aa   : > { %10268 = vmatmul.msk.bf16.vlgmr.msrb.gmra.mxu2 %vm216_vm0, %v8579_v38 }
 0x9ab   : > { %v12725_v4 = vadd.f32 %v8026_v57, %v7914_v12 }
 0x9ad   : > { %v7694_v5 = vpop.f32.mrf.mxu2 }
 0x9ae   : > { %v7782_v18 = vpop.f32.mrf.mxu3 }
 0x9af   : > { %v7783_v35 = vadd.f32 %v7782_v18, %v7694_v5  ;;  %v8029_v22 = vpop.f32.mrf.mxu1 }
 0x9b1   : > { %v7901_v55 = vpop.f32.mrf.mxu0  ;;  %v7915_v58 = vadd.f32 %v7899_v16, %v7783_v35  ;;  %v8573_v35 = vld [vmem:[#allocation2 + $0x53] sm:$0xff] }
 0x9b3   : > { %v12728_v54 = vadd.f32 %v8029_v22, %v7915_v58  ;;  %v8572_v58 = vld [vmem:[#allocation2 + $0x4b] sm:$0xff] }
 0x9b4   : > { %v8582_v2 = vpack.c.bf16 %v8573_v35, %v8572_v58 }
 0x9b5   : > { %v7696_v32 = vpop.f32.mrf.mxu2 }
 0x9b6   : > { %v7784_v29 = vpop.f32.mrf.mxu3 }
 0x9b7   : > { %v8031_v36 = vpop.f32.mrf.mxu1 }
 0x9b9   : > { %v8389_v56 = vpop.f32.mrf.mxu0 }
 0x9ba   : > { %10269 = vmatmul.msk.bf16.gmra.mxu2 %vm216_vm0, %v8580_v34 }
 0x9bd   : > { %v8129_v14 = vpop.f32.mrf.mxu2 }
 0x9be   : > { %v8259_v61 = vpop.f32.mrf.mxu3  ;;  %v8163_v44 = vadd.f32 %v8129_v14, %v12682_v27 }
 0x9bf   : > { %v8519_v30 = vpop.f32.mrf.mxu1 }
 0x9c0   : > { %v8293_v19 = vadd.f32 %v8259_v61, %v8163_v44 }
 0x9c1   : > { %v8391_v20 = vpop.f32.mrf.mxu0 }
 0x9c2   : > { %v8423_v49 = vadd.f32 %v8389_v56, %v8293_v19 }
 0x9c4   : > { %v12732_v24 = vadd.f32 %v8519_v30, %v8423_v49  ;;  %v8575_v49 = vld [vmem:[#allocation2 + $0x63] sm:$0xff] }
 0x9c5   : > { %v8131_v13 = vpop.f32.mrf.mxu2  ;;  %v8583_v7 = vpack.c.bf16 %v8575_v49, %v8574_v39 }
 0x9c6   : > { %v8261_v51 = vpop.f32.mrf.mxu3  ;;  %v8164_v8 = vadd.f32 %v8131_v13, %v12685_v3 }
 0x9c7   : > { %v8521_v6 = vpop.f32.mrf.mxu1 }
 0x9c8   : > { %v8294_v23 = vadd.f32 %v8261_v51, %v8164_v8 }
 0x9c9   : > { %v8394_v9 = vpop.f32.mrf.mxu0 }
 0x9ca   : > { %v8424_v15 = vadd.f32 %v8391_v20, %v8294_v23  ;;  %10270 = vmatmul.msk.bf16.gmra.mxu2 %vm216_vm0, %v8581_v21 }
 0x9cc   : > { %v12736_v27 = vadd.f32 %v8521_v6, %v8424_v15 }
 0x9cd   : > { %v8134_v10 = vpop.f32.mrf.mxu2 }
 0x9ce   : > { %v8264_v25 = vpop.f32.mrf.mxu3  ;;  %v8165_v57 = vadd.f32 %v8134_v10, %v12690_v43 }
 0x9cf   : > { %v8524_v48 = vpop.f32.mrf.mxu1 }
 0x9d0   : > { %v8295_v16 = vadd.f32 %v8264_v25, %v8165_v57 }
 0x9d1   : > { %v8396_v12 = vpop.f32.mrf.mxu0 }
 0x9d2   : > { %v8425_v38 = vadd.f32 %v8394_v9, %v8295_v16 }
 0x9d4   : > { %v12739_v5 = vadd.f32 %v8524_v48, %v8425_v38  ;;  %v8576_v38 = vld [vmem:[#allocation2 + $0x6b] sm:$0xff] }
 0x9d5   : > { %v8136_v3 = vpop.f32.mrf.mxu2 }
 0x9d6   : > { %v8266_v18 = vpop.f32.mrf.mxu3  ;;  %v8166_v22 = vadd.f32 %v8136_v3, %v12693_v47  ;;  %v8577_v3 = vld [vmem:[#allocation2 + $0x73] sm:$0xff] }
 0x9d7   : > { %v8526_v55 = vpop.f32.mrf.mxu1  ;;  %v8584_v58 = vpack.c.bf16 %v8577_v3, %v8576_v38 }
 0x9d8   : > { %v8296_v32 = vadd.f32 %v8266_v18, %v8166_v22 }
 0x9d9   : > { %v8399_v29 = vpop.f32.mrf.mxu0 }
 0x9da   : > { %v8426_v36 = vadd.f32 %v8396_v12, %v8296_v32  ;;  %10271 = vmatmul.msk.bf16.gmra.mxu2 %vm216_vm0, %v8582_v2 }
 0x9dc   : > { %v12743_v43 = vadd.f32 %v8526_v55, %v8426_v36 }
 0x9dd   : > { %v8139_v60 = vpop.f32.mrf.mxu2 }
 0x9de   : > { %v8269_v56 = vpop.f32.mrf.mxu3  ;;  %v8167_v34 = vadd.f32 %v8139_v60, %v12698_v33 }
 0x9df   : > { %v8529_v14 = vpop.f32.mrf.mxu1 }
 0x9e0   : > { %v8297_v61 = vadd.f32 %v8269_v56, %v8167_v34 }
 0x9e1   : > { %v8401_v44 = vpop.f32.mrf.mxu0 }
 0x9e2   : > { %v8427_v30 = vadd.f32 %v8399_v29, %v8297_v61  ;;  %v8578_v61 = vld [vmem:[#allocation2 + $0x7b] sm:$0xf] }
 0x9e4   : > { %v12746_v19 = vadd.f32 %v8529_v14, %v8427_v30 }
 0x9e5   : > { %v8141_v47 = vpop.f32.mrf.mxu2 }
 0x9e6   : > { %v8271_v20 = vpop.f32.mrf.mxu3  ;;  %v8168_v13 = vadd.f32 %v8141_v47, %v12701_v11 }
 0x9e7   : > { %v8531_v51 = vpop.f32.mrf.mxu1 }
 0x9e8   : > { %v8298_v8 = vadd.f32 %v8271_v20, %v8168_v13  ;;  %v8585_v20 = vpack.c.bf16 %v8578_v61, %v8578_v61 }
 0x9e9   : > { %v8404_v6 = vpop.f32.mrf.mxu0 }
 0x9ea   : > { %v8428_v23 = vadd.f32 %v8401_v44, %v8298_v8  ;;  %10272 = vmatmul.msk.bf16.gmra.mxu2 %vm216_vm0, %v8583_v7 }
 0x9ec   : > { %v12750_v33 = vadd.f32 %v8531_v51, %v8428_v23 }
 0x9ed   : > { %v8144_v9 = vpop.f32.mrf.mxu2 }
 0x9ee   : > { %v8274_v21 = vpop.f32.mrf.mxu3  ;;  %v8169_v15 = vadd.f32 %v8144_v9, %v12706_v53 }
 0x9ef   : > { %v8534_v10 = vpop.f32.mrf.mxu1 }
 0x9f0   : > { %v8299_v25 = vadd.f32 %v8274_v21, %v8169_v15 }
 0x9f1   : > { %v8406_v57 = vpop.f32.mrf.mxu0 }
 0x9f2   : > { %v8429_v48 = vadd.f32 %v8404_v6, %v8299_v25 }
 0x9f4   : > { %v12753_v16 = vadd.f32 %v8534_v10, %v8429_v48 }
 0x9f5   : > { %v8146_v11 = vpop.f32.mrf.mxu2 }
 0x9f6   : > { %v8276_v12 = vpop.f32.mrf.mxu3  ;;  %v8170_v18 = vadd.f32 %v8146_v11, %v12709_v26 }
 0x9f7   : > { %v8536_v35 = vpop.f32.mrf.mxu1 }
 0x9f8   : > { %v8300_v22 = vadd.f32 %v8276_v12, %v8170_v18 }
 0x9f9   : > { %v8409_v55 = vpop.f32.mrf.mxu0 }
 0x9fa   : > { %v8430_v32 = vadd.f32 %v8406_v57, %v8300_v22  ;;  %10273 = vmatmul.msk.bf16.gmra.mxu2 %vm216_vm0, %v8584_v58 }
 0x9fc   : > { %v12757_v53 = vadd.f32 %v8536_v35, %v8430_v32 }
 0x9fd   : > { %v8149_v29 = vpop.f32.mrf.mxu2 }
 0x9fe   : > { %v8279_v2 = vpop.f32.mrf.mxu3  ;;  %v8171_v36 = vadd.f32 %v8149_v29, %v12714_v62 }
 0x9ff   : > { %v8539_v60 = vpop.f32.mrf.mxu1 }
 0xa00   : > { %v8301_v56 = vadd.f32 %v8279_v2, %v8171_v36 }
 0xa01   : > { %v8411_v34 = vpop.f32.mrf.mxu0 }
 0xa02   : > { %v8431_v14 = vadd.f32 %v8409_v55, %v8301_v56 }
 0xa04   : > { %v12760_v44 = vadd.f32 %v8539_v60, %v8431_v14  ;;  %v12778_v60 = vld [vmem:[%s12857_s2 + $0x6] ss:$0 sm:$0xff] }
 0xa05   : > { %v8151_v26 = vpop.f32.mrf.mxu2 }
 0xa06   : > { %v8281_v30 = vpop.f32.mrf.mxu3  ;;  %v8172_v47 = vadd.f32 %v8151_v26, %v12717_v63 }
 0xa07   : > { %v8541_v49 = vpop.f32.mrf.mxu1 }
 0xa08   : > { %v8302_v13 = vadd.f32 %v8281_v30, %v8172_v47 }
 0xa09   : > { %v8414_v51 = vpop.f32.mrf.mxu0 }
 0xa0a   : > { %v8432_v39 = vadd.f32 %v8411_v34, %v8302_v13  ;;  %10274 = vmatmul.msk.bf16.gmra.mxu2 %vm216_vm0, %v8585_v20 }
 0xa0c   : > { %v12764_v8 = vadd.f32 %v8541_v49, %v8432_v39 }
 0xa0d   : > { %v8154_v62 = vpop.f32.mrf.mxu2 }
 0xa0e   : > { %v8284_v6 = vpop.f32.mrf.mxu3  ;;  %v8173_v7 = vadd.f32 %v8154_v62, %v12722_v40 }
 0xa0f   : > { %v8544_v23 = vpop.f32.mrf.mxu1 }
 0xa10   : > { %v8303_v9 = vadd.f32 %v8284_v6, %v8173_v7 }
 0xa11   : > { %v8416_v21 = vpop.f32.mrf.mxu0 }
 0xa12   : > { %v8433_v15 = vadd.f32 %v8414_v51, %v8303_v9 }
 0xa14   : > { %v12767_v10 = vadd.f32 %v8544_v23, %v8433_v15 }
 0xa15   : > { %v8156_v63 = vpop.f32.mrf.mxu2 }
 0xa16   : > { %v8286_v25 = vpop.f32.mrf.mxu3  ;;  %v8174_v57 = vadd.f32 %v8156_v63, %v12725_v4 }
 0xa17   : > { %v8546_v48 = vpop.f32.mrf.mxu1 }
 0xa18   : > { %v8304_v11 = vadd.f32 %v8286_v25, %v8174_v57 }
 0xa19   : > { %v8419_v12 = vpop.f32.mrf.mxu0 }
 0xa1a   : > { %v8434_v38 = vadd.f32 %v8416_v21, %v8304_v11 }
 0xa1c   : > { %v12770_v3 = vadd.f32 %v8546_v48, %v8434_v38 }
 0xa1d   : > { %v8159_v18 = vpop.f32.mrf.mxu2 }
 0xa1e   : > { %v8289_v35 = vpop.f32.mrf.mxu3  ;;  %v8175_v40 = vadd.f32 %v8159_v18, %v12728_v54 }
 0xa1f   : > { %v8549_v22 = vpop.f32.mrf.mxu1 }
 0xa20   : > { %v8305_v55 = vadd.f32 %v8289_v35, %v8175_v40 }
 0xa21   : > { %v8421_v58 = vpop.f32.mrf.mxu0 }
 0xa22   : > { %v8435_v32 = vadd.f32 %v8419_v12, %v8305_v55 }
 0xa24   : > { %v12773_v29 = vadd.f32 %v8549_v22, %v8435_v32 }
 0xa25   : > { %v8161_v2 = vpop.f32.mrf.mxu2 }
 0xa26   : > { %v8291_v36 = vpop.f32.mrf.mxu3 }
 0xa27   : > { %v8551_v4 = vpop.f32.mrf.mxu1 }
 0xa2d   : > { %v8649_v56 = vpop.f32.mrf.mxu2 }
 0xa2e   : > { %v8683_v34 = vadd.f32 %v8649_v56, %v12732_v24 }
 0xa30   : > { %v8698_v54 = vadd.f32 %v12778_v60, %v8683_v34 }
 0xa32   : > { %v8711_v14 = vmul.f32 %v8698_v54, %v11041_v37 }
 0xa34   : > { %10575 = vtanh.f32 %v8711_v14 }
 0xa35   : > { %v8651_v61 = vpop.f32.mrf.mxu2 }
 0xa36   : > { %v8684_v26 = vadd.f32 %v8651_v61, %v12736_v27 }
 0xa38   : > { %v8699_v30 = vadd.f32 %v12778_v60, %v8684_v26 }
 0xa3a   : > { %v10576_v47 = vpop.eup %10575  ;;  %v8712_v24 = vmul.f32 %v8699_v30, %v11053_v42 }
 0xa3b   : > { %8737 = vst.msk [vmem:[%s12789_s23] sm:$0xff] %vm216_vm0, %v10576_v47 }
 0xa3c   : > { %10577 = vtanh.f32 %v8712_v24 }
 0xa3d   : > { %v8654_v37 = vpop.f32.mrf.mxu2 }
 0xa3e   : > { %v8685_v27 = vadd.f32 %v8654_v37, %v12739_v5 }
 0xa40   : > { %v8700_v20 = vadd.f32 %v12778_v60, %v8685_v27 }
 0xa42   : > { %v10578_v49 = vpop.eup %10577  ;;  %v8713_v13 = vmul.f32 %v8700_v20, %v11067_v45 }
 0xa43   : > { %8738 = vst.msk [vmem:[%s12789_s23 + $0x8] sm:$0xff] %vm216_vm0, %v10578_v49 }
 0xa44   : > { %10579 = vtanh.f32 %v8713_v13 }
 0xa45   : > { %v8656_v51 = vpop.f32.mrf.mxu2 }
 0xa46   : > { %v8686_v39 = vadd.f32 %v8656_v51, %v12743_v43 }
 0xa48   : > { %v8701_v42 = vadd.f32 %v12778_v60, %v8686_v39 }
 0xa4a   : > { %v10580_v62 = vpop.eup %10579  ;;  %v8714_v6 = vmul.f32 %v8701_v42, %v11086_v52 }
 0xa4b   : > { %8739 = vst.msk [vmem:[%s12789_s23 + $0x10] sm:$0xff] %vm216_vm0, %v10580_v62 }
 0xa4c   : > { %10581 = vtanh.f32 %v8714_v6 }
 0xa4d   : > { %v8659_v5 = vpop.f32.mrf.mxu2 }
 0xa4e   : > { %v8687_v7 = vadd.f32 %v8659_v5, %v12746_v19 }
 0xa50   : > { %v8702_v45 = vadd.f32 %v12778_v60, %v8687_v7 }
 0xa52   : > { %v10582_v23 = vpop.eup %10581  ;;  %v8715_v9 = vmul.f32 %v8702_v45, %v11099_v0 }
 0xa53   : > { %8740 = vst.msk [vmem:[%s12789_s23 + $0x18] sm:$0xff] %vm216_vm0, %v10582_v23 }
 0xa54   : > { %10583 = vtanh.f32 %v8715_v9 }
 0xa55   : > { %v8661_v43 = vpop.f32.mrf.mxu2 }
 0xa56   : > { %v8688_v21 = vadd.f32 %v8661_v43, %v12750_v33 }
 0xa58   : > { %v8703_v52 = vadd.f32 %v12778_v60, %v8688_v21 }
 0xa5a   : > { %v10584_v15 = vpop.eup %10583  ;;  %v8716_v63 = vmul.f32 %v8703_v52, %v11118_v17 }
 0xa5b   : > { %8741 = vst.msk [vmem:[%s12789_s23 + $0x20] sm:$0xff] %vm216_vm0, %v10584_v15 }
 0xa5c   : > { %10585 = vtanh.f32 %v8716_v63 }
 0xa5d   : > { %v8664_v19 = vpop.f32.mrf.mxu2 }
 0xa5e   : > { %v8689_v25 = vadd.f32 %v8664_v19, %v12753_v16 }
 0xa60   : > { %v8704_v0 = vadd.f32 %v12778_v60, %v8689_v25 }
 0xa62   : > { %v10586_v57 = vpop.eup %10585  ;;  %v8717_v48 = vmul.f32 %v8704_v0, %v11137_v28 }
 0xa63   : > { %8742 = vst.msk [vmem:[%s12789_s23 + $0x28] sm:$0xff] %vm216_vm0, %v10586_v57 }
 0xa64   : > { %10587 = vtanh.f32 %v8717_v48 }
 0xa65   : > { %v8666_v33 = vpop.f32.mrf.mxu2 }
 0xa66   : > { %v8690_v11 = vadd.f32 %v8666_v33, %v12757_v53 }
 0xa68   : > { %v8705_v17 = vadd.f32 %v12778_v60, %v8690_v11 }
 0xa6a   : > { %v10588_v12 = vpop.eup %10587  ;;  %v8718_v38 = vmul.f32 %v8705_v17, %v11152_v46 }
 0xa6b   : > { %8743 = vst.msk [vmem:[%s12789_s23 + $0x30] sm:$0xff] %vm216_vm0, %v10588_v12 }
 0xa6c   : > { %10589 = vtanh.f32 %v8718_v38 }
 0xa6d   : > { %v8669_v16 = vpop.f32.mrf.mxu2 }
 0xa6e   : > { %v8691_v18 = vadd.f32 %v8669_v16, %v12760_v44 }
 0xa70   : > { %v8706_v28 = vadd.f32 %v12778_v60, %v8691_v18 }
 0xa72   : > { %v10590_v35 = vpop.eup %10589  ;;  %v8719_v40 = vmul.f32 %v8706_v28, %v13040_v31 }
 0xa73   : > { %8744 = vst.msk [vmem:[%s12789_s23 + $0x38] sm:$0xff] %vm216_vm0, %v10590_v35 }
 0xa74   : > { %10591 = vtanh.f32 %v8719_v40 }
 0xa75   : > { %v8671_v53 = vpop.f32.mrf.mxu2 }
 0xa76   : > { %v8692_v22 = vadd.f32 %v8671_v53, %v12764_v8 }
 0xa78   : > { %v8707_v46 = vadd.f32 %v12778_v60, %v8692_v22 }
 0xa7a   : > { %v10592_v55 = vpop.eup %10591  ;;  %v8720_v58 = vmul.f32 %v8707_v46, %v13045_v50 }
 0xa7b   : > { %8745 = vst.msk [vmem:[%s12789_s23 + $0x40] sm:$0xff] %vm216_vm0, %v10592_v55 }
 0xa7c   : > { %10593 = vtanh.f32 %v8720_v58 }
 0xa7d   : > { %v8674_v44 = vpop.f32.mrf.mxu2 }
 0xa7e   : > { %v8693_v32 = vadd.f32 %v8674_v44, %v12767_v10 }
 0xa80   : > { %v8708_v31 = vadd.f32 %v12778_v60, %v8693_v32 }
 0xa82   : > { %v10594_v2 = vpop.eup %10593  ;;  %v8721_v36 = vmul.f32 %v8708_v31, %v13050_v41 }
 0xa83   : > { %8746 = vst.msk [vmem:[%s12789_s23 + $0x48] sm:$0xff] %vm216_vm0, %v10594_v2 }
 0xa84   : > { %10595 = vtanh.f32 %v8721_v36 }
 0xa85   : > { %v8676_v8 = vpop.f32.mrf.mxu2 }
 0xa86   : > { %v8694_v4 = vadd.f32 %v8676_v8, %v12770_v3 }
 0xa88   : > { %v8709_v50 = vadd.f32 %v12778_v60, %v8694_v4 }
 0xa8a   : > { %v10596_v56 = vpop.eup %10595  ;;  %v8722_v34 = vmul.f32 %v8709_v50, %v13053_v59 }
 0xa8b   : > { %8747 = vst.msk [vmem:[%s12789_s23 + $0x50] sm:$0xff] %vm216_vm0, %v10596_v56 }
 0xa8c   : > { %10597 = vtanh.f32 %v8722_v34 }
 0xa8d   : > { %v8679_v10 = vpop.f32.mrf.mxu2 }
 0xa8e   : > { %v8695_v54 = vadd.f32 %v8679_v10, %v12773_v29 }
 0xa90   : > { %v8710_v41 = vadd.f32 %v12778_v60, %v8695_v54 }
 0xa92   : > { %v10598_v14 = vpop.eup %10597  ;;  %v8723_v61 = vmul.f32 %v8710_v41, %v13055_v1 }
 0xa93   : > { %8748 = vst.msk [vmem:[%s12789_s23 + $0x58] sm:$0xff] %vm216_vm0, %v10598_v14 }
 0xa94   : > { %10599 = vtanh.f32 %v8723_v61 }
 0xa95   : > { %v8681_v3 = vpop.f32.mrf.mxu2 }
 0xa9a   : > { %v10600_v26 = vpop.eup %10599 }
 0xa9b   : > { %8749 = vst.msk [vmem:[%s12789_s23 + $0x60] sm:$0xf] %vm233_vm1, %v10600_v26 }
 0xa9c PF: > { %s15_s15 = sadd.s32 1, %s10641_s15  }
 0xa9d   : > { %p12_p7 = scmp.ge.s32.totalorder %s15_s15, 4  }
 0xa9f   :  { %14 = sbr.rel (!%p12_p7) target bundleno = 1 (0x1), region = 133 }
 0xaa4   :  { %8771 = vsyncpa [#allocation4], 1 }
 0xaa5   :  { %8773 = vsyncpa [#allocation4 + $0x1], 1 }

</bundles_post_ra>
